<compile_context>
chip_gen: v6e
topology: v6e:2x2x1
jax: 0.10.0
libtpu: 0.0.40
codegen_flags: <defaults>
</compile_context>

<pallas_src>
import functools
import math

import jax
import jax.numpy as jnp
from jax import lax
from jax.experimental import pallas as pl
from jax.experimental.pallas import tpu as pltpu

# ----------------------------- small demo config -----------------------------
INPUT_DIM = 32                 # embed_dim (divisible by 8 heads)
NUM_HEADS = 8
HEAD_DIM = INPUT_DIM // NUM_HEADS
OUT_CHANNELS = 16              # configs.projector.out_channels
KERNEL_SIZES = (3, 5)          # configs.projector.kernel_sizes
N_CONVS = len(KERNEL_SIZES)
CONV_FEATS = OUT_CHANNELS * N_CONVS
INNER_DIM = 64                 # configs.projector.inner_linear_dim
OUTPUT_DIM = 8                 # configs.projector.output_dim
NUM_TASK_TOKENS = 500          # hard-coded split index in the PyTorch forward
BN_EPS = 1e-5


# ============================ fused MHA kernel ================================
def _mha_kernel(x_seq_ref, x_task_ref, wq_ref, wk_ref, wv_ref,
                bq_ref, bk_ref, bv_ref, wo_ref, bo_ref, o_ref,
                *, num_heads, head_dim):
    xq = x_seq_ref[0]                       # (Sq, D)
    xkv = x_task_ref[0]                     # (Skv, D)
    q = jnp.dot(xq, wq_ref[...], preferred_element_type=jnp.float32) + bq_ref[0]
    k = jnp.dot(xkv, wk_ref[...], preferred_element_type=jnp.float32) + bk_ref[0]
    v = jnp.dot(xkv, wv_ref[...], preferred_element_type=jnp.float32) + bv_ref[0]
    wo = wo_ref[...]                        # (D, D)
    scale = 1.0 / math.sqrt(head_dim)
    sq = xq.shape[0]
    d = wo.shape[1]
    acc = jnp.zeros((sq, d), jnp.float32)
    for h in range(num_heads):              # static loop over heads
        sl = slice(h * head_dim, (h + 1) * head_dim)
        qh = q[:, sl] * scale
        kh = k[:, sl]
        vh = v[:, sl]
        logits = lax.dot_general(qh, kh, (((1,), (1,)), ((), ())),
                                 preferred_element_type=jnp.float32)   # (Sq, Skv)
        logits = logits - jnp.max(logits, axis=-1, keepdims=True)
        probs = jnp.exp(logits)
        probs = probs / jnp.sum(probs, axis=-1, keepdims=True)
        ctx = jnp.dot(probs, vh, preferred_element_type=jnp.float32)   # (Sq, dh)
        # output projection fused per head -> avoids lane-dim concat of heads
        acc = acc + jnp.dot(ctx, wo[sl, :], preferred_element_type=jnp.float32)
    acc = acc + bo_ref[0]
    o_ref[0] = acc.astype(o_ref.dtype)


def mha_forward(x_seq, x_task, p):
    B, Sq, D = x_seq.shape
    Skv = x_task.shape[1]
    kernel = functools.partial(_mha_kernel, num_heads=NUM_HEADS, head_dim=HEAD_DIM)

    def full(shape):
        return pl.BlockSpec(shape, lambda b: (0,) * len(shape))

    return pl.pallas_call(
        kernel,
        out_shape=jax.ShapeDtypeStruct((B, Sq, D), x_seq.dtype),
        grid_spec=pltpu.PrefetchScalarGridSpec(
            num_scalar_prefetch=0,
            grid=(B,),
            in_specs=[
                pl.BlockSpec((1, Sq, D), lambda b: (b, 0, 0)),
                pl.BlockSpec((1, Skv, D), lambda b: (b, 0, 0)),
                full((D, D)), full((D, D)), full((D, D)),
                full((1, D)), full((1, D)), full((1, D)),
                full((D, D)), full((1, D)),
            ],
            out_specs=pl.BlockSpec((1, Sq, D), lambda b: (b, 0, 0)),
        ),
        compiler_params=pltpu.CompilerParams(dimension_semantics=("parallel",)),
    )(x_seq, x_task,
      p["wq_t"], p["wk_t"], p["wv_t"],
      p["bq"], p["bk"], p["bv"],
      p["wo_t"], p["bo"])


# =============== fused multi-kernel-size Conv1d + BN + ReLU ===================
def _conv_bn_relu_kernel(*refs, kernel_sizes, offsets, seq_len, out_channels):
    n = len(kernel_sizes)
    x_ref = refs[0]
    wt_refs = refs[1:1 + n]
    scale_ref = refs[1 + n]
    shift_ref = refs[2 + n]
    o_ref = refs[3 + n]
    x = x_ref[0]                                         # (S_pad, Cin), channels-last
    for i, ks in enumerate(kernel_sizes):
        wt = wt_refs[i][...]                             # (ks, Cin, Cout)
        acc = jnp.zeros((seq_len, out_channels), jnp.float32)
        for k in range(ks):                              # static tap loop
            start = offsets[i] + k
            xs = x[start:start + seq_len, :]             # (S, Cin)
            acc = acc + jnp.dot(xs, wt[k], preferred_element_type=jnp.float32)
        lo, hi = i * out_channels, (i + 1) * out_channels
        # conv bias + BatchNorm (eval, running stats) folded into scale/shift
        y = acc * scale_ref[0, lo:hi] + shift_ref[0, lo:hi]
        y = jnp.maximum(y, 0.0)                          # ReLU fused
        o_ref[0, :, lo:hi] = y.astype(o_ref.dtype)


def conv_bn_relu_forward(x, conv_wts, eff_scale, eff_shift, kernel_sizes, out_channels):
    # x: (B, S, Cin) channels-last
    B, S, Cin = x.shape
    n = len(kernel_sizes)
    # torch padding='same' rule: left = (k-1)//2, right = (k-1) - left
    lefts = [(k - 1) // 2 for k in kernel_sizes]
    rights = [(k - 1) - l for k, l in zip(kernel_sizes, lefts)]
    max_left, max_right = max(lefts), max(rights)
    x_pad = jnp.pad(x, ((0, 0), (max_left, max_right), (0, 0)))
    offsets = tuple(max_left - l for l in lefts)
    s_pad = S + max_left + max_right
    f_out = out_channels * n

    kernel = functools.partial(
        _conv_bn_relu_kernel,
        kernel_sizes=tuple(kernel_sizes), offsets=offsets,
        seq_len=S, out_channels=out_channels)

    in_specs = [pl.BlockSpec((1, s_pad, Cin), lambda b: (b, 0, 0))]
    for ks in kernel_sizes:
        in_specs.append(pl.BlockSpec((ks, Cin, out_channels), lambda b: (0, 0, 0)))
    in_specs += [pl.BlockSpec((1, f_out), lambda b: (0, 0)),
                 pl.BlockSpec((1, f_out), lambda b: (0, 0))]

    return pl.pallas_call(
        kernel,
        out_shape=jax.ShapeDtypeStruct((B, S, f_out), x.dtype),
        grid_spec=pltpu.PrefetchScalarGridSpec(
            num_scalar_prefetch=0,
            grid=(B,),
            in_specs=in_specs,
            out_specs=pl.BlockSpec((1, S, f_out), lambda b: (b, 0, 0)),
        ),
        compiler_params=pltpu.CompilerParams(dimension_semantics=("parallel",)),
    )(x_pad, *conv_wts, eff_scale, eff_shift)


# ===================== fused Linear (+BN) (+ReLU) kernel ======================
def _linear_kernel(x_ref, wt_ref, scale_ref, shift_ref, o_ref, *, relu):
    y = jnp.dot(x_ref[...], wt_ref[...], preferred_element_type=jnp.float32)
    y = y * scale_ref[0] + shift_ref[0]
    if relu:
        y = jnp.maximum(y, 0.0)
    o_ref[...] = y.astype(o_ref.dtype)


def linear_forward(x, wt, eff_scale, eff_shift, *, relu):
    M, K = x.shape
    N = wt.shape[1]
    bm = M if M <= 512 else 256        # row tile; partial edge blocks are masked
    grid_m = pl.cdiv(M, bm)
    kernel = functools.partial(_linear_kernel, relu=relu)
    return pl.pallas_call(
        kernel,
        out_shape=jax.ShapeDtypeStruct((M, N), x.dtype),
        grid_spec=pltpu.PrefetchScalarGridSpec(
            num_scalar_prefetch=0,
            grid=(grid_m,),
            in_specs=[pl.BlockSpec((bm, K), lambda i: (i, 0)),
                      pl.BlockSpec((K, N), lambda i: (0, 0)),
                      pl.BlockSpec((1, N), lambda i: (0, 0)),
                      pl.BlockSpec((1, N), lambda i: (0, 0))],
            out_specs=pl.BlockSpec((bm, N), lambda i: (i, 0)),
        ),
        compiler_params=pltpu.CompilerParams(dimension_semantics=("parallel",)),
    )(x, wt, eff_scale, eff_shift)


# ============================== full forward ==================================
def esm_head_forward(features, params):
    B, L, D = features.shape
    assert L > NUM_TASK_TOKENS, "sequence length must exceed the 500 task tokens"
    x_task = features[:, :NUM_TASK_TOKENS, :]
    x_seq = features[:, NUM_TASK_TOKENS:, :]

    attn = mha_forward(x_seq, x_task, params["mha"])              # (B, Sq, D)

    # torch permutes to (B, D, S) for Conv1d; we keep channels-last so the
    # final permute back is a no-op and all matmuls are lane-dense on channels.
    h1 = conv_bn_relu_forward(attn, params["conv1"]["wts"],
                              params["conv1"]["eff_scale"], params["conv1"]["eff_shift"],
                              KERNEL_SIZES, OUT_CHANNELS)         # (B, Sq, F)
    # TODO(synk): nn.Dropout(p=droprate) is identity in eval mode; train-mode RNG
    # masking (pltpu.prng_random_bits) not implemented.
    h2 = conv_bn_relu_forward(h1, params["conv2"]["wts"],
                              params["conv2"]["eff_scale"], params["conv2"]["eff_shift"],
                              KERNEL_SIZES, OUT_CHANNELS)         # (B, Sq, F)

    Bq, Sq, Fd = h2.shape
    flat = h2.reshape(Bq * Sq, Fd)
    hidden = linear_forward(flat, params["mlp"]["w1_t"],
                            params["mlp"]["eff_scale1"], params["mlp"]["eff_shift1"],
                            relu=True)                            # (B*Sq, inner)
    out = linear_forward(hidden, params["mlp"]["w2_t"],
                         params["mlp"]["scale2"], params["mlp"]["shift2"],
                         relu=False)                              # (B*Sq, out_dim)
    # MoBYMLP returns (reshaped output, hidden activations)
    return out.reshape(Bq, Sq, -1), hidden


# ============================ parameter setup =================================
def init_params(key):
    keys = list(jax.random.split(key, 64))
    it = iter(keys)

    def normal(shape, scale=0.1):
        return scale * jax.random.normal(next(it), shape, dtype=jnp.float32)

    def uniform(shape, lo=0.5, hi=1.5):
        return jax.random.uniform(next(it), shape, jnp.float32, lo, hi)

    D, C, F, H = INPUT_DIM, OUT_CHANNELS, CONV_FEATS, INNER_DIM

    raw = {
        "mha": {"wq": normal((D, D)), "wk": normal((D, D)), "wv": normal((D, D)),
                "bq": normal((D,)), "bk": normal((D,)), "bv": normal((D,)),
                "wo": normal((D, D)), "bo": normal((D,))},
        "conv1": [(normal((C, D, k)), normal((C,))) for k in KERNEL_SIZES],
        "bn1": (uniform((F,)), normal((F,)), normal((F,)), uniform((F,))),
        "conv2": [(normal((C, F, k)), normal((C,))) for k in KERNEL_SIZES],
        "bn2": (uniform((F,)), normal((F,)), normal((F,)), uniform((F,))),
        "mlp_w1": normal((H, F)), "mlp_b1": normal((H,)),
        "mlp_bn": (uniform((H,)), normal((H,)), normal((H,)), uniform((H,))),
        "mlp_w2": normal((OUTPUT_DIM, H)), "mlp_b2": normal((OUTPUT_DIM,)),
    }

    def fold_bn(bias, gamma, beta, mean, var):
        s = gamma / jnp.sqrt(var + BN_EPS)
        t = beta + (bias - mean) * s
        return s[None, :], t[None, :]

    b1 = jnp.concatenate([b for _, b in raw["conv1"]])
    s1, t1 = fold_bn(b1, *raw["bn1"])
    b2 = jnp.concatenate([b for _, b in raw["conv2"]])
    s2, t2 = fold_bn(b2, *raw["bn2"])
    sm, tm = fold_bn(raw["mlp_b1"], *raw["mlp_bn"])

    params = {
        "mha": {"wq_t": raw["mha"]["wq"].T, "wk_t": raw["mha"]["wk"].T,
                "wv_t": raw["mha"]["wv"].T,
                "bq": raw["mha"]["bq"][None, :], "bk": raw["mha"]["bk"][None, :],
                "bv": raw["mha"]["bv"][None, :],
                "wo_t": raw["mha"]["wo"].T, "bo": raw["mha"]["bo"][None, :]},
        "conv1": {"wts": [jnp.transpose(w, (2, 1, 0)) for w, _ in raw["conv1"]],
                  "eff_scale": s1, "eff_shift": t1},
        "conv2": {"wts": [jnp.transpose(w, (2, 1, 0)) for w, _ in raw["conv2"]],
                  "eff_scale": s2, "eff_shift": t2},
        "mlp": {"w1_t": raw["mlp_w1"].T, "eff_scale1": sm, "eff_shift1": tm,
                "w2_t": raw["mlp_w2"].T,
                "scale2": jnp.ones((1, OUTPUT_DIM), jnp.float32),
                "shift2": raw["mlp_b2"][None, :]},
    }
    return raw, params


# ========================= pure-JAX reference (eval) ==========================
def _ref_mha(x_seq, x_task, p):
    B, Sq, D = x_seq.shape
    Skv = x_task.shape[1]
    dh = D // NUM_HEADS
    q = x_seq @ p["wq"].T + p["bq"]
    k = x_task @ p["wk"].T + p["bk"]
    v = x_task @ p["wv"].T + p["bv"]
    q = q.reshape(B, Sq, NUM_HEADS, dh).transpose(0, 2, 1, 3)
    k = k.reshape(B, Skv, NUM_HEADS, dh).transpose(0, 2, 1, 3)
    v = v.reshape(B, Skv, NUM_HEADS, dh).transpose(0, 2, 1, 3)
    logits = jnp.einsum("bhqd,bhkd->bhqk", q, k) / math.sqrt(dh)
    probs = jax.nn.softmax(logits, axis=-1)
    ctx = jnp.einsum("bhqk,bhkd->bhqd", probs, v)
    ctx = ctx.transpose(0, 2, 1, 3).reshape(B, Sq, D)
    return ctx @ p["wo"].T + p["bo"]


def _ref_conv1d_same(x_ncs, w, b, k):
    total = k - 1
    left = total // 2
    y = lax.conv_general_dilated(x_ncs, w, window_strides=(1,),
                                 padding=[(left, total - left)],
                                 dimension_numbers=("NCH", "OIH", "NCH"))
    return y + b[None, :, None]


def _ref_bn_ncs(x, gamma, beta, mean, var):
    inv = gamma / jnp.sqrt(var + BN_EPS)
    return (x - mean[None, :, None]) * inv[None, :, None] + beta[None, :, None]


def reference_forward(features, raw):
    x_task = features[:, :NUM_TASK_TOKENS, :]
    x_seq = features[:, NUM_TASK_TOKENS:, :]
    attn = _ref_mha(x_seq, x_task, raw["mha"])
    x = attn.transpose(0, 2, 1)
    x = jnp.concatenate([_ref_conv1d_same(x, w, b, k)
                         for (w, b), k in zip(raw["conv1"], KERNEL_SIZES)], axis=1)
    x = jnp.maximum(_ref_bn_ncs(x, *raw["bn1"]), 0.0)
    x = jnp.concatenate([_ref_conv1d_same(x, w, b, k)
                         for (w, b), k in zip(raw["conv2"], KERNEL_SIZES)], axis=1)
    x = jnp.maximum(_ref_bn_ncs(x, *raw["bn2"]), 0.0)
    x = x.transpose(0, 2, 1)
    B, S, Fd = x.shape
    flat = x.reshape(B * S, Fd)
    h = flat @ raw["mlp_w1"].T + raw["mlp_b1"]
    g, be, m, v = raw["mlp_bn"]
    h = (h - m) * (g / jnp.sqrt(v + BN_EPS)) + be
    h = jnp.maximum(h, 0.0)
    out = h @ raw["mlp_w2"].T + raw["mlp_b2"]
    return out.reshape(B, S, -1), h


# ==================================== main ====================================
if __name__ == "__main__":
    key = jax.random.PRNGKey(0)
    k_feat, k_params = jax.random.split(key)

    B, SEQ = 2, 8
    L = NUM_TASK_TOKENS + SEQ                      # forward hard-codes the 500 split
    features = jax.random.normal(k_feat, (B, L, INPUT_DIM), dtype=jnp.float32)

    raw, params = init_params(k_params)

    out, hidden = esm_head_forward(features, params)
    out = jax.block_until_ready(out)
    hidden = jax.block_until_ready(hidden)

    ref_out, ref_hidden = reference_forward(features, raw)

    assert out.shape == (B, SEQ, OUTPUT_DIM), out.shape
    assert hidden.shape == (B * SEQ, INNER_DIM), hidden.shape
    assert jnp.allclose(out, ref_out, atol=1e-4, rtol=1e-3), (
        "output mismatch, max abs diff = %e" % float(jnp.max(jnp.abs(out - ref_out))))
    assert jnp.allclose(hidden, ref_hidden, atol=1e-4, rtol=1e-3), (
        "hidden mismatch, max abs diff = %e" % float(jnp.max(jnp.abs(hidden - ref_hidden))))

    print("KERNEL_OK")
</pallas_src>

<mosaic_0001>
module attributes {stable_mosaic.version = 11 : i64} {
  func.func @_mha_kernel(%arg0: i32, %arg1: memref<1x8x32xf32, #tpu.memory_space<vmem>>, %arg2: memref<1x500x32xf32, #tpu.memory_space<vmem>>, %arg3: memref<32x32xf32, #tpu.memory_space<vmem>>, %arg4: memref<32x32xf32, #tpu.memory_space<vmem>>, %arg5: memref<32x32xf32, #tpu.memory_space<vmem>>, %arg6: memref<1x32xf32, #tpu.memory_space<vmem>>, %arg7: memref<1x32xf32, #tpu.memory_space<vmem>>, %arg8: memref<1x32xf32, #tpu.memory_space<vmem>>, %arg9: memref<32x32xf32, #tpu.memory_space<vmem>>, %arg10: memref<1x32xf32, #tpu.memory_space<vmem>>, %arg11: memref<1x8x32xf32, #tpu.memory_space<vmem>>) attributes {dimension_semantics = [#tpu.dimension_semantics<parallel>], iteration_bounds = array<i64: 2>, scalar_prefetch = 0 : i64, scratch_operands = 0 : i64, tpu.core_type = #tpu.core_type<tc>, window_params = [{transform_indices = @transform_0, window_bounds = array<i64: 1, 8, 32>}, {transform_indices = @transform_1, window_bounds = array<i64: 1, 500, 32>}, {pipeline_mode = #tpu.pipeline_mode<synchronous>, transform_indices = @transform_2, window_bounds = array<i64: 32, 32>}, {pipeline_mode = #tpu.pipeline_mode<synchronous>, transform_indices = @transform_3, window_bounds = array<i64: 32, 32>}, {pipeline_mode = #tpu.pipeline_mode<synchronous>, transform_indices = @transform_4, window_bounds = array<i64: 32, 32>}, {pipeline_mode = #tpu.pipeline_mode<synchronous>, transform_indices = @transform_5, window_bounds = array<i64: 1, 32>}, {pipeline_mode = #tpu.pipeline_mode<synchronous>, transform_indices = @transform_6, window_bounds = array<i64: 1, 32>}, {pipeline_mode = #tpu.pipeline_mode<synchronous>, transform_indices = @transform_7, window_bounds = array<i64: 1, 32>}, {pipeline_mode = #tpu.pipeline_mode<synchronous>, transform_indices = @transform_8, window_bounds = array<i64: 32, 32>}, {pipeline_mode = #tpu.pipeline_mode<synchronous>, transform_indices = @transform_9, window_bounds = array<i64: 1, 32>}, {transform_indices = @transform_10, window_bounds = array<i64: 1, 8, 32>}]} {
    %c0 = arith.constant 0 : index
    %c0_0 = arith.constant 0 : index
    %c0_1 = arith.constant 0 : index
    %0 = vector.load %arg1[%c0, %c0_0, %c0_1] : memref<1x8x32xf32, #tpu.memory_space<vmem>>, vector<1x8x32xf32>
    %1 = vector.shape_cast %0 : vector<1x8x32xf32> to vector<8x32xf32>
    %c0_2 = arith.constant 0 : index
    %c0_3 = arith.constant 0 : index
    %c0_4 = arith.constant 0 : index
    %2 = vector.load %arg2[%c0_2, %c0_3, %c0_4] : memref<1x500x32xf32, #tpu.memory_space<vmem>>, vector<1x500x32xf32>
    %3 = vector.shape_cast %2 : vector<1x500x32xf32> to vector<500x32xf32>
    %c0_5 = arith.constant 0 : index
    %c0_6 = arith.constant 0 : index
    %4 = vector.load %arg3[%c0_5, %c0_6] : memref<32x32xf32, #tpu.memory_space<vmem>>, vector<32x32xf32>
    %cst = arith.constant dense<0.000000e+00> : vector<8x32xf32>
    %5 = tpu.matmul %1, %4, %cst {dimension_numbers = #tpu.dot_dimension_numbers<[1], [0], [0], [1], [0, 0, 1, 1], [], []>} : vector<8x32xf32>, vector<32x32xf32>, vector<8x32xf32> -> vector<8x32xf32>
    %c0_7 = arith.constant 0 : index
    %c0_8 = arith.constant 0 : index
    %6 = vector.load %arg6[%c0_7, %c0_8] : memref<1x32xf32, #tpu.memory_space<vmem>>, vector<1x32xf32>
    %7 = vector.shape_cast %6 : vector<1x32xf32> to vector<32xf32>
    %8 = vector.shape_cast %7 : vector<32xf32> to vector<1x32xf32>
    %9 = vector.broadcast %8 : vector<1x32xf32> to vector<8x32xf32>
    %10 = arith.addf %5, %9 : vector<8x32xf32>
    %c0_9 = arith.constant 0 : index
    %c0_10 = arith.constant 0 : index
    %11 = vector.load %arg4[%c0_9, %c0_10] : memref<32x32xf32, #tpu.memory_space<vmem>>, vector<32x32xf32>
    %cst_11 = arith.constant dense<0.000000e+00> : vector<500x32xf32>
    %12 = tpu.matmul %3, %11, %cst_11 {dimension_numbers = #tpu.dot_dimension_numbers<[1], [0], [0], [1], [0, 0, 1, 1], [], []>} : vector<500x32xf32>, vector<32x32xf32>, vector<500x32xf32> -> vector<500x32xf32>
    %c0_12 = arith.constant 0 : index
    %c0_13 = arith.constant 0 : index
    %13 = vector.load %arg7[%c0_12, %c0_13] : memref<1x32xf32, #tpu.memory_space<vmem>>, vector<1x32xf32>
    %14 = vector.shape_cast %13 : vector<1x32xf32> to vector<32xf32>
    %15 = vector.shape_cast %14 : vector<32xf32> to vector<1x32xf32>
    %16 = vector.broadcast %15 : vector<1x32xf32> to vector<500x32xf32>
    %17 = arith.addf %12, %16 : vector<500x32xf32>
    %c0_14 = arith.constant 0 : index
    %c0_15 = arith.constant 0 : index
    %18 = vector.load %arg5[%c0_14, %c0_15] : memref<32x32xf32, #tpu.memory_space<vmem>>, vector<32x32xf32>
    %cst_16 = arith.constant dense<0.000000e+00> : vector<500x32xf32>
    %19 = tpu.matmul %3, %18, %cst_16 {dimension_numbers = #tpu.dot_dimension_numbers<[1], [0], [0], [1], [0, 0, 1, 1], [], []>} : vector<500x32xf32>, vector<32x32xf32>, vector<500x32xf32> -> vector<500x32xf32>
    %c0_17 = arith.constant 0 : index
    %c0_18 = arith.constant 0 : index
    %20 = vector.load %arg8[%c0_17, %c0_18] : memref<1x32xf32, #tpu.memory_space<vmem>>, vector<1x32xf32>
    %21 = vector.shape_cast %20 : vector<1x32xf32> to vector<32xf32>
    %22 = vector.shape_cast %21 : vector<32xf32> to vector<1x32xf32>
    %23 = vector.broadcast %22 : vector<1x32xf32> to vector<500x32xf32>
    %24 = arith.addf %19, %23 : vector<500x32xf32>
    %c0_19 = arith.constant 0 : index
    %c0_20 = arith.constant 0 : index
    %25 = vector.load %arg9[%c0_19, %c0_20] : memref<32x32xf32, #tpu.memory_space<vmem>>, vector<32x32xf32>
    %cst_21 = arith.constant 0.000000e+00 : f32
    %26 = vector.broadcast %cst_21 : f32 to vector<8x32xf32>
    %27 = vector.extract_strided_slice %10 {offsets = [0, 0], sizes = [8, 4], strides = [1, 1]} : vector<8x32xf32> to vector<8x4xf32>
    %cst_22 = arith.constant 5.000000e-01 : f32
    %28 = vector.broadcast %cst_22 : f32 to vector<8x4xf32>
    %29 = arith.mulf %27, %28 : vector<8x4xf32>
    %30 = vector.extract_strided_slice %17 {offsets = [0, 0], sizes = [500, 4], strides = [1, 1]} : vector<500x32xf32> to vector<500x4xf32>
    %31 = vector.extract_strided_slice %24 {offsets = [0, 0], sizes = [500, 4], strides = [1, 1]} : vector<500x32xf32> to vector<500x4xf32>
    %cst_23 = arith.constant dense<0.000000e+00> : vector<8x500xf32>
    %32 = tpu.matmul %29, %30, %cst_23 {dimension_numbers = #tpu.dot_dimension_numbers<[1], [1], [0], [0], [0, 0, 1, 0], [], []>} : vector<8x4xf32>, vector<500x4xf32>, vector<8x500xf32> -> vector<8x500xf32>
    %cst_24 = arith.constant dense<0xFF800000> : vector<8xf32>
    %33 = vector.multi_reduction <maximumf>, %32, %cst_24 [1] : vector<8x500xf32> to vector<8xf32>
    %34 = vector.shape_cast %33 : vector<8xf32> to vector<8x1xf32>
    %35 = vector.broadcast %34 : vector<8x1xf32> to vector<8x500xf32>
    %36 = arith.subf %32, %35 : vector<8x500xf32>
    %37 = math.exp %36 : vector<8x500xf32>
    %cst_25 = arith.constant dense<0.000000e+00> : vector<8xf32>
    %38 = vector.multi_reduction <add>, %37, %cst_25 [1] : vector<8x500xf32> to vector<8xf32>
    %39 = vector.shape_cast %38 : vector<8xf32> to vector<8x1xf32>
    %40 = vector.broadcast %39 : vector<8x1xf32> to vector<8x500xf32>
    %41 = arith.divf %37, %40 : vector<8x500xf32>
    %cst_26 = arith.constant dense<0.000000e+00> : vector<8x4xf32>
    %42 = tpu.matmul %41, %31, %cst_26 {dimension_numbers = #tpu.dot_dimension_numbers<[1], [0], [0], [1], [0, 0, 1, 1], [], []>} : vector<8x500xf32>, vector<500x4xf32>, vector<8x4xf32> -> vector<8x4xf32>
    %43 = vector.extract_strided_slice %25 {offsets = [0, 0], sizes = [4, 32], strides = [1, 1]} : vector<32x32xf32> to vector<4x32xf32>
    %cst_27 = arith.constant dense<0.000000e+00> : vector<8x32xf32>
    %44 = tpu.matmul %42, %43, %cst_27 {dimension_numbers = #tpu.dot_dimension_numbers<[1], [0], [0], [1], [0, 0, 1, 1], [], []>} : vector<8x4xf32>, vector<4x32xf32>, vector<8x32xf32> -> vector<8x32xf32>
    %45 = arith.addf %26, %44 : vector<8x32xf32>
    %46 = vector.extract_strided_slice %10 {offsets = [0, 4], sizes = [8, 4], strides = [1, 1]} : vector<8x32xf32> to vector<8x4xf32>
    %cst_28 = arith.constant 5.000000e-01 : f32
    %47 = vector.broadcast %cst_28 : f32 to vector<8x4xf32>
    %48 = arith.mulf %46, %47 : vector<8x4xf32>
    %49 = vector.extract_strided_slice %17 {offsets = [0, 4], sizes = [500, 4], strides = [1, 1]} : vector<500x32xf32> to vector<500x4xf32>
    %50 = vector.extract_strided_slice %24 {offsets = [0, 4], sizes = [500, 4], strides = [1, 1]} : vector<500x32xf32> to vector<500x4xf32>
    %cst_29 = arith.constant dense<0.000000e+00> : vector<8x500xf32>
    %51 = tpu.matmul %48, %49, %cst_29 {dimension_numbers = #tpu.dot_dimension_numbers<[1], [1], [0], [0], [0, 0, 1, 0], [], []>} : vector<8x4xf32>, vector<500x4xf32>, vector<8x500xf32> -> vector<8x500xf32>
    %cst_30 = arith.constant dense<0xFF800000> : vector<8xf32>
    %52 = vector.multi_reduction <maximumf>, %51, %cst_30 [1] : vector<8x500xf32> to vector<8xf32>
    %53 = vector.shape_cast %52 : vector<8xf32> to vector<8x1xf32>
    %54 = vector.broadcast %53 : vector<8x1xf32> to vector<8x500xf32>
    %55 = arith.subf %51, %54 : vector<8x500xf32>
    %56 = math.exp %55 : vector<8x500xf32>
    %cst_31 = arith.constant dense<0.000000e+00> : vector<8xf32>
    %57 = vector.multi_reduction <add>, %56, %cst_31 [1] : vector<8x500xf32> to vector<8xf32>
    %58 = vector.shape_cast %57 : vector<8xf32> to vector<8x1xf32>
    %59 = vector.broadcast %58 : vector<8x1xf32> to vector<8x500xf32>
    %60 = arith.divf %56, %59 : vector<8x500xf32>
    %cst_32 = arith.constant dense<0.000000e+00> : vector<8x4xf32>
    %61 = tpu.matmul %60, %50, %cst_32 {dimension_numbers = #tpu.dot_dimension_numbers<[1], [0], [0], [1], [0, 0, 1, 1], [], []>} : vector<8x500xf32>, vector<500x4xf32>, vector<8x4xf32> -> vector<8x4xf32>
    %62 = vector.extract_strided_slice %25 {offsets = [4, 0], sizes = [4, 32], strides = [1, 1]} : vector<32x32xf32> to vector<4x32xf32>
    %cst_33 = arith.constant dense<0.000000e+00> : vector<8x32xf32>
    %63 = tpu.matmul %61, %62, %cst_33 {dimension_numbers = #tpu.dot_dimension_numbers<[1], [0], [0], [1], [0, 0, 1, 1], [], []>} : vector<8x4xf32>, vector<4x32xf32>, vector<8x32xf32> -> vector<8x32xf32>
    %64 = arith.addf %45, %63 : vector<8x32xf32>
    %65 = vector.extract_strided_slice %10 {offsets = [0, 8], sizes = [8, 4], strides = [1, 1]} : vector<8x32xf32> to vector<8x4xf32>
    %cst_34 = arith.constant 5.000000e-01 : f32
    %66 = vector.broadcast %cst_34 : f32 to vector<8x4xf32>
    %67 = arith.mulf %65, %66 : vector<8x4xf32>
    %68 = vector.extract_strided_slice %17 {offsets = [0, 8], sizes = [500, 4], strides = [1, 1]} : vector<500x32xf32> to vector<500x4xf32>
    %69 = vector.extract_strided_slice %24 {offsets = [0, 8], sizes = [500, 4], strides = [1, 1]} : vector<500x32xf32> to vector<500x4xf32>
    %cst_35 = arith.constant dense<0.000000e+00> : vector<8x500xf32>
    %70 = tpu.matmul %67, %68, %cst_35 {dimension_numbers = #tpu.dot_dimension_numbers<[1], [1], [0], [0], [0, 0, 1, 0], [], []>} : vector<8x4xf32>, vector<500x4xf32>, vector<8x500xf32> -> vector<8x500xf32>
    %cst_36 = arith.constant dense<0xFF800000> : vector<8xf32>
    %71 = vector.multi_reduction <maximumf>, %70, %cst_36 [1] : vector<8x500xf32> to vector<8xf32>
    %72 = vector.shape_cast %71 : vector<8xf32> to vector<8x1xf32>
    %73 = vector.broadcast %72 : vector<8x1xf32> to vector<8x500xf32>
    %74 = arith.subf %70, %73 : vector<8x500xf32>
    %75 = math.exp %74 : vector<8x500xf32>
    %cst_37 = arith.constant dense<0.000000e+00> : vector<8xf32>
    %76 = vector.multi_reduction <add>, %75, %cst_37 [1] : vector<8x500xf32> to vector<8xf32>
    %77 = vector.shape_cast %76 : vector<8xf32> to vector<8x1xf32>
    %78 = vector.broadcast %77 : vector<8x1xf32> to vector<8x500xf32>
    %79 = arith.divf %75, %78 : vector<8x500xf32>
    %cst_38 = arith.constant dense<0.000000e+00> : vector<8x4xf32>
    %80 = tpu.matmul %79, %69, %cst_38 {dimension_numbers = #tpu.dot_dimension_numbers<[1], [0], [0], [1], [0, 0, 1, 1], [], []>} : vector<8x500xf32>, vector<500x4xf32>, vector<8x4xf32> -> vector<8x4xf32>
    %81 = vector.extract_strided_slice %25 {offsets = [8, 0], sizes = [4, 32], strides = [1, 1]} : vector<32x32xf32> to vector<4x32xf32>
    %cst_39 = arith.constant dense<0.000000e+00> : vector<8x32xf32>
    %82 = tpu.matmul %80, %81, %cst_39 {dimension_numbers = #tpu.dot_dimension_numbers<[1], [0], [0], [1], [0, 0, 1, 1], [], []>} : vector<8x4xf32>, vector<4x32xf32>, vector<8x32xf32> -> vector<8x32xf32>
    %83 = arith.addf %64, %82 : vector<8x32xf32>
    %84 = vector.extract_strided_slice %10 {offsets = [0, 12], sizes = [8, 4], strides = [1, 1]} : vector<8x32xf32> to vector<8x4xf32>
    %cst_40 = arith.constant 5.000000e-01 : f32
    %85 = vector.broadcast %cst_40 : f32 to vector<8x4xf32>
    %86 = arith.mulf %84, %85 : vector<8x4xf32>
    %87 = vector.extract_strided_slice %17 {offsets = [0, 12], sizes = [500, 4], strides = [1, 1]} : vector<500x32xf32> to vector<500x4xf32>
    %88 = vector.extract_strided_slice %24 {offsets = [0, 12], sizes = [500, 4], strides = [1, 1]} : vector<500x32xf32> to vector<500x4xf32>
    %cst_41 = arith.constant dense<0.000000e+00> : vector<8x500xf32>
    %89 = tpu.matmul %86, %87, %cst_41 {dimension_numbers = #tpu.dot_dimension_numbers<[1], [1], [0], [0], [0, 0, 1, 0], [], []>} : vector<8x4xf32>, vector<500x4xf32>, vector<8x500xf32> -> vector<8x500xf32>
    %cst_42 = arith.constant dense<0xFF800000> : vector<8xf32>
    %90 = vector.multi_reduction <maximumf>, %89, %cst_42 [1] : vector<8x500xf32> to vector<8xf32>
    %91 = vector.shape_cast %90 : vector<8xf32> to vector<8x1xf32>
    %92 = vector.broadcast %91 : vector<8x1xf32> to vector<8x500xf32>
    %93 = arith.subf %89, %92 : vector<8x500xf32>
    %94 = math.exp %93 : vector<8x500xf32>
    %cst_43 = arith.constant dense<0.000000e+00> : vector<8xf32>
    %95 = vector.multi_reduction <add>, %94, %cst_43 [1] : vector<8x500xf32> to vector<8xf32>
    %96 = vector.shape_cast %95 : vector<8xf32> to vector<8x1xf32>
    %97 = vector.broadcast %96 : vector<8x1xf32> to vector<8x500xf32>
    %98 = arith.divf %94, %97 : vector<8x500xf32>
    %cst_44 = arith.constant dense<0.000000e+00> : vector<8x4xf32>
    %99 = tpu.matmul %98, %88, %cst_44 {dimension_numbers = #tpu.dot_dimension_numbers<[1], [0], [0], [1], [0, 0, 1, 1], [], []>} : vector<8x500xf32>, vector<500x4xf32>, vector<8x4xf32> -> vector<8x4xf32>
    %100 = vector.extract_strided_slice %25 {offsets = [12, 0], sizes = [4, 32], strides = [1, 1]} : vector<32x32xf32> to vector<4x32xf32>
    %cst_45 = arith.constant dense<0.000000e+00> : vector<8x32xf32>
    %101 = tpu.matmul %99, %100, %cst_45 {dimension_numbers = #tpu.dot_dimension_numbers<[1], [0], [0], [1], [0, 0, 1, 1], [], []>} : vector<8x4xf32>, vector<4x32xf32>, vector<8x32xf32> -> vector<8x32xf32>
    %102 = arith.addf %83, %101 : vector<8x32xf32>
    %103 = vector.extract_strided_slice %10 {offsets = [0, 16], sizes = [8, 4], strides = [1, 1]} : vector<8x32xf32> to vector<8x4xf32>
    %cst_46 = arith.constant 5.000000e-01 : f32
    %104 = vector.broadcast %cst_46 : f32 to vector<8x4xf32>
    %105 = arith.mulf %103, %104 : vector<8x4xf32>
    %106 = vector.extract_strided_slice %17 {offsets = [0, 16], sizes = [500, 4], strides = [1, 1]} : vector<500x32xf32> to vector<500x4xf32>
    %107 = vector.extract_strided_slice %24 {offsets = [0, 16], sizes = [500, 4], strides = [1, 1]} : vector<500x32xf32> to vector<500x4xf32>
    %cst_47 = arith.constant dense<0.000000e+00> : vector<8x500xf32>
    %108 = tpu.matmul %105, %106, %cst_47 {dimension_numbers = #tpu.dot_dimension_numbers<[1], [1], [0], [0], [0, 0, 1, 0], [], []>} : vector<8x4xf32>, vector<500x4xf32>, vector<8x500xf32> -> vector<8x500xf32>
    %cst_48 = arith.constant dense<0xFF800000> : vector<8xf32>
    %109 = vector.multi_reduction <maximumf>, %108, %cst_48 [1] : vector<8x500xf32> to vector<8xf32>
    %110 = vector.shape_cast %109 : vector<8xf32> to vector<8x1xf32>
    %111 = vector.broadcast %110 : vector<8x1xf32> to vector<8x500xf32>
    %112 = arith.subf %108, %111 : vector<8x500xf32>
    %113 = math.exp %112 : vector<8x500xf32>
    %cst_49 = arith.constant dense<0.000000e+00> : vector<8xf32>
    %114 = vector.multi_reduction <add>, %113, %cst_49 [1] : vector<8x500xf32> to vector<8xf32>
    %115 = vector.shape_cast %114 : vector<8xf32> to vector<8x1xf32>
    %116 = vector.broadcast %115 : vector<8x1xf32> to vector<8x500xf32>
    %117 = arith.divf %113, %116 : vector<8x500xf32>
    %cst_50 = arith.constant dense<0.000000e+00> : vector<8x4xf32>
    %118 = tpu.matmul %117, %107, %cst_50 {dimension_numbers = #tpu.dot_dimension_numbers<[1], [0], [0], [1], [0, 0, 1, 1], [], []>} : vector<8x500xf32>, vector<500x4xf32>, vector<8x4xf32> -> vector<8x4xf32>
    %119 = vector.extract_strided_slice %25 {offsets = [16, 0], sizes = [4, 32], strides = [1, 1]} : vector<32x32xf32> to vector<4x32xf32>
    %cst_51 = arith.constant dense<0.000000e+00> : vector<8x32xf32>
    %120 = tpu.matmul %118, %119, %cst_51 {dimension_numbers = #tpu.dot_dimension_numbers<[1], [0], [0], [1], [0, 0, 1, 1], [], []>} : vector<8x4xf32>, vector<4x32xf32>, vector<8x32xf32> -> vector<8x32xf32>
    %121 = arith.addf %102, %120 : vector<8x32xf32>
    %122 = vector.extract_strided_slice %10 {offsets = [0, 20], sizes = [8, 4], strides = [1, 1]} : vector<8x32xf32> to vector<8x4xf32>
    %cst_52 = arith.constant 5.000000e-01 : f32
    %123 = vector.broadcast %cst_52 : f32 to vector<8x4xf32>
    %124 = arith.mulf %122, %123 : vector<8x4xf32>
    %125 = vector.extract_strided_slice %17 {offsets = [0, 20], sizes = [500, 4], strides = [1, 1]} : vector<500x32xf32> to vector<500x4xf32>
    %126 = vector.extract_strided_slice %24 {offsets = [0, 20], sizes = [500, 4], strides = [1, 1]} : vector<500x32xf32> to vector<500x4xf32>
    %cst_53 = arith.constant dense<0.000000e+00> : vector<8x500xf32>
    %127 = tpu.matmul %124, %125, %cst_53 {dimension_numbers = #tpu.dot_dimension_numbers<[1], [1], [0], [0], [0, 0, 1, 0], [], []>} : vector<8x4xf32>, vector<500x4xf32>, vector<8x500xf32> -> vector<8x500xf32>
    %cst_54 = arith.constant dense<0xFF800000> : vector<8xf32>
    %128 = vector.multi_reduction <maximumf>, %127, %cst_54 [1] : vector<8x500xf32> to vector<8xf32>
    %129 = vector.shape_cast %128 : vector<8xf32> to vector<8x1xf32>
    %130 = vector.broadcast %129 : vector<8x1xf32> to vector<8x500xf32>
    %131 = arith.subf %127, %130 : vector<8x500xf32>
    %132 = math.exp %131 : vector<8x500xf32>
    %cst_55 = arith.constant dense<0.000000e+00> : vector<8xf32>
    %133 = vector.multi_reduction <add>, %132, %cst_55 [1] : vector<8x500xf32> to vector<8xf32>
    %134 = vector.shape_cast %133 : vector<8xf32> to vector<8x1xf32>
    %135 = vector.broadcast %134 : vector<8x1xf32> to vector<8x500xf32>
    %136 = arith.divf %132, %135 : vector<8x500xf32>
    %cst_56 = arith.constant dense<0.000000e+00> : vector<8x4xf32>
    %137 = tpu.matmul %136, %126, %cst_56 {dimension_numbers = #tpu.dot_dimension_numbers<[1], [0], [0], [1], [0, 0, 1, 1], [], []>} : vector<8x500xf32>, vector<500x4xf32>, vector<8x4xf32> -> vector<8x4xf32>
    %138 = vector.extract_strided_slice %25 {offsets = [20, 0], sizes = [4, 32], strides = [1, 1]} : vector<32x32xf32> to vector<4x32xf32>
    %cst_57 = arith.constant dense<0.000000e+00> : vector<8x32xf32>
    %139 = tpu.matmul %137, %138, %cst_57 {dimension_numbers = #tpu.dot_dimension_numbers<[1], [0], [0], [1], [0, 0, 1, 1], [], []>} : vector<8x4xf32>, vector<4x32xf32>, vector<8x32xf32> -> vector<8x32xf32>
    %140 = arith.addf %121, %139 : vector<8x32xf32>
    %141 = vector.extract_strided_slice %10 {offsets = [0, 24], sizes = [8, 4], strides = [1, 1]} : vector<8x32xf32> to vector<8x4xf32>
    %cst_58 = arith.constant 5.000000e-01 : f32
    %142 = vector.broadcast %cst_58 : f32 to vector<8x4xf32>
    %143 = arith.mulf %141, %142 : vector<8x4xf32>
    %144 = vector.extract_strided_slice %17 {offsets = [0, 24], sizes = [500, 4], strides = [1, 1]} : vector<500x32xf32> to vector<500x4xf32>
    %145 = vector.extract_strided_slice %24 {offsets = [0, 24], sizes = [500, 4], strides = [1, 1]} : vector<500x32xf32> to vector<500x4xf32>
    %cst_59 = arith.constant dense<0.000000e+00> : vector<8x500xf32>
    %146 = tpu.matmul %143, %144, %cst_59 {dimension_numbers = #tpu.dot_dimension_numbers<[1], [1], [0], [0], [0, 0, 1, 0], [], []>} : vector<8x4xf32>, vector<500x4xf32>, vector<8x500xf32> -> vector<8x500xf32>
    %cst_60 = arith.constant dense<0xFF800000> : vector<8xf32>
    %147 = vector.multi_reduction <maximumf>, %146, %cst_60 [1] : vector<8x500xf32> to vector<8xf32>
    %148 = vector.shape_cast %147 : vector<8xf32> to vector<8x1xf32>
    %149 = vector.broadcast %148 : vector<8x1xf32> to vector<8x500xf32>
    %150 = arith.subf %146, %149 : vector<8x500xf32>
    %151 = math.exp %150 : vector<8x500xf32>
    %cst_61 = arith.constant dense<0.000000e+00> : vector<8xf32>
    %152 = vector.multi_reduction <add>, %151, %cst_61 [1] : vector<8x500xf32> to vector<8xf32>
    %153 = vector.shape_cast %152 : vector<8xf32> to vector<8x1xf32>
    %154 = vector.broadcast %153 : vector<8x1xf32> to vector<8x500xf32>
    %155 = arith.divf %151, %154 : vector<8x500xf32>
    %cst_62 = arith.constant dense<0.000000e+00> : vector<8x4xf32>
    %156 = tpu.matmul %155, %145, %cst_62 {dimension_numbers = #tpu.dot_dimension_numbers<[1], [0], [0], [1], [0, 0, 1, 1], [], []>} : vector<8x500xf32>, vector<500x4xf32>, vector<8x4xf32> -> vector<8x4xf32>
    %157 = vector.extract_strided_slice %25 {offsets = [24, 0], sizes = [4, 32], strides = [1, 1]} : vector<32x32xf32> to vector<4x32xf32>
    %cst_63 = arith.constant dense<0.000000e+00> : vector<8x32xf32>
    %158 = tpu.matmul %156, %157, %cst_63 {dimension_numbers = #tpu.dot_dimension_numbers<[1], [0], [0], [1], [0, 0, 1, 1], [], []>} : vector<8x4xf32>, vector<4x32xf32>, vector<8x32xf32> -> vector<8x32xf32>
    %159 = arith.addf %140, %158 : vector<8x32xf32>
    %160 = vector.extract_strided_slice %10 {offsets = [0, 28], sizes = [8, 4], strides = [1, 1]} : vector<8x32xf32> to vector<8x4xf32>
    %cst_64 = arith.constant 5.000000e-01 : f32
    %161 = vector.broadcast %cst_64 : f32 to vector<8x4xf32>
    %162 = arith.mulf %160, %161 : vector<8x4xf32>
    %163 = vector.extract_strided_slice %17 {offsets = [0, 28], sizes = [500, 4], strides = [1, 1]} : vector<500x32xf32> to vector<500x4xf32>
    %164 = vector.extract_strided_slice %24 {offsets = [0, 28], sizes = [500, 4], strides = [1, 1]} : vector<500x32xf32> to vector<500x4xf32>
    %cst_65 = arith.constant dense<0.000000e+00> : vector<8x500xf32>
    %165 = tpu.matmul %162, %163, %cst_65 {dimension_numbers = #tpu.dot_dimension_numbers<[1], [1], [0], [0], [0, 0, 1, 0], [], []>} : vector<8x4xf32>, vector<500x4xf32>, vector<8x500xf32> -> vector<8x500xf32>
    %cst_66 = arith.constant dense<0xFF800000> : vector<8xf32>
    %166 = vector.multi_reduction <maximumf>, %165, %cst_66 [1] : vector<8x500xf32> to vector<8xf32>
    %167 = vector.shape_cast %166 : vector<8xf32> to vector<8x1xf32>
    %168 = vector.broadcast %167 : vector<8x1xf32> to vector<8x500xf32>
    %169 = arith.subf %165, %168 : vector<8x500xf32>
    %170 = math.exp %169 : vector<8x500xf32>
    %cst_67 = arith.constant dense<0.000000e+00> : vector<8xf32>
    %171 = vector.multi_reduction <add>, %170, %cst_67 [1] : vector<8x500xf32> to vector<8xf32>
    %172 = vector.shape_cast %171 : vector<8xf32> to vector<8x1xf32>
    %173 = vector.broadcast %172 : vector<8x1xf32> to vector<8x500xf32>
    %174 = arith.divf %170, %173 : vector<8x500xf32>
    %cst_68 = arith.constant dense<0.000000e+00> : vector<8x4xf32>
    %175 = tpu.matmul %174, %164, %cst_68 {dimension_numbers = #tpu.dot_dimension_numbers<[1], [0], [0], [1], [0, 0, 1, 1], [], []>} : vector<8x500xf32>, vector<500x4xf32>, vector<8x4xf32> -> vector<8x4xf32>
    %176 = vector.extract_strided_slice %25 {offsets = [28, 0], sizes = [4, 32], strides = [1, 1]} : vector<32x32xf32> to vector<4x32xf32>
    %cst_69 = arith.constant dense<0.000000e+00> : vector<8x32xf32>
    %177 = tpu.matmul %175, %176, %cst_69 {dimension_numbers = #tpu.dot_dimension_numbers<[1], [0], [0], [1], [0, 0, 1, 1], [], []>} : vector<8x4xf32>, vector<4x32xf32>, vector<8x32xf32> -> vector<8x32xf32>
    %178 = arith.addf %159, %177 : vector<8x32xf32>
    %c0_70 = arith.constant 0 : index
    %c0_71 = arith.constant 0 : index
    %179 = vector.load %arg10[%c0_70, %c0_71] : memref<1x32xf32, #tpu.memory_space<vmem>>, vector<1x32xf32>
    %180 = vector.shape_cast %179 : vector<1x32xf32> to vector<32xf32>
    %181 = vector.shape_cast %180 : vector<32xf32> to vector<1x32xf32>
    %182 = vector.broadcast %181 : vector<1x32xf32> to vector<8x32xf32>
    %183 = arith.addf %178, %182 : vector<8x32xf32>
    %c0_72 = arith.constant 0 : index
    %c0_73 = arith.constant 0 : index
    %c0_74 = arith.constant 0 : index
    %184 = vector.load %arg11[%c0_72, %c0_73, %c0_74] : memref<1x8x32xf32, #tpu.memory_space<vmem>>, vector<1x8x32xf32>
    %185 = vector.shape_cast %184 : vector<1x8x32xf32> to vector<8x32xf32>
    %186 = vector.shape_cast %183 : vector<8x32xf32> to vector<1x8x32xf32>
    tpu.vector_store %arg11[%c0_72, %c0_73, %c0_74], %186 {strides = array<i32>} : memref<1x8x32xf32, #tpu.memory_space<vmem>>, vector<1x8x32xf32>,
    return
  }
  func.func @transform_0(%arg0: i32) -> (i32, i32, i32) {
    %c0_i32 = arith.constant 0 : i32
    %c0_i32_0 = arith.constant 0 : i32
    %c0_i32_1 = arith.constant 0 : i32
    return %arg0, %c0_i32, %c0_i32_0 : i32, i32, i32
  }
  func.func @transform_1(%arg0: i32) -> (i32, i32, i32) {
    %c0_i32 = arith.constant 0 : i32
    %c0_i32_0 = arith.constant 0 : i32
    %c0_i32_1 = arith.constant 0 : i32
    return %arg0, %c0_i32, %c0_i32_0 : i32, i32, i32
  }
  func.func @transform_2(%arg0: i32) -> (i32, i32) {
    %c0_i32 = arith.constant 0 : i32
    %c0_i32_0 = arith.constant 0 : i32
    %c0_i32_1 = arith.constant 0 : i32
    return %c0_i32, %c0_i32_0 : i32, i32
  }
  func.func @transform_3(%arg0: i32) -> (i32, i32) {
    %c0_i32 = arith.constant 0 : i32
    %c0_i32_0 = arith.constant 0 : i32
    %c0_i32_1 = arith.constant 0 : i32
    return %c0_i32, %c0_i32_0 : i32, i32
  }
  func.func @transform_4(%arg0: i32) -> (i32, i32) {
    %c0_i32 = arith.constant 0 : i32
    %c0_i32_0 = arith.constant 0 : i32
    %c0_i32_1 = arith.constant 0 : i32
    return %c0_i32, %c0_i32_0 : i32, i32
  }
  func.func @transform_5(%arg0: i32) -> (i32, i32) {
    %c0_i32 = arith.constant 0 : i32
    %c0_i32_0 = arith.constant 0 : i32
    %c0_i32_1 = arith.constant 0 : i32
    return %c0_i32, %c0_i32_0 : i32, i32
  }
  func.func @transform_6(%arg0: i32) -> (i32, i32) {
    %c0_i32 = arith.constant 0 : i32
    %c0_i32_0 = arith.constant 0 : i32
    %c0_i32_1 = arith.constant 0 : i32
    return %c0_i32, %c0_i32_0 : i32, i32
  }
  func.func @transform_7(%arg0: i32) -> (i32, i32) {
    %c0_i32 = arith.constant 0 : i32
    %c0_i32_0 = arith.constant 0 : i32
    %c0_i32_1 = arith.constant 0 : i32
    return %c0_i32, %c0_i32_0 : i32, i32
  }
  func.func @transform_8(%arg0: i32) -> (i32, i32) {
    %c0_i32 = arith.constant 0 : i32
    %c0_i32_0 = arith.constant 0 : i32
    %c0_i32_1 = arith.constant 0 : i32
    return %c0_i32, %c0_i32_0 : i32, i32
  }
  func.func @transform_9(%arg0: i32) -> (i32, i32) {
    %c0_i32 = arith.constant 0 : i32
    %c0_i32_0 = arith.constant 0 : i32
    %c0_i32_1 = arith.constant 0 : i32
    return %c0_i32, %c0_i32_0 : i32, i32
  }
  func.func @transform_10(%arg0: i32) -> (i32, i32, i32) {
    %c0_i32 = arith.constant 0 : i32
    %c0_i32_0 = arith.constant 0 : i32
    %c0_i32_1 = arith.constant 0 : i32
    return %arg0, %c0_i32, %c0_i32_0 : i32, i32, i32
  }
}

</mosaic_0001>

<bundles_post_ra>
// kernel: tpu_custom_call.1
= control target key start
LH: loop header
LB: loop body
LE: loop exit
PB: predicated region body
PF: predicated region fallthrough
CT: control target
= control target key end

     0   :  { %15 = vsyncpa [#allocation3], 0  ;;  %s15675_s0 = inlined_call_operand.vmem [shape: f32[2,8,32], index: 0, kind: input, shape index: {}]   ;;  %s15676_s1 = inlined_call_operand.vmem [shape: f32[2,500,32], index: 1, kind: input, shape index: {}]   ;;  %s15677_s2 = inlined_call_operand.vmem [shape: f32[32,32], index: 2, kind: input, shape index: {}]   ;;  %s15678_s3 = inlined_call_operand.vmem [shape: f32[32,32], index: 3, kind: input, shape index: {}]   ;;  %s15679_s4 = inlined_call_operand.vmem [shape: f32[32,32], index: 4, kind: input, shape index: {}]   ;;  %s15680_s5 = inlined_call_operand.vmem [shape: f32[1,32], index: 5, kind: input, shape index: {}]   ;;  %s15681_s6 = inlined_call_operand.vmem [shape: f32[1,32], index: 6, kind: input, shape index: {}]   ;;  %s15682_s7 = inlined_call_operand.vmem [shape: f32[1,32], index: 7, kind: input, shape index: {}]   ;;  %s15683_s8 = inlined_call_operand.vmem [shape: f32[32,32], index: 8, kind: input, shape index: {}]   ;;  %s15684_s9 = inlined_call_operand.vmem [shape: f32[1,32], index: 9, kind: input, shape index: {}]   ;;  %s15685_s10 = inlined_call_operand.hbm [shape: f32[2,8,32], index: 10, kind: output, shape index: {}]  }
   0x1   :  { %17 = vsyncpa [#allocation3 + $0x1], 0  ;;  %s10204_s13 = smov 0   ;;  %s10206_s14 = smov 0  }
   0x2   :  { %s10208_s15 = smov 0   ;;  %s10210_s16 = smov 0  }
   0x3 LB: > { %15954 = sst [smem:[#allocation5_spill]] %s10133_s15  ;;  %s10225_s17 = sadd.s32 4294967295, %s10137_s16   ;;  %s10137_s16 = sphi %s10210_s16, %s16762_s16   ;;  %s10133_s15 = sphi %s10208_s15, %s16759_s15   ;;  %s10129_s14 = sphi %s10206_s14, %s16761_s14   ;;  %s10125_s13 = sphi %s10204_s13, %s16760_s13  }
   0x4   : > { %s8102_s18 = sadd.s32 4294967294, %s10137_s16   ;;  %s10229_s19 = sadd.s32 1, %s10137_s16  }
   0x5   : > { %s250_s20 = sadd.s32 1, %s10133_s15  ;;  %s247_s21 = ssub.s32 %s10137_s16, %s10229_s19 }
   0x6   : > { %p260_p0 = scmp.ne.s32.totalorder %s10133_s15, %s10129_s14  ;;  %p248_p1 = scmp.eq.s32.totalorder %s247_s21, 0 }
   0x7   : > { %p261_p2 = scmp.eq.s32.totalorder %s10225_s17, 1  ;;  %p266_p3 = scmp.ne.s32.totalorder %s10129_s14, %s10125_s13 }
   0x8   : > { %p267_p4 = scmp.eq.s32.totalorder %s8102_s18, 1  ;;  %p8105_p7 = scmp.ge.s32.totalorder %s10137_s16, 1 }
   0x9   : > { %s10240_s22 = scalar_select %p248_p1, %s10133_s15, %s250_s20  }
   0xa   : > { %p10242_p5 = por %p261_p2, %p260_p0  ;;  %p10246_p6 = por %p267_p4, %p266_p3 }
   0xb   : > { %15955 = sst [smem:[#allocation6_spill]] %s10240_s22  ;;  %p324_p8 = scmp.lt.s32.totalorder %s10137_s16, 3 }
   0xd   : > { %p325_p9 = pnand %p8105_p7, %p324_p8 }
   0xf   : > { %328 = sbr.rel (%p325_p9) target bundleno = 7191 (0x1c17), region = 60 }
  0x14   : > { %v527_v0 = vld [vmem:[%s15678_s3 + $0x18] sm:$0xff]  ;;  %p366_p10 = scmp.lt.s32.totalorder %s10225_s17, 1  ;;  %v15687_v1 = vmov 0.0   ;;  %v526_v2 = vld [vmem:[%s15678_s3 + $0x10] sm:$0xff]  ;;  %vm10140_vm0 = vmmov 0   ;;  %v525_v5 = vld [vmem:[%s15678_s3 + $0x8] sm:$0xff] }
  0x15   : > { %9514 = vmatprep.subr.mxu1 %v15687_v1  ;;  %9522 = vmatprep.mubr.msk.f32.mxu1 %vm10140_vm0, %v15687_v1  ;;  %v442_v3 = vld [vmem:[%s15677_s2 + $0x18] sm:$0xff]  ;;  %v441_v4 = vld [vmem:[%s15677_s2 + $0x10] sm:$0xff]  ;;  %v440_v6 = vld [vmem:[%s15677_s2 + $0x8] sm:$0xff]  ;;  %vm450_vm1 = vcmask 261120   ;;  %vm1500_vm2 = vcmask 31744   ;;  %vm1868_vm3 = vcmask 1043456  }
  0x16   : > { %9515 = vmatpush3.msra.mxu1 %v527_v0  ;;  %s367_s11 = scalar_select %p366_p10, %s10225_s17, 1  ;;  %9503 = vmatprep.subr.mxu0 %v15687_v1  ;;  %v524_v7 = vld [vmem:[%s15678_s3] sm:$0xff]  ;;  %v1107_v11 = vld [vmem:[%s15679_s4 + $0x18] sm:$0xff]  ;;  %v1106_v13 = vld [vmem:[%s15679_s4 + $0x10] sm:$0xff]  ;;  %vm1835_vm4 = vcmask 949248  }
  0x17   : > { %9516 = vmatprep.subr.mxu1 %v15687_v1  ;;  %9504 = vmatpush3.msra.mxu0 %v442_v3  ;;  %v439_v8 = vld [vmem:[%s15677_s2] sm:$0xff]  ;;  %v1105_v14 = vld [vmem:[%s15679_s4 + $0x8] sm:$0xff]  ;;  %s10142_s29 = smov 120   ;;  %s10143_s30 = smov 116  }
  0x18   : > { %9517 = vmatpush3.msra.mxu1 %v526_v2  ;;  %s9948_s25 = smul.u32 504, %s367_s11  ;;  %9505 = vmatprep.subr.mxu0 %v15687_v1  ;;  %s8107_s28 = sshll.u32 %s367_s11, 3  ;;  %v1104_v16 = vld [vmem:[%s15679_s4] sm:$0xff] }
  0x19   : > { %9518 = vmatprep.subr.mxu1 %v15687_v1  ;;  %9506 = vmatpush3.msra.mxu0 %v441_v4  ;;  %s369_s20 = scalar_lea.vmem %s15675_s0, %s8107_s28  ;;  %s10146_s26 = smov 104  }
  0x1a   : > { %9519 = vmatpush3.msra.mxu1 %v525_v5  ;;  %s10288_s15 = scalar_lea.vmem %s15676_s1, %s9948_s25  ;;  %9507 = vmatprep.subr.mxu0 %v15687_v1  ;;  %v375_v10 = vld [vmem:[%s369_s20] sm:$0xff]  ;;  %s10141_s25 = smov 124  }
  0x1b   : > { %9520 = vmatprep.subr.mxu1 %v15687_v1  ;;  %v376_v9 = vld [vmem:[%s10288_s15] sm:$0xff]  ;;  %9508 = vmatpush3.msra.mxu0 %v440_v6  ;;  %v377_v12 = vld [vmem:[%s10288_s15 + $0x8] sm:$0xff]  ;;  %v378_v15 = vld [vmem:[%s10288_s15 + $0x10] sm:$0xff]  ;;  %s10145_s20 = smov 108   ;;  %s10147_s22 = smov 100  }
  0x1c   : > { %9521 = vmatpush3.msra.mxu1 %v524_v7  ;;  %9509 = vmatprep.subr.mxu0 %v15687_v1  ;;  %v379_v17 = vld [vmem:[%s10288_s15 + $0x18] sm:$0xff]  ;;  %v380_v18 = vld [vmem:[%s10288_s15 + $0x20] sm:$0xff]  ;;  %v381_v19 = vld [vmem:[%s10288_s15 + $0x28] sm:$0xff]  ;;  %s363_s28 = sand.u32 1, %s10129_s14   ;;  %s8793_s18 = sshll.u32 %s10225_s17, 7 }
  0x1d   : > { %9523 = vmatmul.mubr.msk.f32.vlgmr.msra.gmra.mxu1 %vm450_vm1, %v376_v9  ;;  %9510 = vmatpush3.msra.mxu0 %v439_v8  ;;  %v382_v20 = vld [vmem:[%s10288_s15 + $0x30] sm:$0xff]  ;;  %v383_v21 = vld [vmem:[%s10288_s15 + $0x38] sm:$0xff]  ;;  %v384_v22 = vld [vmem:[%s10288_s15 + $0x40] sm:$0xff]  ;;  %s10148_s17 = smov [#allocation2]  }
  0x1e   : > { %9525 = vmatprep.mubr.msk.f32.mxu1 %vm10140_vm0, %v15687_v1  ;;  %9511 = vmatprep.mubr.msk.f32.mxu0 %vm10140_vm0, %v15687_v1  ;;  %v385_v23 = vld [vmem:[%s10288_s15 + $0x48] sm:$0xff]  ;;  %v386_v24 = vld [vmem:[%s10288_s15 + $0x50] sm:$0xff]  ;;  %v387_v25 = vld [vmem:[%s10288_s15 + $0x58] sm:$0xff]  ;;  %s10081_s27 = sshll.u32 %s10148_s17, 4  ;;  %s10082_s27 = int_to_ptr.vmem [resolvable:$false] %s10081_s27 }
  0x1f   : > { %9711 = vmatprep.subr.mxu0 %v15687_v1  ;;  %9512 = vmatmul.mubr.msk.f32.vlgmr.msra.gmra.mxu0 %vm450_vm1, %v375_v10  ;;  %v388_v26 = vld [vmem:[%s10288_s15 + $0x60] sm:$0xff]  ;;  %v389_v27 = vld [vmem:[%s10288_s15 + $0x68] sm:$0xff]  ;;  %v390_v28 = vld [vmem:[%s10288_s15 + $0x70] sm:$0xff] }
  0x20   : > { %9712 = vmatpush3.msra.mxu0 %v1107_v11  ;;  %9719 = vmatprep.mubr.msk.f32.mxu0 %vm10140_vm0, %v15687_v1  ;;  %v391_v29 = vld [vmem:[%s10288_s15 + $0x78] sm:$0xff]  ;;  %v392_v30 = vld [vmem:[%s10288_s15 + $0x80] sm:$0xff]  ;;  %v393_v31 = vld [vmem:[%s10288_s15 + $0x88] sm:$0xff] }
  0x21   : > { %9526 = vmatmul.mubr.msk.f32.gmra.mxu1 %vm450_vm1, %v377_v12  ;;  %9713 = vmatprep.subr.mxu0 %v15687_v1  ;;  %v394_v32 = vld [vmem:[%s10288_s15 + $0x90] sm:$0xff]  ;;  %v395_v33 = vld [vmem:[%s10288_s15 + $0x98] sm:$0xff]  ;;  %v396_v34 = vld [vmem:[%s10288_s15 + $0xa0] sm:$0xff] }
  0x22   : > { %9528 = vmatprep.mubr.msk.f32.mxu1 %vm10140_vm0, %v15687_v1  ;;  %9714 = vmatpush3.msra.mxu0 %v1106_v13  ;;  %v397_v35 = vld [vmem:[%s10288_s15 + $0xa8] sm:$0xff]  ;;  %v398_v36 = vld [vmem:[%s10288_s15 + $0xb0] sm:$0xff]  ;;  %v399_v37 = vld [vmem:[%s10288_s15 + $0xb8] sm:$0xff] }
  0x23   : > { %9715 = vmatprep.subr.mxu0 %v15687_v1  ;;  %v400_v38 = vld [vmem:[%s10288_s15 + $0xc0] sm:$0xff]  ;;  %v401_v39 = vld [vmem:[%s10288_s15 + $0xc8] sm:$0xff]  ;;  %v402_v40 = vld [vmem:[%s10288_s15 + $0xd0] sm:$0xff] }
  0x24   : > { %9716 = vmatpush3.msra.mxu0 %v1105_v14  ;;  %v403_v41 = vld [vmem:[%s10288_s15 + $0xd8] sm:$0xff]  ;;  %v404_v42 = vld [vmem:[%s10288_s15 + $0xe0] sm:$0xff]  ;;  %v405_v43 = vld [vmem:[%s10288_s15 + $0xe8] sm:$0xff] }
  0x25   : > { %9529 = vmatmul.mubr.msk.f32.gmra.mxu1 %vm450_vm1, %v378_v15  ;;  %9717 = vmatprep.subr.mxu0 %v15687_v1  ;;  %v406_v44 = vld [vmem:[%s10288_s15 + $0xf0] sm:$0xff]  ;;  %v407_v45 = vld [vmem:[%s10288_s15 + $0xf8] sm:$0xff]  ;;  %v408_v46 = vld [vmem:[%s10288_s15 + $0x100] sm:$0xff] }
  0x26   : > { %9531 = vmatprep.mubr.msk.f32.mxu1 %vm10140_vm0, %v15687_v1  ;;  %9718 = vmatpush3.msra.mxu0 %v1104_v16  ;;  %v409_v47 = vld [vmem:[%s10288_s15 + $0x108] sm:$0xff]  ;;  %v410_v48 = vld [vmem:[%s10288_s15 + $0x110] sm:$0xff]  ;;  %v411_v49 = vld [vmem:[%s10288_s15 + $0x118] sm:$0xff] }
  0x27   : > { %9720 = vmatmul.mubr.msk.f32.vlgmr.msra.gmra.mxu0 %vm450_vm1, %v376_v9  ;;  %1764 = vmatprep.subr.mxu0 %v15687_v1  ;;  %v412_v50 = vld [vmem:[%s10288_s15 + $0x120] sm:$0xff]  ;;  %v413_v51 = vld [vmem:[%s10288_s15 + $0x128] sm:$0xff]  ;;  %v414_v52 = vld [vmem:[%s10288_s15 + $0x130] sm:$0xff] }
  0x28   : > { %9722 = vmatprep.mubr.msk.f32.mxu0 %vm10140_vm0, %v15687_v1  ;;  %v415_v53 = vld [vmem:[%s10288_s15 + $0x138] sm:$0xff]  ;;  %v416_v54 = vld [vmem:[%s10288_s15 + $0x140] sm:$0xff]  ;;  %v417_v55 = vld [vmem:[%s10288_s15 + $0x148] sm:$0xff] }
  0x29   : > { %9532 = vmatmul.mubr.msk.f32.gmra.mxu1 %vm450_vm1, %v379_v17  ;;  %v418_v56 = vld [vmem:[%s10288_s15 + $0x150] sm:$0xff]  ;;  %v419_v57 = vld [vmem:[%s10288_s15 + $0x158] sm:$0xff]  ;;  %v420_v58 = vld [vmem:[%s10288_s15 + $0x160] sm:$0xff] }
  0x2a   : > { %9534 = vmatprep.mubr.msk.f32.mxu1 %vm10140_vm0, %v15687_v1  ;;  %v421_v59 = vld [vmem:[%s10288_s15 + $0x168] sm:$0xff]  ;;  %v422_v60 = vld [vmem:[%s10288_s15 + $0x170] sm:$0xff]  ;;  %v423_v61 = vld [vmem:[%s10288_s15 + $0x178] sm:$0xff] }
  0x2b   : > { %9723 = vmatmul.mubr.msk.f32.gmra.mxu0 %vm450_vm1, %v377_v12  ;;  %v424_v62 = vld [vmem:[%s10288_s15 + $0x180] sm:$0xff]  ;;  %v425_v0 = vld [vmem:[%s10288_s15 + $0x188] sm:$0xff]  ;;  %v426_v6 = vld [vmem:[%s10288_s15 + $0x190] sm:$0xff] }
  0x2c   : > { %9725 = vmatprep.mubr.msk.f32.mxu0 %vm10140_vm0, %v15687_v1  ;;  %v427_v9 = vld [vmem:[%s10288_s15 + $0x198] sm:$0xff]  ;;  %v428_v14 = vld [vmem:[%s10288_s15 + $0x1a0] sm:$0xff] }
  0x2d   : > { %9535 = vmatmul.mubr.msk.f32.gmra.mxu1 %vm450_vm1, %v380_v18 }
  0x2e   : > { %9537 = vmatprep.mubr.msk.f32.mxu1 %vm10140_vm0, %v15687_v1 }
  0x2f   : > { %9726 = vmatmul.mubr.msk.f32.gmra.mxu0 %vm450_vm1, %v378_v15 }
  0x30   : > { %9728 = vmatprep.mubr.msk.f32.mxu0 %vm10140_vm0, %v15687_v1 }
  0x31   : > { %9538 = vmatmul.mubr.msk.f32.gmra.mxu1 %vm450_vm1, %v381_v19 }
  0x32   : > { %9540 = vmatprep.mubr.msk.f32.mxu1 %vm10140_vm0, %v15687_v1 }
  0x33   : > { %9729 = vmatmul.mubr.msk.f32.gmra.mxu0 %vm450_vm1, %v379_v17 }
  0x34   : > { %9731 = vmatprep.mubr.msk.f32.mxu0 %vm10140_vm0, %v15687_v1 }
  0x35   : > { %9541 = vmatmul.mubr.msk.f32.gmra.mxu1 %vm450_vm1, %v382_v20 }
  0x36   : > { %9543 = vmatprep.mubr.msk.f32.mxu1 %vm10140_vm0, %v15687_v1 }
  0x37   : > { %9732 = vmatmul.mubr.msk.f32.gmra.mxu0 %vm450_vm1, %v380_v18 }
  0x38   : > { %9734 = vmatprep.mubr.msk.f32.mxu0 %vm10140_vm0, %v15687_v1 }
  0x39   : > { %9544 = vmatmul.mubr.msk.f32.gmra.mxu1 %vm450_vm1, %v383_v21 }
  0x3a   : > { %9546 = vmatprep.mubr.msk.f32.mxu1 %vm10140_vm0, %v15687_v1 }
  0x3b   : > { %9735 = vmatmul.mubr.msk.f32.gmra.mxu0 %vm450_vm1, %v381_v19  ;;  %v429_v19 = vld [vmem:[%s10288_s15 + $0x1a8] sm:$0xff] }
  0x3c   : > { %9737 = vmatprep.mubr.msk.f32.mxu0 %vm10140_vm0, %v15687_v1 }
  0x3d   : > { %9547 = vmatmul.mubr.msk.f32.gmra.mxu1 %vm450_vm1, %v384_v22 }
  0x3e   : > { %9549 = vmatprep.mubr.msk.f32.mxu1 %vm10140_vm0, %v15687_v1 }
  0x3f   : > { %9738 = vmatmul.mubr.msk.f32.gmra.mxu0 %vm450_vm1, %v382_v20 }
  0x40   : > { %9740 = vmatprep.mubr.msk.f32.mxu0 %vm10140_vm0, %v15687_v1 }
  0x41   : > { %9550 = vmatmul.mubr.msk.f32.gmra.mxu1 %vm450_vm1, %v385_v23 }
  0x42   : > { %9552 = vmatprep.mubr.msk.f32.mxu1 %vm10140_vm0, %v15687_v1 }
  0x43   : > { %9741 = vmatmul.mubr.msk.f32.gmra.mxu0 %vm450_vm1, %v383_v21 }
  0x44   : > { %9743 = vmatprep.mubr.msk.f32.mxu0 %vm10140_vm0, %v15687_v1 }
  0x45   : > { %9553 = vmatmul.mubr.msk.f32.gmra.mxu1 %vm450_vm1, %v386_v24 }
  0x46   : > { %9555 = vmatprep.mubr.msk.f32.mxu1 %vm10140_vm0, %v15687_v1 }
  0x47   : > { %9744 = vmatmul.mubr.msk.f32.gmra.mxu0 %vm450_vm1, %v384_v22 }
  0x48   : > { %9746 = vmatprep.mubr.msk.f32.mxu0 %vm10140_vm0, %v15687_v1 }
  0x49   : > { %9556 = vmatmul.mubr.msk.f32.gmra.mxu1 %vm450_vm1, %v387_v25 }
  0x4a   : > { %9558 = vmatprep.mubr.msk.f32.mxu1 %vm10140_vm0, %v15687_v1 }
  0x4b   : > { %9747 = vmatmul.mubr.msk.f32.gmra.mxu0 %vm450_vm1, %v385_v23 }
  0x4c   : > { %9749 = vmatprep.mubr.msk.f32.mxu0 %vm10140_vm0, %v15687_v1 }
  0x4d   : > { %9559 = vmatmul.mubr.msk.f32.gmra.mxu1 %vm450_vm1, %v388_v26 }
  0x4e   : > { %9561 = vmatprep.mubr.msk.f32.mxu1 %vm10140_vm0, %v15687_v1 }
  0x4f   : > { %9750 = vmatmul.mubr.msk.f32.gmra.mxu0 %vm450_vm1, %v386_v24  ;;  %v430_v24 = vld [vmem:[%s10288_s15 + $0x1b0] sm:$0xff] }
  0x50   : > { %9752 = vmatprep.mubr.msk.f32.mxu0 %vm10140_vm0, %v15687_v1 }
  0x51   : > { %9562 = vmatmul.mubr.msk.f32.gmra.mxu1 %vm450_vm1, %v389_v27 }
  0x52   : > { %9564 = vmatprep.mubr.msk.f32.mxu1 %vm10140_vm0, %v15687_v1 }
  0x53   : > { %9753 = vmatmul.mubr.msk.f32.gmra.mxu0 %vm450_vm1, %v387_v25 }
  0x54   : > { %9755 = vmatprep.mubr.msk.f32.mxu0 %vm10140_vm0, %v15687_v1 }
  0x55   : > { %9565 = vmatmul.mubr.msk.f32.gmra.mxu1 %vm450_vm1, %v390_v28 }
  0x56   : > { %9567 = vmatprep.mubr.msk.f32.mxu1 %vm10140_vm0, %v15687_v1 }
  0x57   : > { %9756 = vmatmul.mubr.msk.f32.gmra.mxu0 %vm450_vm1, %v388_v26 }
  0x58   : > { %9758 = vmatprep.mubr.msk.f32.mxu0 %vm10140_vm0, %v15687_v1 }
  0x59   : > { %9568 = vmatmul.mubr.msk.f32.gmra.mxu1 %vm450_vm1, %v391_v29 }
  0x5a   : > { %9570 = vmatprep.mubr.msk.f32.mxu1 %vm10140_vm0, %v15687_v1 }
  0x5b   : > { %9759 = vmatmul.mubr.msk.f32.gmra.mxu0 %vm450_vm1, %v389_v27 }
  0x5c   : > { %9761 = vmatprep.mubr.msk.f32.mxu0 %vm10140_vm0, %v15687_v1 }
  0x5d   : > { %9571 = vmatmul.mubr.msk.f32.gmra.mxu1 %vm450_vm1, %v392_v30 }
  0x5e   : > { %9573 = vmatprep.mubr.msk.f32.mxu1 %vm10140_vm0, %v15687_v1 }
  0x5f   : > { %9762 = vmatmul.mubr.msk.f32.gmra.mxu0 %vm450_vm1, %v390_v28 }
  0x60   : > { %9764 = vmatprep.mubr.msk.f32.mxu0 %vm10140_vm0, %v15687_v1 }
  0x61   : > { %9574 = vmatmul.mubr.msk.f32.gmra.mxu1 %vm450_vm1, %v393_v31 }
  0x62   : > { %9576 = vmatprep.mubr.msk.f32.mxu1 %vm10140_vm0, %v15687_v1 }
  0x63   : > { %9765 = vmatmul.mubr.msk.f32.gmra.mxu0 %vm450_vm1, %v391_v29  ;;  %v431_v29 = vld [vmem:[%s10288_s15 + $0x1b8] sm:$0xff] }
  0x64   : > { %9767 = vmatprep.mubr.msk.f32.mxu0 %vm10140_vm0, %v15687_v1 }
  0x65   : > { %9577 = vmatmul.mubr.msk.f32.gmra.mxu1 %vm450_vm1, %v394_v32 }
  0x66   : > { %9579 = vmatprep.mubr.msk.f32.mxu1 %vm10140_vm0, %v15687_v1 }
  0x67   : > { %9768 = vmatmul.mubr.msk.f32.gmra.mxu0 %vm450_vm1, %v392_v30 }
  0x68   : > { %9770 = vmatprep.mubr.msk.f32.mxu0 %vm10140_vm0, %v15687_v1 }
  0x69   : > { %9580 = vmatmul.mubr.msk.f32.gmra.mxu1 %vm450_vm1, %v395_v33 }
  0x6a   : > { %9582 = vmatprep.mubr.msk.f32.mxu1 %vm10140_vm0, %v15687_v1 }
  0x6b   : > { %9771 = vmatmul.mubr.msk.f32.gmra.mxu0 %vm450_vm1, %v393_v31 }
  0x6c   : > { %9773 = vmatprep.mubr.msk.f32.mxu0 %vm10140_vm0, %v15687_v1 }
  0x6d   : > { %9583 = vmatmul.mubr.msk.f32.gmra.mxu1 %vm450_vm1, %v396_v34 }
  0x6e   : > { %9585 = vmatprep.mubr.msk.f32.mxu1 %vm10140_vm0, %v15687_v1 }
  0x6f   : > { %9774 = vmatmul.mubr.msk.f32.gmra.mxu0 %vm450_vm1, %v394_v32 }
  0x70   : > { %9776 = vmatprep.mubr.msk.f32.mxu0 %vm10140_vm0, %v15687_v1 }
  0x71   : > { %9586 = vmatmul.mubr.msk.f32.gmra.mxu1 %vm450_vm1, %v397_v35 }
  0x72   : > { %9588 = vmatprep.mubr.msk.f32.mxu1 %vm10140_vm0, %v15687_v1 }
  0x73   : > { %9777 = vmatmul.mubr.msk.f32.gmra.mxu0 %vm450_vm1, %v395_v33 }
  0x74   : > { %9779 = vmatprep.mubr.msk.f32.mxu0 %vm10140_vm0, %v15687_v1 }
  0x75   : > { %9589 = vmatmul.mubr.msk.f32.gmra.mxu1 %vm450_vm1, %v398_v36 }
  0x76   : > { %9591 = vmatprep.mubr.msk.f32.mxu1 %vm10140_vm0, %v15687_v1 }
  0x77   : > { %9780 = vmatmul.mubr.msk.f32.gmra.mxu0 %vm450_vm1, %v396_v34  ;;  %v432_v34 = vld [vmem:[%s10288_s15 + $0x1c0] sm:$0xff] }
  0x78   : > { %9782 = vmatprep.mubr.msk.f32.mxu0 %vm10140_vm0, %v15687_v1 }
  0x79   : > { %9592 = vmatmul.mubr.msk.f32.gmra.mxu1 %vm450_vm1, %v399_v37 }
  0x7a   : > { %9594 = vmatprep.mubr.msk.f32.mxu1 %vm10140_vm0, %v15687_v1 }
  0x7b   : > { %9783 = vmatmul.mubr.msk.f32.gmra.mxu0 %vm450_vm1, %v397_v35 }
  0x7c   : > { %9785 = vmatprep.mubr.msk.f32.mxu0 %vm10140_vm0, %v15687_v1 }
  0x7d   : > { %9595 = vmatmul.mubr.msk.f32.gmra.mxu1 %vm450_vm1, %v400_v38 }
  0x7e   : > { %9597 = vmatprep.mubr.msk.f32.mxu1 %vm10140_vm0, %v15687_v1 }
  0x7f   : > { %9786 = vmatmul.mubr.msk.f32.gmra.mxu0 %vm450_vm1, %v398_v36 }
  0x80   : > { %9788 = vmatprep.mubr.msk.f32.mxu0 %vm10140_vm0, %v15687_v1 }
  0x81   : > { %9598 = vmatmul.mubr.msk.f32.gmra.mxu1 %vm450_vm1, %v401_v39 }
  0x82   : > { %9600 = vmatprep.mubr.msk.f32.mxu1 %vm10140_vm0, %v15687_v1 }
  0x83   : > { %9789 = vmatmul.mubr.msk.f32.gmra.mxu0 %vm450_vm1, %v399_v37 }
  0x84   : > { %9791 = vmatprep.mubr.msk.f32.mxu0 %vm10140_vm0, %v15687_v1 }
  0x85   : > { %9601 = vmatmul.mubr.msk.f32.gmra.mxu1 %vm450_vm1, %v402_v40 }
  0x86   : > { %9603 = vmatprep.mubr.msk.f32.mxu1 %vm10140_vm0, %v15687_v1 }
  0x87   : > { %9792 = vmatmul.mubr.msk.f32.gmra.mxu0 %vm450_vm1, %v400_v38 }
  0x88   : > { %9794 = vmatprep.mubr.msk.f32.mxu0 %vm10140_vm0, %v15687_v1 }
  0x89   : > { %9604 = vmatmul.mubr.msk.f32.gmra.mxu1 %vm450_vm1, %v403_v41 }
  0x8a   : > { %9606 = vmatprep.mubr.msk.f32.mxu1 %vm10140_vm0, %v15687_v1 }
  0x8b   : > { %9795 = vmatmul.mubr.msk.f32.gmra.mxu0 %vm450_vm1, %v401_v39  ;;  %v433_v39 = vld [vmem:[%s10288_s15 + $0x1c8] sm:$0xff] }
  0x8c   : > { %9797 = vmatprep.mubr.msk.f32.mxu0 %vm10140_vm0, %v15687_v1 }
  0x8d   : > { %9607 = vmatmul.mubr.msk.f32.gmra.mxu1 %vm450_vm1, %v404_v42 }
  0x8e   : > { %9609 = vmatprep.mubr.msk.f32.mxu1 %vm10140_vm0, %v15687_v1 }
  0x8f   : > { %9798 = vmatmul.mubr.msk.f32.gmra.mxu0 %vm450_vm1, %v402_v40 }
  0x90   : > { %9800 = vmatprep.mubr.msk.f32.mxu0 %vm10140_vm0, %v15687_v1 }
  0x91   : > { %9610 = vmatmul.mubr.msk.f32.gmra.mxu1 %vm450_vm1, %v405_v43 }
  0x92   : > { %9612 = vmatprep.mubr.msk.f32.mxu1 %vm10140_vm0, %v15687_v1 }
  0x93   : > { %9801 = vmatmul.mubr.msk.f32.gmra.mxu0 %vm450_vm1, %v403_v41 }
  0x94   : > { %9803 = vmatprep.mubr.msk.f32.mxu0 %vm10140_vm0, %v15687_v1 }
  0x95   : > { %9613 = vmatmul.mubr.msk.f32.gmra.mxu1 %vm450_vm1, %v406_v44 }
  0x96   : > { %9615 = vmatprep.mubr.msk.f32.mxu1 %vm10140_vm0, %v15687_v1 }
  0x97   : > { %9804 = vmatmul.mubr.msk.f32.gmra.mxu0 %vm450_vm1, %v404_v42 }
  0x98   : > { %9806 = vmatprep.mubr.msk.f32.mxu0 %vm10140_vm0, %v15687_v1 }
  0x99   : > { %9616 = vmatmul.mubr.msk.f32.gmra.mxu1 %vm450_vm1, %v407_v45 }
  0x9a   : > { %9618 = vmatprep.mubr.msk.f32.mxu1 %vm10140_vm0, %v15687_v1 }
  0x9b   : > { %9807 = vmatmul.mubr.msk.f32.gmra.mxu0 %vm450_vm1, %v405_v43 }
  0x9c   : > { %9809 = vmatprep.mubr.msk.f32.mxu0 %vm10140_vm0, %v15687_v1 }
  0x9d   : > { %9619 = vmatmul.mubr.msk.f32.gmra.mxu1 %vm450_vm1, %v408_v46 }
  0x9e   : > { %9621 = vmatprep.mubr.msk.f32.mxu1 %vm10140_vm0, %v15687_v1 }
  0x9f   : > { %9810 = vmatmul.mubr.msk.f32.gmra.mxu0 %vm450_vm1, %v406_v44  ;;  %v434_v44 = vld [vmem:[%s10288_s15 + $0x1d0] sm:$0xff] }
  0xa0   : > { %9812 = vmatprep.mubr.msk.f32.mxu0 %vm10140_vm0, %v15687_v1 }
  0xa1   : > { %9622 = vmatmul.mubr.msk.f32.gmra.mxu1 %vm450_vm1, %v409_v47 }
  0xa2   : > { %9624 = vmatprep.mubr.msk.f32.mxu1 %vm10140_vm0, %v15687_v1 }
  0xa3   : > { %9813 = vmatmul.mubr.msk.f32.gmra.mxu0 %vm450_vm1, %v407_v45 }
  0xa4   : > { %9815 = vmatprep.mubr.msk.f32.mxu0 %vm10140_vm0, %v15687_v1 }
  0xa5   : > { %9625 = vmatmul.mubr.msk.f32.gmra.mxu1 %vm450_vm1, %v410_v48 }
  0xa6   : > { %9627 = vmatprep.mubr.msk.f32.mxu1 %vm10140_vm0, %v15687_v1 }
  0xa7   : > { %9816 = vmatmul.mubr.msk.f32.gmra.mxu0 %vm450_vm1, %v408_v46 }
  0xa8   : > { %9818 = vmatprep.mubr.msk.f32.mxu0 %vm10140_vm0, %v15687_v1 }
  0xa9   : > { %9628 = vmatmul.mubr.msk.f32.gmra.mxu1 %vm450_vm1, %v411_v49 }
  0xaa   : > { %9630 = vmatprep.mubr.msk.f32.mxu1 %vm10140_vm0, %v15687_v1 }
  0xab   : > { %9819 = vmatmul.mubr.msk.f32.gmra.mxu0 %vm450_vm1, %v409_v47 }
  0xac   : > { %9821 = vmatprep.mubr.msk.f32.mxu0 %vm10140_vm0, %v15687_v1 }
  0xad   : > { %9631 = vmatmul.mubr.msk.f32.gmra.mxu1 %vm450_vm1, %v412_v50 }
  0xae   : > { %9633 = vmatprep.mubr.msk.f32.mxu1 %vm10140_vm0, %v15687_v1 }
  0xaf   : > { %9822 = vmatmul.mubr.msk.f32.gmra.mxu0 %vm450_vm1, %v410_v48 }
  0xb0   : > { %9824 = vmatprep.mubr.msk.f32.mxu0 %vm10140_vm0, %v15687_v1 }
  0xb1   : > { %9634 = vmatmul.mubr.msk.f32.gmra.mxu1 %vm450_vm1, %v413_v51 }
  0xb2   : > { %9636 = vmatprep.mubr.msk.f32.mxu1 %vm10140_vm0, %v15687_v1 }
  0xb3   : > { %9825 = vmatmul.mubr.msk.f32.gmra.mxu0 %vm450_vm1, %v411_v49  ;;  %v435_v49 = vld [vmem:[%s10288_s15 + $0x1d8] sm:$0xff] }
  0xb4   : > { %9827 = vmatprep.mubr.msk.f32.mxu0 %vm10140_vm0, %v15687_v1 }
  0xb5   : > { %9637 = vmatmul.mubr.msk.f32.gmra.mxu1 %vm450_vm1, %v414_v52 }
  0xb6   : > { %9639 = vmatprep.mubr.msk.f32.mxu1 %vm10140_vm0, %v15687_v1 }
  0xb7   : > { %9828 = vmatmul.mubr.msk.f32.gmra.mxu0 %vm450_vm1, %v412_v50 }
  0xb8   : > { %9830 = vmatprep.mubr.msk.f32.mxu0 %vm10140_vm0, %v15687_v1 }
  0xb9   : > { %9640 = vmatmul.mubr.msk.f32.gmra.mxu1 %vm450_vm1, %v415_v53 }
  0xba   : > { %9642 = vmatprep.mubr.msk.f32.mxu1 %vm10140_vm0, %v15687_v1 }
  0xbb   : > { %9831 = vmatmul.mubr.msk.f32.gmra.mxu0 %vm450_vm1, %v413_v51 }
  0xbc   : > { %9833 = vmatprep.mubr.msk.f32.mxu0 %vm10140_vm0, %v15687_v1 }
  0xbd   : > { %9643 = vmatmul.mubr.msk.f32.gmra.mxu1 %vm450_vm1, %v416_v54 }
  0xbe   : > { %9645 = vmatprep.mubr.msk.f32.mxu1 %vm10140_vm0, %v15687_v1 }
  0xbf   : > { %9834 = vmatmul.mubr.msk.f32.gmra.mxu0 %vm450_vm1, %v414_v52 }
  0xc0   : > { %9836 = vmatprep.mubr.msk.f32.mxu0 %vm10140_vm0, %v15687_v1 }
  0xc1   : > { %9646 = vmatmul.mubr.msk.f32.gmra.mxu1 %vm450_vm1, %v417_v55 }
  0xc2   : > { %9648 = vmatprep.mubr.msk.f32.mxu1 %vm10140_vm0, %v15687_v1 }
  0xc3   : > { %9837 = vmatmul.mubr.msk.f32.gmra.mxu0 %vm450_vm1, %v415_v53 }
  0xc4   : > { %9839 = vmatprep.mubr.msk.f32.mxu0 %vm10140_vm0, %v15687_v1 }
  0xc5   : > { %9649 = vmatmul.mubr.msk.f32.gmra.mxu1 %vm450_vm1, %v418_v56 }
  0xc6   : > { %9651 = vmatprep.mubr.msk.f32.mxu1 %vm10140_vm0, %v15687_v1 }
  0xc7   : > { %9840 = vmatmul.mubr.msk.f32.gmra.mxu0 %vm450_vm1, %v416_v54  ;;  %v436_v54 = vld [vmem:[%s10288_s15 + $0x1e0] sm:$0xff] }
  0xc8   : > { %9842 = vmatprep.mubr.msk.f32.mxu0 %vm10140_vm0, %v15687_v1 }
  0xc9   : > { %9652 = vmatmul.mubr.msk.f32.gmra.mxu1 %vm450_vm1, %v419_v57 }
  0xca   : > { %9654 = vmatprep.mubr.msk.f32.mxu1 %vm10140_vm0, %v15687_v1 }
  0xcb   : > { %9843 = vmatmul.mubr.msk.f32.gmra.mxu0 %vm450_vm1, %v417_v55 }
  0xcc   : > { %9845 = vmatprep.mubr.msk.f32.mxu0 %vm10140_vm0, %v15687_v1 }
  0xcd   : > { %9655 = vmatmul.mubr.msk.f32.gmra.mxu1 %vm450_vm1, %v420_v58 }
  0xce   : > { %9657 = vmatprep.mubr.msk.f32.mxu1 %vm10140_vm0, %v15687_v1 }
  0xcf   : > { %9846 = vmatmul.mubr.msk.f32.gmra.mxu0 %vm450_vm1, %v418_v56 }
  0xd0   : > { %9848 = vmatprep.mubr.msk.f32.mxu0 %vm10140_vm0, %v15687_v1 }
  0xd1   : > { %9658 = vmatmul.mubr.msk.f32.gmra.mxu1 %vm450_vm1, %v421_v59 }
  0xd2   : > { %9660 = vmatprep.mubr.msk.f32.mxu1 %vm10140_vm0, %v15687_v1 }
  0xd3   : > { %9849 = vmatmul.mubr.msk.f32.gmra.mxu0 %vm450_vm1, %v419_v57 }
  0xd4   : > { %9851 = vmatprep.mubr.msk.f32.mxu0 %vm10140_vm0, %v15687_v1 }
  0xd5   : > { %9661 = vmatmul.mubr.msk.f32.gmra.mxu1 %vm450_vm1, %v422_v60 }
  0xd6   : > { %9663 = vmatprep.mubr.msk.f32.mxu1 %vm10140_vm0, %v15687_v1 }
  0xd7   : > { %9852 = vmatmul.mubr.msk.f32.gmra.mxu0 %vm450_vm1, %v420_v58 }
  0xd8   : > { %9854 = vmatprep.mubr.msk.f32.mxu0 %vm10140_vm0, %v15687_v1 }
  0xd9   : > { %9664 = vmatmul.mubr.msk.f32.gmra.mxu1 %vm450_vm1, %v423_v61 }
  0xda   : > { %9666 = vmatprep.mubr.msk.f32.mxu1 %vm10140_vm0, %v15687_v1 }
  0xdb   : > { %9855 = vmatmul.mubr.msk.f32.gmra.mxu0 %vm450_vm1, %v421_v59  ;;  %v437_v59 = vld [vmem:[%s10288_s15 + $0x1e8] sm:$0xff] }
  0xdc   : > { %9857 = vmatprep.mubr.msk.f32.mxu0 %vm10140_vm0, %v15687_v1 }
  0xdd   : > { %v10649_v63 = vpop.f32.mrf.mxu1  ;;  %9667 = vmatmul.mubr.msk.f32.gmra.mxu1 %vm450_vm1, %v424_v62 }
  0xde   : > { %9669 = vmatprep.mubr.msk.f32.mxu1 %vm10140_vm0, %v15687_v1 }
  0xdf   : > { %v9524_v2 = vpop.f32.mrf.mxu1  ;;  %v10655_v3 = vpop.f32.mrf.mxu0  ;;  %9858 = vmatmul.mubr.msk.f32.gmra.mxu0 %vm450_vm1, %v422_v60 }
  0xe0   : > { %9860 = vmatprep.mubr.msk.f32.mxu0 %vm10140_vm0, %v15687_v1  ;;  %v438_v2 = vld [vmem:[%s10288_s15 + $0x1f0] sm:$0xf]  ;;  %s10144_s15 = smov 112  }
  0xe1   : > { %v10660_v4 = vpop.f32.mrf.mxu1  ;;  %9670 = vmatmul.mubr.msk.f32.gmra.mxu1 %vm450_vm1, %v425_v0  ;;  %v9513_v5 = vpop.f32.mrf.mxu0 }
  0xe2   : > { %9672 = vmatprep.mubr.msk.f32.mxu1 %vm10140_vm0, %v15687_v1 }
  0xe3   : > { %v9527_v7 = vpop.f32.mrf.mxu1  ;;  %9861 = vmatmul.mubr.msk.f32.gmra.mxu0 %vm450_vm1, %v423_v61 }
  0xe4   : > { %9863 = vmatprep.mubr.msk.f32.mxu0 %vm10140_vm0, %v15687_v1 }
  0xe5   : > { %v10669_v8 = vpop.f32.mrf.mxu1  ;;  %9673 = vmatmul.mubr.msk.f32.gmra.mxu1 %vm450_vm1, %v426_v6 }
  0xe6   : > { %9675 = vmatprep.mubr.msk.f32.mxu1 %vm10140_vm0, %v15687_v1 }
  0xe7   : > { %v9530_v10 = vpop.f32.mrf.mxu1  ;;  %v10675_v11 = vpop.f32.mrf.mxu0  ;;  %9864 = vmatmul.mubr.msk.f32.gmra.mxu0 %vm450_vm1, %v424_v62 }
  0xe8   : > { %15958 = vst [vmem:[#allocation7_spill] sm:$0xff] %v10675_v11  ;;  %9866 = vmatprep.mubr.msk.f32.mxu0 %vm10140_vm0, %v15687_v1 }
  0xe9   : > { %v10680_v12 = vpop.f32.mrf.mxu1  ;;  %9676 = vmatmul.mubr.msk.f32.gmra.mxu1 %vm450_vm1, %v427_v9  ;;  %v9721_v13 = vpop.f32.mrf.mxu0 }
  0xea   : > { %9678 = vmatprep.mubr.msk.f32.mxu1 %vm10140_vm0, %v15687_v1 }
  0xeb   : > { %v9533_v15 = vpop.f32.mrf.mxu1  ;;  %v10686_v16 = vpop.f32.mrf.mxu0  ;;  %9867 = vmatmul.mubr.msk.f32.gmra.mxu0 %vm450_vm1, %v425_v0 }
  0xec   : > { %15959 = vst [vmem:[#allocation8_spill] sm:$0xff] %v10686_v16  ;;  %9869 = vmatprep.mubr.msk.f32.mxu0 %vm10140_vm0, %v15687_v1 }
  0xed   : > { %v10691_v17 = vpop.f32.mrf.mxu1  ;;  %9679 = vmatmul.mubr.msk.f32.gmra.mxu1 %vm450_vm1, %v428_v14  ;;  %v9724_v18 = vpop.f32.mrf.mxu0 }
  0xee   : > { %9681 = vmatprep.mubr.msk.f32.mxu1 %vm10140_vm0, %v15687_v1 }
  0xef   : > { %v9536_v20 = vpop.f32.mrf.mxu1  ;;  %v10697_v21 = vpop.f32.mrf.mxu0  ;;  %9870 = vmatmul.mubr.msk.f32.gmra.mxu0 %vm450_vm1, %v426_v6 }
  0xf0   : > { %15960 = vst [vmem:[#allocation9_spill] sm:$0xff] %v10697_v21  ;;  %9872 = vmatprep.mubr.msk.f32.mxu0 %vm10140_vm0, %v15687_v1 }
  0xf1   : > { %v10702_v22 = vpop.f32.mrf.mxu1  ;;  %9682 = vmatmul.mubr.msk.f32.gmra.mxu1 %vm450_vm1, %v429_v19  ;;  %v9727_v23 = vpop.f32.mrf.mxu0 }
  0xf2   : > { %9684 = vmatprep.mubr.msk.f32.mxu1 %vm10140_vm0, %v15687_v1 }
  0xf3   : > { %v9539_v25 = vpop.f32.mrf.mxu1  ;;  %v10708_v26 = vpop.f32.mrf.mxu0  ;;  %9873 = vmatmul.mubr.msk.f32.gmra.mxu0 %vm450_vm1, %v427_v9 }
  0xf4   : > { %9875 = vmatprep.mubr.msk.f32.mxu0 %vm10140_vm0, %v15687_v1 }
  0xf5   : > { %v10713_v27 = vpop.f32.mrf.mxu1  ;;  %9685 = vmatmul.mubr.msk.f32.gmra.mxu1 %vm450_vm1, %v430_v24  ;;  %v9730_v28 = vpop.f32.mrf.mxu0 }
  0xf6   : > { %9687 = vmatprep.mubr.msk.f32.mxu1 %vm10140_vm0, %v15687_v1 }
  0xf7   : > { %v9542_v30 = vpop.f32.mrf.mxu1  ;;  %v10719_v31 = vpop.f32.mrf.mxu0  ;;  %9876 = vmatmul.mubr.msk.f32.gmra.mxu0 %vm450_vm1, %v428_v14 }
  0xf8   : > { %9878 = vmatprep.mubr.msk.f32.mxu0 %vm10140_vm0, %v15687_v1 }
  0xf9   : > { %v10724_v32 = vpop.f32.mrf.mxu1  ;;  %9688 = vmatmul.mubr.msk.f32.gmra.mxu1 %vm450_vm1, %v431_v29  ;;  %v9733_v33 = vpop.f32.mrf.mxu0 }
  0xfa   : > { %9690 = vmatprep.mubr.msk.f32.mxu1 %vm10140_vm0, %v15687_v1 }
  0xfb   : > { %v9545_v35 = vpop.f32.mrf.mxu1  ;;  %v10730_v36 = vpop.f32.mrf.mxu0  ;;  %9879 = vmatmul.mubr.msk.f32.gmra.mxu0 %vm450_vm1, %v429_v19 }
  0xfc   : > { %9881 = vmatprep.mubr.msk.f32.mxu0 %vm10140_vm0, %v15687_v1 }
  0xfd   : > { %v10735_v37 = vpop.f32.mrf.mxu1  ;;  %9691 = vmatmul.mubr.msk.f32.gmra.mxu1 %vm450_vm1, %v432_v34  ;;  %v9736_v38 = vpop.f32.mrf.mxu0 }
  0xfe   : > { %9693 = vmatprep.mubr.msk.f32.mxu1 %vm10140_vm0, %v15687_v1 }
  0xff   : > { %v9548_v40 = vpop.f32.mrf.mxu1  ;;  %v10741_v41 = vpop.f32.mrf.mxu0  ;;  %9882 = vmatmul.mubr.msk.f32.gmra.mxu0 %vm450_vm1, %v430_v24 }
 0x100   : > { %9884 = vmatprep.mubr.msk.f32.mxu0 %vm10140_vm0, %v15687_v1 }
 0x101   : > { %v10746_v42 = vpop.f32.mrf.mxu1  ;;  %9694 = vmatmul.mubr.msk.f32.gmra.mxu1 %vm450_vm1, %v433_v39  ;;  %v9739_v43 = vpop.f32.mrf.mxu0 }
 0x102   : > { %9696 = vmatprep.mubr.msk.f32.mxu1 %vm10140_vm0, %v15687_v1 }
 0x103   : > { %v9551_v45 = vpop.f32.mrf.mxu1  ;;  %v10752_v46 = vpop.f32.mrf.mxu0  ;;  %9885 = vmatmul.mubr.msk.f32.gmra.mxu0 %vm450_vm1, %v431_v29 }
 0x104   : > { %9887 = vmatprep.mubr.msk.f32.mxu0 %vm10140_vm0, %v15687_v1 }
 0x105   : > { %v10757_v47 = vpop.f32.mrf.mxu1  ;;  %9697 = vmatmul.mubr.msk.f32.gmra.mxu1 %vm450_vm1, %v434_v44  ;;  %v9742_v48 = vpop.f32.mrf.mxu0 }
 0x106   : > { %9699 = vmatprep.mubr.msk.f32.mxu1 %vm10140_vm0, %v15687_v1 }
 0x107   : > { %v9554_v50 = vpop.f32.mrf.mxu1  ;;  %v10763_v51 = vpop.f32.mrf.mxu0  ;;  %9888 = vmatmul.mubr.msk.f32.gmra.mxu0 %vm450_vm1, %v432_v34 }
 0x108   : > { %9890 = vmatprep.mubr.msk.f32.mxu0 %vm10140_vm0, %v15687_v1 }
 0x109   : > { %v10768_v52 = vpop.f32.mrf.mxu1  ;;  %9700 = vmatmul.mubr.msk.f32.gmra.mxu1 %vm450_vm1, %v435_v49  ;;  %v9745_v53 = vpop.f32.mrf.mxu0 }
 0x10a   : > { %9702 = vmatprep.mubr.msk.f32.mxu1 %vm10140_vm0, %v15687_v1 }
 0x10b   : > { %v9557_v55 = vpop.f32.mrf.mxu1  ;;  %v10774_v56 = vpop.f32.mrf.mxu0  ;;  %9891 = vmatmul.mubr.msk.f32.gmra.mxu0 %vm450_vm1, %v433_v39 }
 0x10c   : > { %9893 = vmatprep.mubr.msk.f32.mxu0 %vm10140_vm0, %v15687_v1 }
 0x10d   : > { %v10779_v57 = vpop.f32.mrf.mxu1  ;;  %9703 = vmatmul.mubr.msk.f32.gmra.mxu1 %vm450_vm1, %v436_v54  ;;  %v9748_v58 = vpop.f32.mrf.mxu0 }
 0x10e   : > { %9705 = vmatprep.mubr.msk.f32.mxu1 %vm10140_vm0, %v15687_v1 }
 0x10f   : > { %v9560_v60 = vpop.f32.mrf.mxu1  ;;  %v10785_v61 = vpop.f32.mrf.mxu0  ;;  %9894 = vmatmul.mubr.msk.f32.gmra.mxu0 %vm450_vm1, %v434_v44 }
 0x110   : > { %9896 = vmatprep.mubr.msk.f32.mxu0 %vm10140_vm0, %v15687_v1 }
 0x111   : > { %v10790_v62 = vpop.f32.mrf.mxu1  ;;  %9706 = vmatmul.mubr.msk.f32.gmra.mxu1 %vm450_vm1, %v437_v59  ;;  %v9751_v0 = vpop.f32.mrf.mxu0 }
 0x112   : > { %9708 = vmatprep.mubr.msk.f32.mxu1 %vm10140_vm0, %v15687_v1 }
 0x113   : > { %v9563_v5 = vpop.f32.mrf.mxu1  ;;  %v10796_v6 = vpop.f32.mrf.mxu0  ;;  %9897 = vmatmul.mubr.msk.f32.gmra.mxu0 %vm450_vm1, %v435_v49 }
 0x114   : > { %9899 = vmatprep.mubr.msk.f32.mxu0 %vm10140_vm0, %v15687_v1 }
 0x115   : > { %v10801_v7 = vpop.f32.mrf.mxu1  ;;  %9709 = vmatmul.mubr.msk.f32.gmra.mxu1 %vm450_vm1, %v438_v2  ;;  %v9754_v9 = vpop.f32.mrf.mxu0 }
 0x117   : > { %v9566_v10 = vpop.f32.mrf.mxu1  ;;  %v10804_v13 = vpop.f32.mrf.mxu0  ;;  %9900 = vmatmul.mubr.msk.f32.gmra.mxu0 %vm450_vm1, %v436_v54 }
 0x118   : > { %9902 = vmatprep.mubr.msk.f32.mxu0 %vm10140_vm0, %v15687_v1 }
 0x119   : > { %v10809_v14 = vpop.f32.mrf.mxu1  ;;  %v9757_v15 = vpop.f32.mrf.mxu0 }
 0x11a   : > { %v8109_v15 = vld [vmem:[%s15680_s5] ss:$0 sm:$0xff] }
 0x11b   : > { %v9569_v18 = vpop.f32.mrf.mxu1  ;;  %v10811_v19 = vpop.f32.mrf.mxu0  ;;  %9903 = vmatmul.mubr.msk.f32.gmra.mxu0 %vm450_vm1, %v437_v59 }
 0x11c   : > { %9905 = vmatprep.mubr.msk.f32.mxu0 %vm10140_vm0, %v15687_v1 }
 0x11d   : > { %v10816_v20 = vpop.f32.mrf.mxu1  ;;  %v9760_v23 = vpop.f32.mrf.mxu0 }
 0x11e   : > { %v521_v23 = vadd.f32 %v8109_v15, %v10655_v3 }
 0x11f   : > { %v9572_v24 = vpop.f32.mrf.mxu1  ;;  %v10818_v25 = vpop.f32.mrf.mxu0  ;;  %9906 = vmatmul.mubr.msk.f32.gmra.mxu0 %vm450_vm1, %v438_v2 }
 0x120   : > { %1828 = vmatprep.mubr.f32.mxu0 %v15687_v1 }
 0x121   : > { %v10822_v28 = vpop.f32.mrf.mxu1  ;;  %v9763_v29 = vpop.f32.mrf.mxu0 }
 0x123   : > { %v9575_v30 = vpop.f32.mrf.mxu1  ;;  %v10824_v33 = vpop.f32.mrf.mxu0 }
 0x124   : > { %v10856_v30 = vmul.f32 0.5, %v521_v23 }
 0x125   : > { %v10826_v34 = vpop.f32.mrf.mxu1  ;;  %v9766_v35 = vpop.f32.mrf.mxu0 }
 0x126   : > { %15964 = vst [vmem:[#allocation13_spill] sm:$0xff] %v10856_v30  ;;  %8967 = vmatprep.mubr.msk.f32.mxu1 %vm1500_vm2, %v10856_v30 }
 0x127   : > { %v9578_v38 = vpop.f32.mrf.mxu1  ;;  %v10828_v39 = vpop.f32.mrf.mxu0 }
 0x128   : > { %15961 = vst [vmem:[#allocation10_spill] sm:$0xff] %v10828_v39 }
 0x129   : > { %v10830_v40 = vpop.f32.mrf.mxu1  ;;  %v9769_v43 = vpop.f32.mrf.mxu0 }
 0x12b   : > { %v9581_v44 = vpop.f32.mrf.mxu1  ;;  %v10832_v45 = vpop.f32.mrf.mxu0 }
 0x12c   : > { %15962 = vst [vmem:[#allocation11_spill] sm:$0xff] %v10832_v45 }
 0x12d   : > { %v10834_v48 = vpop.f32.mrf.mxu1  ;;  %v9772_v49 = vpop.f32.mrf.mxu0 }
 0x12f   : > { %v9584_v50 = vpop.f32.mrf.mxu1  ;;  %v10836_v53 = vpop.f32.mrf.mxu0 }
 0x130   : > { %15963 = vst [vmem:[#allocation12_spill] sm:$0xff] %v10836_v53 }
 0x131   : > { %v10838_v54 = vpop.f32.mrf.mxu1  ;;  %v9775_v55 = vpop.f32.mrf.mxu0 }
 0x133   : > { %v9587_v58 = vpop.f32.mrf.mxu1  ;;  %v10840_v59 = vpop.f32.mrf.mxu0 }
 0x135   : > { %v10842_v60 = vpop.f32.mrf.mxu1  ;;  %v9778_v0 = vpop.f32.mrf.mxu0 }
 0x137   : > { %v9590_v2 = vpop.f32.mrf.mxu1  ;;  %v10844_v5 = vpop.f32.mrf.mxu0 }
 0x139   : > { %v10846_v9 = vpop.f32.mrf.mxu1  ;;  %v9781_v10 = vpop.f32.mrf.mxu0 }
 0x13b   : > { %v9593_v18 = vpop.f32.mrf.mxu1  ;;  %v10852_v24 = vpop.f32.mrf.mxu0 }
 0x13d   : > { %v10854_v29 = vpop.f32.mrf.mxu1  ;;  %v9784_v35 = vpop.f32.mrf.mxu0 }
 0x13f   : > { %v9596_v38 = vpop.f32.mrf.mxu1  ;;  %v10860_v43 = vpop.f32.mrf.mxu0 }
 0x141   : > { %v10862_v44 = vpop.f32.mrf.mxu1  ;;  %v9787_v49 = vpop.f32.mrf.mxu0 }
 0x143   : > { %v9599_v50 = vpop.f32.mrf.mxu1  ;;  %v10864_v55 = vpop.f32.mrf.mxu0 }
 0x145   : > { %v920_v3 = vpop.f32.mrf.mxu1  ;;  %v9790_v58 = vpop.f32.mrf.mxu0 }
 0x147   : > { %v9602_v0 = vpop.f32.mrf.mxu1  ;;  %v10866_v2 = vpop.f32.mrf.mxu0 }
 0x149   : > { %v925_v10 = vpop.f32.mrf.mxu1  ;;  %v9793_v15 = vpop.f32.mrf.mxu0 }
 0x14a   : > { %v10879_v15 = vld [vmem:[%s15681_s6] ss:$0 sm:$0xff] }
 0x14b   : > { %v9605_v18 = vpop.f32.mrf.mxu1  ;;  %v10868_v23 = vpop.f32.mrf.mxu0 }
 0x14d   : > { %v930_v35 = vpop.f32.mrf.mxu1  ;;  %v9796_v38 = vpop.f32.mrf.mxu0 }
 0x14f   : > { %v9608_v1 = vpop.f32.mrf.mxu1  ;;  %v10870_v11 = vpop.f32.mrf.mxu0 }
 0x151   : > { %v935_v39 = vpop.f32.mrf.mxu1  ;;  %v9799_v49 = vpop.f32.mrf.mxu0 }
 0x152   : > { %v10886_v49 = vadd.f32 %v10879_v15, %v10809_v14  ;;  %v10903_v14 = vadd.f32 %v10879_v15, %v10801_v7 }
 0x153   : > { %v9611_v50 = vpop.f32.mrf.mxu1  ;;  %v10872_v16 = vpop.f32.mrf.mxu0 }
 0x154   : > { %15966 = vst [vmem:[#allocation15_spill] sm:$0xff] %v10886_v49  ;;  %15968 = vst [vmem:[#allocation17_spill] sm:$0xff] %v10903_v14 }
 0x155   : > { %v940_v45 = vpop.f32.mrf.mxu1  ;;  %v9802_v58 = vpop.f32.mrf.mxu0 }
 0x156   : > { %v10891_v58 = vadd.f32 %v10879_v15, %v940_v45  ;;  %v10908_v45 = vadd.f32 %v10879_v15, %v935_v39 }
 0x157   : > { %v9614_v0 = vpop.f32.mrf.mxu1  ;;  %v10874_v21 = vpop.f32.mrf.mxu0 }
 0x158   : > { %15967 = vst [vmem:[#allocation16_spill] sm:$0xff] %v10891_v58  ;;  %15969 = vst [vmem:[#allocation18_spill] sm:$0xff] %v10908_v45 }
 0x159   : > { %v945_v18 = vpop.f32.mrf.mxu1  ;;  %v9805_v38 = vpop.f32.mrf.mxu0 }
 0x15a   : > { %v10882_v1 = vadd.f32 %v10879_v15, %v945_v18 }
 0x15b   : > { %v9617_v50 = vpop.f32.mrf.mxu1  ;;  %v10888_v53 = vpop.f32.mrf.mxu0 }
 0x15c   : > { %15965 = vst [vmem:[#allocation14_spill] sm:$0xff] %v10882_v1  ;;  %8935 = vmatprep.subr.msk.mxu1 %vm1500_vm2, %v10882_v1 }
 0x15d   : > { %v10895_v0 = vpop.f32.mrf.mxu1  ;;  %8936 = vmatpush3.xpose.msk.msra.mxu1 %vm1500_vm2, %v10886_v49  ;;  %v9808_v18 = vpop.f32.mrf.mxu0 }
 0x15e   : > { %8937 = vmatprep.subr.msk.mxu1 %vm1500_vm2, %v10891_v58  ;;  %v10918_v18 = vadd.f32 %v10879_v15, %v10790_v62  ;;  %v10923_v58 = vadd.f32 %v10879_v15, %v930_v35  ;;  %v10946_v35 = vadd.f32 %v10879_v15, %v10768_v52  ;;  %v10963_v52 = vadd.f32 %v10879_v15, %v10862_v44 }
 0x15f   : > { %v9620_v38 = vpop.f32.mrf.mxu1  ;;  %v10905_v50 = vpop.f32.mrf.mxu0  ;;  %v10987_v44 = vadd.f32 %v10879_v15, %v10735_v37  ;;  %v11005_v37 = vadd.f32 %v10879_v15, %v10842_v60 }
 0x160   : > { %15970 = vst [vmem:[#allocation19_spill] sm:$0xff] %v10918_v18  ;;  %15971 = vst [vmem:[#allocation20_spill] sm:$0xff] %v10923_v58 }
 0x161   : > { %v10910_v1 = vpop.f32.mrf.mxu1  ;;  %8938 = vmatpush3.xpose.msk.msra.mxu1 %vm1500_vm2, %v10903_v14  ;;  %v9811_v49 = vpop.f32.mrf.mxu0  ;;  %15974 = vst [vmem:[#allocation23_spill] sm:$0xff] %v10946_v35  ;;  %15977 = vst [vmem:[#allocation26_spill] sm:$0xff] %v10963_v52 }
 0x162   : > { %8939 = vmatprep.subr.msk.mxu1 %vm1500_vm2, %v10908_v45  ;;  %v10933_v49 = vadd.f32 %v10879_v15, %v10779_v57  ;;  %v10949_v57 = vadd.f32 %v10879_v15, %v920_v3  ;;  %v10973_v3 = vadd.f32 %v10879_v15, %v10746_v42  ;;  %15980 = vst [vmem:[#allocation29_spill] sm:$0xff] %v10987_v44  ;;  %15983 = vst [vmem:[#allocation32_spill] sm:$0xff] %v11005_v37 }
 0x163   : > { %v9623_v7 = vpop.f32.mrf.mxu1  ;;  %v10920_v38 = vpop.f32.mrf.mxu0  ;;  %v10991_v42 = vadd.f32 %v10879_v15, %v10846_v9  ;;  %v11015_v9 = vadd.f32 %v10879_v15, %v10713_v27 }
 0x164   : > { %15972 = vst [vmem:[#allocation21_spill] sm:$0xff] %v10933_v49  ;;  %v10936_v7 = vadd.f32 %v10879_v15, %v925_v10  ;;  %15975 = vst [vmem:[#allocation24_spill] sm:$0xff] %v10949_v57  ;;  %v10959_v10 = vadd.f32 %v10879_v15, %v10757_v47  ;;  %v10977_v47 = vadd.f32 %v10879_v15, %v10854_v29 }
 0x165   : > { %v10925_v39 = vpop.f32.mrf.mxu1  ;;  %8940 = vmatpush3.xpose.msk.msra.mxu1 %vm1500_vm2, %v10918_v18  ;;  %v9814_v14 = vpop.f32.mrf.mxu0  ;;  %15978 = vst [vmem:[#allocation27_spill] sm:$0xff] %v10973_v3  ;;  %15981 = vst [vmem:[#allocation30_spill] sm:$0xff] %v10991_v42  ;;  %v11001_v29 = vadd.f32 %v10879_v15, %v10724_v32  ;;  %v11019_v32 = vadd.f32 %v10879_v15, %v10838_v54  ;;  %v11035_v54 = vadd.f32 %v10879_v15, %v10834_v48 }
 0x166   : > { %8941 = vmatprep.subr.msk.mxu1 %vm1500_vm2, %v10923_v58  ;;  %15973 = vst [vmem:[#allocation22_spill] sm:$0xff] %v10936_v7  ;;  %15976 = vst [vmem:[#allocation25_spill] sm:$0xff] %v10959_v10  ;;  %v11051_v48 = vadd.f32 %v10879_v15, %v10830_v40  ;;  %v11067_v40 = vadd.f32 %v10879_v15, %v10826_v34 }
 0x167   : > { %v9626_v62 = vpop.f32.mrf.mxu1  ;;  %15979 = vst [vmem:[#allocation28_spill] sm:$0xff] %v10977_v47  ;;  %15982 = vst [vmem:[#allocation31_spill] sm:$0xff] %v11001_v29  ;;  %v11025_v60 = vpop.f32.mrf.mxu0 }
 0x168   : > { %15984 = vst [vmem:[#allocation33_spill] sm:$0xff] %v11015_v9  ;;  %15985 = vst [vmem:[#allocation34_spill] sm:$0xff] %v11019_v32 }
 0x169   : > { %v10938_v45 = vpop.f32.mrf.mxu1  ;;  %8942 = vmatpush3.xpose.msk.msra.mxu1 %vm1500_vm2, %v10933_v49  ;;  %15986 = vst [vmem:[#allocation35_spill] sm:$0xff] %v11025_v60  ;;  %15988 = vst [vmem:[#allocation37_spill] sm:$0xff] %v11035_v54 }
 0x16a   : > { %8943 = vmatprep.subr.msk.mxu1 %vm1500_vm2, %v10936_v7  ;;  %15991 = vst [vmem:[#allocation40_spill] sm:$0xff] %v11051_v48  ;;  %15994 = vst [vmem:[#allocation43_spill] sm:$0xff] %v11067_v40 }
 0x16b   : > { %v9629_v14 = vpop.f32.mrf.mxu1 }
 0x16d   : > { %v10951_v62 = vpop.f32.mrf.mxu1  ;;  %8944 = vmatpush3.xpose.msk.msra.mxu1 %vm1500_vm2, %v10946_v35 }
 0x16e   : > { %8945 = vmatprep.subr.msk.mxu1 %vm1500_vm2, %v10949_v57 }
 0x16f   : > { %v9632_v7 = vpop.f32.mrf.mxu1 }
 0x171   : > { %v10965_v14 = vpop.f32.mrf.mxu1  ;;  %8946 = vmatpush3.xpose.msk.msra.mxu1 %vm1500_vm2, %v10959_v10 }
 0x172   : > { %8947 = vmatprep.subr.msk.mxu1 %vm1500_vm2, %v10963_v52 }
 0x173   : > { %v9635_v35 = vpop.f32.mrf.mxu1 }
 0x175   : > { %v10979_v7 = vpop.f32.mrf.mxu1  ;;  %8948 = vmatpush3.xpose.msk.msra.mxu1 %vm1500_vm2, %v10973_v3 }
 0x176   : > { %8949 = vmatprep.subr.msk.mxu1 %vm1500_vm2, %v10977_v47 }
 0x177   : > { %v9638_v52 = vpop.f32.mrf.mxu1 }
 0x179   : > { %v10993_v35 = vpop.f32.mrf.mxu1  ;;  %8950 = vmatpush3.xpose.msk.msra.mxu1 %vm1500_vm2, %v10987_v44 }
 0x17a   : > { %8951 = vmatprep.subr.msk.mxu1 %vm1500_vm2, %v10991_v42 }
 0x17b   : > { %v9641_v3 = vpop.f32.mrf.mxu1 }
 0x17d   : > { %v11007_v52 = vpop.f32.mrf.mxu1  ;;  %8952 = vmatpush3.xpose.msk.msra.mxu1 %vm1500_vm2, %v11001_v29  ;;  %v11031_v29 = vadd.f32 %v10879_v15, %v10702_v22  ;;  %v11047_v22 = vadd.f32 %v10879_v15, %v10691_v17  ;;  %v11063_v17 = vadd.f32 %v10879_v15, %v10680_v12 }
 0x17e   : > { %8953 = vmatprep.subr.msk.mxu1 %vm1500_vm2, %v11005_v37 }
 0x17f   : > { %v9644_v42 = vpop.f32.mrf.mxu1  ;;  %15987 = vst [vmem:[#allocation36_spill] sm:$0xff] %v11031_v29  ;;  %15990 = vst [vmem:[#allocation39_spill] sm:$0xff] %v11047_v22 }
 0x180   : > { %v9817_v42 = vpop.f32.mrf.mxu0  ;;  %15993 = vst [vmem:[#allocation42_spill] sm:$0xff] %v11063_v17 }
 0x181   : > { %v11021_v3 = vpop.f32.mrf.mxu1  ;;  %8954 = vmatpush3.xpose.msk.msra.mxu1 %vm1500_vm2, %v11015_v9 }
 0x182   : > { %8955 = vmatprep.subr.msk.mxu1 %vm1500_vm2, %v11019_v32  ;;  %v11041_v9 = vpop.f32.mrf.mxu0 }
 0x183   : > { %v9647_v27 = vpop.f32.mrf.mxu1  ;;  %15989 = vst [vmem:[#allocation38_spill] sm:$0xff] %v11041_v9 }
 0x184   : > { %v9820_v42 = vpop.f32.mrf.mxu0 }
 0x185   : > { %v11037_v18 = vpop.f32.mrf.mxu1  ;;  %8956 = vmatpush3.xpose.msk.msra.mxu1 %vm1500_vm2, %v11031_v29 }
 0x186   : > { %8957 = vmatprep.subr.msk.mxu1 %vm1500_vm2, %v11035_v54  ;;  %v11057_v29 = vpop.f32.mrf.mxu0 }
 0x187   : > { %v9650_v27 = vpop.f32.mrf.mxu1  ;;  %15992 = vst [vmem:[#allocation41_spill] sm:$0xff] %v11057_v29  ;;  %v11091_v29 = vadd.f32 %v10879_v15, %v10660_v4 }
 0x188   : > { %v9823_v42 = vpop.f32.mrf.mxu0 }
 0x189   : > { %v11053_v32 = vpop.f32.mrf.mxu1  ;;  %8958 = vmatpush3.xpose.msk.msra.mxu1 %vm1500_vm2, %v11047_v22  ;;  %v11081_v42 = vadd.f32 %v10879_v15, %v10822_v28  ;;  %15999 = vst [vmem:[#allocation48_spill] sm:$0xff] %v11091_v29 }
 0x18a   : > { %8959 = vmatprep.subr.msk.mxu1 %vm1500_vm2, %v11051_v48  ;;  %v11071_v9 = vpop.f32.mrf.mxu0  ;;  %v11077_v48 = vadd.f32 %v10879_v15, %v10669_v8 }
 0x18b   : > { %v9653_v27 = vpop.f32.mrf.mxu1  ;;  %15995 = vst [vmem:[#allocation44_spill] sm:$0xff] %v11071_v9  ;;  %15997 = vst [vmem:[#allocation46_spill] sm:$0xff] %v11081_v42 }
 0x18c   : > { %15996 = vst [vmem:[#allocation45_spill] sm:$0xff] %v11077_v48  ;;  %v9826_v27 = vpop.f32.mrf.mxu0 }
 0x18d   : > { %v1010_v60 = vpop.f32.mrf.mxu1  ;;  %8960 = vmatpush3.xpose.msk.msra.mxu1 %vm1500_vm2, %v11063_v17  ;;  %v11100_v27 = vadd.f32 %v10879_v15, %v10816_v20 }
 0x18e   : > { %8961 = vmatprep.subr.msk.mxu1 %vm1500_vm2, %v11067_v40  ;;  %v11085_v17 = vpop.f32.mrf.mxu0 }
 0x18f   : > { %v9656_v12 = vpop.f32.mrf.mxu1  ;;  %15998 = vst [vmem:[#allocation47_spill] sm:$0xff] %v11085_v17  ;;  %16000 = vst [vmem:[#allocation49_spill] sm:$0xff] %v11100_v27 }
 0x190   : > { %v11096_v12 = vld [vmem:[%s15682_s7] ss:$0 sm:$0xff]  ;;  %v9829_v28 = vpop.f32.mrf.mxu0 }
 0x191   : > { %v1015_v34 = vpop.f32.mrf.mxu1  ;;  %8962 = vmatpush3.xpose.msk.msra.mxu1 %vm1500_vm2, %v11077_v48  ;;  %v11110_v4 = vadd.f32 %v11096_v12, %v10920_v38 }
 0x192   : > { %8963 = vmatprep.subr.msk.mxu1 %vm1500_vm2, %v11081_v42  ;;  %v11104_v42 = vpop.f32.mrf.mxu0 }
 0x193   : > { %v9659_v8 = vpop.f32.mrf.mxu1  ;;  %16001 = vst [vmem:[#allocation50_spill] sm:$0xff] %v11104_v42  ;;  %16002 = vst [vmem:[#allocation51_spill] sm:$0xff] %v11110_v4 }
 0x194   : > { %v11114_v8 = vadd.f32 %v10879_v15, %v10649_v63  ;;  %v9832_v20 = vpop.f32.mrf.mxu0  ;;  %v11130_v63 = vadd.f32 %v11096_v12, %v10905_v50 }
 0x195   : > { %v1020_v9 = vpop.f32.mrf.mxu1  ;;  %8964 = vmatpush3.xpose.msk.msra.mxu1 %vm1500_vm2, %v11091_v29  ;;  %v16007_v20 = vmov 0.0  }
 0x196   : > { %8965 = vmatprep.subr.msk.mxu1 %vm1500_vm2, %v11100_v27  ;;  %16003 = vst [vmem:[#allocation52_spill] sm:$0xff] %v11114_v8  ;;  %v11118_v29 = vpop.f32.mrf.mxu0  ;;  %v11125_v27 = vadd.f32 %v11096_v12, %v10824_v33  ;;  %16006 = vst [vmem:[#allocation55_spill] sm:$0xff] %v11130_v63  ;;  %v11141_v33 = vadd.f32 %v11096_v12, %v10818_v25 }
 0x197   : > { %v9662_v28 = vpop.f32.mrf.mxu1 }
 0x198   : > { %16005 = vst [vmem:[#allocation54_spill] sm:$0xff] %v11125_v27  ;;  %v9835_v28 = vpop.f32.mrf.mxu0  ;;  %16008 = vst [vmem:[#allocation56_spill] sm:$0xff] %v11141_v33 }
 0x199   : > { %v1025_v17 = vpop.f32.mrf.mxu1  ;;  %8966 = vmatpush3.xpose.msk.msra.mxu1 %vm1500_vm2, %v11114_v8  ;;  %v11152_v28 = vadd.f32 %v11096_v12, %v10888_v53  ;;  %v11169_v53 = vadd.f32 %v11096_v12, %v10874_v21  ;;  %v11187_v21 = vadd.f32 %v11096_v12, %v10872_v16 }
 0x19a   : > { %v11121_v42 = vadd.f32 %v10879_v15, %v1025_v17  ;;  %8969 = vmatprep.subr.mxu1 %v11110_v4  ;;  %v11145_v50 = vpop.f32.mrf.mxu0  ;;  %v11157_v4 = vadd.f32 %v11096_v12, %v10811_v19 }
 0x19b   : > { %v9665_v38 = vpop.f32.mrf.mxu1  ;;  %16010 = vst [vmem:[#allocation58_spill] sm:$0xff] %v11152_v28  ;;  %16012 = vst [vmem:[#allocation60_spill] sm:$0xff] %v11169_v53 }
 0x19c   : > { %16004 = vst [vmem:[#allocation53_spill] sm:$0xff] %v11121_v42  ;;  %2108 = vrot.lane.b32.xlu1 %v11121_v42, %s10141_s25  ;;  %8272 = vmatpush1.xpose.msk.msra.mxu0 %vm1500_vm2, %v11121_v42  ;;  %v11148_v38 = vadd.f32 %v10879_v15, %v1020_v9  ;;  %16011 = vst [vmem:[#allocation59_spill] sm:$0xff] %v11157_v4  ;;  %v9838_v25 = vpop.f32.mrf.mxu0 }
 0x19d   : > { %v11136_v17 = vpop.f32.mrf.mxu1  ;;  %1766 = vmatprep.subr.mxu0 %v16007_v20  ;;  %8968 = vmatmul.mubr.msk.f32.vlgmr.msra.gmra.mxu1 %vm1500_vm2, %v10856_v30  ;;  %v11178_v25 = vadd.f32 %v10879_v15, %v1015_v34  ;;  %16016 = vst [vmem:[#allocation64_spill] sm:$0xff] %v11187_v21  ;;  %v11206_v34 = vadd.f32 %v10879_v15, %v11053_v32 }
 0x19e   : > { %16009 = vst [vmem:[#allocation57_spill] sm:$0xff] %v11148_v38  ;;  %8970 = vmatpush3.msra.mxu1 %v11125_v27  ;;  %v11172_v19 = vpop.f32.mrf.mxu0 }
 0x19f   : > { %v9668_v42 = vpop.f32.mrf.mxu1  ;;  %8971 = vmatprep.subr.mxu1 %v11130_v63  ;;  %16014 = vst [vmem:[#allocation62_spill] sm:$0xff] %v11178_v25  ;;  %16018 = vst [vmem:[#allocation66_spill] sm:$0xff] %v11206_v34 }
 0x1a0   : > { %2106 = vrot.lane.b32.xlu1 %v11148_v38, %s10141_s25  ;;  %8273 = vmatpush1.xpose.msk.msra.mxu0 %vm1500_vm2, %v11148_v38  ;;  %v11175_v42 = vadd.f32 %v10879_v15, %v1010_v60  ;;  %v11182_v38 = vadd.f32 %v11096_v12, %v10804_v13  ;;  %v11199_v13 = vadd.f32 %v11096_v12, %v10796_v6 }
 0x1a1   : > { %v11164_v9 = vpop.f32.mrf.mxu1  ;;  %1768 = vmatprep.subr.mxu0 %v16007_v20  ;;  %8972 = vmatpush3.msra.mxu1 %v11141_v33  ;;  %v9841_v33 = vpop.f32.mrf.mxu0 }
 0x1a2   : > { %16013 = vst [vmem:[#allocation61_spill] sm:$0xff] %v11175_v42  ;;  %16015 = vst [vmem:[#allocation63_spill] sm:$0xff] %v11182_v38  ;;  %8973 = vmatprep.subr.mxu1 %v11152_v28  ;;  %v11215_v28 = vadd.f32 %v11096_v12, %v10785_v61 }
 0x1a3   : > { %v9671_v63 = vpop.f32.mrf.mxu1  ;;  %8974 = vmatpush3.msra.mxu1 %v11157_v4  ;;  %16017 = vst [vmem:[#allocation65_spill] sm:$0xff] %v11199_v13  ;;  %v11202_v16 = vpop.f32.mrf.mxu0 }
 0x1a4   : > { %2102 = vrot.lane.b32.xlu1 %v11175_v42, %s10141_s25  ;;  %8274 = vmatpush1.xpose.msk.msra.mxu0 %vm1500_vm2, %v11178_v25  ;;  %v11210_v63 = vadd.f32 %v11096_v12, %v10870_v11  ;;  %16020 = vst [vmem:[#allocation68_spill] sm:$0xff] %v11215_v28  ;;  %v11227_v11 = vadd.f32 %v11096_v12, %v10868_v23 }
 0x1a5   : > { %v11194_v60 = vpop.f32.mrf.mxu1  ;;  %1770 = vmatprep.subr.mxu0 %v16007_v20  ;;  %8975 = vmatprep.subr.mxu1 %v11169_v53  ;;  %v9844_v6 = vpop.f32.mrf.mxu0 }
 0x1a6   : > { %16019 = vst [vmem:[#allocation67_spill] sm:$0xff] %v11210_v63  ;;  %8976 = vmatpush3.msra.mxu1 %v11182_v38  ;;  %16021 = vst [vmem:[#allocation69_spill] sm:$0xff] %v11227_v11  ;;  %v11238_v6 = vadd.f32 %v11096_v12, %v10774_v56  ;;  %v11255_v56 = vadd.f32 %v11096_v12, %v10763_v51 }
 0x1a7   : > { %v9674_v33 = vpop.f32.mrf.mxu1  ;;  %8977 = vmatprep.subr.mxu1 %v11187_v21  ;;  %v11230_v61 = vpop.f32.mrf.mxu0  ;;  %v11243_v21 = vadd.f32 %v11096_v12, %v10866_v2 }
 0x1a8   : > { %2100 = vrot.lane.b32.xlu1 %v11206_v34, %s10141_s25  ;;  %8275 = vmatpush1.xpose.msk.msra.mxu0 %vm1500_vm2, %v11175_v42  ;;  %v11234_v33 = vadd.f32 %v10879_v15, %v11037_v18  ;;  %16023 = vst [vmem:[#allocation71_spill] sm:$0xff] %v11238_v6  ;;  %16025 = vst [vmem:[#allocation73_spill] sm:$0xff] %v11255_v56 }
 0x1a9   : > { %v11222_v32 = vpop.f32.mrf.mxu1  ;;  %1772 = vmatprep.subr.mxu0 %v16007_v20  ;;  %8978 = vmatpush3.msra.mxu1 %v11199_v13  ;;  %16024 = vst [vmem:[#allocation72_spill] sm:$0xff] %v11243_v21  ;;  %v9847_v23 = vpop.f32.mrf.mxu0  ;;  %v16048_v13 = vld [vmem:[#allocation8_spill] sm:$0xff] }
 0x1aa   : > { %16022 = vst [vmem:[#allocation70_spill] sm:$0xff] %v11234_v33  ;;  %8979 = vmatprep.subr.mxu1 %v11210_v63  ;;  %v11266_v23 = vadd.f32 %v11096_v12, %v10864_v55  ;;  %v11271_v63 = vadd.f32 %v11096_v12, %v10752_v46  ;;  %v11283_v55 = vadd.f32 %v11096_v12, %v10860_v43 }
 0x1ab   : > { %v9677_v42 = vpop.f32.mrf.mxu1  ;;  %8980 = vmatpush3.msra.mxu1 %v11215_v28  ;;  %v11258_v2 = vpop.f32.mrf.mxu0 }
 0x1ac   : > { %2098 = vrot.lane.b32.xlu1 %v11234_v33, %s10141_s25  ;;  %8276 = vmatpush1.xpose.msk.msra.mxu0 %vm1500_vm2, %v11206_v34  ;;  %v11262_v42 = vadd.f32 %v10879_v15, %v11021_v3  ;;  %16027 = vst [vmem:[#allocation75_spill] sm:$0xff] %v11266_v23  ;;  %16028 = vst [vmem:[#allocation76_spill] sm:$0xff] %v11271_v63 }
 0x1ad   : > { %v11250_v18 = vpop.f32.mrf.mxu1  ;;  %1774 = vmatprep.subr.mxu0 %v16007_v20  ;;  %8981 = vmatprep.subr.mxu1 %v11227_v11  ;;  %v9850_v51 = vpop.f32.mrf.mxu0  ;;  %16029 = vst [vmem:[#allocation77_spill] sm:$0xff] %v11283_v55 }
 0x1ae   : > { %16026 = vst [vmem:[#allocation74_spill] sm:$0xff] %v11262_v42  ;;  %8982 = vmatpush3.msra.mxu1 %v11238_v6  ;;  %v11294_v51 = vadd.f32 %v11096_v12, %v10741_v41  ;;  %v11311_v41 = vadd.f32 %v11096_v12, %v10730_v36 }
 0x1af   : > { %v9680_v34 = vpop.f32.mrf.mxu1  ;;  %8983 = vmatprep.subr.mxu1 %v11243_v21  ;;  %v11286_v46 = vpop.f32.mrf.mxu0  ;;  %v11299_v21 = vadd.f32 %v11096_v12, %v10852_v24 }
 0x1b0   : > { %2096 = vrot.lane.b32.xlu1 %v11262_v42, %s10141_s25  ;;  %8277 = vmatpush1.xpose.msk.msra.mxu0 %vm1500_vm2, %v11234_v33  ;;  %v11290_v34 = vadd.f32 %v10879_v15, %v11007_v52  ;;  %16031 = vst [vmem:[#allocation79_spill] sm:$0xff] %v11294_v51  ;;  %16033 = vst [vmem:[#allocation81_spill] sm:$0xff] %v11311_v41 }
 0x1b1   : > { %v11278_v3 = vpop.f32.mrf.mxu1  ;;  %1776 = vmatprep.subr.mxu0 %v16007_v20  ;;  %8984 = vmatpush3.msra.mxu1 %v11255_v56  ;;  %16032 = vst [vmem:[#allocation80_spill] sm:$0xff] %v11299_v21  ;;  %v9853_v43 = vpop.f32.mrf.mxu0 }
 0x1b2   : > { %16030 = vst [vmem:[#allocation78_spill] sm:$0xff] %v11290_v34  ;;  %8985 = vmatprep.subr.mxu1 %v11266_v23  ;;  %v11322_v43 = vadd.f32 %v11096_v12, %v10844_v5  ;;  %v11327_v23 = vadd.f32 %v11096_v12, %v10719_v31  ;;  %v11339_v5 = vadd.f32 %v11096_v12, %v10840_v59 }
 0x1b3   : > { %v9683_v33 = vpop.f32.mrf.mxu1  ;;  %8986 = vmatpush3.msra.mxu1 %v11271_v63  ;;  %v11314_v24 = vpop.f32.mrf.mxu0 }
 0x1b4   : > { %2094 = vrot.lane.b32.xlu1 %v11290_v34, %s10141_s25  ;;  %8278 = vmatpush1.xpose.msk.msra.mxu0 %vm1500_vm2, %v11262_v42  ;;  %v11318_v33 = vadd.f32 %v10879_v15, %v10993_v35  ;;  %16035 = vst [vmem:[#allocation83_spill] sm:$0xff] %v11322_v43  ;;  %16036 = vst [vmem:[#allocation84_spill] sm:$0xff] %v11327_v23 }
 0x1b5   : > { %v11306_v52 = vpop.f32.mrf.mxu1  ;;  %1778 = vmatprep.subr.mxu0 %v16007_v20  ;;  %8987 = vmatprep.subr.mxu1 %v11283_v55  ;;  %v9856_v36 = vpop.f32.mrf.mxu0  ;;  %16037 = vst [vmem:[#allocation85_spill] sm:$0xff] %v11339_v5 }
 0x1b6   : > { %16034 = vst [vmem:[#allocation82_spill] sm:$0xff] %v11318_v33  ;;  %8988 = vmatpush3.msra.mxu1 %v11294_v51  ;;  %v11350_v36 = vadd.f32 %v11096_v12, %v10708_v26  ;;  %v16042_v26 = vld [vmem:[#allocation9_spill] sm:$0xff] }
 0x1b7   : > { %v9686_v42 = vpop.f32.mrf.mxu1  ;;  %8989 = vmatprep.subr.mxu1 %v11299_v21  ;;  %v11342_v31 = vpop.f32.mrf.mxu0  ;;  %v16040_v21 = vld [vmem:[#allocation12_spill] sm:$0xff] }
 0x1b8   : > { %2092 = vrot.lane.b32.xlu1 %v11318_v33, %s10141_s25  ;;  %8279 = vmatpush1.xpose.msk.msra.mxu0 %vm1500_vm2, %v11290_v34  ;;  %v11346_v42 = vadd.f32 %v10879_v15, %v10965_v14  ;;  %16039 = vst [vmem:[#allocation87_spill] sm:$0xff] %v11350_v36  ;;  %v11355_v55 = vadd.f32 %v11096_v12, %v16040_v21 }
 0x1b9   : > { %v11334_v35 = vpop.f32.mrf.mxu1  ;;  %1780 = vmatprep.subr.mxu0 %v16007_v20  ;;  %8990 = vmatpush3.msra.mxu1 %v11311_v41  ;;  %v9859_v59 = vpop.f32.mrf.mxu0 }
 0x1ba   : > { %16038 = vst [vmem:[#allocation86_spill] sm:$0xff] %v11346_v42  ;;  %8991 = vmatprep.subr.mxu1 %v11322_v43  ;;  %16041 = vst [vmem:[#allocation12_spill] sm:$0xff] %v11355_v55  ;;  %v11374_v59 = vadd.f32 %v10879_v15, %v10938_v45  ;;  %v11378_v43 = vadd.f32 %v10879_v15, %v10979_v7  ;;  %v16050_v7 = vld [vmem:[#allocation10_spill] sm:$0xff] }
 0x1bb   : > { %v9689_v34 = vpop.f32.mrf.mxu1  ;;  %8992 = vmatpush3.msra.mxu1 %v11327_v23  ;;  %v11370_v21 = vpop.f32.mrf.mxu0 }
 0x1bc   : > { %2088 = vrot.lane.b32.xlu1 %v11346_v42, %s10141_s25  ;;  %8280 = vmatpush1.xpose.msk.msra.mxu0 %vm1500_vm2, %v11318_v33  ;;  %v11367_v34 = vadd.f32 %v11096_v12, %v16042_v26  ;;  %16044 = vst [vmem:[#allocation88_spill] sm:$0xff] %v11374_v59  ;;  %16045 = vst [vmem:[#allocation89_spill] sm:$0xff] %v11378_v43  ;;  %v16046_v33 = vld [vmem:[#allocation11_spill] sm:$0xff] }
 0x1bd   : > { %v11362_v14 = vpop.f32.mrf.mxu1  ;;  %1782 = vmatprep.subr.mxu0 %v16007_v20  ;;  %8993 = vmatprep.subr.mxu1 %v11339_v5  ;;  %v11382_v11 = vadd.f32 %v11096_v12, %v16046_v33  ;;  %v11387_v5 = vadd.f32 %v11096_v12, %v16048_v13  ;;  %v9862_v38 = vpop.f32.mrf.mxu0  ;;  %v11399_v33 = vadd.f32 %v11096_v12, %v16050_v7 }
 0x1be   : > { %16043 = vst [vmem:[#allocation9_spill] sm:$0xff] %v11367_v34  ;;  %8994 = vmatpush3.msra.mxu1 %v11350_v36  ;;  %v11404_v13 = vadd.f32 %v10879_v15, %v10910_v1  ;;  %v16053_v38 = vld [vmem:[#allocation7_spill] sm:$0xff]  ;;  %v11422_v1 = vadd.f32 %v10879_v15, %v10895_v0 }
 0x1bf   : > { %16047 = vst [vmem:[#allocation11_spill] sm:$0xff] %v11382_v11  ;;  %v9692_v26 = vpop.f32.mrf.mxu1  ;;  %16049 = vst [vmem:[#allocation8_spill] sm:$0xff] %v11387_v5  ;;  %8995 = vmatprep.subr.mxu1 %v11355_v55 }
 0x1c0   : > { %2084 = vrot.lane.b32.xlu1 %v11374_v59, %s10141_s25  ;;  %8281 = vmatpush1.xpose.msk.msra.mxu0 %vm1500_vm2, %v11378_v43  ;;  %16051 = vst [vmem:[#allocation10_spill] sm:$0xff] %v11399_v33  ;;  %16052 = vst [vmem:[#allocation90_spill] sm:$0xff] %v11404_v13  ;;  %v11408_v26 = vadd.f32 %v11096_v12, %v16053_v38 }
 0x1c1   : > { %v11394_v45 = vpop.f32.mrf.mxu1  ;;  %1784 = vmatprep.subr.mxu0 %v16007_v20  ;;  %8996 = vmatpush3.msra.mxu1 %v11367_v34  ;;  %16055 = vst [vmem:[#allocation91_spill] sm:$0xff] %v11422_v1 }
 0x1c2   : > { %16054 = vst [vmem:[#allocation7_spill] sm:$0xff] %v11408_v26  ;;  %8997 = vmatprep.subr.mxu1 %v11382_v11  ;;  %v11429_v11 = vpop.f32.mrf.mxu0 }
 0x1c3   : > { %v9695_v55 = vpop.f32.mrf.mxu1  ;;  %8998 = vmatpush3.msra.mxu1 %v11387_v5  ;;  %v11445_v5 = vadd.f32 %v10879_v15, %v10925_v39 }
 0x1c4   : > { %2080 = vrot.lane.b32.xlu1 %v11404_v13, %s10141_s25  ;;  %8282 = vmatpush1.xpose.msk.msra.mxu0 %vm1500_vm2, %v11346_v42  ;;  %v11426_v55 = vadd.f32 %v10879_v15, %v10951_v62  ;;  %v9865_v0 = vpop.f32.mrf.mxu0  ;;  %v16057_v62 = vld [vmem:[#allocation16_spill] sm:$0xff] }
 0x1c5   : > { %v11416_v7 = vpop.f32.mrf.mxu1  ;;  %1786 = vmatprep.subr.mxu0 %v16007_v20  ;;  %8999 = vmatprep.subr.mxu1 %v11399_v33  ;;  %16058 = vst [vmem:[#allocation93_spill] sm:$0xff] %v11445_v5 }
 0x1c6   : > { %16056 = vst [vmem:[#allocation92_spill] sm:$0xff] %v11426_v55  ;;  %9000 = vmatpush3.msra.mxu1 %v11408_v26  ;;  %v11436_v53 = vpop.f32.mrf.mxu0 }
 0x1c7   : > { %v9698_v38 = vpop.f32.mrf.mxu1 }
 0x1c8   : > { %2078 = vrot.lane.b32.xlu1 %v11422_v1, %s10141_s25  ;;  %8283 = vmatpush1.xpose.msk.msra.mxu0 %vm1500_vm2, %v11426_v55  ;;  %v9868_v26 = vpop.f32.mrf.mxu0 }
 0x1c9   : > { %v1085_v42 = vpop.f32.mrf.mxu1  ;;  %1788 = vmatprep.subr.mxu0 %v16007_v20 }
 0x1ca   : > { %v11447_v36 = vpop.f32.mrf.mxu0 }
 0x1cb   : > { %v9701_v33 = vpop.f32.mrf.mxu1 }
 0x1cc   : > { %2074 = vrot.lane.b32.xlu1 %v16057_v62, %s10141_s25  ;;  %8284 = vmatpush1.xpose.msk.msra.mxu0 %vm1500_vm2, %v11374_v59  ;;  %v16059_v33 = vld [vmem:[#allocation17_spill] sm:$0xff]  ;;  %v9871_v62 = vpop.f32.mrf.mxu0 }
 0x1cd   : > { %v1090_v38 = vpop.f32.mrf.mxu1  ;;  %1790 = vmatprep.subr.mxu0 %v16007_v20 }
 0x1ce   : > { %v11457_v23 = vpop.f32.mrf.mxu0 }
 0x1cf   : > { %v9704_v34 = vpop.f32.mrf.mxu1 }
 0x1d0   : > { %2042 = vrot.lane.b32.xlu1 %v16059_v33, %s10141_s25  ;;  %8285 = vmatpush1.xpose.msk.msra.mxu0 %vm1500_vm2, %v11445_v5  ;;  %v9874_v34 = vpop.f32.mrf.mxu0 }
 0x1d1   : > { %v1095_v0 = vpop.f32.mrf.mxu1  ;;  %1792 = vmatprep.subr.mxu0 %v16007_v20  ;;  %v11482_v34 = vadd.f32 %v10879_v15, %v1085_v42 }
 0x1d2   : > { %v11455_v59 = vadd.f32 %v10879_v15, %v1095_v0  ;;  %v11464_v41 = vpop.f32.mrf.mxu0 }
 0x1d3   : > { %v9707_v26 = vpop.f32.mrf.mxu1  ;;  %16062 = vst [vmem:[#allocation96_spill] sm:$0xff] %v11482_v34 }
 0x1d4   : > { %16060 = vst [vmem:[#allocation94_spill] sm:$0xff] %v11455_v59  ;;  %2136 = vrot.lane.b32.xlu1 %v11455_v59, %s10141_s25  ;;  %8286 = vmatpush1.xpose.msk.msra.mxu0 %vm1500_vm2, %v11404_v13  ;;  %v9877_v0 = vpop.f32.mrf.mxu0 }
 0x1d5   : > { %1794 = vmatprep.subr.mxu0 %v16007_v20  ;;  %v1100_v39 = vpop.f32.mrf.mxu1  ;;  %v11492_v0 = vadd.f32 %v10879_v15, %v1090_v38 }
 0x1d6   : > { %v11471_v62 = vadd.f32 %v10879_v15, %v1100_v39  ;;  %v11474_v26 = vpop.f32.mrf.mxu0 }
 0x1d7   : > { %v9710_v33 = vpop.f32.mrf.mxu1  ;;  %16063 = vst [vmem:[#allocation97_spill] sm:$0xff] %v11492_v0 }
 0x1d8   : > { %2070 = vrot.lane.b32.xlu1 %v10923_v58, %s10141_s25  ;;  %8287 = vmatpush1.xpose.msk.msra.mxu0 %vm1500_vm2, %v11422_v1  ;;  %16061 = vst [vmem:[#allocation95_spill] sm:$0xff] %v11471_v62  ;;  %v9880_v33 = vpop.f32.mrf.mxu0 }
 0x1d9   : > { %1798 = vmatprep.subr.mxu0 %v16007_v20 }
 0x1da   : > { %v11484_v58 = vpop.f32.mrf.mxu0 }
 0x1dc   : > { %2038 = vrot.lane.b32.xlu1 %v10933_v49, %s10141_s25  ;;  %8288 = vmatpush2.xpose.msk.msra.mxu0 %vm1500_vm2, %v11471_v62  ;;  %v9883_v39 = vpop.f32.mrf.mxu0 }
 0x1dd   : > { %1800 = vmatprep.subr.mxu0 %v16007_v20  ;;  %v11510_v39 = vadd.f32 %v10879_v15, %v11394_v45 }
 0x1de   : > { %v11494_v49 = vpop.f32.mrf.mxu0 }
 0x1df   : > { %16064 = vst [vmem:[#allocation98_spill] sm:$0xff] %v11510_v39 }
 0x1e0   : > { %2132 = vrot.lane.b32.xlu1 %v11482_v34, %s10141_s25  ;;  %8289 = vmatpush2.xpose.msk.msra.mxu0 %vm1500_vm2, %v11455_v59  ;;  %v9886_v42 = vpop.f32.mrf.mxu0 }
 0x1e1   : > { %1802 = vmatprep.subr.mxu0 %v16007_v20 }
 0x1e2   : > { %v11501_v33 = vpop.f32.mrf.mxu0 }
 0x1e4   : > { %2066 = vrot.lane.b32.xlu1 %v10949_v57, %s10141_s25  ;;  %8290 = vmatpush2.xpose.msk.msra.mxu0 %vm1500_vm2, %v11492_v0  ;;  %v9889_v38 = vpop.f32.mrf.mxu0  ;;  %v11514_v57 = vadd.f32 %v10879_v15, %v11416_v7  ;;  %v11532_v7 = vadd.f32 %v10879_v15, %v11362_v14 }
 0x1e5   : > { %1804 = vmatprep.subr.mxu0 %v16007_v20 }
 0x1e6   : > { %16065 = vst [vmem:[#allocation99_spill] sm:$0xff] %v11514_v57  ;;  %v11516_v42 = vpop.f32.mrf.mxu0  ;;  %16066 = vst [vmem:[#allocation100_spill] sm:$0xff] %v11532_v7 }
 0x1e8   : > { %2034 = vrot.lane.b32.xlu1 %v10959_v10, %s10141_s25  ;;  %8291 = vmatpush2.xpose.msk.msra.mxu0 %vm1500_vm2, %v11482_v34  ;;  %v9892_v10 = vpop.f32.mrf.mxu0 }
 0x1e9   : > { %1806 = vmatprep.subr.mxu0 %v16007_v20 }
 0x1ea   : > { %v11523_v38 = vpop.f32.mrf.mxu0 }
 0x1ec   : > { %2128 = vrot.lane.b32.xlu1 %v11510_v39, %s10141_s25  ;;  %8292 = vmatpush2.xpose.msk.msra.mxu0 %vm1500_vm2, %v11514_v57  ;;  %v9895_v45 = vpop.f32.mrf.mxu0 }
 0x1ed   : > { %1808 = vmatprep.subr.mxu0 %v16007_v20 }
 0x1ee   : > { %v11534_v34 = vpop.f32.mrf.mxu0 }
 0x1f0   : > { %2062 = vrot.lane.b32.xlu1 %v10977_v47, %s10141_s25  ;;  %8293 = vmatpush2.xpose.msk.msra.mxu0 %vm1500_vm2, %v11510_v39  ;;  %v9898_v10 = vpop.f32.mrf.mxu0  ;;  %v11543_v47 = vadd.f32 %v10879_v15, %v11334_v35  ;;  %v11576_v39 = vadd.f32 %v10879_v15, %v11250_v18  ;;  %v11625_v18 = vadd.f32 %v11096_v12, %v11342_v31 }
 0x1f1   : > { %1810 = vmatprep.subr.mxu0 %v16007_v20  ;;  %v11647_v31 = vadd.f32 %v11096_v12, %v11258_v2  ;;  %v11667_v2 = vadd.f32 %v11096_v12, %v11172_v19  ;;  %v16082_v19 = vld [vmem:[#allocation50_spill] sm:$0xff] }
 0x1f2   : > { %16067 = vst [vmem:[#allocation101_spill] sm:$0xff] %v11543_v47  ;;  %v11545_v45 = vpop.f32.mrf.mxu0  ;;  %16071 = vst [vmem:[#allocation104_spill] sm:$0xff] %v11576_v39 }
 0x1f3   : > { %16076 = vst [vmem:[#allocation109_spill] sm:$0xff] %v11625_v18  ;;  %16080 = vst [vmem:[#allocation112_spill] sm:$0xff] %v11667_v2 }
 0x1f4   : > { %2030 = vrot.lane.b32.xlu1 %v10987_v44, %s10141_s25  ;;  %8294 = vmatpush2.xpose.msk.msra.mxu0 %vm1500_vm2, %v11532_v7  ;;  %v9901_v14 = vpop.f32.mrf.mxu0  ;;  %v11554_v44 = vadd.f32 %v10879_v15, %v11306_v52  ;;  %v16070_v52 = vld [vmem:[#allocation33_spill] sm:$0xff] }
 0x1f5   : > { %1812 = vmatprep.subr.mxu0 %v16007_v20 }
 0x1f6   : > { %16068 = vst [vmem:[#allocation102_spill] sm:$0xff] %v11554_v44  ;;  %v11556_v10 = vpop.f32.mrf.mxu0 }
 0x1f8   : > { %2124 = vrot.lane.b32.xlu1 %v11543_v47, %s10141_s25  ;;  %8295 = vmatpush2.xpose.msk.msra.mxu0 %vm1500_vm2, %v11543_v47  ;;  %v9904_v35 = vpop.f32.mrf.mxu0  ;;  %v11565_v47 = vadd.f32 %v10879_v15, %v11278_v3  ;;  %v11585_v3 = vadd.f32 %v10879_v15, %v11222_v32  ;;  %v11603_v32 = vadd.f32 %v10879_v15, %v11164_v9 }
 0x1f9   : > { %1814 = vmatprep.subr.mxu0 %v16007_v20  ;;  %v11620_v9 = vadd.f32 %v11096_v12, %v11370_v21  ;;  %v11661_v21 = vadd.f32 %v11096_v12, %v11202_v16  ;;  %v11681_v16 = vadd.f32 %v11096_v12, %v11118_v29  ;;  %v11687_v35 = vadd.f32 %v11096_v12, %v16082_v19  ;;  %v16085_v29 = vld [vmem:[#allocation44_spill] sm:$0xff]  ;;  %v16087_v19 = vld [vmem:[#allocation41_spill] sm:$0xff] }
 0x1fa   : > { %16069 = vst [vmem:[#allocation103_spill] sm:$0xff] %v11565_v47  ;;  %v11567_v14 = vpop.f32.mrf.mxu0  ;;  %16072 = vst [vmem:[#allocation105_spill] sm:$0xff] %v11585_v3 }
 0x1fb   : > { %16074 = vst [vmem:[#allocation107_spill] sm:$0xff] %v11603_v32  ;;  %16081 = vst [vmem:[#allocation113_spill] sm:$0xff] %v11681_v16 }
 0x1fc   : > { %2058 = vrot.lane.b32.xlu1 %v11005_v37, %s10141_s25  ;;  %8296 = vmatpush2.xpose.msk.msra.mxu0 %vm1500_vm2, %v11554_v44  ;;  %v9907_v37 = vpop.f32.mrf.mxu0 }
 0x1fd   : > { %1816 = vmatprep.subr.mxu0 %v16007_v20  ;;  %v11594_v37 = vadd.f32 %v10879_v15, %v11194_v60  ;;  %v11612_v60 = vadd.f32 %v10879_v15, %v11136_v17  ;;  %v11633_v15 = vadd.f32 %v11096_v12, %v11314_v24  ;;  %v11639_v17 = vadd.f32 %v11096_v12, %v11286_v46  ;;  %v16079_v46 = vld [vmem:[#allocation49_spill] sm:$0xff] }
 0x1fe   : > { %v11653_v24 = vadd.f32 %v11096_v12, %v11230_v61  ;;  %v11675_v61 = vadd.f32 %v11096_v12, %v11145_v50  ;;  %v16083_v50 = vld [vmem:[#allocation47_spill] sm:$0xff] }
 0x1ff   : > { %16073 = vst [vmem:[#allocation106_spill] sm:$0xff] %v11594_v37  ;;  %16075 = vst [vmem:[#allocation108_spill] sm:$0xff] %v11612_v60 }
 0x200   : > { %2026 = vrot.lane.b32.xlu1 %v16070_v52, %s10141_s25  ;;  %8297 = vmatpush2.xpose.msk.msra.mxu0 %vm1500_vm2, %v11565_v47  ;;  %16077 = vst [vmem:[#allocation110_spill] sm:$0xff] %v11639_v17  ;;  %16078 = vst [vmem:[#allocation111_spill] sm:$0xff] %v11653_v24 }
 0x201   : > { %1818 = vmatprep.subr.mxu0 %v16007_v20 }
 0x204   : > { %2120 = vrot.lane.b32.xlu1 %v11565_v47, %s10141_s25  ;;  %8298 = vmatpush2.xpose.msk.msra.mxu0 %vm1500_vm2, %v11576_v39 }
 0x205   : > { %1820 = vmatprep.subr.mxu0 %v16007_v20 }
 0x208   : > { %2054 = vrot.lane.b32.xlu1 %v11035_v54, %s10141_s25  ;;  %8299 = vmatpush2.xpose.msk.msra.mxu0 %vm1500_vm2, %v11585_v3 }
 0x209   : > { %1822 = vmatprep.subr.mxu0 %v16007_v20 }
 0x20c   : > { %2022 = vrot.lane.b32.xlu1 %v11047_v22, %s10141_s25  ;;  %8300 = vmatpush2.xpose.msk.msra.mxu0 %vm1500_vm2, %v11594_v37 }
 0x20d   : > { %1824 = vmatprep.subr.mxu0 %v16007_v20 }
 0x210   : > { %2116 = vrot.lane.b32.xlu1 %v11585_v3, %s10141_s25  ;;  %8301 = vmatpush2.xpose.msk.msra.mxu0 %vm1500_vm2, %v11603_v32 }
 0x211   : > { %1826 = vmatprep.subr.mxu0 %v16007_v20 }
 0x214   : > { %2050 = vrot.lane.b32.xlu1 %v11067_v40, %s10141_s25  ;;  %8302 = vmatpush2.xpose.msk.msra.mxu0 %vm1500_vm2, %v11612_v60 }
 0x215   : > { %1942 = vmatprep.subr.mxu0 %v16007_v20 }
 0x217   : > { %8303 = vmatmul.mubr.msk.f32.vlgmr.msra.gmra.mxu0 %vm1500_vm2, %v10856_v30 }
 0x218   : > { %2018 = vrot.lane.b32.xlu1 %v11077_v48, %s10141_s25  ;;  %1943 = vmatpush1.msra.mxu0 %v11620_v9 }
 0x219   : > { %1944 = vmatprep.subr.mxu0 %v16007_v20 }
 0x21a   : > { %1945 = vmatpush1.msra.mxu0 %v11625_v18 }
 0x21b   : > { %1946 = vmatprep.subr.mxu0 %v16007_v20 }
 0x21c   : > { %2112 = vrot.lane.b32.xlu1 %v11603_v32, %s10141_s25  ;;  %1947 = vmatpush1.msra.mxu0 %v11633_v15  ;;  %v11705_v32 = vadd.f32 %v11096_v12, %v16087_v19  ;;  %v11723_v19 = vadd.f32 %v11096_v12, %v11567_v14  ;;  %v11742_v14 = vadd.f32 %v11096_v12, %v11534_v34 }
 0x21d   : > { %1948 = vmatprep.subr.mxu0 %v16007_v20  ;;  %v11760_v34 = vadd.f32 %v11096_v12, %v11501_v33  ;;  %v11778_v33 = vadd.f32 %v11096_v12, %v11474_v26  ;;  %v11796_v26 = vadd.f32 %v11096_v12, %v11447_v36 }
 0x21e   : > { %1949 = vmatpush1.msra.mxu0 %v11639_v17  ;;  %16088 = vst [vmem:[#allocation44_spill] sm:$0xff] %v11705_v32  ;;  %16096 = vst [vmem:[#allocation116_spill] sm:$0xff] %v11742_v14 }
 0x21f   : > { %1950 = vmatprep.subr.mxu0 %v16007_v20  ;;  %16099 = vst [vmem:[#allocation119_spill] sm:$0xff] %v11760_v34  ;;  %16102 = vst [vmem:[#allocation122_spill] sm:$0xff] %v11778_v33 }
 0x220   : > { %2046 = vrot.lane.b32.xlu1 %v16079_v46, %s10141_s25  ;;  %1951 = vmatpush1.msra.mxu0 %v11647_v31  ;;  %v11699_v46 = vadd.f32 %v11096_v12, %v16085_v29  ;;  %v16091_v29 = vld [vmem:[#allocation35_spill] sm:$0xff]  ;;  %16105 = vst [vmem:[#allocation125_spill] sm:$0xff] %v11796_v26 }
 0x221   : > { %1952 = vmatprep.subr.mxu0 %v16007_v20  ;;  %v11717_v40 = vadd.f32 %v11096_v12, %v16091_v29  ;;  %16093 = vst [vmem:[#allocation35_spill] sm:$0xff] %v11723_v19  ;;  %v11735_v29 = vadd.f32 %v11096_v12, %v11545_v45  ;;  %v11754_v45 = vadd.f32 %v11096_v12, %v11516_v42 }
 0x222   : > { %1953 = vmatpush1.msra.mxu0 %v11653_v24  ;;  %16086 = vst [vmem:[#allocation47_spill] sm:$0xff] %v11699_v46  ;;  %v11772_v42 = vadd.f32 %v11096_v12, %v11484_v58  ;;  %v11790_v58 = vadd.f32 %v11096_v12, %v11457_v23  ;;  %v11808_v23 = vadd.f32 %v11096_v12, %v11429_v11 }
 0x223   : > { %1954 = vmatprep.subr.mxu0 %v16007_v20  ;;  %16095 = vst [vmem:[#allocation115_spill] sm:$0xff] %v11735_v29  ;;  %16098 = vst [vmem:[#allocation118_spill] sm:$0xff] %v11754_v45 }
 0x224   : > { %2014 = vrot.lane.b32.xlu1 %v11114_v8, %s10141_s25  ;;  %1955 = vmatpush1.msra.mxu0 %v11661_v21  ;;  %v11693_v8 = vadd.f32 %v11096_v12, %v16083_v50  ;;  %v16089_v50 = vld [vmem:[#allocation38_spill] sm:$0xff]  ;;  %16101 = vst [vmem:[#allocation121_spill] sm:$0xff] %v11772_v42  ;;  %16104 = vst [vmem:[#allocation124_spill] sm:$0xff] %v11790_v58 }
 0x225   : > { %1956 = vmatprep.subr.mxu0 %v16007_v20  ;;  %v11711_v48 = vadd.f32 %v11096_v12, %v16089_v50  ;;  %16092 = vst [vmem:[#allocation38_spill] sm:$0xff] %v11717_v40  ;;  %v11729_v50 = vadd.f32 %v11096_v12, %v11556_v10  ;;  %v11748_v10 = vadd.f32 %v11096_v12, %v11523_v38  ;;  %16107 = vst [vmem:[#allocation127_spill] sm:$0xff] %v11808_v23 }
 0x226   : > { %1957 = vmatpush1.msra.mxu0 %v11667_v2  ;;  %16084 = vst [vmem:[#allocation50_spill] sm:$0xff] %v11693_v8  ;;  %v11766_v38 = vadd.f32 %v11096_v12, %v11494_v49  ;;  %v11784_v49 = vadd.f32 %v11096_v12, %v11464_v41  ;;  %v11802_v41 = vadd.f32 %v11096_v12, %v11436_v53  ;;  %v16125_v2 = vld [vmem:[#allocation55_spill] sm:$0xff] }
 0x227   : > { %1958 = vmatprep.subr.mxu0 %v16007_v20  ;;  %16090 = vst [vmem:[#allocation41_spill] sm:$0xff] %v11711_v48  ;;  %16094 = vst [vmem:[#allocation114_spill] sm:$0xff] %v11729_v50 }
 0x228   : > { %1959 = vmatpush1.msra.mxu0 %v11675_v61  ;;  %16097 = vst [vmem:[#allocation117_spill] sm:$0xff] %v11748_v10  ;;  %16100 = vst [vmem:[#allocation120_spill] sm:$0xff] %v11766_v38 }
 0x229   : > { %1960 = vmatprep.subr.mxu0 %v16007_v20  ;;  %16103 = vst [vmem:[#allocation123_spill] sm:$0xff] %v11784_v49  ;;  %16106 = vst [vmem:[#allocation126_spill] sm:$0xff] %v11802_v41 }
 0x22a   : > { %1961 = vmatpush1.msra.mxu0 %v11681_v16  ;;  %v16123_v16 = vld [vmem:[#allocation48_spill] sm:$0xff] }
 0x22b   : > { %1962 = vmatprep.subr.mxu0 %v16007_v20 }
 0x22c   : > { %1963 = vmatpush1.msra.mxu0 %v11687_v35 }
 0x22d   : > { %1964 = vmatprep.subr.mxu0 %v16007_v20 }
 0x22e   : > { %1965 = vmatpush1.msra.mxu0 %v11693_v8 }
 0x22f   : > { %1966 = vmatprep.subr.mxu0 %v16007_v20 }
 0x230   : > { %1967 = vmatpush1.msra.mxu0 %v11699_v46 }
 0x231   : > { %1968 = vmatprep.subr.mxu0 %v16007_v20 }
 0x232   : > { %1969 = vmatpush1.msra.mxu0 %v11705_v32  ;;  %v16117_v32 = vld [vmem:[#allocation31_spill] sm:$0xff] }
 0x233   : > { %1970 = vmatprep.subr.mxu0 %v16007_v20 }
 0x234   : > { %1971 = vmatpush1.msra.mxu0 %v11711_v48 }
 0x235   : > { %1972 = vmatprep.subr.mxu0 %v16007_v20 }
 0x236   : > { %1973 = vmatpush1.msra.mxu0 %v11717_v40 }
 0x237   : > { %1976 = vmatprep.subr.mxu0 %v16007_v20 }
 0x238   : > { %8304 = vmatpush2.msk.msra.mxu0 %vm1868_vm3, %v11723_v19 }
 0x239   : > { %1978 = vmatprep.subr.mxu0 %v16007_v20 }
 0x23a   : > { %1979 = vmatpush2.msra.mxu0 %v11729_v50 }
 0x23b   : > { %1980 = vmatprep.subr.mxu0 %v16007_v20 }
 0x23c   : > { %1981 = vmatpush2.msra.mxu0 %v11735_v29 }
 0x23d   : > { %1982 = vmatprep.subr.mxu0 %v16007_v20 }
 0x23e   : > { %1983 = vmatpush2.msra.mxu0 %v11742_v14 }
 0x23f   : > { %1984 = vmatprep.subr.mxu0 %v16007_v20 }
 0x240   : > { %1985 = vmatpush2.msra.mxu0 %v11748_v10 }
 0x241   : > { %1986 = vmatprep.subr.mxu0 %v16007_v20 }
 0x242   : > { %1987 = vmatpush2.msra.mxu0 %v11754_v45 }
 0x243   : > { %1988 = vmatprep.subr.mxu0 %v16007_v20 }
 0x244   : > { %1989 = vmatpush2.msra.mxu0 %v11760_v34 }
 0x245   : > { %1990 = vmatprep.subr.mxu0 %v16007_v20 }
 0x246   : > { %1991 = vmatpush2.msra.mxu0 %v11766_v38 }
 0x247   : > { %1992 = vmatprep.subr.mxu0 %v16007_v20 }
 0x248   : > { %1993 = vmatpush2.msra.mxu0 %v11772_v42 }
 0x249   : > { %1994 = vmatprep.subr.mxu0 %v16007_v20 }
 0x24a   : > { %1995 = vmatpush2.msra.mxu0 %v11778_v33 }
 0x24b   : > { %1996 = vmatprep.subr.mxu0 %v16007_v20 }
 0x24c   : > { %1997 = vmatpush2.msra.mxu0 %v11784_v49 }
 0x24d   : > { %1998 = vmatprep.subr.mxu0 %v16007_v20 }
 0x24e   : > { %1999 = vmatpush2.msra.mxu0 %v11790_v58 }
 0x24f   : > { %2000 = vmatprep.subr.mxu0 %v16007_v20 }
 0x250   : > { %2001 = vmatpush2.msra.mxu0 %v11796_v26 }
 0x251   : > { %2002 = vmatprep.subr.mxu0 %v16007_v20 }
 0x252   : > { %2003 = vmatpush2.msra.mxu0 %v11802_v41 }
 0x253   : > { %2004 = vmatprep.subr.mxu0 %v16007_v20 }
 0x254   : > { %2005 = vmatpush2.msra.mxu0 %v11808_v23 }
 0x255   : > { %2339 = vmatprep.subr.mxu0 %v16007_v20 }
 0x25d   : > { %v1759_v53 = vpop.f32.mrf.mxu1 }
 0x25f   : > { %v1761_v3 = vpop.f32.mrf.mxu1 }
 0x260   : > { %v1837_v11 = vmax.f32 %v1759_v53, %v1761_v3 }
 0x2d7   : > { %v1830_v36 = vpop.f32.mrf.mxu0 }
 0x2d9   : > { %v1832_v22 = vpop.f32.mrf.mxu0 }
 0x2da   : > { %v1836_v12 = vsel %vm1835_vm4, %v1832_v22, -inf }
 0x2db   : > { %v1838_v54 = vmax.f32 %v1830_v36, %v1836_v12 }
 0x2dd   : > { %v1839_v47 = vmax.f32 %v1837_v11, %v1838_v54 }
 0x2df   : > { %1840 = vmax.xlane.f32.xlu0 %v1839_v47 }
 0x368   : > { %v1841_v52 = vpop.xlane.xlu0 %1840 }
 0x369   : > { %v1842_v59 = vsub.f32 %v1759_v53, %v1841_v52  ;;  %v1843_v1 = vsub.f32 %v1761_v3, %v1841_v52  ;;  %v1844_v13 = vsub.f32 %v1830_v36, %v1841_v52  ;;  %v1845_v41 = vsub.f32 %v1832_v22, %v1841_v52  ;;  %v16109_v52 = vld [vmem:[#allocation15_spill] sm:$0xff]  ;;  %v2109_v3 = vpop.permute.xlu1 %2108 }
 0x36a   : > { %v16113_v36 = vld [vmem:[#allocation23_spill] sm:$0xff] }
 0x36b   : > { %v1846_v58 = vmul.f32 1.442695, %v1842_v59  ;;  %v1848_v33 = vmul.f32 1.442695, %v1843_v1  ;;  %v1850_v38 = vmul.f32 1.442695, %v1844_v13 }
 0x36c   : > { %v1852_v45 = vmul.f32 1.442695, %v1845_v41  ;;  %v16108_v1 = vld [vmem:[#allocation14_spill] sm:$0xff] }
 0x36d   : > { %9997 = vpow2.f32 %v1846_v58  ;;  %v16112_v41 = vld [vmem:[#allocation22_spill] sm:$0xff] }
 0x36e   : > { %9999 = vpow2.f32 %v1848_v33  ;;  %v16111_v33 = vld [vmem:[#allocation19_spill] sm:$0xff] }
 0x36f   : > { %10001 = vpow2.f32 %v1850_v38  ;;  %v11846_v38 = vpop.permute.xlu1 %2106 }
 0x370   : > { %10003 = vpow2.f32 %v1852_v45  ;;  %v16110_v45 = vld [vmem:[#allocation18_spill] sm:$0xff] }
 0x373   : > { %v11850_v58 = vpop.permute.xlu1 %2102 }
 0x377   : > { %v11856_v53 = vpop.permute.xlu1 %2100 }
 0x37a   : > { %v11817_v14 = vpop.eup %9997 }
 0x37b   : > { %v11819_v50 = vpop.eup %9999  ;;  %v11860_v11 = vpop.permute.xlu1 %2098 }
 0x37c   : > { %v11821_v12 = vpop.eup %10001  ;;  %v1854_v47 = vadd.f32 %v11819_v50, %v11817_v14 }
 0x37d   : > { %v11825_v54 = vpop.eup %10003 }
 0x37e   : > { %v1855_v22 = vadd.f32 %v11821_v12, %v1854_v47  ;;  %v1856_v59 = vsel %vm1835_vm4, %v11825_v54, 0.0  ;;  %v16114_v47 = vld [vmem:[#allocation26_spill] sm:$0xff] }
 0x380   : > { %v1857_v13 = vadd.f32 %v1856_v59, %v1855_v22  ;;  %v11866_v22 = vpop.permute.xlu1 %2096  ;;  %v16115_v59 = vld [vmem:[#allocation27_spill] sm:$0xff] }
 0x382   : > { %1858 = vadd.xlane.f32.xlu0 %v1857_v13 }
 0x384   : > { %v11870_v13 = vpop.permute.xlu1 %2094 }
 0x388   : > { %v11876_v40 = vpop.permute.xlu1 %2092 }
 0x398   : > { %2104 = vrot.lane.b32.xlu0 %v11178_v25, %s10141_s25  ;;  %v16116_v25 = vld [vmem:[#allocation30_spill] sm:$0xff] }
 0x39c   : > { %2090 = vrot.lane.b32.xlu0 %v11378_v43, %s10141_s25 }
 0x3a0   : > { %2086 = vrot.lane.b32.xlu0 %v11426_v55, %s10141_s25 }
 0x3a4   : > { %2082 = vrot.lane.b32.xlu0 %v11445_v5, %s10141_s25 }
 0x3a8   : > { %2076 = vrot.lane.b32.xlu0 %v16108_v1, %s10141_s25 }
 0x3ac   : > { %2044 = vrot.lane.b32.xlu0 %v16109_v52, %s10141_s25 }
 0x3b0   : > { %2138 = vrot.lane.b32.xlu0 %v11471_v62, %s10141_s25 }
 0x3b4   : > { %2072 = vrot.lane.b32.xlu0 %v16110_v45, %s10141_s25 }
 0x3b8   : > { %2040 = vrot.lane.b32.xlu0 %v16111_v33, %s10141_s25 }
 0x3bc   : > { %2134 = vrot.lane.b32.xlu0 %v11492_v0, %s10141_s25 }
 0x3c0   : > { %2068 = vrot.lane.b32.xlu0 %v16112_v41, %s10141_s25 }
 0x3c4   : > { %2036 = vrot.lane.b32.xlu0 %v16113_v36, %s10141_s25 }
 0x3c8   : > { %2130 = vrot.lane.b32.xlu0 %v11514_v57, %s10141_s25  ;;  %v11880_v57 = vpop.permute.xlu1 %2088 }
 0x3cc   : > { %2064 = vrot.lane.b32.xlu0 %v16114_v47, %s10141_s25  ;;  %v11886_v47 = vpop.permute.xlu1 %2084 }
 0x3d0   : > { %2032 = vrot.lane.b32.xlu0 %v16115_v59, %s10141_s25  ;;  %v16118_v59 = vld [vmem:[#allocation34_spill] sm:$0xff]  ;;  %v11890_v8 = vpop.permute.xlu1 %2080 }
 0x3d4   : > { %2126 = vrot.lane.b32.xlu0 %v11532_v7, %s10141_s25  ;;  %v16119_v7 = vld [vmem:[#allocation36_spill] sm:$0xff] }
 0x3d8   : > { %2060 = vrot.lane.b32.xlu0 %v16116_v25, %s10141_s25  ;;  %v11896_v25 = vpop.permute.xlu1 %2078 }
 0x3dc   : > { %2028 = vrot.lane.b32.xlu0 %v16117_v32, %s10141_s25  ;;  %v16120_v32 = vld [vmem:[#allocation40_spill] sm:$0xff]  ;;  %v2075_v36 = vpop.permute.xlu1 %2074 }
 0x3e0   : > { %2122 = vrot.lane.b32.xlu0 %v11554_v44, %s10141_s25  ;;  %v16121_v44 = vld [vmem:[#allocation42_spill] sm:$0xff] }
 0x3e4   : > { %2056 = vrot.lane.b32.xlu0 %v16118_v59, %s10141_s25  ;;  %v16122_v59 = vld [vmem:[#allocation46_spill] sm:$0xff] }
 0x3e8   : > { %2024 = vrot.lane.b32.xlu0 %v16119_v7, %s10141_s25  ;;  %v2043_v7 = vpop.permute.xlu1 %2042 }
 0x3ec   : > { %2118 = vrot.lane.b32.xlu0 %v11576_v39, %s10141_s25  ;;  %v11906_v39 = vpop.permute.xlu1 %2136 }
 0x3f0   : > { %2052 = vrot.lane.b32.xlu0 %v16120_v32, %s10141_s25 }
 0x3f4   : > { %2020 = vrot.lane.b32.xlu0 %v16121_v44, %s10141_s25  ;;  %v2071_v44 = vpop.permute.xlu1 %2070 }
 0x3f8   : > { %2114 = vrot.lane.b32.xlu0 %v11594_v37, %s10141_s25  ;;  %v16124_v37 = vld [vmem:[#allocation51_spill] sm:$0xff]  ;;  %v2039_v41 = vpop.permute.xlu1 %2038 }
 0x3fc   : > { %2048 = vrot.lane.b32.xlu0 %v16122_v59, %s10141_s25 }
 0x400   : > { %2016 = vrot.lane.b32.xlu0 %v16123_v16, %s10141_s25 }
 0x404   : > { %2110 = vrot.lane.b32.xlu0 %v11612_v60, %s10141_s25  ;;  %v11920_v60 = vpop.permute.xlu1 %2132 }
 0x408   : > { %2012 = vrot.lane.b32.xlu0 %v10856_v30, %s10141_s25  ;;  %v16126_v30 = vld [vmem:[#allocation56_spill] sm:$0xff]  ;;  %v2067_v17 = vpop.permute.xlu1 %2066 }
 0x40b   : > { %v1859_v32 = vpop.xlane.xlu0 %1858 }
 0x40c   : > { %10005 = vrcp.f32 %v1859_v32  ;;  %2563 = vrot.lane.b32.xlu0 %v16124_v37, %s10141_s25 }
 0x40f   : > { %v2105_v59 = vpop.permute.xlu0 %2104 }
 0x410   : > { %2531 = vrot.lane.b32.xlu0 %v11125_v27, %s10141_s25 }
 0x413   : > { %v11916_v16 = vpop.permute.xlu0 %2090 }
 0x414   : > { %2561 = vrot.lane.b32.xlu0 %v16125_v2, %s10141_s25 }
 0x417   : > { %v11922_v0 = vpop.permute.xlu0 %2086 }
 0x418   : > { %2529 = vrot.lane.b32.xlu0 %v16126_v30, %s10141_s25 }
 0x419   : > { %v10006_v32 = vpop.eup %10005 }
 0x41a   : > { %v1862_v37 = vmul.f32 %v10006_v32, %v11819_v50  ;;  %v1864_v24 = vmul.f32 %v10006_v32, %v11825_v54  ;;  %v1861_v33 = vmul.f32 %v10006_v32, %v11817_v14  ;;  %v1863_v27 = vmul.f32 %v10006_v32, %v11821_v12  ;;  %v2035_v14 = vpop.permute.xlu1 %2034  ;;  %v16131_v32 = vld [vmem:[#allocation8_spill] sm:$0xff] }
 0x41b   : > { %v11930_v45 = vpop.permute.xlu0 %2082 }
 0x41c   : > { %2527 = vrot.lane.b32.xlu0 %v11157_v4, %s10141_s25  ;;  %1936 = vmatprep.mubr.f32.mxu1 %v1862_v37 }
 0x41d   : > { %8305 = vmatprep.mubr.msk.f32.mxu0 %vm1835_vm4, %v1864_v24  ;;  %1937 = vmatmul.mubr.f32.vlgmr.msra.gmra.mxu1 %v1861_v33  ;;  %v16127_v33 = vld [vmem:[#allocation81_spill] sm:$0xff] }
 0x41e   : > { %2007 = vmatmul.mubr.f32.vlgmr.msra.gmra.mxu0 %v1863_v27  ;;  %v11948_v27 = vpop.permute.xlu1 %2128 }
 0x41f   : > { %8339 = vmatpush1.xpose.msk.msra.mxu0 %vm1500_vm2, %v2109_v3  ;;  %v2077_v50 = vpop.permute.xlu0 %2076  ;;  %2403 = vmatprep.mubr.f32.mxu0 %v16007_v20 }
 0x420   : > { %2521 = vrot.lane.b32.xlu0 %v11215_v28, %s10141_s25  ;;  %9004 = vmatprep.subr.msk.mxu1 %vm1500_vm2, %v2077_v50  ;;  %v16132_v50 = vld [vmem:[#allocation7_spill] sm:$0xff] }
 0x421   : > { %2341 = vmatprep.subr.mxu0 %v16007_v20 }
 0x422   : > { %v2063_v54 = vpop.permute.xlu1 %2062 }
 0x423   : > { %8340 = vmatpush1.xpose.msk.msra.mxu0 %vm1500_vm2, %v11846_v38  ;;  %v2045_v37 = vpop.permute.xlu0 %2044 }
 0x424   : > { %2519 = vrot.lane.b32.xlu0 %v11238_v6, %s10141_s25  ;;  %9005 = vmatpush3.xpose.msk.msra.mxu1 %vm1500_vm2, %v2045_v37 }
 0x425   : > { %2343 = vmatprep.subr.mxu0 %v16007_v20  ;;  %9006 = vmatprep.subr.msk.mxu1 %vm1500_vm2, %v2075_v36 }
 0x427   : > { %8341 = vmatpush1.xpose.msk.msra.mxu0 %vm1500_vm2, %v2105_v59  ;;  %v11951_v24 = vpop.permute.xlu0 %2138  ;;  %v16130_v59 = vld [vmem:[#allocation9_spill] sm:$0xff] }
 0x428   : > { %2517 = vrot.lane.b32.xlu0 %v11255_v56, %s10141_s25  ;;  %9007 = vmatpush3.xpose.msk.msra.mxu1 %vm1500_vm2, %v2043_v7  ;;  %v2031_v7 = vpop.permute.xlu1 %2030 }
 0x429   : > { %2345 = vmatprep.subr.mxu0 %v16007_v20 }
 0x42b   : > { %8342 = vmatpush1.xpose.msk.msra.mxu0 %vm1500_vm2, %v11850_v58  ;;  %v2073_v12 = vpop.permute.xlu0 %2072 }
 0x42c   : > { %2515 = vrot.lane.b32.xlu0 %v11271_v63, %s10141_s25  ;;  %9008 = vmatprep.subr.msk.mxu1 %vm1500_vm2, %v2073_v12 }
 0x42d   : > { %2347 = vmatprep.subr.mxu0 %v16007_v20 }
 0x42f   : > { %8343 = vmatpush1.xpose.msk.msra.mxu0 %vm1500_vm2, %v11856_v53  ;;  %v2041_v3 = vpop.permute.xlu0 %2040  ;;  %v16128_v53 = vld [vmem:[#allocation84_spill] sm:$0xff] }
 0x430   : > { %2513 = vrot.lane.b32.xlu0 %v11294_v51, %s10141_s25  ;;  %9009 = vmatpush3.xpose.msk.msra.mxu1 %vm1500_vm2, %v2041_v3 }
 0x431   : > { %2349 = vmatprep.subr.mxu0 %v16007_v20  ;;  %9010 = vmatprep.subr.msk.mxu1 %vm1500_vm2, %v2071_v44  ;;  %v11983_v44 = vpop.permute.xlu1 %2124 }
 0x433   : > { %8344 = vmatpush1.xpose.msk.msra.mxu0 %vm1500_vm2, %v11860_v11  ;;  %v11972_v38 = vpop.permute.xlu0 %2134 }
 0x434   : > { %2511 = vrot.lane.b32.xlu0 %v16127_v33, %s10141_s25  ;;  %9011 = vmatpush3.xpose.msk.msra.mxu1 %vm1500_vm2, %v2039_v41  ;;  %v16129_v41 = vld [vmem:[#allocation87_spill] sm:$0xff] }
 0x435   : > { %2351 = vmatprep.subr.mxu0 %v16007_v20  ;;  %v2059_v11 = vpop.permute.xlu1 %2058 }
 0x437   : > { %8345 = vmatpush1.xpose.msk.msra.mxu0 %vm1500_vm2, %v11866_v22  ;;  %v2069_v58 = vpop.permute.xlu0 %2068 }
 0x438   : > { %2509 = vrot.lane.b32.xlu0 %v16128_v53, %s10141_s25  ;;  %9012 = vmatprep.subr.msk.mxu1 %vm1500_vm2, %v2069_v58 }
 0x439   : > { %2353 = vmatprep.subr.mxu0 %v16007_v20 }
 0x43b   : > { %8346 = vmatpush1.xpose.msk.msra.mxu0 %vm1500_vm2, %v11870_v13  ;;  %v2037_v36 = vpop.permute.xlu0 %2036 }
 0x43c   : > { %2507 = vrot.lane.b32.xlu0 %v16129_v41, %s10141_s25  ;;  %9013 = vmatpush3.xpose.msk.msra.mxu1 %vm1500_vm2, %v2037_v36 }
 0x43d   : > { %2355 = vmatprep.subr.mxu0 %v16007_v20  ;;  %9014 = vmatprep.subr.msk.mxu1 %vm1500_vm2, %v2067_v17  ;;  %v2027_v17 = vpop.permute.xlu1 %2026 }
 0x43f   : > { %8347 = vmatpush1.xpose.msk.msra.mxu0 %vm1500_vm2, %v11876_v40  ;;  %v2131_v22 = vpop.permute.xlu0 %2130 }
 0x440   : > { %2505 = vrot.lane.b32.xlu0 %v16130_v59, %s10141_s25  ;;  %9015 = vmatpush3.xpose.msk.msra.mxu1 %vm1500_vm2, %v2035_v14 }
 0x441   : > { %2357 = vmatprep.subr.mxu0 %v16007_v20 }
 0x443   : > { %8348 = vmatpush1.xpose.msk.msra.mxu0 %vm1500_vm2, %v11916_v16  ;;  %v2065_v13 = vpop.permute.xlu0 %2064  ;;  %v12012_v16 = vpop.permute.xlu1 %2120 }
 0x444   : > { %2503 = vrot.lane.b32.xlu0 %v16131_v32, %s10141_s25  ;;  %9016 = vmatprep.subr.msk.mxu1 %vm1500_vm2, %v2065_v13 }
 0x445   : > { %2359 = vmatprep.subr.mxu0 %v16007_v20 }
 0x447   : > { %8349 = vmatpush1.xpose.msk.msra.mxu0 %vm1500_vm2, %v11880_v57  ;;  %v2033_v40 = vpop.permute.xlu0 %2032  ;;  %v2055_v37 = vpop.permute.xlu1 %2054 }
 0x448   : > { %2501 = vrot.lane.b32.xlu0 %v16132_v50, %s10141_s25  ;;  %9017 = vmatpush3.xpose.msk.msra.mxu1 %vm1500_vm2, %v2033_v40 }
 0x449   : > { %2361 = vmatprep.subr.mxu0 %v16007_v20  ;;  %9018 = vmatprep.subr.msk.mxu1 %vm1500_vm2, %v2063_v54 }
 0x44b   : > { %8350 = vmatpush1.xpose.msk.msra.mxu0 %vm1500_vm2, %v11922_v0  ;;  %v2127_v14 = vpop.permute.xlu0 %2126  ;;  %v2023_v0 = vpop.permute.xlu1 %2022 }
 0x44c   : > { %9019 = vmatpush3.xpose.msk.msra.mxu1 %vm1500_vm2, %v2031_v7  ;;  %2363 = vmatprep.subr.mxu0 %v16007_v20 }
 0x44f   : > { %8351 = vmatpush1.xpose.msk.msra.mxu0 %vm1500_vm2, %v11886_v47  ;;  %v2061_v57 = vpop.permute.xlu0 %2060  ;;  %v2117_v54 = vpop.permute.xlu1 %2116 }
 0x450   : > { %9020 = vmatprep.subr.msk.mxu1 %vm1500_vm2, %v2061_v57  ;;  %2365 = vmatprep.subr.mxu0 %v16007_v20 }
 0x453   : > { %8352 = vmatpush1.xpose.msk.msra.mxu0 %vm1500_vm2, %v11930_v45  ;;  %v2029_v12 = vpop.permute.xlu0 %2028 }
 0x454   : > { %9021 = vmatpush3.xpose.msk.msra.mxu1 %vm1500_vm2, %v2029_v12  ;;  %2367 = vmatprep.subr.mxu0 %v16007_v20 }
 0x455   : > { %9022 = vmatprep.subr.msk.mxu1 %vm1500_vm2, %v2059_v11 }
 0x457   : > { %8353 = vmatpush1.xpose.msk.msra.mxu0 %vm1500_vm2, %v11890_v8  ;;  %v2123_v47 = vpop.permute.xlu0 %2122  ;;  %v2051_v8 = vpop.permute.xlu1 %2050 }
 0x458   : > { %9023 = vmatpush3.xpose.msk.msra.mxu1 %vm1500_vm2, %v2027_v17  ;;  %2369 = vmatprep.subr.mxu0 %v16007_v20 }
 0x45b   : > { %8354 = vmatpush1.xpose.msk.msra.mxu0 %vm1500_vm2, %v11896_v25  ;;  %v2057_v45 = vpop.permute.xlu0 %2056  ;;  %v2019_v7 = vpop.permute.xlu1 %2018 }
 0x45c   : > { %9024 = vmatprep.subr.msk.mxu1 %vm1500_vm2, %v2057_v45  ;;  %2373 = vmatprep.subr.mxu0 %v16007_v20 }
 0x45f   : > { %8355 = vmatpush2.xpose.msk.msra.mxu0 %vm1500_vm2, %v11951_v24  ;;  %v2025_v3 = vpop.permute.xlu0 %2024 }
 0x460   : > { %9025 = vmatpush3.xpose.msk.msra.mxu1 %vm1500_vm2, %v2025_v3  ;;  %2375 = vmatprep.subr.mxu0 %v16007_v20 }
 0x461   : > { %9026 = vmatprep.subr.msk.mxu1 %vm1500_vm2, %v2055_v37 }
 0x463   : > { %8356 = vmatpush2.xpose.msk.msra.mxu0 %vm1500_vm2, %v11906_v39  ;;  %v2119_v25 = vpop.permute.xlu0 %2118  ;;  %v2113_v39 = vpop.permute.xlu1 %2112 }
 0x464   : > { %9027 = vmatpush3.xpose.msk.msra.mxu1 %vm1500_vm2, %v2023_v0  ;;  %2377 = vmatprep.subr.mxu0 %v16007_v20 }
 0x467   : > { %8357 = vmatpush2.xpose.msk.msra.mxu0 %vm1500_vm2, %v11972_v38  ;;  %v2053_v24 = vpop.permute.xlu0 %2052 }
 0x468   : > { %9028 = vmatprep.subr.msk.mxu1 %vm1500_vm2, %v2053_v24  ;;  %2379 = vmatprep.subr.mxu0 %v16007_v20 }
 0x46b   : > { %8358 = vmatpush2.xpose.msk.msra.mxu0 %vm1500_vm2, %v11920_v60  ;;  %v2021_v58 = vpop.permute.xlu0 %2020  ;;  %v2047_v60 = vpop.permute.xlu1 %2046 }
 0x46c   : > { %9029 = vmatpush3.xpose.msk.msra.mxu1 %vm1500_vm2, %v2021_v58  ;;  %2381 = vmatprep.subr.mxu0 %v16007_v20 }
 0x46d   : > { %9030 = vmatprep.subr.msk.mxu1 %vm1500_vm2, %v2051_v8 }
 0x46f   : > { %8359 = vmatpush2.xpose.msk.msra.mxu0 %vm1500_vm2, %v2131_v22  ;;  %v2115_v38 = vpop.permute.xlu0 %2114  ;;  %v2015_v22 = vpop.permute.xlu1 %2014 }
 0x470   : > { %9031 = vmatpush3.xpose.msk.msra.mxu1 %vm1500_vm2, %v2019_v7  ;;  %2383 = vmatprep.subr.mxu0 %v16007_v20 }
 0x473   : > { %8360 = vmatpush2.xpose.msk.msra.mxu0 %vm1500_vm2, %v11948_v27  ;;  %v2049_v36 = vpop.permute.xlu0 %2048 }
 0x474   : > { %9032 = vmatprep.subr.msk.mxu1 %vm1500_vm2, %v2049_v36  ;;  %2385 = vmatprep.subr.mxu0 %v16007_v20  ;;  %v16134_v36 = vld [vmem:[#allocation60_spill] sm:$0xff] }
 0x477   : > { %8361 = vmatpush2.xpose.msk.msra.mxu0 %vm1500_vm2, %v2127_v14  ;;  %v2017_v11 = vpop.permute.xlu0 %2016 }
 0x478   : > { %9033 = vmatpush3.xpose.msk.msra.mxu1 %vm1500_vm2, %v2017_v11  ;;  %2387 = vmatprep.subr.mxu0 %v16007_v20  ;;  %v16136_v11 = vld [vmem:[#allocation64_spill] sm:$0xff] }
 0x479   : > { %9034 = vmatprep.subr.msk.mxu1 %vm1500_vm2, %v2047_v60  ;;  %v16135_v60 = vld [vmem:[#allocation63_spill] sm:$0xff] }
 0x47b   : > { %8362 = vmatpush2.xpose.msk.msra.mxu0 %vm1500_vm2, %v11983_v44  ;;  %v2111_v27 = vpop.permute.xlu0 %2110 }
 0x47c   : > { %9035 = vmatpush3.xpose.msk.msra.mxu1 %vm1500_vm2, %v2015_v22  ;;  %2389 = vmatprep.subr.mxu0 %v16007_v20  ;;  %v16137_v22 = vld [vmem:[#allocation65_spill] sm:$0xff] }
 0x47f   : > { %8363 = vmatpush2.xpose.msk.msra.mxu0 %vm1500_vm2, %v2123_v47  ;;  %v2013_v13 = vpop.permute.xlu0 %2012 }
 0x480   : > { %9036 = vmatprep.mubr.msk.f32.mxu1 %vm1500_vm2, %v2013_v13  ;;  %2391 = vmatprep.subr.mxu0 %v16007_v20 }
 0x481   : > { %9037 = vmatmul.mubr.msk.f32.vlgmr.msra.gmra.mxu1 %vm1500_vm2, %v2013_v13 }
 0x483   : > { %8364 = vmatpush2.xpose.msk.msra.mxu0 %vm1500_vm2, %v12012_v16  ;;  %v2564_v17 = vpop.permute.xlu0 %2563  ;;  %v12088_v16 = vld [vmem:[%s15683_s8] sm:$0xff] }
 0x484   : > { %2393 = vmatprep.subr.mxu0 %v16007_v20  ;;  %9038 = vmatprep.subr.mxu1 %v2564_v17  ;;  %v16140_v17 = vld [vmem:[#allocation72_spill] sm:$0xff] }
 0x487   : > { %8365 = vmatpush2.xpose.msk.msra.mxu0 %vm1500_vm2, %v2119_v25  ;;  %v2532_v44 = vpop.permute.xlu0 %2531 }
 0x488   : > { %2395 = vmatprep.subr.mxu0 %v16007_v20  ;;  %9039 = vmatpush3.msra.mxu1 %v2532_v44  ;;  %v16141_v44 = vld [vmem:[#allocation75_spill] sm:$0xff] }
 0x48b   : > { %8366 = vmatpush2.xpose.msk.msra.mxu0 %vm1500_vm2, %v2117_v54  ;;  %v2562_v40 = vpop.permute.xlu0 %2561 }
 0x48c   : > { %2397 = vmatprep.subr.mxu0 %v16007_v20  ;;  %9040 = vmatprep.subr.mxu1 %v2562_v40  ;;  %v16142_v40 = vld [vmem:[#allocation77_spill] sm:$0xff] }
 0x48f   : > { %8367 = vmatpush2.xpose.msk.msra.mxu0 %vm1500_vm2, %v2115_v38  ;;  %v2530_v14 = vpop.permute.xlu0 %2529  ;;  %v16133_v38 = vld [vmem:[#allocation58_spill] sm:$0xff] }
 0x490   : > { %2399 = vmatprep.subr.mxu0 %v16007_v20  ;;  %9041 = vmatpush3.msra.mxu1 %v2530_v14  ;;  %v16143_v14 = vld [vmem:[#allocation80_spill] sm:$0xff] }
 0x493   : > { %8368 = vmatpush2.xpose.msk.msra.mxu0 %vm1500_vm2, %v2113_v39 }
 0x494   : > { %2401 = vmatprep.subr.mxu0 %v16007_v20 }
 0x497   : > { %8369 = vmatpush2.xpose.msk.msra.mxu0 %vm1500_vm2, %v2111_v27  ;;  %v16138_v27 = vld [vmem:[#allocation67_spill] sm:$0xff] }
 0x498   : > { %9913 = vmatprep.subr.mxu0 %v16007_v20 }
 0x49a   : > { %8370 = vmatmul.mubr.msk.f32.vlgmr.msra.gmra.mxu0 %vm1500_vm2, %v2013_v13  ;;  %v16139_v13 = vld [vmem:[#allocation69_spill] sm:$0xff] }
 0x49b   : > { %9914 = vmatpush3.msk.msra.mxu0 %vm1868_vm3, %v12088_v16  ;;  %9915 = vmatprep.mubr.msk.f32.mxu0 %vm10140_vm0, %v16007_v20 }
 0x49c   : > { %3313 = vmatprep.subr.mxu0 %v16007_v20 }
 0x4dd   : > { %v9001_v57 = vpop.f32.mrf.mxu1 }
 0x4de   : > { %v2008_v37 = vpop.f32.mrf.mxu0 }
 0x4df   : > { %v9002_v12 = vpop.f32.mrf.mxu1 }
 0x4e0   : > { %v9003_v0 = vadd.f32 %v9002_v12, %v9001_v57  ;;  %v2010_v47 = vpop.f32.mrf.mxu0  ;;  %v16144_v57 = vld [vmem:[#allocation83_spill] sm:$0xff] }
 0x4e1   : > { %v16147_v47 = vld [vmem:[#allocation12_spill] sm:$0xff] }
 0x4e2   : > { %v2009_v45 = vadd.f32 %v9003_v0, %v2008_v37  ;;  %v16145_v37 = vld [vmem:[#allocation85_spill] sm:$0xff] }
 0x4e4   : > { %9916 = vmatmul.mubr.msk.f32.vlgmr.msra.gmra.mxu0 %vm1500_vm2, %v2009_v45  ;;  %v16148_v45 = vld [vmem:[#allocation11_spill] sm:$0xff] }
 0x4e5   : > { %3377 = vmatprep.mubr.f32.mxu0 %v16007_v20 }
 0x541   : > { %v2334_v54 = vpop.f32.mrf.mxu1 }
 0x543   : > { %v2336_v8 = vpop.f32.mrf.mxu1 }
 0x544   : > { %v2411_v7 = vmax.f32 %v2334_v54, %v2336_v8 }
 0x55a   : > { %v2405_v3 = vpop.f32.mrf.mxu0 }
 0x55c   : > { %v2407_v25 = vpop.f32.mrf.mxu0 }
 0x55d   : > { %v2410_v24 = vsel %vm1835_vm4, %v2407_v25, -inf }
 0x55e   : > { %v2412_v58 = vmax.f32 %v2405_v3, %v2410_v24  ;;  %v16149_v24 = vld [vmem:[#allocation10_spill] sm:$0xff] }
 0x560   : > { %v2413_v39 = vmax.f32 %v2411_v7, %v2412_v58  ;;  %v2528_v7 = vpop.permute.xlu0 %2527 }
 0x562   : > { %2414 = vmax.xlane.f32.xlu1 %v2413_v39 }
 0x573   : > { %2559 = vrot.lane.b32.xlu1 %v16133_v38, %s10141_s25 }
 0x577   : > { %2557 = vrot.lane.b32.xlu1 %v16134_v36, %s10141_s25 }
 0x57b   : > { %2525 = vrot.lane.b32.xlu1 %v16135_v60, %s10141_s25 }
 0x57f   : > { %2555 = vrot.lane.b32.xlu1 %v16136_v11, %s10141_s25 }
 0x583   : > { %2523 = vrot.lane.b32.xlu1 %v16137_v22, %s10141_s25 }
 0x587   : > { %2553 = vrot.lane.b32.xlu1 %v16138_v27, %s10141_s25 }
 0x58b   : > { %2551 = vrot.lane.b32.xlu1 %v16139_v13, %s10141_s25 }
 0x58f   : > { %2549 = vrot.lane.b32.xlu1 %v16140_v17, %s10141_s25 }
 0x593   : > { %2547 = vrot.lane.b32.xlu1 %v16141_v44, %s10141_s25 }
 0x597   : > { %2545 = vrot.lane.b32.xlu1 %v16142_v40, %s10141_s25 }
 0x59b   : > { %2543 = vrot.lane.b32.xlu1 %v16143_v14, %s10141_s25 }
 0x59f   : > { %2541 = vrot.lane.b32.xlu1 %v16144_v57, %s10141_s25 }
 0x5a3   : > { %2539 = vrot.lane.b32.xlu1 %v16145_v37, %s10141_s25 }
 0x5a4   : > { %v12125_v12 = vpop.f32.mrf.mxu0 }
 0x5a5   : > { %16146 = vst [vmem:[#allocation58_spill] sm:$0xff] %v12125_v12 }
 0x5a6   : > { %v9917_v0 = vpop.f32.mrf.mxu0 }
 0x5a7   : > { %2537 = vrot.lane.b32.xlu1 %v16147_v47, %s10141_s25 }
 0x5ab   : > { %2535 = vrot.lane.b32.xlu1 %v16148_v45, %s10141_s25 }
 0x5af   : > { %2533 = vrot.lane.b32.xlu1 %v16149_v24, %s10141_s25 }
 0x5b3   : > { %2595 = vrot.lane.b32.xlu1 %v11620_v9, %s10141_s25 }
 0x5b7   : > { %2591 = vrot.lane.b32.xlu1 %v11633_v15, %s10141_s25 }
 0x5bb   : > { %2587 = vrot.lane.b32.xlu1 %v11647_v31, %s10141_s25 }
 0x5bf   : > { %2583 = vrot.lane.b32.xlu1 %v11661_v21, %s10141_s25 }
 0x5c3   : > { %2579 = vrot.lane.b32.xlu1 %v11675_v61, %s10141_s25 }
 0x5c7   : > { %2575 = vrot.lane.b32.xlu1 %v11687_v35, %s10141_s25 }
 0x5cb   : > { %2571 = vrot.lane.b32.xlu1 %v11699_v46, %s10141_s25 }
 0x5cf   : > { %2567 = vrot.lane.b32.xlu1 %v11711_v48, %s10141_s25 }
 0x5d3   : > { %2625 = vrot.lane.b32.xlu1 %v11723_v19, %s10141_s25 }
 0x5d7   : > { %2621 = vrot.lane.b32.xlu1 %v11735_v29, %s10141_s25 }
 0x5db   : > { %2617 = vrot.lane.b32.xlu1 %v11748_v10, %s10141_s25 }
 0x5df   : > { %2613 = vrot.lane.b32.xlu1 %v11760_v34, %s10141_s25  ;;  %v2522_v34 = vpop.permute.xlu0 %2521 }
 0x5e3   : > { %2609 = vrot.lane.b32.xlu1 %v11772_v42, %s10141_s25 }
 0x5e7   : > { %2605 = vrot.lane.b32.xlu1 %v11784_v49, %s10141_s25 }
 0x5eb   : > { %2601 = vrot.lane.b32.xlu1 %v11796_v26, %s10141_s25  ;;  %v2415_v58 = vpop.xlane.xlu1 %2414 }
 0x5ec   : > { %v2416_v39 = vsub.f32 %v2334_v54, %v2415_v58  ;;  %v2417_v0 = vsub.f32 %v2336_v8, %v2415_v58  ;;  %v2418_v12 = vsub.f32 %v2405_v3, %v2415_v58  ;;  %v2419_v29 = vsub.f32 %v2407_v25, %v2415_v58  ;;  %v16150_v54 = vld [vmem:[#allocation57_spill] sm:$0xff]  ;;  %v2520_v8 = vpop.permute.xlu0 %2519 }
 0x5ee   : > { %v2420_v19 = vmul.f32 1.442695, %v2416_v39  ;;  %v2422_v10 = vmul.f32 1.442695, %v2417_v0  ;;  %v2424_v48 = vmul.f32 1.442695, %v2418_v12 }
 0x5ef   : > { %v2426_v46 = vmul.f32 1.442695, %v2419_v29  ;;  %2597 = vrot.lane.b32.xlu1 %v11808_v23, %s10141_s25  ;;  %v2560_v42 = vpop.permute.xlu1 %2559  ;;  %v16151_v29 = vld [vmem:[#allocation61_spill] sm:$0xff]  ;;  %v16152_v12 = vld [vmem:[#allocation70_spill] sm:$0xff] }
 0x5f0   : > { %10007 = vpow2.f32 %v2420_v19  ;;  %9042 = vmatprep.subr.mxu1 %v2560_v42 }
 0x5f1   : > { %10009 = vpow2.f32 %v2422_v10  ;;  %9043 = vmatpush3.msra.mxu1 %v2528_v7  ;;  %v2518_v10 = vpop.permute.xlu0 %2517  ;;  %v16153_v7 = vld [vmem:[#allocation78_spill] sm:$0xff] }
 0x5f2   : > { %10011 = vpow2.f32 %v2424_v48 }
 0x5f3   : > { %10013 = vpow2.f32 %v2426_v46  ;;  %3080 = vrot.lane.b32.xlu1 %v16150_v54, %s10142_s29  ;;  %v2558_v3 = vpop.permute.xlu1 %2557 }
 0x5f4   : > { %9044 = vmatprep.subr.mxu1 %v2558_v3 }
 0x5f7   : > { %3076 = vrot.lane.b32.xlu1 %v16151_v29, %s10142_s29  ;;  %v2526_v25 = vpop.permute.xlu1 %2525 }
 0x5f8   : > { %9045 = vmatpush3.msra.mxu1 %v2526_v25  ;;  %v2516_v25 = vpop.permute.xlu0 %2515 }
 0x5fb   : > { %3072 = vrot.lane.b32.xlu1 %v16152_v12, %s10142_s29  ;;  %v2556_v19 = vpop.permute.xlu1 %2555 }
 0x5fc   : > { %9046 = vmatprep.subr.mxu1 %v2556_v19  ;;  %v2514_v54 = vpop.permute.xlu0 %2513 }
 0x5fd   : > { %v12171_v48 = vpop.eup %10007 }
 0x5fe   : > { %v12173_v46 = vpop.eup %10009 }
 0x5ff   : > { %v12175_v42 = vpop.eup %10011  ;;  %3068 = vrot.lane.b32.xlu1 %v16153_v7, %s10142_s29  ;;  %v2524_v58 = vpop.permute.xlu1 %2523  ;;  %v2428_v39 = vadd.f32 %v12173_v46, %v12171_v48 }
 0x600   : > { %v12181_v0 = vpop.eup %10013  ;;  %9047 = vmatpush3.msra.mxu1 %v2524_v58 }
 0x601   : > { %v2429_v3 = vadd.f32 %v12175_v42, %v2428_v39  ;;  %v2430_v19 = vsel %vm1835_vm4, %v12181_v0, 0.0  ;;  %v2512_v39 = vpop.permute.xlu0 %2511 }
 0x603   : > { %3064 = vrot.lane.b32.xlu1 %v11378_v43, %s10142_s29  ;;  %v2554_v12 = vpop.permute.xlu1 %2553  ;;  %v2431_v29 = vadd.f32 %v2430_v19, %v2429_v3 }
 0x604   : > { %9048 = vmatprep.subr.mxu1 %v2554_v12 }
 0x605   : > { %2432 = vadd.xlane.f32.xlu0 %v2431_v29  ;;  %9049 = vmatpush3.msra.mxu1 %v2522_v34  ;;  %v2510_v29 = vpop.permute.xlu0 %2509 }
 0x607   : > { %3060 = vrot.lane.b32.xlu1 %v11426_v55, %s10142_s29  ;;  %v2552_v7 = vpop.permute.xlu1 %2551 }
 0x608   : > { %9050 = vmatprep.subr.mxu1 %v2552_v7  ;;  %v16154_v7 = vld [vmem:[#allocation18_spill] sm:$0xff] }
 0x609   : > { %9051 = vmatpush3.msra.mxu1 %v2520_v8 }
 0x60b   : > { %3056 = vrot.lane.b32.xlu1 %v11445_v5, %s10142_s29  ;;  %v2550_v58 = vpop.permute.xlu1 %2549 }
 0x60c   : > { %9052 = vmatprep.subr.mxu1 %v2550_v58 }
 0x60d   : > { %9053 = vmatpush3.msra.mxu1 %v2518_v10  ;;  %v2508_v10 = vpop.permute.xlu0 %2507 }
 0x60f   : > { %3050 = vrot.lane.b32.xlu1 %v16108_v1, %s10142_s29  ;;  %v2548_v12 = vpop.permute.xlu1 %2547 }
 0x610   : > { %9054 = vmatprep.subr.mxu1 %v2548_v12  ;;  %v16158_v12 = vld [vmem:[#allocation97_spill] sm:$0xff] }
 0x611   : > { %9055 = vmatpush3.msra.mxu1 %v2516_v25  ;;  %v16155_v25 = vld [vmem:[#allocation110_spill] sm:$0xff]  ;;  %v2506_v58 = vpop.permute.xlu0 %2505 }
 0x613   : > { %3018 = vrot.lane.b32.xlu1 %v16109_v52, %s10142_s29  ;;  %v2546_v34 = vpop.permute.xlu1 %2545 }
 0x614   : > { %9056 = vmatprep.subr.mxu1 %v2546_v34 }
 0x615   : > { %9057 = vmatpush3.msra.mxu1 %v2514_v54  ;;  %v16156_v54 = vld [vmem:[#allocation19_spill] sm:$0xff] }
 0x617   : > { %3112 = vrot.lane.b32.xlu1 %v11471_v62, %s10142_s29  ;;  %v2544_v8 = vpop.permute.xlu1 %2543 }
 0x618   : > { %9058 = vmatprep.subr.mxu1 %v2544_v8  ;;  %v16159_v8 = vld [vmem:[#allocation112_spill] sm:$0xff] }
 0x619   : > { %9059 = vmatpush3.msra.mxu1 %v2512_v39  ;;  %v16157_v39 = vld [vmem:[#allocation111_spill] sm:$0xff] }
 0x61b   : > { %2593 = vrot.lane.b32.xlu0 %v11625_v18, %s10141_s25  ;;  %3046 = vrot.lane.b32.xlu1 %v16154_v7, %s10142_s29  ;;  %v2542_v3 = vpop.permute.xlu1 %2541 }
 0x61c   : > { %9060 = vmatprep.subr.mxu1 %v2542_v3  ;;  %v16160_v3 = vld [vmem:[#allocation22_spill] sm:$0xff] }
 0x61d   : > { %9061 = vmatpush3.msra.mxu1 %v2510_v29  ;;  %v2504_v29 = vpop.permute.xlu0 %2503 }
 0x61f   : > { %2589 = vrot.lane.b32.xlu0 %v16155_v25, %s10141_s25  ;;  %3014 = vrot.lane.b32.xlu1 %v16156_v54, %s10142_s29  ;;  %v2540_v19 = vpop.permute.xlu1 %2539 }
 0x620   : > { %9062 = vmatprep.subr.mxu1 %v2540_v19  ;;  %v16162_v19 = vld [vmem:[#allocation23_spill] sm:$0xff] }
 0x621   : > { %9063 = vmatpush3.msra.mxu1 %v2508_v10  ;;  %v16161_v10 = vld [vmem:[#allocation113_spill] sm:$0xff]  ;;  %v2502_v7 = vpop.permute.xlu0 %2501 }
 0x623   : > { %2585 = vrot.lane.b32.xlu0 %v16157_v39, %s10141_s25  ;;  %3108 = vrot.lane.b32.xlu1 %v16158_v12, %s10142_s29  ;;  %v2538_v34 = vpop.permute.xlu1 %2537 }
 0x624   : > { %9064 = vmatprep.subr.mxu1 %v2538_v34  ;;  %v16164_v34 = vld [vmem:[#allocation99_spill] sm:$0xff] }
 0x625   : > { %9065 = vmatpush3.msra.mxu1 %v2506_v58  ;;  %v16163_v58 = vld [vmem:[#allocation50_spill] sm:$0xff] }
 0x627   : > { %2581 = vrot.lane.b32.xlu0 %v16159_v8, %s10141_s25  ;;  %3042 = vrot.lane.b32.xlu1 %v16160_v3, %s10142_s29  ;;  %v2536_v54 = vpop.permute.xlu1 %2535  ;;  %v16166_v3 = vld [vmem:[#allocation26_spill] sm:$0xff] }
 0x628   : > { %9066 = vmatprep.subr.mxu1 %v2536_v54 }
 0x629   : > { %9067 = vmatpush3.msra.mxu1 %v2504_v29  ;;  %v16165_v29 = vld [vmem:[#allocation44_spill] sm:$0xff] }
 0x62b   : > { %2577 = vrot.lane.b32.xlu0 %v16161_v10, %s10141_s25  ;;  %3010 = vrot.lane.b32.xlu1 %v16162_v19, %s10142_s29  ;;  %v2534_v12 = vpop.permute.xlu1 %2533 }
 0x62c   : > { %9068 = vmatprep.subr.mxu1 %v2534_v12  ;;  %v16168_v12 = vld [vmem:[#allocation27_spill] sm:$0xff] }
 0x62d   : > { %9069 = vmatpush3.msra.mxu1 %v2502_v7  ;;  %v16167_v7 = vld [vmem:[#allocation38_spill] sm:$0xff] }
 0x62e   : > { %2764 = vmatprep.subr.mxu1 %v16007_v20 }
 0x62f   : > { %2573 = vrot.lane.b32.xlu0 %v16163_v58, %s10141_s25  ;;  %3104 = vrot.lane.b32.xlu1 %v16164_v34, %s10142_s29  ;;  %v12223_v54 = vpop.permute.xlu1 %2595  ;;  %v16169_v58 = vld [vmem:[#allocation114_spill] sm:$0xff]  ;;  %v16170_v34 = vld [vmem:[#allocation100_spill] sm:$0xff] }
 0x633   : > { %2569 = vrot.lane.b32.xlu0 %v16165_v29, %s10141_s25  ;;  %3038 = vrot.lane.b32.xlu1 %v16166_v3, %s10142_s29  ;;  %v12229_v19 = vpop.permute.xlu1 %2591  ;;  %v16171_v29 = vld [vmem:[#allocation116_spill] sm:$0xff]  ;;  %v16172_v3 = vld [vmem:[#allocation30_spill] sm:$0xff] }
 0x637   : > { %2565 = vrot.lane.b32.xlu0 %v16167_v7, %s10141_s25  ;;  %3006 = vrot.lane.b32.xlu1 %v16168_v12, %s10142_s29  ;;  %v12239_v10 = vpop.permute.xlu1 %2587  ;;  %v16173_v7 = vld [vmem:[#allocation118_spill] sm:$0xff]  ;;  %v16174_v12 = vld [vmem:[#allocation31_spill] sm:$0xff] }
 0x63b   : > { %2623 = vrot.lane.b32.xlu0 %v16169_v58, %s10141_s25  ;;  %3100 = vrot.lane.b32.xlu1 %v16170_v34, %s10142_s29  ;;  %v12245_v8 = vpop.permute.xlu1 %2583  ;;  %v16175_v58 = vld [vmem:[#allocation120_spill] sm:$0xff]  ;;  %v16176_v34 = vld [vmem:[#allocation102_spill] sm:$0xff] }
 0x63f   : > { %2619 = vrot.lane.b32.xlu0 %v16171_v29, %s10141_s25  ;;  %3034 = vrot.lane.b32.xlu1 %v16172_v3, %s10142_s29  ;;  %v12255_v62 = vpop.permute.xlu1 %2579  ;;  %v16177_v29 = vld [vmem:[#allocation122_spill] sm:$0xff] }
 0x640   : > { %v16178_v3 = vld [vmem:[#allocation34_spill] sm:$0xff] }
 0x643   : > { %2615 = vrot.lane.b32.xlu0 %v16173_v7, %s10141_s25  ;;  %3002 = vrot.lane.b32.xlu1 %v16174_v12, %s10142_s29  ;;  %v12261_v39 = vpop.permute.xlu1 %2575  ;;  %v16179_v7 = vld [vmem:[#allocation124_spill] sm:$0xff] }
 0x644   : > { %v16180_v12 = vld [vmem:[#allocation36_spill] sm:$0xff] }
 0x647   : > { %2611 = vrot.lane.b32.xlu0 %v16175_v58, %s10141_s25  ;;  %3096 = vrot.lane.b32.xlu1 %v16176_v34, %s10142_s29  ;;  %v16181_v58 = vld [vmem:[#allocation126_spill] sm:$0xff]  ;;  %v16182_v34 = vld [vmem:[#allocation104_spill] sm:$0xff]  ;;  %v12271_v52 = vpop.permute.xlu1 %2571 }
 0x64b   : > { %2607 = vrot.lane.b32.xlu0 %v16177_v29, %s10141_s25  ;;  %3030 = vrot.lane.b32.xlu1 %v16178_v3, %s10142_s29  ;;  %v16183_v29 = vld [vmem:[#allocation53_spill] sm:$0xff]  ;;  %v16184_v3 = vld [vmem:[#allocation40_spill] sm:$0xff]  ;;  %v12277_v25 = vpop.permute.xlu1 %2567 }
 0x64f   : > { %2603 = vrot.lane.b32.xlu0 %v16179_v7, %s10141_s25  ;;  %2998 = vrot.lane.b32.xlu1 %v16180_v12, %s10142_s29  ;;  %v16185_v7 = vld [vmem:[#allocation62_spill] sm:$0xff]  ;;  %v12287_v1 = vpop.permute.xlu1 %2625 }
 0x650   : > { %v16186_v12 = vld [vmem:[#allocation42_spill] sm:$0xff] }
 0x653   : > { %2599 = vrot.lane.b32.xlu0 %v16181_v58, %s10141_s25  ;;  %3092 = vrot.lane.b32.xlu1 %v16182_v34, %s10142_s29  ;;  %v16187_v58 = vld [vmem:[#allocation66_spill] sm:$0xff]  ;;  %v12293_v5 = vpop.permute.xlu1 %2621 }
 0x654   : > { %v16188_v34 = vld [vmem:[#allocation106_spill] sm:$0xff] }
 0x657   : > { %3082 = vrot.lane.b32.xlu0 %v16183_v29, %s10142_s29  ;;  %3026 = vrot.lane.b32.xlu1 %v16184_v3, %s10142_s29  ;;  %v16189_v29 = vld [vmem:[#allocation74_spill] sm:$0xff]  ;;  %v12303_v55 = vpop.permute.xlu1 %2617 }
 0x658   : > { %v16190_v3 = vld [vmem:[#allocation46_spill] sm:$0xff] }
 0x65b   : > { %3078 = vrot.lane.b32.xlu0 %v16185_v7, %s10142_s29  ;;  %2994 = vrot.lane.b32.xlu1 %v16186_v12, %s10142_s29  ;;  %v16191_v7 = vld [vmem:[#allocation82_spill] sm:$0xff]  ;;  %v16192_v12 = vld [vmem:[#allocation48_spill] sm:$0xff]  ;;  %v12309_v43 = vpop.permute.xlu1 %2613 }
 0x65f   : > { %3074 = vrot.lane.b32.xlu0 %v16187_v58, %s10142_s29  ;;  %3088 = vrot.lane.b32.xlu1 %v16188_v34, %s10142_s29  ;;  %v16193_v58 = vld [vmem:[#allocation86_spill] sm:$0xff]  ;;  %v16194_v34 = vld [vmem:[#allocation108_spill] sm:$0xff]  ;;  %v12319_v23 = vpop.permute.xlu1 %2609 }
 0x663   : > { %3070 = vrot.lane.b32.xlu0 %v16189_v29, %s10142_s29  ;;  %3022 = vrot.lane.b32.xlu1 %v16190_v3, %s10142_s29  ;;  %v16195_v29 = vld [vmem:[#allocation88_spill] sm:$0xff]  ;;  %v16196_v3 = vld [vmem:[#allocation13_spill] sm:$0xff] }
 0x667   : > { %3066 = vrot.lane.b32.xlu0 %v16191_v7, %s10142_s29  ;;  %2990 = vrot.lane.b32.xlu1 %v16192_v12, %s10142_s29  ;;  %v16197_v7 = vld [vmem:[#allocation90_spill] sm:$0xff]  ;;  %v16198_v12 = vld [vmem:[#allocation51_spill] sm:$0xff] }
 0x66b   : > { %3062 = vrot.lane.b32.xlu0 %v16193_v58, %s10142_s29  ;;  %3084 = vrot.lane.b32.xlu1 %v16194_v34, %s10142_s29  ;;  %v16199_v58 = vld [vmem:[#allocation91_spill] sm:$0xff]  ;;  %v16200_v34 = vld [vmem:[#allocation54_spill] sm:$0xff] }
 0x66f   : > { %3058 = vrot.lane.b32.xlu0 %v16195_v29, %s10142_s29  ;;  %2986 = vrot.lane.b32.xlu1 %v16196_v3, %s10142_s29  ;;  %v16201_v29 = vld [vmem:[#allocation16_spill] sm:$0xff]  ;;  %v12325_v3 = vpop.permute.xlu1 %2605 }
 0x673   : > { %3054 = vrot.lane.b32.xlu0 %v16197_v7, %s10142_s29  ;;  %3475 = vrot.lane.b32.xlu1 %v16198_v12, %s10142_s29  ;;  %v16202_v7 = vld [vmem:[#allocation17_spill] sm:$0xff]  ;;  %v16203_v12 = vld [vmem:[#allocation94_spill] sm:$0xff] }
 0x677   : > { %3052 = vrot.lane.b32.xlu0 %v16199_v58, %s10142_s29  ;;  %3443 = vrot.lane.b32.xlu1 %v16200_v34, %s10142_s29  ;;  %v12335_v34 = vpop.permute.xlu1 %2601 }
 0x67b   : > { %3048 = vrot.lane.b32.xlu0 %v16201_v29, %s10142_s29  ;;  %3473 = vrot.lane.b32.xlu1 %v16125_v2, %s10142_s29  ;;  %v16204_v29 = vld [vmem:[#allocation20_spill] sm:$0xff]  ;;  %v12341_v2 = vpop.permute.xlu1 %2597 }
 0x67f   : > { %3016 = vrot.lane.b32.xlu0 %v16202_v7, %s10142_s29  ;;  %3441 = vrot.lane.b32.xlu1 %v16126_v30, %s10142_s29  ;;  %v16205_v7 = vld [vmem:[#allocation21_spill] sm:$0xff] }
 0x683   : > { %3110 = vrot.lane.b32.xlu0 %v16203_v12, %s10142_s29  ;;  %3469 = vrot.lane.b32.xlu1 %v16134_v36, %s10142_s29  ;;  %v16206_v36 = vld [vmem:[#allocation96_spill] sm:$0xff] }
 0x687   : > { %3044 = vrot.lane.b32.xlu0 %v16204_v29, %s10142_s29  ;;  %3433 = vrot.lane.b32.xlu1 %v11215_v28, %s10142_s29  ;;  %v12351_v29 = vpop.permute.xlu1 %3080  ;;  %v16207_v28 = vld [vmem:[#allocation24_spill] sm:$0xff] }
 0x68b   : > { %3012 = vrot.lane.b32.xlu0 %v16205_v7, %s10142_s29  ;;  %3431 = vrot.lane.b32.xlu1 %v11238_v6, %s10142_s29  ;;  %v12357_v7 = vpop.permute.xlu1 %3076 }
 0x68e   : > { %v2433_v30 = vpop.xlane.xlu0 %2432 }
 0x68f   : > { %10015 = vrcp.f32 %v2433_v30  ;;  %3106 = vrot.lane.b32.xlu0 %v16206_v36, %s10142_s29  ;;  %3429 = vrot.lane.b32.xlu1 %v11255_v56, %s10142_s29  ;;  %v16208_v30 = vld [vmem:[#allocation25_spill] sm:$0xff]  ;;  %v16209_v56 = vld [vmem:[#allocation98_spill] sm:$0xff]  ;;  %v12369_v58 = vpop.permute.xlu1 %3072 }
 0x692   : > { %v2594_v12 = vpop.permute.xlu0 %2593 }
 0x693   : > { %3040 = vrot.lane.b32.xlu0 %v16207_v28, %s10142_s29  ;;  %3427 = vrot.lane.b32.xlu1 %v11271_v63, %s10142_s29 }
 0x696   : > { %v2590_v6 = vpop.permute.xlu0 %2589 }
 0x697   : > { %3008 = vrot.lane.b32.xlu0 %v16208_v30, %s10142_s29  ;;  %3425 = vrot.lane.b32.xlu1 %v11294_v51, %s10142_s29  ;;  %v16210_v51 = vld [vmem:[#allocation28_spill] sm:$0xff] }
 0x69a   : > { %v2586_v36 = vpop.permute.xlu0 %2585 }
 0x69b   : > { %3102 = vrot.lane.b32.xlu0 %v16209_v56, %s10142_s29  ;;  %3423 = vrot.lane.b32.xlu1 %v16127_v33, %s10142_s29  ;;  %v16211_v33 = vld [vmem:[#allocation29_spill] sm:$0xff] }
 0x69c   : > { %v12367_v28 = vpop.eup %10015 }
 0x69d   : > { %v2436_v63 = vmul.f32 %v12367_v28, %v12173_v46  ;;  %v2435_v30 = vmul.f32 %v12367_v28, %v12171_v48  ;;  %v2438_v56 = vmul.f32 %v12367_v28, %v12181_v0  ;;  %v12383_v46 = vpop.permute.xlu1 %3068 }
 0x69e   : > { %v2582_v26 = vpop.permute.xlu0 %2581 }
 0x69f   : > { %3036 = vrot.lane.b32.xlu0 %v16210_v51, %s10142_s29  ;;  %2758 = vmatprep.mubr.f32.mxu1 %v2436_v63 }
 0x6a0   : > { %3421 = vrot.lane.b32.xlu1 %v16128_v53, %s10142_s29  ;;  %2759 = vmatmul.mubr.f32.vlgmr.msra.gmra.mxu1 %v2435_v30 }
 0x6a1   : > { %2765 = vmatpush1.msra.mxu1 %v12223_v54  ;;  %8372 = vmatprep.mubr.msk.f32.mxu1 %vm1835_vm4, %v2438_v56  ;;  %v16212_v56 = vld [vmem:[#allocation101_spill] sm:$0xff]  ;;  %v12395_v0 = vpop.permute.xlu1 %3064 }
 0x6a2   : > { %2766 = vmatprep.subr.mxu1 %v16007_v20  ;;  %v2578_v48 = vpop.permute.xlu0 %2577 }
 0x6a3   : > { %2767 = vmatpush1.msra.mxu1 %v2594_v12  ;;  %3004 = vrot.lane.b32.xlu0 %v16211_v33, %s10142_s29 }
 0x6a4   : > { %2768 = vmatprep.subr.mxu1 %v16007_v20  ;;  %3419 = vrot.lane.b32.xlu1 %v16129_v41, %s10142_s29 }
 0x6a5   : > { %2769 = vmatpush1.msra.mxu1 %v12229_v19  ;;  %v16213_v19 = vld [vmem:[#allocation32_spill] sm:$0xff] }
 0x6a6   : > { %2770 = vmatprep.subr.mxu1 %v16007_v20  ;;  %v2574_v63 = vpop.permute.xlu0 %2573 }
 0x6a7   : > { %2771 = vmatpush1.msra.mxu1 %v2590_v6  ;;  %3098 = vrot.lane.b32.xlu0 %v16212_v56, %s10142_s29  ;;  %v12408_v6 = vpop.permute.xlu1 %3060 }
 0x6a8   : > { %2772 = vmatprep.subr.mxu1 %v16007_v20  ;;  %3417 = vrot.lane.b32.xlu1 %v16130_v59, %s10142_s29 }
 0x6a9   : > { %2773 = vmatpush1.msra.mxu1 %v12239_v10  ;;  %v16214_v10 = vld [vmem:[#allocation33_spill] sm:$0xff] }
 0x6aa   : > { %2774 = vmatprep.subr.mxu1 %v16007_v20  ;;  %v2570_v54 = vpop.permute.xlu0 %2569 }
 0x6ab   : > { %2775 = vmatpush1.msra.mxu1 %v2586_v36  ;;  %3032 = vrot.lane.b32.xlu0 %v16213_v19, %s10142_s29  ;;  %v12420_v30 = vpop.permute.xlu1 %3056 }
 0x6ac   : > { %2776 = vmatprep.subr.mxu1 %v16007_v20  ;;  %3415 = vrot.lane.b32.xlu1 %v16131_v32, %s10142_s29 }
 0x6ad   : > { %2777 = vmatpush1.msra.mxu1 %v12245_v8  ;;  %v16215_v8 = vld [vmem:[#allocation103_spill] sm:$0xff] }
 0x6ae   : > { %2778 = vmatprep.subr.mxu1 %v16007_v20  ;;  %v2566_v12 = vpop.permute.xlu0 %2565 }
 0x6af   : > { %2779 = vmatpush1.msra.mxu1 %v2582_v26  ;;  %3000 = vrot.lane.b32.xlu0 %v16214_v10, %s10142_s29 }
 0x6b0   : > { %2780 = vmatprep.subr.mxu1 %v16007_v20  ;;  %3413 = vrot.lane.b32.xlu1 %v16132_v50, %s10142_s29 }
 0x6b1   : > { %2781 = vmatpush1.msra.mxu1 %v12255_v62  ;;  %v16216_v62 = vld [vmem:[#allocation37_spill] sm:$0xff] }
 0x6b2   : > { %2782 = vmatprep.subr.mxu1 %v16007_v20  ;;  %v2624_v36 = vpop.permute.xlu0 %2623 }
 0x6b3   : > { %2783 = vmatpush1.msra.mxu1 %v2578_v48  ;;  %3094 = vrot.lane.b32.xlu0 %v16215_v8, %s10142_s29  ;;  %v12431_v48 = vpop.permute.xlu1 %3050 }
 0x6b4   : > { %2784 = vmatprep.subr.mxu1 %v16007_v20  ;;  %3505 = vrot.lane.b32.xlu1 %v11625_v18, %s10142_s29  ;;  %v16217_v18 = vld [vmem:[#allocation39_spill] sm:$0xff] }
 0x6b5   : > { %2785 = vmatpush1.msra.mxu1 %v12261_v39 }
 0x6b6   : > { %2786 = vmatprep.subr.mxu1 %v16007_v20  ;;  %v2620_v26 = vpop.permute.xlu0 %2619 }
 0x6b7   : > { %2787 = vmatpush1.msra.mxu1 %v2574_v63  ;;  %3028 = vrot.lane.b32.xlu0 %v16216_v62, %s10142_s29  ;;  %v16218_v63 = vld [vmem:[#allocation105_spill] sm:$0xff] }
 0x6b8   : > { %2788 = vmatprep.subr.mxu1 %v16007_v20 }
 0x6b9   : > { %2789 = vmatpush1.msra.mxu1 %v12271_v52  ;;  %v12441_v52 = vpop.permute.xlu1 %3018 }
 0x6ba   : > { %2790 = vmatprep.subr.mxu1 %v16007_v20  ;;  %v2616_v50 = vpop.permute.xlu0 %2615 }
 0x6bb   : > { %2791 = vmatpush1.msra.mxu1 %v2570_v54  ;;  %2996 = vrot.lane.b32.xlu0 %v16217_v18, %s10142_s29  ;;  %v16220_v18 = vld [vmem:[#allocation45_spill] sm:$0xff] }
 0x6bc   : > { %2792 = vmatprep.subr.mxu1 %v16007_v20 }
 0x6bd   : > { %2793 = vmatpush1.msra.mxu1 %v12277_v25  ;;  %v16219_v25 = vld [vmem:[#allocation43_spill] sm:$0xff] }
 0x6be   : > { %2794 = vmatprep.subr.mxu1 %v16007_v20  ;;  %v2612_v39 = vpop.permute.xlu0 %2611 }
 0x6bf   : > { %2795 = vmatpush1.msra.mxu1 %v2566_v12  ;;  %3090 = vrot.lane.b32.xlu0 %v16218_v63, %s10142_s29  ;;  %v12451_v12 = vpop.permute.xlu1 %3112 }
 0x6c0   : > { %2798 = vmatprep.subr.mxu1 %v16007_v20 }
 0x6c1   : > { %8371 = vmatpush2.msk.msra.mxu1 %vm1868_vm3, %v12287_v1 }
 0x6c2   : > { %2800 = vmatprep.subr.mxu1 %v16007_v20  ;;  %v2608_v54 = vpop.permute.xlu0 %2607 }
 0x6c3   : > { %2801 = vmatpush2.msra.mxu1 %v2624_v36  ;;  %3024 = vrot.lane.b32.xlu0 %v16219_v25, %s10142_s29  ;;  %v16221_v36 = vld [vmem:[#allocation107_spill] sm:$0xff] }
 0x6c4   : > { %2802 = vmatprep.subr.mxu1 %v16007_v20 }
 0x6c5   : > { %2803 = vmatpush2.msra.mxu1 %v12293_v5  ;;  %v12461_v5 = vpop.permute.xlu1 %3046 }
 0x6c6   : > { %2804 = vmatprep.subr.mxu1 %v16007_v20  ;;  %v2604_v63 = vpop.permute.xlu0 %2603 }
 0x6c7   : > { %2805 = vmatpush2.msra.mxu1 %v2620_v26  ;;  %2992 = vrot.lane.b32.xlu0 %v16220_v18, %s10142_s29  ;;  %v16222_v18 = vld [vmem:[#allocation49_spill] sm:$0xff] }
 0x6c8   : > { %2806 = vmatprep.subr.mxu1 %v16007_v20 }
 0x6c9   : > { %2807 = vmatpush2.msra.mxu1 %v12303_v55  ;;  %v12472_v55 = vpop.permute.xlu1 %3014 }
 0x6ca   : > { %2808 = vmatprep.subr.mxu1 %v16007_v20  ;;  %v2600_v1 = vpop.permute.xlu0 %2599 }
 0x6cb   : > { %2809 = vmatpush2.msra.mxu1 %v2616_v50  ;;  %3086 = vrot.lane.b32.xlu0 %v16221_v36, %s10142_s29  ;;  %v16223_v50 = vld [vmem:[#allocation52_spill] sm:$0xff] }
 0x6cc   : > { %2810 = vmatprep.subr.mxu1 %v16007_v20 }
 0x6cd   : > { %2811 = vmatpush2.msra.mxu1 %v12309_v43 }
 0x6ce   : > { %2812 = vmatprep.subr.mxu1 %v16007_v20  ;;  %v3083_v26 = vpop.permute.xlu0 %3082 }
 0x6cf   : > { %2813 = vmatpush2.msra.mxu1 %v2612_v39  ;;  %3020 = vrot.lane.b32.xlu0 %v16222_v18, %s10142_s29  ;;  %v12483_v39 = vpop.permute.xlu1 %3108 }
 0x6d0   : > { %2814 = vmatprep.subr.mxu1 %v16007_v20  ;;  %8410 = vmatpush1.xpose.msk.msra.mxu0 %vm1500_vm2, %v3083_v26 }
 0x6d1   : > { %2815 = vmatpush2.msra.mxu1 %v12319_v23  ;;  %3315 = vmatprep.subr.mxu0 %v16007_v20 }
 0x6d2   : > { %2816 = vmatprep.subr.mxu1 %v16007_v20  ;;  %v3079_v43 = vpop.permute.xlu0 %3078 }
 0x6d3   : > { %2817 = vmatpush2.msra.mxu1 %v2608_v54  ;;  %2988 = vrot.lane.b32.xlu0 %v16223_v50, %s10142_s29 }
 0x6d4   : > { %2818 = vmatprep.subr.mxu1 %v16007_v20  ;;  %8411 = vmatpush1.xpose.msk.msra.mxu0 %vm1500_vm2, %v12351_v29 }
 0x6d5   : > { %2819 = vmatpush2.msra.mxu1 %v12325_v3  ;;  %3317 = vmatprep.subr.mxu0 %v16007_v20  ;;  %v2835_v3 = vrot.slane %v12088_v16, 4 }
 0x6d6   : > { %2820 = vmatprep.subr.mxu1 %v16007_v20  ;;  %v3075_v23 = vpop.permute.xlu0 %3074 }
 0x6d7   : > { %2821 = vmatpush2.msra.mxu1 %v2604_v63  ;;  %v2437_v63 = vmul.f32 %v12367_v28, %v12175_v42 }
 0x6d8   : > { %2822 = vmatprep.subr.mxu1 %v16007_v20  ;;  %8412 = vmatpush1.xpose.msk.msra.mxu0 %vm1500_vm2, %v3079_v43 }
 0x6d9   : > { %2823 = vmatpush2.msra.mxu1 %v12335_v34  ;;  %3319 = vmatprep.subr.mxu0 %v16007_v20  ;;  %v12498_v34 = vpop.permute.xlu1 %3042 }
 0x6da   : > { %2824 = vmatprep.subr.mxu1 %v16007_v20  ;;  %v3071_v29 = vpop.permute.xlu0 %3070 }
 0x6db   : > { %2825 = vmatpush2.msra.mxu1 %v2600_v1 }
 0x6dc   : > { %2826 = vmatprep.subr.mxu1 %v16007_v20  ;;  %8413 = vmatpush1.xpose.msk.msra.mxu0 %vm1500_vm2, %v12357_v7 }
 0x6dd   : > { %2827 = vmatpush2.msra.mxu1 %v12341_v2  ;;  %3321 = vmatprep.subr.mxu0 %v16007_v20  ;;  %v12508_v2 = vpop.permute.xlu1 %3010 }
 0x6de   : > { %2829 = vmatmul.mubr.f32.vlgmr.msra.gmra.mxu1 %v2437_v63  ;;  %9908 = vmatprep.subr.mxu1 %v16007_v20  ;;  %v3067_v54 = vpop.permute.xlu0 %3066 }
 0x6df   : > { %9909 = vmatpush3.msk.msra.mxu1 %vm1868_vm3, %v2835_v3  ;;  %9910 = vmatprep.mubr.msk.f32.mxu1 %vm10140_vm0, %v16007_v20 }
 0x6e0   : > { %9077 = vmatprep.subr.msk.mxu1 %vm1500_vm2, %v12431_v48  ;;  %8414 = vmatpush1.xpose.msk.msra.mxu0 %vm1500_vm2, %v3075_v23 }
 0x6e1   : > { %3323 = vmatprep.subr.mxu0 %v16007_v20  ;;  %v3105_v42 = vpop.permute.xlu1 %3104 }
 0x6e2   : > { %v3063_v28 = vpop.permute.xlu0 %3062 }
 0x6e4   : > { %8415 = vmatpush1.xpose.msk.msra.mxu0 %vm1500_vm2, %v12369_v58 }
 0x6e5   : > { %3325 = vmatprep.subr.mxu0 %v16007_v20  ;;  %v12518_v1 = vpop.permute.xlu1 %3038 }
 0x6e6   : > { %v3059_v16 = vpop.permute.xlu0 %3058 }
 0x6e8   : > { %8416 = vmatpush1.xpose.msk.msra.mxu0 %vm1500_vm2, %v3071_v29 }
 0x6e9   : > { %3327 = vmatprep.subr.mxu0 %v16007_v20  ;;  %v12527_v26 = vpop.permute.xlu1 %3006 }
 0x6ea   : > { %v3055_v7 = vpop.permute.xlu0 %3054 }
 0x6ec   : > { %8417 = vmatpush1.xpose.msk.msra.mxu0 %vm1500_vm2, %v12383_v46 }
 0x6ed   : > { %3329 = vmatprep.subr.mxu0 %v16007_v20  ;;  %v3101_v23 = vpop.permute.xlu1 %3100 }
 0x6ee   : > { %v3053_v48 = vpop.permute.xlu0 %3052 }
 0x6f0   : > { %8418 = vmatpush1.xpose.msk.msra.mxu0 %vm1500_vm2, %v3067_v54 }
 0x6f1   : > { %3331 = vmatprep.subr.mxu0 %v16007_v20 }
 0x6f2   : > { %v12522_v58 = vpop.permute.xlu0 %3048 }
 0x6f4   : > { %8419 = vmatpush1.xpose.msk.msra.mxu0 %vm1500_vm2, %v12395_v0  ;;  %v12540_v0 = vpop.permute.xlu1 %3034 }
 0x6f5   : > { %3333 = vmatprep.subr.mxu0 %v16007_v20 }
 0x6f6   : > { %v12529_v43 = vpop.permute.xlu0 %3016 }
 0x6f8   : > { %8420 = vmatpush1.xpose.msk.msra.mxu0 %vm1500_vm2, %v3063_v28  ;;  %v12547_v54 = vpop.permute.xlu1 %3002 }
 0x6f9   : > { %3335 = vmatprep.subr.mxu0 %v16007_v20 }
 0x6fa   : > { %v3111_v46 = vpop.permute.xlu0 %3110 }
 0x6fc   : > { %8421 = vmatpush1.xpose.msk.msra.mxu0 %vm1500_vm2, %v12408_v6  ;;  %v3097_v28 = vpop.permute.xlu1 %3096 }
 0x6fd   : > { %3337 = vmatprep.subr.mxu0 %v16007_v20 }
 0x6fe   : > { %v12536_v29 = vpop.permute.xlu0 %3044 }
 0x700   : > { %8422 = vmatpush1.xpose.msk.msra.mxu0 %vm1500_vm2, %v3059_v16  ;;  %v12560_v50 = vpop.permute.xlu1 %3030 }
 0x701   : > { %3339 = vmatprep.subr.mxu0 %v16007_v20 }
 0x702   : > { %v12542_v3 = vpop.permute.xlu0 %3012 }
 0x704   : > { %8423 = vmatpush1.xpose.msk.msra.mxu0 %vm1500_vm2, %v12420_v30 }
 0x705   : > { %3341 = vmatprep.subr.mxu0 %v16007_v20 }
 0x706   : > { %v3107_v63 = vpop.permute.xlu0 %3106 }
 0x708   : > { %8424 = vmatpush1.xpose.msk.msra.mxu0 %vm1500_vm2, %v3055_v7 }
 0x709   : > { %3343 = vmatprep.subr.mxu0 %v16007_v20 }
 0x70a   : > { %v12551_v6 = vpop.permute.xlu0 %3040 }
 0x70c   : > { %8425 = vmatpush1.xpose.msk.msra.mxu0 %vm1500_vm2, %v3053_v48  ;;  %v12569_v48 = vpop.permute.xlu1 %2998 }
 0x70d   : > { %3347 = vmatprep.subr.mxu0 %v16007_v20 }
 0x70e   : > { %v12555_v16 = vpop.permute.xlu0 %3008 }
 0x710   : > { %8426 = vmatpush2.xpose.msk.msra.mxu0 %vm1500_vm2, %v12451_v12  ;;  %v3093_v36 = vpop.permute.xlu1 %3092 }
 0x711   : > { %3349 = vmatprep.subr.mxu0 %v16007_v20 }
 0x712   : > { %v3103_v30 = vpop.permute.xlu0 %3102 }
 0x714   : > { %8427 = vmatpush2.xpose.msk.msra.mxu0 %vm1500_vm2, %v3111_v46 }
 0x715   : > { %3351 = vmatprep.subr.mxu0 %v16007_v20 }
 0x716   : > { %v12564_v7 = vpop.permute.xlu0 %3036 }
 0x718   : > { %8428 = vmatpush2.xpose.msk.msra.mxu0 %vm1500_vm2, %v12483_v39  ;;  %v12581_v39 = vpop.permute.xlu1 %3026 }
 0x719   : > { %3353 = vmatprep.subr.mxu0 %v16007_v20 }
 0x71a   : > { %v12571_v18 = vpop.permute.xlu0 %3004 }
 0x71c   : > { %8429 = vmatpush2.xpose.msk.msra.mxu0 %vm1500_vm2, %v3107_v63  ;;  %v12585_v32 = vpop.permute.xlu1 %2994 }
 0x71d   : > { %3355 = vmatprep.subr.mxu0 %v16007_v20 }
 0x71e   : > { %v3099_v12 = vpop.permute.xlu0 %3098 }
 0x720   : > { %8430 = vmatpush2.xpose.msk.msra.mxu0 %vm1500_vm2, %v3105_v42 }
 0x721   : > { %3357 = vmatprep.subr.mxu0 %v16007_v20 }
 0x722   : > { %v12577_v46 = vpop.permute.xlu0 %3032 }
 0x724   : > { %8431 = vmatpush2.xpose.msk.msra.mxu0 %vm1500_vm2, %v3103_v30  ;;  %v3089_v30 = vpop.permute.xlu1 %3088 }
 0x725   : > { %3359 = vmatprep.subr.mxu0 %v16007_v20 }
 0x726   : > { %v3001_v25 = vpop.permute.xlu0 %3000 }
 0x728   : > { %8432 = vmatpush2.xpose.msk.msra.mxu0 %vm1500_vm2, %v3101_v23  ;;  %v3023_v59 = vpop.permute.xlu1 %3022 }
 0x729   : > { %3361 = vmatprep.subr.mxu0 %v16007_v20 }
 0x72a   : > { %v3095_v63 = vpop.permute.xlu0 %3094 }
 0x72c   : > { %8433 = vmatpush2.xpose.msk.msra.mxu0 %vm1500_vm2, %v3099_v12 }
 0x72d   : > { %3363 = vmatprep.subr.mxu0 %v16007_v20 }
 0x72e   : > { %v3029_v42 = vpop.permute.xlu0 %3028 }
 0x730   : > { %8434 = vmatpush2.xpose.msk.msra.mxu0 %vm1500_vm2, %v3097_v28  ;;  %v2991_v28 = vpop.permute.xlu1 %2990 }
 0x731   : > { %3365 = vmatprep.subr.mxu0 %v16007_v20 }
 0x732   : > { %v2997_v62 = vpop.permute.xlu0 %2996 }
 0x734   : > { %8435 = vmatpush2.xpose.msk.msra.mxu0 %vm1500_vm2, %v3095_v63  ;;  %v3085_v41 = vpop.permute.xlu1 %3084 }
 0x735   : > { %3367 = vmatprep.subr.mxu0 %v16007_v20 }
 0x736   : > { %v3091_v23 = vpop.permute.xlu0 %3090 }
 0x738   : > { %8436 = vmatpush2.xpose.msk.msra.mxu0 %vm1500_vm2, %v3093_v36  ;;  %v2987_v36 = vpop.permute.xlu1 %2986 }
 0x739   : > { %3369 = vmatprep.subr.mxu0 %v16007_v20 }
 0x73a   : > { %v3025_v12 = vpop.permute.xlu0 %3024 }
 0x73c   : > { %8437 = vmatpush2.xpose.msk.msra.mxu0 %vm1500_vm2, %v3091_v23 }
 0x73d   : > { %3371 = vmatprep.subr.mxu0 %v16007_v20 }
 0x73e   : > { %v2993_v8 = vpop.permute.xlu0 %2992 }
 0x740   : > { %8438 = vmatpush2.xpose.msk.msra.mxu0 %vm1500_vm2, %v3089_v30 }
 0x741   : > { %3373 = vmatprep.subr.mxu0 %v16007_v20 }
 0x742   : > { %v3087_v63 = vpop.permute.xlu0 %3086 }
 0x744   : > { %8439 = vmatpush2.xpose.msk.msra.mxu0 %vm1500_vm2, %v3087_v63 }
 0x745   : > { %3375 = vmatprep.subr.mxu0 %v16007_v20 }
 0x748   : > { %8440 = vmatpush2.xpose.msk.msra.mxu0 %vm1500_vm2, %v3085_v41  ;;  %v3021_v41 = vpop.permute.xlu0 %3020 }
 0x749   : > { %9918 = vmatprep.subr.mxu0 %v16007_v20 }
 0x74b   : > { %8441 = vmatmul.mubr.msk.f32.vlgmr.msra.gmra.mxu0 %vm1500_vm2, %v2987_v36 }
 0x74c   : > { %9920 = vmatprep.mubr.msk.f32.mxu0 %vm10140_vm0, %v16007_v20 }
 0x760   : > { %v9070_v23 = vpop.f32.mrf.mxu1 }
 0x762   : > { %v9071_v30 = vpop.f32.mrf.mxu1 }
 0x763   : > { %v9072_v10 = vadd.f32 %v9071_v30, %v9070_v23  ;;  %v16232_v30 = vld [vmem:[#allocation127_spill] sm:$0xff] }
 0x79e   : > { %v2830_v53 = vpop.f32.mrf.mxu1 }
 0x79f   : > { %v2831_v19 = vadd.f32 %v9072_v10, %v2830_v53 }
 0x7a0   : > { %v2832_v56 = vpop.f32.mrf.mxu1 }
 0x7a1   : > { %9911 = vmatmul.mubr.msk.f32.vlgmr.msra.gmra.mxu1 %vm1500_vm2, %v2831_v19  ;;  %v2989_v19 = vpop.permute.xlu0 %2988 }
 0x7a2   : > { %9078 = vmatpush3.xpose.msk.msra.mxu1 %vm1500_vm2, %v12441_v52  ;;  %9109 = vmatprep.mubr.msk.f32.mxu1 %vm1500_vm2, %v2987_v36 }
 0x7a3   : > { %9079 = vmatprep.subr.msk.mxu1 %vm1500_vm2, %v12522_v58  ;;  %v16226_v58 = vld [vmem:[#allocation35_spill] sm:$0xff] }
 0x7a6   : > { %9080 = vmatpush3.xpose.msk.msra.mxu1 %vm1500_vm2, %v12529_v43  ;;  %v16228_v43 = vld [vmem:[#allocation117_spill] sm:$0xff] }
 0x7a7   : > { %9081 = vmatprep.subr.msk.mxu1 %vm1500_vm2, %v12461_v5 }
 0x7aa   : > { %9082 = vmatpush3.xpose.msk.msra.mxu1 %vm1500_vm2, %v12472_v55 }
 0x7ab   : > { %9083 = vmatprep.subr.msk.mxu1 %vm1500_vm2, %v12536_v29  ;;  %v16229_v29 = vld [vmem:[#allocation119_spill] sm:$0xff] }
 0x7ae   : > { %9084 = vmatpush3.xpose.msk.msra.mxu1 %vm1500_vm2, %v12542_v3 }
 0x7af   : > { %9085 = vmatprep.subr.msk.mxu1 %vm1500_vm2, %v12498_v34 }
 0x7b2   : > { %9086 = vmatpush3.xpose.msk.msra.mxu1 %vm1500_vm2, %v12508_v2  ;;  %v16224_v2 = vld [vmem:[#allocation47_spill] sm:$0xff] }
 0x7b3   : > { %9087 = vmatprep.subr.msk.mxu1 %vm1500_vm2, %v12551_v6 }
 0x7b6   : > { %9088 = vmatpush3.xpose.msk.msra.mxu1 %vm1500_vm2, %v12555_v16 }
 0x7b7   : > { %9089 = vmatprep.subr.msk.mxu1 %vm1500_vm2, %v12518_v1  ;;  %v16225_v1 = vld [vmem:[#allocation41_spill] sm:$0xff] }
 0x7ba   : > { %9090 = vmatpush3.xpose.msk.msra.mxu1 %vm1500_vm2, %v12527_v26  ;;  %v16227_v26 = vld [vmem:[#allocation115_spill] sm:$0xff] }
 0x7bb   : > { %9091 = vmatprep.subr.msk.mxu1 %vm1500_vm2, %v12564_v7 }
 0x7be   : > { %9092 = vmatpush3.xpose.msk.msra.mxu1 %vm1500_vm2, %v12571_v18  ;;  %v3476_v18 = vpop.permute.xlu1 %3475 }
 0x7bf   : > { %9093 = vmatprep.subr.msk.mxu1 %vm1500_vm2, %v12540_v0  ;;  %v16230_v0 = vld [vmem:[#allocation121_spill] sm:$0xff] }
 0x7c2   : > { %9094 = vmatpush3.xpose.msk.msra.mxu1 %vm1500_vm2, %v12547_v54  ;;  %v3444_v53 = vpop.permute.xlu1 %3443 }
 0x7c3   : > { %9095 = vmatprep.subr.msk.mxu1 %vm1500_vm2, %v12577_v46 }
 0x7c6   : > { %9096 = vmatpush3.xpose.msk.msra.mxu1 %vm1500_vm2, %v3001_v25  ;;  %v3474_v56 = vpop.permute.xlu1 %3473 }
 0x7c7   : > { %9097 = vmatprep.subr.msk.mxu1 %vm1500_vm2, %v12560_v50 }
 0x7ca   : > { %9098 = vmatpush3.xpose.msk.msra.mxu1 %vm1500_vm2, %v12569_v48 }
 0x7cb   : > { %9099 = vmatprep.subr.msk.mxu1 %vm1500_vm2, %v3029_v42 }
 0x7ce   : > { %9100 = vmatpush3.xpose.msk.msra.mxu1 %vm1500_vm2, %v2997_v62 }
 0x7cf   : > { %9101 = vmatprep.subr.msk.mxu1 %vm1500_vm2, %v12581_v39 }
 0x7d2   : > { %9102 = vmatpush3.xpose.msk.msra.mxu1 %vm1500_vm2, %v12585_v32  ;;  %v3442_v32 = vpop.permute.xlu1 %3441 }
 0x7d3   : > { %9103 = vmatprep.subr.msk.mxu1 %vm1500_vm2, %v3025_v12 }
 0x7d6   : > { %9104 = vmatpush3.xpose.msk.msra.mxu1 %vm1500_vm2, %v2993_v8  ;;  %v3470_v3 = vpop.permute.xlu1 %3469 }
 0x7d7   : > { %9105 = vmatprep.subr.msk.mxu1 %vm1500_vm2, %v3023_v59 }
 0x7da   : > { %9106 = vmatpush3.xpose.msk.msra.mxu1 %vm1500_vm2, %v2991_v28  ;;  %v3434_v63 = vpop.permute.xlu1 %3433 }
 0x7db   : > { %9107 = vmatprep.subr.msk.mxu1 %vm1500_vm2, %v3021_v41  ;;  %v16233_v41 = vld [vmem:[#allocation57_spill] sm:$0xff] }
 0x7de   : > { %9108 = vmatpush3.xpose.msk.msra.mxu1 %vm1500_vm2, %v2989_v19 }
 0x7df   : > { %9111 = vmatprep.subr.mxu1 %v3476_v18  ;;  %v3432_v18 = vpop.permute.xlu1 %3431 }
 0x7e1   : > { %9110 = vmatmul.mubr.msk.f32.vlgmr.msra.gmra.mxu1 %vm1500_vm2, %v2987_v36  ;;  %v16231_v36 = vld [vmem:[#allocation125_spill] sm:$0xff] }
 0x7e2   : > { %9112 = vmatpush3.msra.mxu1 %v3444_v53 }
 0x7e3   : > { %9113 = vmatprep.subr.mxu1 %v3474_v56  ;;  %v3430_v19 = vpop.permute.xlu1 %3429 }
 0x7e4   : > { %9114 = vmatpush3.msra.mxu1 %v3442_v32  ;;  %v16234_v32 = vld [vmem:[#allocation61_spill] sm:$0xff] }
 0x80b   : > { %v3379_v62 = vpop.f32.mrf.mxu0 }
 0x80d   : > { %v3381_v59 = vpop.f32.mrf.mxu0 }
 0x80e   : > { %v3384_v52 = vsel %vm1835_vm4, %v3381_v59, -inf }
 0x80f   : > { %v3386_v55 = vmax.f32 %v3379_v62, %v3384_v52 }
 0x861   : > { %v12662_v10 = vpop.f32.mrf.mxu1 }
 0x863   : > { %v9912_v8 = vpop.f32.mrf.mxu1 }
 0x8a1   : > { %v3308_v25 = vpop.f32.mrf.mxu1 }
 0x8a3   : > { %v3310_v5 = vpop.f32.mrf.mxu1 }
 0x8a4   : > { %v3385_v50 = vmax.f32 %v3308_v25, %v3310_v5 }
 0x8a6   : > { %v3387_v34 = vmax.f32 %v3385_v50, %v3386_v55  ;;  %v16235_v55 = vld [vmem:[#allocation70_spill] sm:$0xff] }
 0x8a8   : > { %3388 = vmax.xlane.f32.xlu0 %v3387_v34  ;;  %v3428_v34 = vpop.permute.xlu1 %3427 }
 0x8be   : > { %3471 = vrot.lane.b32.xlu0 %v16133_v38, %s10142_s29 }
 0x8c2   : > { %3439 = vrot.lane.b32.xlu0 %v11157_v4, %s10142_s29 }
 0x8c6   : > { %3437 = vrot.lane.b32.xlu0 %v16135_v60, %s10142_s29 }
 0x8ca   : > { %3467 = vrot.lane.b32.xlu0 %v16136_v11, %s10142_s29 }
 0x8ce   : > { %3435 = vrot.lane.b32.xlu0 %v16137_v22, %s10142_s29 }
 0x8d2   : > { %3465 = vrot.lane.b32.xlu0 %v16138_v27, %s10142_s29 }
 0x8d6   : > { %3463 = vrot.lane.b32.xlu0 %v16139_v13, %s10142_s29 }
 0x8da   : > { %3461 = vrot.lane.b32.xlu0 %v16140_v17, %s10142_s29 }
 0x8de   : > { %3459 = vrot.lane.b32.xlu0 %v16141_v44, %s10142_s29 }
 0x8e2   : > { %3457 = vrot.lane.b32.xlu0 %v16142_v40, %s10142_s29 }
 0x8e6   : > { %3455 = vrot.lane.b32.xlu0 %v16143_v14, %s10142_s29 }
 0x8ea   : > { %3453 = vrot.lane.b32.xlu0 %v16144_v57, %s10142_s29 }
 0x8ee   : > { %3451 = vrot.lane.b32.xlu0 %v16145_v37, %s10142_s29 }
 0x8f2   : > { %3449 = vrot.lane.b32.xlu0 %v16147_v47, %s10142_s29 }
 0x8f6   : > { %3447 = vrot.lane.b32.xlu0 %v16148_v45, %s10142_s29 }
 0x8fa   : > { %3445 = vrot.lane.b32.xlu0 %v16149_v24, %s10142_s29 }
 0x8fe   : > { %3507 = vrot.lane.b32.xlu0 %v11620_v9, %s10142_s29 }
 0x902   : > { %3503 = vrot.lane.b32.xlu0 %v11633_v15, %s10142_s29 }
 0x906   : > { %3499 = vrot.lane.b32.xlu0 %v11647_v31, %s10142_s29 }
 0x90a   : > { %3495 = vrot.lane.b32.xlu0 %v11661_v21, %s10142_s29 }
 0x90e   : > { %3491 = vrot.lane.b32.xlu0 %v11675_v61, %s10142_s29 }
 0x912   : > { %3487 = vrot.lane.b32.xlu0 %v11687_v35, %s10142_s29 }
 0x916   : > { %3483 = vrot.lane.b32.xlu0 %v16224_v2, %s10142_s29 }
 0x91a   : > { %3479 = vrot.lane.b32.xlu0 %v16225_v1, %s10142_s29 }
 0x91e   : > { %3537 = vrot.lane.b32.xlu0 %v16226_v58, %s10142_s29 }
 0x922   : > { %3533 = vrot.lane.b32.xlu0 %v16227_v26, %s10142_s29 }
 0x926   : > { %3529 = vrot.lane.b32.xlu0 %v16228_v43, %s10142_s29  ;;  %v16298_v43 = vld [vmem:[#allocation24_spill] sm:$0xff] }
 0x92a   : > { %3525 = vrot.lane.b32.xlu0 %v16229_v29, %s10142_s29  ;;  %v16297_v29 = vld [vmem:[#allocation96_spill] sm:$0xff] }
 0x92e   : > { %3521 = vrot.lane.b32.xlu0 %v16230_v0, %s10142_s29  ;;  %v16295_v0 = vld [vmem:[#allocation21_spill] sm:$0xff] }
 0x931   : > { %v3389_v54 = vpop.xlane.xlu0 %3388 }
 0x932   : > { %v3390_v6 = vsub.f32 %v3308_v25, %v3389_v54  ;;  %v3391_v16 = vsub.f32 %v3310_v5, %v3389_v54  ;;  %v3392_v7 = vsub.f32 %v3379_v62, %v3389_v54  ;;  %v3393_v48 = vsub.f32 %v3381_v59, %v3389_v54  ;;  %3517 = vrot.lane.b32.xlu0 %v11784_v49, %s10142_s29  ;;  %v16293_v49 = vld [vmem:[#allocation20_spill] sm:$0xff] }
 0x934   : > { %v3394_v46 = vmul.f32 1.442695, %v3390_v6  ;;  %v3396_v39 = vmul.f32 1.442695, %v3391_v16  ;;  %v3398_v42 = vmul.f32 1.442695, %v3392_v7 }
 0x935   : > { %v3400_v12 = vmul.f32 1.442695, %v3393_v48  ;;  %v3472_v28 = vpop.permute.xlu0 %3471  ;;  %v16236_v16 = vld [vmem:[#allocation78_spill] sm:$0xff]  ;;  %v3426_v48 = vpop.permute.xlu1 %3425 }
 0x936   : > { %10017 = vpow2.f32 %v3394_v46  ;;  %3513 = vrot.lane.b32.xlu0 %v16231_v36, %s10142_s29  ;;  %9115 = vmatprep.subr.mxu1 %v3472_v28  ;;  %v16237_v46 = vld [vmem:[#allocation89_spill] sm:$0xff]  ;;  %v16291_v36 = vld [vmem:[#allocation94_spill] sm:$0xff] }
 0x937   : > { %10019 = vpow2.f32 %v3396_v39  ;;  %v12755_v39 = vld [vmem:[%s15683_s8 + $0x8] sm:$0xff] }
 0x938   : > { %10021 = vpow2.f32 %v3398_v42  ;;  %9919 = vmatpush3.msk.msra.mxu0 %vm1868_vm3, %v12755_v39 }
 0x939   : > { %10023 = vpow2.f32 %v3400_v12  ;;  %v3440_v23 = vpop.permute.xlu0 %3439  ;;  %v16238_v12 = vld [vmem:[#allocation92_spill] sm:$0xff]  ;;  %v3424_v28 = vpop.permute.xlu1 %3423 }
 0x93a   : > { %3509 = vrot.lane.b32.xlu0 %v16232_v30, %s10142_s29  ;;  %9116 = vmatpush3.msra.mxu1 %v3440_v23  ;;  %v16239_v23 = vld [vmem:[#allocation93_spill] sm:$0xff] }
 0x93b   : > { %9117 = vmatprep.subr.mxu1 %v3470_v3  ;;  %v16289_v30 = vld [vmem:[#allocation17_spill] sm:$0xff] }
 0x93d   : > { %v3438_v53 = vpop.permute.xlu0 %3437 }
 0x93e   : > { %3917 = vrot.lane.b32.xlu0 %v16233_v41, %s10143_s30  ;;  %9118 = vmatpush3.msra.mxu1 %v3438_v53  ;;  %v3422_v53 = vpop.permute.xlu1 %3421  ;;  %v16287_v41 = vld [vmem:[#allocation16_spill] sm:$0xff] }
 0x941   : > { %v3468_v56 = vpop.permute.xlu0 %3467 }
 0x942   : > { %3913 = vrot.lane.b32.xlu0 %v16234_v32, %s10143_s30  ;;  %9119 = vmatprep.subr.mxu1 %v3468_v56  ;;  %v16240_v56 = vld [vmem:[#allocation14_spill] sm:$0xff]  ;;  %v16285_v32 = vld [vmem:[#allocation91_spill] sm:$0xff] }
 0x943   : > { %v12733_v8 = vpop.eup %10017 }
 0x944   : > { %v12735_v62 = vpop.eup %10019 }
 0x945   : > { %v12737_v59 = vpop.eup %10021  ;;  %v3436_v52 = vpop.permute.xlu0 %3435  ;;  %v3402_v25 = vadd.f32 %v12735_v62, %v12733_v8 }
 0x946   : > { %v12741_v5 = vpop.eup %10023  ;;  %3909 = vrot.lane.b32.xlu0 %v16235_v55, %s10143_s30  ;;  %9120 = vmatpush3.msra.mxu1 %v3436_v52  ;;  %v16241_v52 = vld [vmem:[#allocation110_spill] sm:$0xff] }
 0x947   : > { %v3403_v50 = vadd.f32 %v12737_v59, %v3402_v25  ;;  %v3404_v3 = vsel %vm1835_vm4, %v12741_v5, 0.0  ;;  %v16283_v55 = vld [vmem:[#allocation90_spill] sm:$0xff] }
 0x949   : > { %v3466_v54 = vpop.permute.xlu0 %3465  ;;  %v3405_v6 = vadd.f32 %v3404_v3, %v3403_v50  ;;  %v3420_v50 = vpop.permute.xlu1 %3419  ;;  %v16243_v3 = vld [vmem:[#allocation111_spill] sm:$0xff] }
 0x94a   : > { %3905 = vrot.lane.b32.xlu0 %v16236_v16, %s10143_s30  ;;  %9121 = vmatprep.subr.mxu1 %v3466_v54  ;;  %v16244_v54 = vld [vmem:[#allocation95_spill] sm:$0xff]  ;;  %v16281_v16 = vld [vmem:[#allocation88_spill] sm:$0xff] }
 0x94b   : > { %3406 = vadd.xlane.f32.xlu1 %v3405_v6  ;;  %9122 = vmatpush3.msra.mxu1 %v3434_v63  ;;  %v16245_v6 = vld [vmem:[#allocation112_spill] sm:$0xff] }
 0x94d   : > { %v3464_v7 = vpop.permute.xlu0 %3463 }
 0x94e   : > { %3901 = vrot.lane.b32.xlu0 %v16237_v46, %s10143_s30  ;;  %9123 = vmatprep.subr.mxu1 %v3464_v7  ;;  %v16279_v46 = vld [vmem:[#allocation86_spill] sm:$0xff] }
 0x94f   : > { %9124 = vmatpush3.msra.mxu1 %v3432_v18 }
 0x951   : > { %v3462_v42 = vpop.permute.xlu0 %3461 }
 0x952   : > { %3897 = vrot.lane.b32.xlu0 %v16238_v12, %s10143_s30  ;;  %9125 = vmatprep.subr.mxu1 %v3462_v42  ;;  %v16246_v42 = vld [vmem:[#allocation18_spill] sm:$0xff] }
 0x953   : > { %9126 = vmatpush3.msra.mxu1 %v3430_v19  ;;  %v16242_v19 = vld [vmem:[#allocation15_spill] sm:$0xff]  ;;  %v16277_v12 = vld [vmem:[#allocation82_spill] sm:$0xff] }
 0x955   : > { %v3460_v63 = vpop.permute.xlu0 %3459 }
 0x956   : > { %3893 = vrot.lane.b32.xlu0 %v16239_v23, %s10143_s30  ;;  %9127 = vmatprep.subr.mxu1 %v3460_v63  ;;  %v16275_v23 = vld [vmem:[#allocation74_spill] sm:$0xff] }
 0x957   : > { %9128 = vmatpush3.msra.mxu1 %v3428_v34 }
 0x959   : > { %v3458_v18 = vpop.permute.xlu0 %3457 }
 0x95a   : > { %3887 = vrot.lane.b32.xlu0 %v16240_v56, %s10143_s30  ;;  %9129 = vmatprep.subr.mxu1 %v3458_v18  ;;  %v16248_v18 = vld [vmem:[#allocation19_spill] sm:$0xff]  ;;  %v16273_v56 = vld [vmem:[#allocation66_spill] sm:$0xff] }
 0x95b   : > { %9130 = vmatpush3.msra.mxu1 %v3426_v48  ;;  %v3418_v48 = vpop.permute.xlu1 %3417 }
 0x95c   : > { %3501 = vrot.lane.b32.xlu1 %v16241_v52, %s10142_s29  ;;  %v16265_v52 = vld [vmem:[#allocation124_spill] sm:$0xff] }
 0x95d   : > { %v3456_v25 = vpop.permute.xlu0 %3455 }
 0x95e   : > { %3855 = vrot.lane.b32.xlu0 %v16242_v19, %s10143_s30  ;;  %9131 = vmatprep.subr.mxu1 %v3456_v25  ;;  %v16249_v25 = vld [vmem:[#allocation50_spill] sm:$0xff] }
 0x95f   : > { %9132 = vmatpush3.msra.mxu1 %v3424_v28  ;;  %v16247_v28 = vld [vmem:[#allocation113_spill] sm:$0xff]  ;;  %v16271_v19 = vld [vmem:[#allocation62_spill] sm:$0xff] }
 0x960   : > { %3497 = vrot.lane.b32.xlu1 %v16243_v3, %s10142_s29  ;;  %v16252_v3 = vld [vmem:[#allocation22_spill] sm:$0xff] }
 0x961   : > { %v3454_v34 = vpop.permute.xlu0 %3453 }
 0x962   : > { %3949 = vrot.lane.b32.xlu0 %v16244_v54, %s10143_s30  ;;  %9133 = vmatprep.subr.mxu1 %v3454_v34  ;;  %v16269_v54 = vld [vmem:[#allocation53_spill] sm:$0xff] }
 0x963   : > { %9134 = vmatpush3.msra.mxu1 %v3422_v53  ;;  %v3416_v53 = vpop.permute.xlu1 %3415 }
 0x964   : > { %3493 = vrot.lane.b32.xlu1 %v16245_v6, %s10142_s29  ;;  %v16250_v6 = vld [vmem:[#allocation97_spill] sm:$0xff] }
 0x965   : > { %v3452_v7 = vpop.permute.xlu0 %3451 }
 0x966   : > { %3883 = vrot.lane.b32.xlu0 %v16246_v42, %s10143_s30  ;;  %9135 = vmatprep.subr.mxu1 %v3452_v7  ;;  %v16267_v42 = vld [vmem:[#allocation126_spill] sm:$0xff] }
 0x967   : > { %9136 = vmatpush3.msra.mxu1 %v3420_v50  ;;  %v16251_v50 = vld [vmem:[#allocation44_spill] sm:$0xff] }
 0x968   : > { %3489 = vrot.lane.b32.xlu1 %v16247_v28, %s10142_s29  ;;  %v3414_v28 = vpop.permute.xlu1 %3413 }
 0x969   : > { %v3450_v63 = vpop.permute.xlu0 %3449 }
 0x96a   : > { %3851 = vrot.lane.b32.xlu0 %v16248_v18, %s10143_s30  ;;  %9137 = vmatprep.subr.mxu1 %v3450_v63  ;;  %v16263_v18 = vld [vmem:[#allocation122_spill] sm:$0xff] }
 0x96b   : > { %9138 = vmatpush3.msra.mxu1 %v3418_v48  ;;  %v16253_v48 = vld [vmem:[#allocation38_spill] sm:$0xff] }
 0x96c   : > { %3485 = vrot.lane.b32.xlu1 %v16249_v25, %s10142_s29  ;;  %v16256_v25 = vld [vmem:[#allocation99_spill] sm:$0xff] }
 0x96d   : > { %v3448_v34 = vpop.permute.xlu0 %3447 }
 0x96e   : > { %3945 = vrot.lane.b32.xlu0 %v16250_v6, %s10143_s30  ;;  %9139 = vmatprep.subr.mxu1 %v3448_v34  ;;  %v16254_v34 = vld [vmem:[#allocation23_spill] sm:$0xff]  ;;  %v16261_v6 = vld [vmem:[#allocation120_spill] sm:$0xff] }
 0x96f   : > { %9140 = vmatpush3.msra.mxu1 %v3416_v53  ;;  %v16255_v53 = vld [vmem:[#allocation114_spill] sm:$0xff] }
 0x970   : > { %3481 = vrot.lane.b32.xlu1 %v16251_v50, %s10142_s29 }
 0x971   : > { %v3446_v7 = vpop.permute.xlu0 %3445 }
 0x972   : > { %3879 = vrot.lane.b32.xlu0 %v16252_v3, %s10143_s30  ;;  %9141 = vmatprep.subr.mxu1 %v3446_v7  ;;  %v16259_v3 = vld [vmem:[#allocation118_spill] sm:$0xff] }
 0x973   : > { %9142 = vmatpush3.msra.mxu1 %v3414_v28  ;;  %v16257_v28 = vld [vmem:[#allocation116_spill] sm:$0xff] }
 0x974   : > { %3477 = vrot.lane.b32.xlu1 %v16253_v48, %s10142_s29  ;;  %3676 = vmatprep.subr.mxu1 %v16007_v20  ;;  %v16258_v48 = vld [vmem:[#allocation26_spill] sm:$0xff] }
 0x975   : > { %v12792_v63 = vpop.permute.xlu0 %3507 }
 0x976   : > { %3847 = vrot.lane.b32.xlu0 %v16254_v34, %s10143_s30 }
 0x978   : > { %3535 = vrot.lane.b32.xlu1 %v16255_v53, %s10142_s29  ;;  %v16260_v53 = vld [vmem:[#allocation27_spill] sm:$0xff] }
 0x979   : > { %v12798_v50 = vpop.permute.xlu0 %3503 }
 0x97a   : > { %3941 = vrot.lane.b32.xlu0 %v16256_v25, %s10143_s30 }
 0x97c   : > { %3531 = vrot.lane.b32.xlu1 %v16257_v28, %s10142_s29  ;;  %v16262_v28 = vld [vmem:[#allocation100_spill] sm:$0xff] }
 0x97d   : > { %v12804_v7 = vpop.permute.xlu0 %3499 }
 0x97e   : > { %3875 = vrot.lane.b32.xlu0 %v16258_v48, %s10143_s30 }
 0x980   : > { %3527 = vrot.lane.b32.xlu1 %v16259_v3, %s10142_s29  ;;  %v16264_v3 = vld [vmem:[#allocation30_spill] sm:$0xff] }
 0x981   : > { %v12810_v34 = vpop.permute.xlu0 %3495 }
 0x982   : > { %3843 = vrot.lane.b32.xlu0 %v16260_v53, %s10143_s30 }
 0x984   : > { %3523 = vrot.lane.b32.xlu1 %v16261_v6, %s10142_s29  ;;  %v16266_v6 = vld [vmem:[#allocation31_spill] sm:$0xff] }
 0x985   : > { %v12816_v25 = vpop.permute.xlu0 %3491 }
 0x986   : > { %3937 = vrot.lane.b32.xlu0 %v16262_v28, %s10143_s30 }
 0x988   : > { %3519 = vrot.lane.b32.xlu1 %v16263_v18, %s10142_s29  ;;  %v16268_v18 = vld [vmem:[#allocation102_spill] sm:$0xff] }
 0x989   : > { %v12822_v48 = vpop.permute.xlu0 %3487 }
 0x98a   : > { %3871 = vrot.lane.b32.xlu0 %v16264_v3, %s10143_s30 }
 0x98c   : > { %3515 = vrot.lane.b32.xlu1 %v16265_v52, %s10142_s29  ;;  %v16270_v52 = vld [vmem:[#allocation34_spill] sm:$0xff] }
 0x98d   : > { %v12828_v53 = vpop.permute.xlu0 %3483 }
 0x98e   : > { %3839 = vrot.lane.b32.xlu0 %v16266_v6, %s10143_s30 }
 0x990   : > { %3511 = vrot.lane.b32.xlu1 %v16267_v42, %s10142_s29  ;;  %v16272_v42 = vld [vmem:[#allocation36_spill] sm:$0xff]  ;;  %s8106_s29 = sshll.u32 %s363_s28, 3 }
 0x991   : > { %v12834_v28 = vpop.permute.xlu0 %3479 }
 0x992   : > { %3933 = vrot.lane.b32.xlu0 %v16268_v18, %s10143_s30 }
 0x994   : > { %3919 = vrot.lane.b32.xlu1 %v16269_v54, %s10143_s30  ;;  %v16274_v54 = vld [vmem:[#allocation104_spill] sm:$0xff] }
 0x995   : > { %v12840_v3 = vpop.permute.xlu0 %3537 }
 0x996   : > { %3867 = vrot.lane.b32.xlu0 %v16270_v52, %s10143_s30 }
 0x998   : > { %3915 = vrot.lane.b32.xlu1 %v16271_v19, %s10143_s30  ;;  %v16276_v19 = vld [vmem:[#allocation40_spill] sm:$0xff] }
 0x999   : > { %v12846_v6 = vpop.permute.xlu0 %3533 }
 0x99a   : > { %3835 = vrot.lane.b32.xlu0 %v16272_v42, %s10143_s30 }
 0x99c   : > { %3911 = vrot.lane.b32.xlu1 %v16273_v56, %s10143_s30  ;;  %v16278_v56 = vld [vmem:[#allocation42_spill] sm:$0xff] }
 0x99d   : > { %v12852_v18 = vpop.permute.xlu0 %3529 }
 0x99e   : > { %3929 = vrot.lane.b32.xlu0 %v16274_v54, %s10143_s30 }
 0x9a0   : > { %3907 = vrot.lane.b32.xlu1 %v16275_v23, %s10143_s30  ;;  %v16280_v23 = vld [vmem:[#allocation106_spill] sm:$0xff] }
 0x9a1   : > { %v12858_v52 = vpop.permute.xlu0 %3525 }
 0x9a2   : > { %3863 = vrot.lane.b32.xlu0 %v16276_v19, %s10143_s30 }
 0x9a4   : > { %3903 = vrot.lane.b32.xlu1 %v16277_v12, %s10143_s30  ;;  %v16282_v12 = vld [vmem:[#allocation46_spill] sm:$0xff] }
 0x9a5   : > { %v12864_v42 = vpop.permute.xlu0 %3521 }
 0x9a6   : > { %3831 = vrot.lane.b32.xlu0 %v16278_v56, %s10143_s30 }
 0x9a8   : > { %3899 = vrot.lane.b32.xlu1 %v16279_v46, %s10143_s30  ;;  %v16284_v46 = vld [vmem:[#allocation48_spill] sm:$0xff] }
 0x9a9   : > { %v12870_v54 = vpop.permute.xlu0 %3517 }
 0x9aa   : > { %3925 = vrot.lane.b32.xlu0 %v16280_v23, %s10143_s30 }
 0x9ac   : > { %3895 = vrot.lane.b32.xlu1 %v16281_v16, %s10143_s30  ;;  %v16286_v16 = vld [vmem:[#allocation108_spill] sm:$0xff] }
 0x9ad   : > { %v12876_v19 = vpop.permute.xlu0 %3513 }
 0x9ae   : > { %3859 = vrot.lane.b32.xlu0 %v16282_v12, %s10143_s30 }
 0x9b0   : > { %3891 = vrot.lane.b32.xlu1 %v16283_v55, %s10143_s30  ;;  %v16288_v55 = vld [vmem:[#allocation13_spill] sm:$0xff] }
 0x9b1   : > { %v12882_v56 = vpop.permute.xlu0 %3509 }
 0x9b2   : > { %3827 = vrot.lane.b32.xlu0 %v16284_v46, %s10143_s30 }
 0x9b4   : > { %3889 = vrot.lane.b32.xlu1 %v16285_v32, %s10143_s30  ;;  %v16290_v32 = vld [vmem:[#allocation51_spill] sm:$0xff] }
 0x9b5   : > { %v12888_v23 = vpop.permute.xlu0 %3917 }
 0x9b6   : > { %3921 = vrot.lane.b32.xlu0 %v16286_v16, %s10143_s30 }
 0x9b8   : > { %3885 = vrot.lane.b32.xlu1 %v16287_v41, %s10143_s30  ;;  %v16292_v41 = vld [vmem:[#allocation54_spill] sm:$0xff] }
 0x9b9   : > { %v12894_v12 = vpop.permute.xlu0 %3913 }
 0x9ba   : > { %3823 = vrot.lane.b32.xlu0 %v16288_v55, %s10143_s30 }
 0x9bc   : > { %3853 = vrot.lane.b32.xlu1 %v16289_v30, %s10143_s30  ;;  %v16294_v30 = vld [vmem:[#allocation55_spill] sm:$0xff] }
 0x9bd   : > { %v12900_v46 = vpop.permute.xlu0 %3909 }
 0x9be   : > { %4312 = vrot.lane.b32.xlu0 %v16290_v32, %s10143_s30 }
 0x9c0   : > { %3947 = vrot.lane.b32.xlu1 %v16291_v36, %s10143_s30  ;;  %v16296_v36 = vld [vmem:[#allocation56_spill] sm:$0xff] }
 0x9c1   : > { %v12906_v16 = vpop.permute.xlu0 %3905 }
 0x9c2   : > { %4280 = vrot.lane.b32.xlu0 %v16292_v41, %s10143_s30 }
 0x9c4   : > { %3881 = vrot.lane.b32.xlu1 %v16293_v49, %s10143_s30  ;;  %v3506_v49 = vpop.permute.xlu1 %3505 }
 0x9c5   : > { %v12912_v55 = vpop.permute.xlu0 %3901 }
 0x9c6   : > { %4310 = vrot.lane.b32.xlu0 %v16294_v30, %s10143_s30 }
 0x9c8   : > { %3849 = vrot.lane.b32.xlu1 %v16295_v0, %s10143_s30  ;;  %v16299_v0 = vld [vmem:[#allocation68_spill] sm:$0xff] }
 0x9c9   : > { %v12918_v32 = vpop.permute.xlu0 %3897 }
 0x9ca   : > { %4278 = vrot.lane.b32.xlu0 %v16296_v36, %s10143_s30  ;;  %v16300_v36 = vld [vmem:[#allocation25_spill] sm:$0xff] }
 0x9cc   : > { %3943 = vrot.lane.b32.xlu1 %v16297_v29, %s10143_s30  ;;  %v16301_v29 = vld [vmem:[#allocation71_spill] sm:$0xff] }
 0x9cd   : > { %v12924_v41 = vpop.permute.xlu0 %3893 }
 0x9ce   : > { %4276 = vrot.lane.b32.xlu0 %v11157_v4, %s10143_s30  ;;  %v16302_v4 = vld [vmem:[#allocation98_spill] sm:$0xff] }
 0x9d0   : > { %3877 = vrot.lane.b32.xlu1 %v16298_v43, %s10143_s30  ;;  %v16303_v43 = vld [vmem:[#allocation73_spill] sm:$0xff] }
 0x9d1   : > { %v3888_v30 = vpop.permute.xlu0 %3887 }
 0x9d2   : > { %4270 = vrot.lane.b32.xlu0 %v16299_v0, %s10143_s30  ;;  %9148 = vmatprep.subr.msk.mxu0 %vm1500_vm2, %v3888_v30  ;;  %v16304_v30 = vld [vmem:[#allocation76_spill] sm:$0xff] }
 0x9d4   : > { %3845 = vrot.lane.b32.xlu1 %v16300_v36, %s10143_s30  ;;  %v3407_v26 = vpop.xlane.xlu1 %3406 }
 0x9d5   : > { %10025 = vrcp.f32 %v3407_v26 }
 0x9d6   : > { %4268 = vrot.lane.b32.xlu0 %v16301_v29, %s10143_s30  ;;  %v16305_v29 = vld [vmem:[#allocation79_spill] sm:$0xff] }
 0x9d8   : > { %3939 = vrot.lane.b32.xlu1 %v16302_v4, %s10143_s30  ;;  %v3502_v58 = vpop.permute.xlu1 %3501 }
 0x9da   : > { %4266 = vrot.lane.b32.xlu0 %v16303_v43, %s10143_s30 }
 0x9dc   : > { %3873 = vrot.lane.b32.xlu1 %v16210_v51, %s10143_s30  ;;  %v3498_v0 = vpop.permute.xlu1 %3497  ;;  %v16306_v51 = vld [vmem:[#allocation101_spill] sm:$0xff] }
 0x9de   : > { %4264 = vrot.lane.b32.xlu0 %v16304_v30, %s10143_s30  ;;  %v16307_v30 = vld [vmem:[#allocation81_spill] sm:$0xff] }
 0x9e0   : > { %3841 = vrot.lane.b32.xlu1 %v16211_v33, %s10143_s30  ;;  %v3494_v26 = vpop.permute.xlu1 %3493 }
 0x9e2   : > { %v12947_v36 = vpop.eup %10025  ;;  %4262 = vrot.lane.b32.xlu0 %v16305_v29, %s10143_s30 }
 0x9e3   : > { %v3410_v4 = vmul.f32 %v12947_v36, %v12735_v62  ;;  %v3409_v43 = vmul.f32 %v12947_v36, %v12733_v8  ;;  %v3412_v33 = vmul.f32 %v12947_v36, %v12741_v5  ;;  %v16308_v8 = vld [vmem:[#allocation32_spill] sm:$0xff]  ;;  %v16311_v5 = vld [vmem:[#allocation87_spill] sm:$0xff] }
 0x9e4   : > { %3935 = vrot.lane.b32.xlu1 %v16306_v51, %s10143_s30  ;;  %v3490_v1 = vpop.permute.xlu1 %3489 }
 0x9e5   : > { %3670 = vmatprep.mubr.f32.mxu1 %v3410_v4  ;;  %v16309_v4 = vld [vmem:[#allocation84_spill] sm:$0xff] }
 0x9e6   : > { %3671 = vmatmul.mubr.f32.vlgmr.msra.gmra.mxu1 %v3409_v43  ;;  %4260 = vrot.lane.b32.xlu0 %v16307_v30, %s10143_s30  ;;  %v16310_v43 = vld [vmem:[#allocation33_spill] sm:$0xff] }
 0x9e7   : > { %3677 = vmatpush1.msra.mxu1 %v12792_v63  ;;  %8443 = vmatprep.mubr.msk.f32.mxu1 %vm1835_vm4, %v3412_v33  ;;  %v16313_v63 = vld [vmem:[#allocation9_spill] sm:$0xff] }
 0x9e8   : > { %3678 = vmatprep.subr.mxu1 %v16007_v20  ;;  %3869 = vrot.lane.b32.xlu1 %v16308_v8, %s10143_s30  ;;  %v3486_v62 = vpop.permute.xlu1 %3485 }
 0x9e9   : > { %3679 = vmatpush1.msra.mxu1 %v3506_v49  ;;  %v16312_v49 = vld [vmem:[#allocation103_spill] sm:$0xff] }
 0x9ea   : > { %3680 = vmatprep.subr.mxu1 %v16007_v20  ;;  %4258 = vrot.lane.b32.xlu0 %v16309_v4, %s10143_s30 }
 0x9eb   : > { %3681 = vmatpush1.msra.mxu1 %v12798_v50 }
 0x9ec   : > { %3682 = vmatprep.subr.mxu1 %v16007_v20  ;;  %3837 = vrot.lane.b32.xlu1 %v16310_v43, %s10143_s30  ;;  %v3482_v33 = vpop.permute.xlu1 %3481 }
 0x9ed   : > { %3683 = vmatpush1.msra.mxu1 %v3502_v58  ;;  %v16314_v58 = vld [vmem:[#allocation37_spill] sm:$0xff] }
 0x9ee   : > { %3684 = vmatprep.subr.mxu1 %v16007_v20  ;;  %4256 = vrot.lane.b32.xlu0 %v16311_v5, %s10143_s30 }
 0x9ef   : > { %3685 = vmatpush1.msra.mxu1 %v12804_v7 }
 0x9f0   : > { %3686 = vmatprep.subr.mxu1 %v16007_v20  ;;  %3931 = vrot.lane.b32.xlu1 %v16312_v49, %s10143_s30  ;;  %v3478_v50 = vpop.permute.xlu1 %3477  ;;  %v16315_v49 = vld [vmem:[#allocation8_spill] sm:$0xff] }
 0x9f1   : > { %3687 = vmatpush1.msra.mxu1 %v3498_v0  ;;  %v16316_v0 = vld [vmem:[#allocation39_spill] sm:$0xff] }
 0x9f2   : > { %3688 = vmatprep.subr.mxu1 %v16007_v20  ;;  %4254 = vrot.lane.b32.xlu0 %v16313_v63, %s10143_s30 }
 0x9f3   : > { %3689 = vmatpush1.msra.mxu1 %v12810_v34 }
 0x9f4   : > { %3690 = vmatprep.subr.mxu1 %v16007_v20  ;;  %3865 = vrot.lane.b32.xlu1 %v16314_v58, %s10143_s30  ;;  %v3536_v7 = vpop.permute.xlu1 %3535  ;;  %v16317_v58 = vld [vmem:[#allocation7_spill] sm:$0xff] }
 0x9f5   : > { %3691 = vmatpush1.msra.mxu1 %v3494_v26  ;;  %v16318_v26 = vld [vmem:[#allocation105_spill] sm:$0xff] }
 0x9f6   : > { %3692 = vmatprep.subr.mxu1 %v16007_v20  ;;  %4252 = vrot.lane.b32.xlu0 %v16315_v49, %s10143_s30 }
 0x9f7   : > { %3693 = vmatpush1.msra.mxu1 %v12816_v25 }
 0x9f8   : > { %3694 = vmatprep.subr.mxu1 %v16007_v20  ;;  %3833 = vrot.lane.b32.xlu1 %v16316_v0, %s10143_s30  ;;  %v3532_v34 = vpop.permute.xlu1 %3531 }
 0x9f9   : > { %3695 = vmatpush1.msra.mxu1 %v3490_v1  ;;  %v16319_v1 = vld [vmem:[#allocation43_spill] sm:$0xff] }
 0x9fa   : > { %3696 = vmatprep.subr.mxu1 %v16007_v20  ;;  %4250 = vrot.lane.b32.xlu0 %v16317_v58, %s10143_s30 }
 0x9fb   : > { %3697 = vmatpush1.msra.mxu1 %v12822_v48  ;;  %v16320_v48 = vld [vmem:[#allocation45_spill] sm:$0xff] }
 0x9fc   : > { %3698 = vmatprep.subr.mxu1 %v16007_v20  ;;  %3927 = vrot.lane.b32.xlu1 %v16318_v26, %s10143_s30  ;;  %v3528_v25 = vpop.permute.xlu1 %3527 }
 0x9fd   : > { %3699 = vmatpush1.msra.mxu1 %v3486_v62 }
 0x9fe   : > { %3700 = vmatprep.subr.mxu1 %v16007_v20 }
 0x9ff   : > { %3701 = vmatpush1.msra.mxu1 %v12828_v53  ;;  %v16321_v53 = vld [vmem:[#allocation107_spill] sm:$0xff] }
 0xa00   : > { %3702 = vmatprep.subr.mxu1 %v16007_v20  ;;  %3861 = vrot.lane.b32.xlu1 %v16319_v1, %s10143_s30  ;;  %v3524_v0 = vpop.permute.xlu1 %3523 }
 0xa01   : > { %3703 = vmatpush1.msra.mxu1 %v3482_v33 }
 0xa02   : > { %3704 = vmatprep.subr.mxu1 %v16007_v20 }
 0xa03   : > { %3705 = vmatpush1.msra.mxu1 %v12834_v28  ;;  %v16322_v28 = vld [vmem:[#allocation49_spill] sm:$0xff] }
 0xa04   : > { %3706 = vmatprep.subr.mxu1 %v16007_v20  ;;  %3829 = vrot.lane.b32.xlu1 %v16320_v48, %s10143_s30  ;;  %v3520_v62 = vpop.permute.xlu1 %3519 }
 0xa05   : > { %3707 = vmatpush1.msra.mxu1 %v3478_v50 }
 0xa06   : > { %3710 = vmatprep.subr.mxu1 %v16007_v20 }
 0xa07   : > { %8442 = vmatpush2.msk.msra.mxu1 %vm1868_vm3, %v12840_v3  ;;  %v16323_v3 = vld [vmem:[#allocation52_spill] sm:$0xff] }
 0xa08   : > { %3712 = vmatprep.subr.mxu1 %v16007_v20  ;;  %3923 = vrot.lane.b32.xlu1 %v16321_v53, %s10143_s30  ;;  %v3516_v33 = vpop.permute.xlu1 %3515 }
 0xa09   : > { %3713 = vmatpush2.msra.mxu1 %v3536_v7 }
 0xa0a   : > { %3714 = vmatprep.subr.mxu1 %v16007_v20 }
 0xa0b   : > { %3715 = vmatpush2.msra.mxu1 %v12846_v6 }
 0xa0c   : > { %3716 = vmatprep.subr.mxu1 %v16007_v20  ;;  %3857 = vrot.lane.b32.xlu1 %v16322_v28, %s10143_s30  ;;  %v3512_v50 = vpop.permute.xlu1 %3511  ;;  %v13030_v28 = vpop.permute.xlu0 %3855 }
 0xa0d   : > { %3717 = vmatpush2.msra.mxu1 %v3532_v34 }
 0xa0e   : > { %3718 = vmatprep.subr.mxu1 %v16007_v20 }
 0xa0f   : > { %3719 = vmatpush2.msra.mxu1 %v12852_v18 }
 0xa10   : > { %3720 = vmatprep.subr.mxu1 %v16007_v20  ;;  %3825 = vrot.lane.b32.xlu1 %v16323_v3, %s10143_s30  ;;  %v3920_v7 = vpop.permute.xlu1 %3919  ;;  %v13036_v34 = vpop.permute.xlu0 %3949 }
 0xa11   : > { %3721 = vmatpush2.msra.mxu1 %v3528_v25  ;;  %v3411_v25 = vmul.f32 %v12947_v36, %v12737_v59 }
 0xa12   : > { %3722 = vmatprep.subr.mxu1 %v16007_v20 }
 0xa13   : > { %3723 = vmatpush2.msra.mxu1 %v12858_v52 }
 0xa14   : > { %3724 = vmatprep.subr.mxu1 %v16007_v20  ;;  %v3916_v6 = vpop.permute.xlu1 %3915 }
 0xa15   : > { %3725 = vmatpush2.msra.mxu1 %v3524_v0  ;;  %v13043_v0 = vpop.permute.xlu0 %3883 }
 0xa16   : > { %3726 = vmatprep.subr.mxu1 %v16007_v20 }
 0xa17   : > { %3727 = vmatpush2.msra.mxu1 %v12864_v42 }
 0xa18   : > { %3728 = vmatprep.subr.mxu1 %v16007_v20  ;;  %v3912_v18 = vpop.permute.xlu1 %3911 }
 0xa19   : > { %3729 = vmatpush2.msra.mxu1 %v3520_v62 }
 0xa1a   : > { %3730 = vmatprep.subr.mxu1 %v16007_v20 }
 0xa1b   : > { %3731 = vmatpush2.msra.mxu1 %v12870_v54 }
 0xa1c   : > { %3732 = vmatprep.subr.mxu1 %v16007_v20  ;;  %v3908_v52 = vpop.permute.xlu1 %3907 }
 0xa1d   : > { %3733 = vmatpush2.msra.mxu1 %v3516_v33 }
 0xa1e   : > { %3734 = vmatprep.subr.mxu1 %v16007_v20 }
 0xa1f   : > { %3735 = vmatpush2.msra.mxu1 %v12876_v19  ;;  %v13053_v19 = vpop.permute.xlu0 %3851 }
 0xa20   : > { %3736 = vmatprep.subr.mxu1 %v16007_v20  ;;  %v3904_v42 = vpop.permute.xlu1 %3903 }
 0xa21   : > { %3737 = vmatpush2.msra.mxu1 %v3512_v50 }
 0xa22   : > { %3738 = vmatprep.subr.mxu1 %v16007_v20 }
 0xa23   : > { %3739 = vmatpush2.msra.mxu1 %v12882_v56  ;;  %v3946_v59 = vpop.permute.xlu0 %3945 }
 0xa24   : > { %3741 = vmatmul.mubr.f32.vlgmr.msra.gmra.mxu1 %v3411_v25  ;;  %4150 = vmatprep.subr.mxu1 %v16007_v20  ;;  %v3900_v54 = vpop.permute.xlu1 %3899 }
 0xa25   : > { %8479 = vmatpush1.xpose.msk.msra.mxu1 %vm1500_vm2, %v3920_v7  ;;  %4214 = vmatprep.mubr.f32.mxu1 %v16007_v20 }
 0xa26   : > { %4152 = vmatprep.subr.mxu1 %v16007_v20 }
 0xa27   : > { %v13063_v33 = vpop.permute.xlu0 %3879 }
 0xa28   : > { %v3896_v62 = vpop.permute.xlu1 %3895 }
 0xa29   : > { %8480 = vmatpush1.xpose.msk.msra.mxu1 %vm1500_vm2, %v12888_v23 }
 0xa2a   : > { %4154 = vmatprep.subr.mxu1 %v16007_v20 }
 0xa2b   : > { %v13071_v7 = vpop.permute.xlu0 %3847 }
 0xa2c   : > { %v3892_v36 = vpop.permute.xlu1 %3891 }
 0xa2d   : > { %8481 = vmatpush1.xpose.msk.msra.mxu1 %vm1500_vm2, %v3916_v6 }
 0xa2e   : > { %4156 = vmatprep.subr.mxu1 %v16007_v20 }
 0xa2f   : > { %v3942_v6 = vpop.permute.xlu0 %3941 }
 0xa30   : > { %v3890_v56 = vpop.permute.xlu1 %3889 }
 0xa31   : > { %8482 = vmatpush1.xpose.msk.msra.mxu1 %vm1500_vm2, %v12894_v12 }
 0xa32   : > { %4158 = vmatprep.subr.mxu1 %v16007_v20 }
 0xa33   : > { %v13085_v3 = vpop.permute.xlu0 %3875 }
 0xa34   : > { %v13065_v50 = vpop.permute.xlu1 %3885 }
 0xa35   : > { %8483 = vmatpush1.xpose.msk.msra.mxu1 %vm1500_vm2, %v3912_v18 }
 0xa36   : > { %4160 = vmatprep.subr.mxu1 %v16007_v20 }
 0xa38   : > { %v13069_v23 = vpop.permute.xlu1 %3853 }
 0xa39   : > { %8484 = vmatpush1.xpose.msk.msra.mxu1 %vm1500_vm2, %v12900_v46 }
 0xa3a   : > { %4162 = vmatprep.subr.mxu1 %v16007_v20 }
 0xa3c   : > { %v3948_v12 = vpop.permute.xlu1 %3947 }
 0xa3d   : > { %8485 = vmatpush1.xpose.msk.msra.mxu1 %vm1500_vm2, %v3908_v52  ;;  %v13092_v52 = vpop.permute.xlu0 %3843 }
 0xa3e   : > { %4164 = vmatprep.subr.mxu1 %v16007_v20 }
 0xa40   : > { %v13078_v25 = vpop.permute.xlu1 %3881 }
 0xa41   : > { %8486 = vmatpush1.xpose.msk.msra.mxu1 %vm1500_vm2, %v12906_v16  ;;  %v3938_v48 = vpop.permute.xlu0 %3937 }
 0xa42   : > { %4166 = vmatprep.subr.mxu1 %v16007_v20 }
 0xa44   : > { %v13083_v18 = vpop.permute.xlu1 %3849 }
 0xa45   : > { %8487 = vmatpush1.xpose.msk.msra.mxu1 %vm1500_vm2, %v3904_v42 }
 0xa46   : > { %4168 = vmatprep.subr.mxu1 %v16007_v20 }
 0xa48   : > { %v3944_v46 = vpop.permute.xlu1 %3943 }
 0xa49   : > { %8488 = vmatpush1.xpose.msk.msra.mxu1 %vm1500_vm2, %v12912_v55  ;;  %v13105_v55 = vpop.permute.xlu0 %3871 }
 0xa4a   : > { %4170 = vmatprep.subr.mxu1 %v16007_v20 }
 0xa4c   : > { %v13094_v53 = vpop.permute.xlu1 %3877 }
 0xa4d   : > { %8489 = vmatpush1.xpose.msk.msra.mxu1 %vm1500_vm2, %v3900_v54  ;;  %v13114_v26 = vpop.permute.xlu0 %3839 }
 0xa4e   : > { %4172 = vmatprep.subr.mxu1 %v16007_v20 }
 0xa50   : > { %v13098_v16 = vpop.permute.xlu1 %3845 }
 0xa51   : > { %8490 = vmatpush1.xpose.msk.msra.mxu1 %vm1500_vm2, %v12918_v32 }
 0xa52   : > { %4174 = vmatprep.subr.mxu1 %v16007_v20 }
 0xa54   : > { %v3940_v42 = vpop.permute.xlu1 %3939 }
 0xa55   : > { %8491 = vmatpush1.xpose.msk.msra.mxu1 %vm1500_vm2, %v3896_v62  ;;  %v3934_v62 = vpop.permute.xlu0 %3933 }
 0xa56   : > { %4176 = vmatprep.subr.mxu1 %v16007_v20 }
 0xa58   : > { %v13107_v1 = vpop.permute.xlu1 %3873 }
 0xa59   : > { %8492 = vmatpush1.xpose.msk.msra.mxu1 %vm1500_vm2, %v12924_v41  ;;  %v13125_v58 = vpop.permute.xlu0 %3867 }
 0xa5a   : > { %4178 = vmatprep.subr.mxu1 %v16007_v20 }
 0xa5c   : > { %v13112_v54 = vpop.permute.xlu1 %3841 }
 0xa5d   : > { %8493 = vmatpush1.xpose.msk.msra.mxu1 %vm1500_vm2, %v3892_v36 }
 0xa5e   : > { %4180 = vmatprep.subr.mxu1 %v16007_v20 }
 0xa60   : > { %v3936_v32 = vpop.permute.xlu1 %3935 }
 0xa61   : > { %8494 = vmatpush1.xpose.msk.msra.mxu1 %vm1500_vm2, %v3890_v56  ;;  %v13133_v56 = vpop.permute.xlu0 %3835 }
 0xa62   : > { %4184 = vmatprep.subr.mxu1 %v16007_v20 }
 0xa64   : > { %v13123_v41 = vpop.permute.xlu1 %3869 }
 0xa65   : > { %8495 = vmatpush2.xpose.msk.msra.mxu1 %vm1500_vm2, %v13036_v34  ;;  %v3930_v43 = vpop.permute.xlu0 %3929 }
 0xa66   : > { %4186 = vmatprep.subr.mxu1 %v16007_v20 }
 0xa68   : > { %v13130_v36 = vpop.permute.xlu1 %3837 }
 0xa69   : > { %8496 = vmatpush2.xpose.msk.msra.mxu1 %vm1500_vm2, %v3948_v12 }
 0xa6a   : > { %4188 = vmatprep.subr.mxu1 %v16007_v20 }
 0xa6c   : > { %v3932_v34 = vpop.permute.xlu1 %3931 }
 0xa6d   : > { %8497 = vmatpush2.xpose.msk.msra.mxu1 %vm1500_vm2, %v3946_v59  ;;  %v13143_v59 = vpop.permute.xlu0 %3863 }
 0xa6e   : > { %4190 = vmatprep.subr.mxu1 %v16007_v20 }
 0xa70   : > { %v13140_v12 = vpop.permute.xlu1 %3865 }
 0xa71   : > { %8498 = vmatpush2.xpose.msk.msra.mxu1 %vm1500_vm2, %v3944_v46  ;;  %v13147_v49 = vpop.permute.xlu0 %3831 }
 0xa72   : > { %4192 = vmatprep.subr.mxu1 %v16007_v20 }
 0xa74   : > { %v3834_v46 = vpop.permute.xlu1 %3833 }
 0xa75   : > { %8499 = vmatpush2.xpose.msk.msra.mxu1 %vm1500_vm2, %v3942_v6 }
 0xa76   : > { %4194 = vmatprep.subr.mxu1 %v16007_v20 }
 0xa78   : > { %v3928_v6 = vpop.permute.xlu1 %3927 }
 0xa79   : > { %8500 = vmatpush2.xpose.msk.msra.mxu1 %vm1500_vm2, %v3940_v42  ;;  %v3926_v42 = vpop.permute.xlu0 %3925 }
 0xa7a   : > { %4196 = vmatprep.subr.mxu1 %v16007_v20 }
 0xa7d   : > { %8501 = vmatpush2.xpose.msk.msra.mxu1 %vm1500_vm2, %v3938_v48  ;;  %v3862_v48 = vpop.permute.xlu1 %3861  ;;  %v3860_v8 = vpop.permute.xlu0 %3859 }
 0xa7e   : > { %4198 = vmatprep.subr.mxu1 %v16007_v20 }
 0xa81   : > { %8502 = vmatpush2.xpose.msk.msra.mxu1 %vm1500_vm2, %v3936_v32  ;;  %v3830_v32 = vpop.permute.xlu1 %3829 }
 0xa82   : > { %4200 = vmatprep.subr.mxu1 %v16007_v20 }
 0xa85   : > { %8503 = vmatpush2.xpose.msk.msra.mxu1 %vm1500_vm2, %v3934_v62  ;;  %v3828_v62 = vpop.permute.xlu0 %3827  ;;  %v3924_v63 = vpop.permute.xlu1 %3923 }
 0xa86   : > { %4202 = vmatprep.subr.mxu1 %v16007_v20 }
 0xa89   : > { %8504 = vmatpush2.xpose.msk.msra.mxu1 %vm1500_vm2, %v3932_v34  ;;  %v3922_v34 = vpop.permute.xlu0 %3921 }
 0xa8a   : > { %4204 = vmatprep.subr.mxu1 %v16007_v20 }
 0xa8d   : > { %8505 = vmatpush2.xpose.msk.msra.mxu1 %vm1500_vm2, %v3930_v43  ;;  %v4583_v43 = vrot.slane %v12755_v39, 4 }
 0xa8e   : > { %4206 = vmatprep.subr.mxu1 %v16007_v20 }
 0xa91   : > { %8506 = vmatpush2.xpose.msk.msra.mxu1 %vm1500_vm2, %v3928_v6  ;;  %v3824_v6 = vpop.permute.xlu0 %3823 }
 0xa92   : > { %4208 = vmatprep.subr.mxu1 %v16007_v20 }
 0xa95   : > { %8507 = vmatpush2.xpose.msk.msra.mxu1 %vm1500_vm2, %v3926_v42 }
 0xa96   : > { %4210 = vmatprep.subr.mxu1 %v16007_v20 }
 0xa99   : > { %8508 = vmatpush2.xpose.msk.msra.mxu1 %vm1500_vm2, %v3924_v63 }
 0xa9a   : > { %4212 = vmatprep.subr.mxu1 %v16007_v20 }
 0xa9d   : > { %8509 = vmatpush2.xpose.msk.msra.mxu1 %vm1500_vm2, %v3922_v34 }
 0xa9e   : > { %9923 = vmatprep.subr.mxu1 %v16007_v20 }
 0xaa0   : > { %8510 = vmatmul.mubr.msk.f32.vlgmr.msra.gmra.mxu1 %vm1500_vm2, %v3824_v6 }
 0xaa1   : > { %9924 = vmatpush3.msk.msra.mxu1 %vm1868_vm3, %v4583_v43  ;;  %9925 = vmatprep.mubr.msk.f32.mxu1 %vm10140_vm0, %v16007_v20 }
 0xaa6   : > { %v9143_v42 = vpop.f32.mrf.mxu1 }
 0xaa8   : > { %v9144_v51 = vpop.f32.mrf.mxu1 }
 0xaa9   : > { %v9145_v5 = vadd.f32 %v9144_v51, %v9143_v42  ;;  %v4313_v51 = vpop.permute.xlu0 %4312  ;;  %v16334_v42 = vld [vmem:[#allocation127_spill] sm:$0xff] }
 0xaad   : > { %v4281_v39 = vpop.permute.xlu0 %4280 }
 0xae4   : > { %v3742_v63 = vpop.f32.mrf.mxu1 }
 0xae5   : > { %v3743_v4 = vadd.f32 %v9145_v5, %v3742_v63 }
 0xae6   : > { %v3744_v30 = vpop.f32.mrf.mxu1 }
 0xae7   : > { %9921 = vmatmul.mubr.msk.f32.vlgmr.msra.gmra.mxu0 %vm1500_vm2, %v3743_v4  ;;  %v3858_v30 = vpop.permute.xlu1 %3857  ;;  %v4311_v4 = vpop.permute.xlu0 %4310 }
 0xae8   : > { %9149 = vmatpush3.xpose.msk.msra.mxu0 %vm1500_vm2, %v13030_v28  ;;  %9180 = vmatprep.mubr.msk.f32.mxu0 %vm1500_vm2, %v3824_v6 }
 0xae9   : > { %9150 = vmatprep.subr.msk.mxu0 %vm1500_vm2, %v13065_v50 }
 0xaeb   : > { %v3826_v5 = vpop.permute.xlu1 %3825 }
 0xaec   : > { %9151 = vmatpush3.xpose.msk.msra.mxu0 %vm1500_vm2, %v13069_v23 }
 0xaed   : > { %9152 = vmatprep.subr.msk.mxu0 %vm1500_vm2, %v13043_v0 }
 0xaf0   : > { %9153 = vmatpush3.xpose.msk.msra.mxu0 %vm1500_vm2, %v13053_v19 }
 0xaf1   : > { %9154 = vmatprep.subr.msk.mxu0 %vm1500_vm2, %v13078_v25  ;;  %v16325_v25 = vld [vmem:[#allocation60_spill] sm:$0xff] }
 0xaf4   : > { %9155 = vmatpush3.xpose.msk.msra.mxu0 %vm1500_vm2, %v13083_v18  ;;  %v16327_v18 = vld [vmem:[#allocation35_spill] sm:$0xff] }
 0xaf5   : > { %9156 = vmatprep.subr.msk.mxu0 %vm1500_vm2, %v13063_v33 }
 0xaf8   : > { %9157 = vmatpush3.xpose.msk.msra.mxu0 %vm1500_vm2, %v13071_v7 }
 0xaf9   : > { %9158 = vmatprep.subr.msk.mxu0 %vm1500_vm2, %v13094_v53 }
 0xafc   : > { %9159 = vmatpush3.xpose.msk.msra.mxu0 %vm1500_vm2, %v13098_v16  ;;  %v16329_v16 = vld [vmem:[#allocation117_spill] sm:$0xff] }
 0xafd   : > { %9160 = vmatprep.subr.msk.mxu0 %vm1500_vm2, %v13085_v3 }
 0xb00   : > { %9161 = vmatpush3.xpose.msk.msra.mxu0 %vm1500_vm2, %v13092_v52  ;;  %v16328_v52 = vld [vmem:[#allocation115_spill] sm:$0xff] }
 0xb01   : > { %9162 = vmatprep.subr.msk.mxu0 %vm1500_vm2, %v13107_v1 }
 0xb04   : > { %9163 = vmatpush3.xpose.msk.msra.mxu0 %vm1500_vm2, %v13112_v54  ;;  %v16331_v54 = vld [vmem:[#allocation121_spill] sm:$0xff] }
 0xb05   : > { %9164 = vmatprep.subr.msk.mxu0 %vm1500_vm2, %v13105_v55  ;;  %v16330_v55 = vld [vmem:[#allocation119_spill] sm:$0xff] }
 0xb08   : > { %9165 = vmatpush3.xpose.msk.msra.mxu0 %vm1500_vm2, %v13114_v26 }
 0xb09   : > { %9166 = vmatprep.subr.msk.mxu0 %vm1500_vm2, %v13123_v41  ;;  %v16332_v41 = vld [vmem:[#allocation123_spill] sm:$0xff] }
 0xb0c   : > { %9167 = vmatpush3.xpose.msk.msra.mxu0 %vm1500_vm2, %v13130_v36 }
 0xb0d   : > { %9168 = vmatprep.subr.msk.mxu0 %vm1500_vm2, %v13125_v58  ;;  %v16324_v58 = vld [vmem:[#allocation58_spill] sm:$0xff] }
 0xb0e   : > { %v2983_v26 = vadd.f32 %v16324_v58, %v12662_v10  ;;  %v16326_v10 = vld [vmem:[#allocation41_spill] sm:$0xff]  ;;  %v16337_v58 = vld [vmem:[#allocation70_spill] sm:$0xff] }
 0xb10   : > { %9169 = vmatpush3.xpose.msk.msra.mxu0 %vm1500_vm2, %v13133_v56  ;;  %v16333_v56 = vld [vmem:[#allocation125_spill] sm:$0xff] }
 0xb11   : > { %9170 = vmatprep.subr.msk.mxu0 %vm1500_vm2, %v13140_v12 }
 0xb14   : > { %9171 = vmatpush3.xpose.msk.msra.mxu0 %vm1500_vm2, %v3834_v46 }
 0xb15   : > { %9172 = vmatprep.subr.msk.mxu0 %vm1500_vm2, %v13143_v59 }
 0xb18   : > { %9173 = vmatpush3.xpose.msk.msra.mxu0 %vm1500_vm2, %v13147_v49  ;;  %v4279_v49 = vpop.permute.xlu0 %4278 }
 0xb19   : > { %9174 = vmatprep.subr.msk.mxu0 %vm1500_vm2, %v3862_v48 }
 0xb1c   : > { %9175 = vmatpush3.xpose.msk.msra.mxu0 %vm1500_vm2, %v3830_v32  ;;  %v4277_v36 = vpop.permute.xlu0 %4276 }
 0xb1d   : > { %9176 = vmatprep.subr.msk.mxu0 %vm1500_vm2, %v3860_v8 }
 0xb20   : > { %9177 = vmatpush3.xpose.msk.msra.mxu0 %vm1500_vm2, %v3828_v62 }
 0xb21   : > { %9178 = vmatprep.subr.msk.mxu0 %vm1500_vm2, %v3858_v30 }
 0xb24   : > { %9179 = vmatpush3.xpose.msk.msra.mxu0 %vm1500_vm2, %v3826_v5  ;;  %v16336_v5 = vld [vmem:[#allocation61_spill] sm:$0xff] }
 0xb25   : > { %9182 = vmatprep.subr.mxu0 %v4313_v51  ;;  %v4271_v51 = vpop.permute.xlu0 %4270 }
 0xb27   : > { %9181 = vmatmul.mubr.msk.f32.vlgmr.msra.gmra.mxu0 %vm1500_vm2, %v3824_v6 }
 0xb28   : > { %9183 = vmatpush3.msra.mxu0 %v4281_v39  ;;  %v16335_v39 = vld [vmem:[#allocation57_spill] sm:$0xff] }
 0xb29   : > { %9184 = vmatprep.subr.mxu0 %v4311_v4  ;;  %v4269_v4 = vpop.permute.xlu0 %4268 }
 0xb2a   : > { %9185 = vmatpush3.msra.mxu0 %v4279_v49 }
 0xb60   : > { %v4216_v28 = vpop.f32.mrf.mxu1 }
 0xb62   : > { %v4218_v3 = vpop.f32.mrf.mxu1 }
 0xb63   : > { %v4221_v0 = vsel %vm1835_vm4, %v4218_v3, -inf }
 0xb64   : > { %v4223_v50 = vmax.f32 %v4216_v28, %v4221_v0  ;;  %v16338_v0 = vld [vmem:[#allocation78_spill] sm:$0xff] }
 0xba7   : > { %v3818_v1 = vpop.f32.mrf.mxu0 }
 0xba8   : > { %v13230_v8 = vadd.f32 %v3818_v1, %v2983_v26  ;;  %v4267_v1 = vpop.permute.xlu0 %4266 }
 0xba9   : > { %v9922_v53 = vpop.f32.mrf.mxu0 }
 0xbe7   : > { %v4145_v19 = vpop.f32.mrf.mxu0 }
 0xbe9   : > { %v4147_v33 = vpop.f32.mrf.mxu0 }
 0xbea   : > { %v4222_v23 = vmax.f32 %v4145_v19, %v4147_v33 }
 0xbec   : > { %v4224_v7 = vmax.f32 %v4222_v23, %v4223_v50 }
 0xbee   : > { %4225 = vmax.xlane.f32.xlu1 %v4224_v7  ;;  %v4265_v7 = vpop.permute.xlu0 %4264 }
 0xbff   : > { %4308 = vrot.lane.b32.xlu1 %v16133_v38, %s10143_s30 }
 0xc03   : > { %4306 = vrot.lane.b32.xlu1 %v16325_v25, %s10143_s30 }
 0xc07   : > { %4274 = vrot.lane.b32.xlu1 %v16135_v60, %s10143_s30 }
 0xc0b   : > { %4304 = vrot.lane.b32.xlu1 %v16136_v11, %s10143_s30 }
 0xc0f   : > { %4272 = vrot.lane.b32.xlu1 %v16137_v22, %s10143_s30 }
 0xc13   : > { %4302 = vrot.lane.b32.xlu1 %v16138_v27, %s10143_s30 }
 0xc17   : > { %4300 = vrot.lane.b32.xlu1 %v16139_v13, %s10143_s30 }
 0xc1b   : > { %4298 = vrot.lane.b32.xlu1 %v16140_v17, %s10143_s30 }
 0xc1f   : > { %4296 = vrot.lane.b32.xlu1 %v16141_v44, %s10143_s30 }
 0xc23   : > { %4294 = vrot.lane.b32.xlu1 %v16142_v40, %s10143_s30 }
 0xc27   : > { %4292 = vrot.lane.b32.xlu1 %v16143_v14, %s10143_s30 }
 0xc2b   : > { %4290 = vrot.lane.b32.xlu1 %v16144_v57, %s10143_s30 }
 0xc2f   : > { %4288 = vrot.lane.b32.xlu1 %v16145_v37, %s10143_s30 }
 0xc33   : > { %4286 = vrot.lane.b32.xlu1 %v16147_v47, %s10143_s30 }
 0xc37   : > { %4284 = vrot.lane.b32.xlu1 %v16148_v45, %s10143_s30 }
 0xc3b   : > { %4282 = vrot.lane.b32.xlu1 %v16149_v24, %s10143_s30 }
 0xc3f   : > { %4344 = vrot.lane.b32.xlu1 %v11620_v9, %s10143_s30 }
 0xc43   : > { %4340 = vrot.lane.b32.xlu1 %v11633_v15, %s10143_s30 }
 0xc47   : > { %4336 = vrot.lane.b32.xlu1 %v11647_v31, %s10143_s30 }
 0xc4b   : > { %4332 = vrot.lane.b32.xlu1 %v11661_v21, %s10143_s30 }
 0xc4f   : > { %4328 = vrot.lane.b32.xlu1 %v11675_v61, %s10143_s30 }
 0xc53   : > { %4324 = vrot.lane.b32.xlu1 %v11687_v35, %s10143_s30 }
 0xc57   : > { %4320 = vrot.lane.b32.xlu1 %v16224_v2, %s10143_s30 }
 0xc5b   : > { %4316 = vrot.lane.b32.xlu1 %v16326_v10, %s10143_s30 }
 0xc5f   : > { %4374 = vrot.lane.b32.xlu1 %v16327_v18, %s10143_s30 }
 0xc63   : > { %4370 = vrot.lane.b32.xlu1 %v16328_v52, %s10143_s30 }
 0xc67   : > { %4366 = vrot.lane.b32.xlu1 %v16329_v16, %s10143_s30  ;;  %v16404_v16 = vld [vmem:[#allocation24_spill] sm:$0xff] }
 0xc6b   : > { %4362 = vrot.lane.b32.xlu1 %v16330_v55, %s10143_s30  ;;  %v16402_v55 = vld [vmem:[#allocation96_spill] sm:$0xff] }
 0xc6f   : > { %4358 = vrot.lane.b32.xlu1 %v16331_v54, %s10143_s30  ;;  %v16401_v54 = vld [vmem:[#allocation71_spill] sm:$0xff] }
 0xc73   : > { %4354 = vrot.lane.b32.xlu1 %v16332_v41, %s10143_s30  ;;  %v16399_v41 = vld [vmem:[#allocation68_spill] sm:$0xff] }
 0xc77   : > { %4350 = vrot.lane.b32.xlu1 %v16333_v56, %s10143_s30  ;;  %v4226_v12 = vpop.xlane.xlu1 %4225  ;;  %v16396_v56 = vld [vmem:[#allocation56_spill] sm:$0xff] }
 0xc78   : > { %v4227_v59 = vsub.f32 %v4145_v19, %v4226_v12  ;;  %v4228_v46 = vsub.f32 %v4147_v33, %v4226_v12  ;;  %v4229_v48 = vsub.f32 %v4216_v28, %v4226_v12  ;;  %v4230_v32 = vsub.f32 %v4218_v3, %v4226_v12  ;;  %v16339_v12 = vld [vmem:[#allocation89_spill] sm:$0xff] }
 0xc7a   : > { %v4231_v62 = vmul.f32 1.442695, %v4227_v59  ;;  %v4233_v34 = vmul.f32 1.442695, %v4228_v46  ;;  %v4235_v43 = vmul.f32 1.442695, %v4229_v48 }
 0xc7b   : > { %v4237_v6 = vmul.f32 1.442695, %v4230_v32  ;;  %4346 = vrot.lane.b32.xlu1 %v16334_v42, %s10143_s30  ;;  %v4309_v63 = vpop.permute.xlu1 %4308  ;;  %v16340_v48 = vld [vmem:[#allocation92_spill] sm:$0xff]  ;;  %v16394_v42 = vld [vmem:[#allocation55_spill] sm:$0xff] }
 0xc7c   : > { %10027 = vpow2.f32 %v4231_v62  ;;  %9186 = vmatprep.subr.mxu0 %v4309_v63  ;;  %v4263_v62 = vpop.permute.xlu0 %4262  ;;  %v16342_v63 = vld [vmem:[#allocation14_spill] sm:$0xff] }
 0xc7d   : > { %10029 = vpow2.f32 %v4233_v34  ;;  %9187 = vmatpush3.msra.mxu0 %v4277_v36  ;;  %v16341_v34 = vld [vmem:[#allocation93_spill] sm:$0xff] }
 0xc7e   : > { %10031 = vpow2.f32 %v4235_v43 }
 0xc7f   : > { %10033 = vpow2.f32 %v4237_v6  ;;  %4754 = vrot.lane.b32.xlu1 %v16335_v39, %s10144_s15  ;;  %v4307_v30 = vpop.permute.xlu1 %4306  ;;  %v16392_v39 = vld [vmem:[#allocation54_spill] sm:$0xff] }
 0xc80   : > { %9188 = vmatprep.subr.mxu0 %v4307_v30  ;;  %v4261_v6 = vpop.permute.xlu0 %4260 }
 0xc83   : > { %4750 = vrot.lane.b32.xlu1 %v16336_v5, %s10144_s15  ;;  %v4275_v49 = vpop.permute.xlu1 %4274  ;;  %v16390_v5 = vld [vmem:[#allocation51_spill] sm:$0xff] }
 0xc84   : > { %9189 = vmatpush3.msra.mxu0 %v4275_v49 }
 0xc87   : > { %4746 = vrot.lane.b32.xlu1 %v16337_v58, %s10144_s15  ;;  %v4305_v26 = vpop.permute.xlu1 %4304  ;;  %v16388_v58 = vld [vmem:[#allocation13_spill] sm:$0xff] }
 0xc88   : > { %9190 = vmatprep.subr.mxu0 %v4305_v26  ;;  %v4259_v26 = vpop.permute.xlu0 %4258 }
 0xc89   : > { %v13303_v53 = vpop.eup %10027 }
 0xc8a   : > { %v13305_v28 = vpop.eup %10029 }
 0xc8b   : > { %v13307_v3 = vpop.eup %10031  ;;  %4742 = vrot.lane.b32.xlu1 %v16338_v0, %s10144_s15  ;;  %v4273_v19 = vpop.permute.xlu1 %4272  ;;  %v4239_v33 = vadd.f32 %v13305_v28, %v13303_v53  ;;  %v16386_v0 = vld [vmem:[#allocation108_spill] sm:$0xff] }
 0xc8c   : > { %v13313_v50 = vpop.eup %10033  ;;  %9191 = vmatpush3.msra.mxu0 %v4273_v19 }
 0xc8d   : > { %v4240_v23 = vadd.f32 %v13307_v3, %v4239_v33  ;;  %v4241_v36 = vsel %vm1835_vm4, %v13313_v50, 0.0  ;;  %v16345_v33 = vld [vmem:[#allocation109_spill] sm:$0xff] }
 0xc8f   : > { %4738 = vrot.lane.b32.xlu1 %v16339_v12, %s10144_s15  ;;  %v4303_v59 = vpop.permute.xlu1 %4302  ;;  %v4242_v46 = vadd.f32 %v4241_v36, %v4240_v23  ;;  %v16346_v23 = vld [vmem:[#allocation18_spill] sm:$0xff]  ;;  %v16384_v12 = vld [vmem:[#allocation48_spill] sm:$0xff] }
 0xc90   : > { %9192 = vmatprep.subr.mxu0 %v4303_v59  ;;  %v16347_v36 = vld [vmem:[#allocation110_spill] sm:$0xff]  ;;  %v16348_v59 = vld [vmem:[#allocation19_spill] sm:$0xff] }
 0xc91   : > { %4243 = vadd.xlane.f32.xlu0 %v4242_v46  ;;  %9193 = vmatpush3.msra.mxu0 %v4271_v51  ;;  %v16343_v51 = vld [vmem:[#allocation15_spill] sm:$0xff] }
 0xc93   : > { %4734 = vrot.lane.b32.xlu1 %v16340_v48, %s10144_s15  ;;  %v4301_v32 = vpop.permute.xlu1 %4300  ;;  %v16382_v48 = vld [vmem:[#allocation46_spill] sm:$0xff] }
 0xc94   : > { %9194 = vmatprep.subr.mxu0 %v4301_v32 }
 0xc95   : > { %9195 = vmatpush3.msra.mxu0 %v4269_v4  ;;  %v16344_v4 = vld [vmem:[#allocation95_spill] sm:$0xff] }
 0xc97   : > { %4730 = vrot.lane.b32.xlu1 %v16341_v34, %s10144_s15  ;;  %v4299_v43 = vpop.permute.xlu1 %4298  ;;  %v16380_v34 = vld [vmem:[#allocation106_spill] sm:$0xff] }
 0xc98   : > { %9196 = vmatprep.subr.mxu0 %v4299_v43  ;;  %v16350_v43 = vld [vmem:[#allocation97_spill] sm:$0xff] }
 0xc99   : > { %9197 = vmatpush3.msra.mxu0 %v4267_v1  ;;  %v4257_v1 = vpop.permute.xlu0 %4256 }
 0xc9b   : > { %4724 = vrot.lane.b32.xlu1 %v16342_v63, %s10144_s15  ;;  %v4297_v30 = vpop.permute.xlu1 %4296  ;;  %v16378_v63 = vld [vmem:[#allocation42_spill] sm:$0xff] }
 0xc9c   : > { %9198 = vmatprep.subr.mxu0 %v4297_v30 }
 0xc9d   : > { %9199 = vmatpush3.msra.mxu0 %v4265_v7  ;;  %v4255_v32 = vpop.permute.xlu0 %4254 }
 0xc9f   : > { %4692 = vrot.lane.b32.xlu1 %v16343_v51, %s10144_s15  ;;  %v4295_v49 = vpop.permute.xlu1 %4294  ;;  %v16374_v51 = vld [vmem:[#allocation104_spill] sm:$0xff] }
 0xca0   : > { %9200 = vmatprep.subr.mxu0 %v4295_v49  ;;  %v16351_v49 = vld [vmem:[#allocation112_spill] sm:$0xff] }
 0xca1   : > { %9201 = vmatpush3.msra.mxu0 %v4263_v62  ;;  %v16349_v62 = vld [vmem:[#allocation111_spill] sm:$0xff]  ;;  %v4253_v30 = vpop.permute.xlu0 %4252 }
 0xca3   : > { %4786 = vrot.lane.b32.xlu1 %v16344_v4, %s10144_s15  ;;  %v4293_v19 = vpop.permute.xlu1 %4292  ;;  %v16370_v4 = vld [vmem:[#allocation34_spill] sm:$0xff] }
 0xca4   : > { %9202 = vmatprep.subr.mxu0 %v4293_v19 }
 0xca5   : > { %9203 = vmatpush3.msra.mxu0 %v4261_v6 }
 0xca7   : > { %4342 = vrot.lane.b32.xlu0 %v16345_v33, %s10143_s30  ;;  %4720 = vrot.lane.b32.xlu1 %v16346_v23, %s10144_s15  ;;  %v4291_v7 = vpop.permute.xlu1 %4290  ;;  %v16366_v23 = vld [vmem:[#allocation31_spill] sm:$0xff] }
 0xca8   : > { %9204 = vmatprep.subr.mxu0 %v4291_v7  ;;  %v16354_v7 = vld [vmem:[#allocation23_spill] sm:$0xff] }
 0xca9   : > { %9205 = vmatpush3.msra.mxu0 %v4259_v26  ;;  %v16352_v26 = vld [vmem:[#allocation22_spill] sm:$0xff] }
 0xcab   : > { %4338 = vrot.lane.b32.xlu0 %v16347_v36, %s10143_s30  ;;  %4688 = vrot.lane.b32.xlu1 %v16348_v59, %s10144_s15  ;;  %v4289_v46 = vpop.permute.xlu1 %4288  ;;  %v16362_v59 = vld [vmem:[#allocation100_spill] sm:$0xff] }
 0xcac   : > { %9206 = vmatprep.subr.mxu0 %v4289_v46  ;;  %v16376_v36 = vld [vmem:[#allocation40_spill] sm:$0xff] }
 0xcad   : > { %9207 = vmatpush3.msra.mxu0 %v4257_v1  ;;  %v16353_v1 = vld [vmem:[#allocation113_spill] sm:$0xff] }
 0xcaf   : > { %4334 = vrot.lane.b32.xlu0 %v16349_v62, %s10143_s30  ;;  %4782 = vrot.lane.b32.xlu1 %v16350_v43, %s10144_s15  ;;  %v4287_v6 = vpop.permute.xlu1 %4286  ;;  %v4251_v43 = vpop.permute.xlu0 %4250  ;;  %v16372_v62 = vld [vmem:[#allocation36_spill] sm:$0xff] }
 0xcb0   : > { %9208 = vmatprep.subr.mxu0 %v4287_v6  ;;  %v16356_v6 = vld [vmem:[#allocation99_spill] sm:$0xff] }
 0xcb1   : > { %9209 = vmatpush3.msra.mxu0 %v4255_v32  ;;  %v16355_v32 = vld [vmem:[#allocation50_spill] sm:$0xff] }
 0xcb3   : > { %4330 = vrot.lane.b32.xlu0 %v16351_v49, %s10143_s30  ;;  %4716 = vrot.lane.b32.xlu1 %v16352_v26, %s10144_s15  ;;  %v4285_v19 = vpop.permute.xlu1 %4284  ;;  %v16358_v26 = vld [vmem:[#allocation26_spill] sm:$0xff] }
 0xcb4   : > { %9210 = vmatprep.subr.mxu0 %v4285_v19  ;;  %v16368_v49 = vld [vmem:[#allocation102_spill] sm:$0xff] }
 0xcb5   : > { %9211 = vmatpush3.msra.mxu0 %v4253_v30  ;;  %v16357_v30 = vld [vmem:[#allocation44_spill] sm:$0xff] }
 0xcb7   : > { %4326 = vrot.lane.b32.xlu0 %v16353_v1, %s10143_s30  ;;  %4684 = vrot.lane.b32.xlu1 %v16354_v7, %s10144_s15  ;;  %v4283_v46 = vpop.permute.xlu1 %4282  ;;  %v16364_v1 = vld [vmem:[#allocation30_spill] sm:$0xff] }
 0xcb8   : > { %9212 = vmatprep.subr.mxu0 %v4283_v46  ;;  %v16360_v46 = vld [vmem:[#allocation27_spill] sm:$0xff] }
 0xcb9   : > { %9213 = vmatpush3.msra.mxu0 %v4251_v43  ;;  %v16359_v43 = vld [vmem:[#allocation38_spill] sm:$0xff] }
 0xcba   : > { %4513 = vmatprep.subr.mxu0 %v16007_v20 }
 0xcbb   : > { %4322 = vrot.lane.b32.xlu0 %v16355_v32, %s10143_s30  ;;  %4778 = vrot.lane.b32.xlu1 %v16356_v6, %s10144_s15  ;;  %v13355_v19 = vpop.permute.xlu1 %4344  ;;  %v16361_v6 = vld [vmem:[#allocation114_spill] sm:$0xff] }
 0xcbf   : > { %4318 = vrot.lane.b32.xlu0 %v16357_v30, %s10143_s30  ;;  %4712 = vrot.lane.b32.xlu1 %v16358_v26, %s10144_s15  ;;  %v13361_v7 = vpop.permute.xlu1 %4340  ;;  %v16363_v26 = vld [vmem:[#allocation116_spill] sm:$0xff] }
 0xcc3   : > { %4314 = vrot.lane.b32.xlu0 %v16359_v43, %s10143_s30  ;;  %4680 = vrot.lane.b32.xlu1 %v16360_v46, %s10144_s15  ;;  %v13367_v32 = vpop.permute.xlu1 %4336  ;;  %v16365_v46 = vld [vmem:[#allocation118_spill] sm:$0xff] }
 0xcc7   : > { %4372 = vrot.lane.b32.xlu0 %v16361_v6, %s10143_s30  ;;  %4774 = vrot.lane.b32.xlu1 %v16362_v59, %s10144_s15  ;;  %v13373_v30 = vpop.permute.xlu1 %4332  ;;  %v16367_v59 = vld [vmem:[#allocation120_spill] sm:$0xff] }
 0xccb   : > { %4368 = vrot.lane.b32.xlu0 %v16363_v26, %s10143_s30  ;;  %4708 = vrot.lane.b32.xlu1 %v16364_v1, %s10144_s15  ;;  %v13379_v43 = vpop.permute.xlu1 %4328  ;;  %v16369_v1 = vld [vmem:[#allocation122_spill] sm:$0xff] }
 0xccf   : > { %4364 = vrot.lane.b32.xlu0 %v16365_v46, %s10143_s30  ;;  %4676 = vrot.lane.b32.xlu1 %v16366_v23, %s10144_s15  ;;  %v13385_v6 = vpop.permute.xlu1 %4324  ;;  %v16371_v23 = vld [vmem:[#allocation124_spill] sm:$0xff] }
 0xcd3   : > { %4360 = vrot.lane.b32.xlu0 %v16367_v59, %s10143_s30  ;;  %4770 = vrot.lane.b32.xlu1 %v16368_v49, %s10144_s15  ;;  %v13391_v26 = vpop.permute.xlu1 %4320  ;;  %v16373_v49 = vld [vmem:[#allocation126_spill] sm:$0xff] }
 0xcd7   : > { %4356 = vrot.lane.b32.xlu0 %v16369_v1, %s10143_s30  ;;  %4704 = vrot.lane.b32.xlu1 %v16370_v4, %s10144_s15  ;;  %v13397_v46 = vpop.permute.xlu1 %4316  ;;  %v16375_v4 = vld [vmem:[#allocation53_spill] sm:$0xff] }
 0xcdb   : > { %4352 = vrot.lane.b32.xlu0 %v16371_v23, %s10143_s30  ;;  %4672 = vrot.lane.b32.xlu1 %v16372_v62, %s10144_s15  ;;  %v13403_v59 = vpop.permute.xlu1 %4374  ;;  %v16377_v62 = vld [vmem:[#allocation62_spill] sm:$0xff] }
 0xcdf   : > { %4348 = vrot.lane.b32.xlu0 %v16373_v49, %s10143_s30  ;;  %4766 = vrot.lane.b32.xlu1 %v16374_v51, %s10144_s15  ;;  %v13409_v1 = vpop.permute.xlu1 %4370  ;;  %v16379_v51 = vld [vmem:[#allocation66_spill] sm:$0xff] }
 0xce3   : > { %4756 = vrot.lane.b32.xlu0 %v16375_v4, %s10144_s15  ;;  %4700 = vrot.lane.b32.xlu1 %v16376_v36, %s10144_s15  ;;  %v13415_v23 = vpop.permute.xlu1 %4366  ;;  %v16381_v36 = vld [vmem:[#allocation74_spill] sm:$0xff] }
 0xce7   : > { %4752 = vrot.lane.b32.xlu0 %v16377_v62, %s10144_s15  ;;  %4668 = vrot.lane.b32.xlu1 %v16378_v63, %s10144_s15  ;;  %v13421_v49 = vpop.permute.xlu1 %4362  ;;  %v16383_v63 = vld [vmem:[#allocation82_spill] sm:$0xff] }
 0xceb   : > { %4748 = vrot.lane.b32.xlu0 %v16379_v51, %s10144_s15  ;;  %4762 = vrot.lane.b32.xlu1 %v16380_v34, %s10144_s15  ;;  %v13427_v4 = vpop.permute.xlu1 %4358  ;;  %v16385_v34 = vld [vmem:[#allocation86_spill] sm:$0xff] }
 0xcef   : > { %4744 = vrot.lane.b32.xlu0 %v16381_v36, %s10144_s15  ;;  %4696 = vrot.lane.b32.xlu1 %v16382_v48, %s10144_s15  ;;  %v13433_v62 = vpop.permute.xlu1 %4354  ;;  %v16387_v48 = vld [vmem:[#allocation88_spill] sm:$0xff] }
 0xcf3   : > { %4740 = vrot.lane.b32.xlu0 %v16383_v63, %s10144_s15  ;;  %4664 = vrot.lane.b32.xlu1 %v16384_v12, %s10144_s15  ;;  %v13439_v51 = vpop.permute.xlu1 %4350  ;;  %v16389_v12 = vld [vmem:[#allocation90_spill] sm:$0xff] }
 0xcf7   : > { %4736 = vrot.lane.b32.xlu0 %v16385_v34, %s10144_s15  ;;  %4758 = vrot.lane.b32.xlu1 %v16386_v0, %s10144_s15  ;;  %v13445_v36 = vpop.permute.xlu1 %4346  ;;  %v16391_v0 = vld [vmem:[#allocation91_spill] sm:$0xff] }
 0xcfb   : > { %4732 = vrot.lane.b32.xlu0 %v16387_v48, %s10144_s15  ;;  %4660 = vrot.lane.b32.xlu1 %v16388_v58, %s10144_s15  ;;  %v13451_v63 = vpop.permute.xlu1 %4754  ;;  %v16393_v58 = vld [vmem:[#allocation16_spill] sm:$0xff] }
 0xcff   : > { %4728 = vrot.lane.b32.xlu0 %v16389_v12, %s10144_s15  ;;  %5149 = vrot.lane.b32.xlu1 %v16390_v5, %s10144_s15  ;;  %v13457_v34 = vpop.permute.xlu1 %4750  ;;  %v16395_v5 = vld [vmem:[#allocation17_spill] sm:$0xff] }
 0xd03   : > { %4726 = vrot.lane.b32.xlu0 %v16391_v0, %s10144_s15  ;;  %5117 = vrot.lane.b32.xlu1 %v16392_v39, %s10144_s15  ;;  %v13463_v48 = vpop.permute.xlu1 %4746  ;;  %v16397_v39 = vld [vmem:[#allocation94_spill] sm:$0xff] }
 0xd07   : > { %4722 = vrot.lane.b32.xlu0 %v16393_v58, %s10144_s15  ;;  %5147 = vrot.lane.b32.xlu1 %v16394_v42, %s10144_s15  ;;  %v13469_v12 = vpop.permute.xlu1 %4742  ;;  %v16398_v42 = vld [vmem:[#allocation20_spill] sm:$0xff] }
 0xd0b   : > { %4690 = vrot.lane.b32.xlu0 %v16395_v5, %s10144_s15  ;;  %5115 = vrot.lane.b32.xlu1 %v16396_v56, %s10144_s15  ;;  %v13475_v0 = vpop.permute.xlu1 %4738  ;;  %v16400_v56 = vld [vmem:[#allocation21_spill] sm:$0xff] }
 0xd0f   : > { %4784 = vrot.lane.b32.xlu0 %v16397_v39, %s10144_s15  ;;  %5143 = vrot.lane.b32.xlu1 %v16325_v25, %s10144_s15  ;;  %v13481_v58 = vpop.permute.xlu1 %4734 }
 0xd13   : > { %4718 = vrot.lane.b32.xlu0 %v16398_v42, %s10144_s15  ;;  %5107 = vrot.lane.b32.xlu1 %v16399_v41, %s10144_s15  ;;  %v13487_v5 = vpop.permute.xlu1 %4730  ;;  %v16403_v42 = vld [vmem:[#allocation73_spill] sm:$0xff] }
 0xd17   : > { %4686 = vrot.lane.b32.xlu0 %v16400_v56, %s10144_s15  ;;  %5105 = vrot.lane.b32.xlu1 %v16401_v54, %s10144_s15  ;;  %v4725_v39 = vpop.permute.xlu1 %4724  ;;  %v16405_v56 = vld [vmem:[#allocation76_spill] sm:$0xff]  ;;  %v16406_v54 = vld [vmem:[#allocation25_spill] sm:$0xff] }
 0xd18   : > { %9219 = vmatprep.subr.msk.mxu1 %vm1500_vm2, %v4725_v39  ;;  %v16407_v39 = vld [vmem:[#allocation98_spill] sm:$0xff] }
 0xd1a   : > { %v4244_v25 = vpop.xlane.xlu0 %4243 }
 0xd1b   : > { %10035 = vrcp.f32 %v4244_v25  ;;  %4780 = vrot.lane.b32.xlu0 %v16402_v55, %s10144_s15  ;;  %5103 = vrot.lane.b32.xlu1 %v16403_v42, %s10144_s15  ;;  %v16408_v42 = vld [vmem:[#allocation81_spill] sm:$0xff] }
 0xd1e   : > { %v4343_v41 = vpop.permute.xlu0 %4342 }
 0xd1f   : > { %4714 = vrot.lane.b32.xlu0 %v16404_v16, %s10144_s15  ;;  %5101 = vrot.lane.b32.xlu1 %v16405_v56, %s10144_s15 }
 0xd22   : > { %v4339_v52 = vpop.permute.xlu0 %4338 }
 0xd23   : > { %4682 = vrot.lane.b32.xlu0 %v16406_v54, %s10144_s15  ;;  %5099 = vrot.lane.b32.xlu1 %v16305_v29, %s10144_s15  ;;  %v16409_v54 = vld [vmem:[#allocation28_spill] sm:$0xff] }
 0xd26   : > { %v4335_v25 = vpop.permute.xlu0 %4334 }
 0xd27   : > { %4776 = vrot.lane.b32.xlu0 %v16407_v39, %s10144_s15  ;;  %5097 = vrot.lane.b32.xlu1 %v16408_v42, %s10144_s15  ;;  %v16410_v39 = vld [vmem:[#allocation84_spill] sm:$0xff] }
 0xd28   : > { %v13510_v55 = vpop.eup %10035 }
 0xd29   : > { %v4247_v16 = vmul.f32 %v13510_v55, %v13305_v28  ;;  %v4246_v56 = vmul.f32 %v13510_v55, %v13303_v53  ;;  %v4249_v29 = vmul.f32 %v13510_v55, %v13313_v50  ;;  %v16411_v53 = vld [vmem:[#allocation29_spill] sm:$0xff] }
 0xd2a   : > { %v4331_v18 = vpop.permute.xlu0 %4330 }
 0xd2b   : > { %4710 = vrot.lane.b32.xlu0 %v16409_v54, %s10144_s15  ;;  %4507 = vmatprep.mubr.f32.mxu0 %v4247_v16  ;;  %v16412_v16 = vld [vmem:[#allocation87_spill] sm:$0xff] }
 0xd2c   : > { %5095 = vrot.lane.b32.xlu1 %v16410_v39, %s10144_s15  ;;  %4508 = vmatmul.mubr.f32.vlgmr.msra.gmra.mxu0 %v4246_v56 }
 0xd2d   : > { %4514 = vmatpush1.msra.mxu0 %v13355_v19  ;;  %8512 = vmatprep.mubr.msk.f32.mxu0 %vm1835_vm4, %v4249_v29  ;;  %v16413_v29 = vld [vmem:[#allocation101_spill] sm:$0xff] }
 0xd2e   : > { %4515 = vmatprep.subr.mxu0 %v16007_v20  ;;  %v4327_v28 = vpop.permute.xlu0 %4326 }
 0xd2f   : > { %4516 = vmatpush1.msra.mxu0 %v4343_v41  ;;  %4678 = vrot.lane.b32.xlu0 %v16411_v53, %s10144_s15  ;;  %v16414_v41 = vld [vmem:[#allocation9_spill] sm:$0xff] }
 0xd30   : > { %4517 = vmatprep.subr.mxu0 %v16007_v20  ;;  %5093 = vrot.lane.b32.xlu1 %v16412_v16, %s10144_s15 }
 0xd31   : > { %4518 = vmatpush1.msra.mxu0 %v13361_v7  ;;  %v16415_v7 = vld [vmem:[#allocation32_spill] sm:$0xff] }
 0xd32   : > { %4519 = vmatprep.subr.mxu0 %v16007_v20  ;;  %v4323_v56 = vpop.permute.xlu0 %4322 }
 0xd33   : > { %4520 = vmatpush1.msra.mxu0 %v4339_v52  ;;  %4772 = vrot.lane.b32.xlu0 %v16413_v29, %s10144_s15  ;;  %v16416_v52 = vld [vmem:[#allocation8_spill] sm:$0xff] }
 0xd34   : > { %4521 = vmatprep.subr.mxu0 %v16007_v20  ;;  %5091 = vrot.lane.b32.xlu1 %v16414_v41, %s10144_s15 }
 0xd35   : > { %4522 = vmatpush1.msra.mxu0 %v13367_v32  ;;  %v16417_v32 = vld [vmem:[#allocation33_spill] sm:$0xff] }
 0xd36   : > { %4523 = vmatprep.subr.mxu0 %v16007_v20  ;;  %v4319_v50 = vpop.permute.xlu0 %4318 }
 0xd37   : > { %4524 = vmatpush1.msra.mxu0 %v4335_v25  ;;  %4706 = vrot.lane.b32.xlu0 %v16415_v7, %s10144_s15  ;;  %v16418_v25 = vld [vmem:[#allocation7_spill] sm:$0xff] }
 0xd38   : > { %4525 = vmatprep.subr.mxu0 %v16007_v20  ;;  %5089 = vrot.lane.b32.xlu1 %v16416_v52, %s10144_s15 }
 0xd39   : > { %4526 = vmatpush1.msra.mxu0 %v13373_v30  ;;  %v16419_v30 = vld [vmem:[#allocation103_spill] sm:$0xff] }
 0xd3a   : > { %4527 = vmatprep.subr.mxu0 %v16007_v20  ;;  %v4315_v19 = vpop.permute.xlu0 %4314 }
 0xd3b   : > { %4528 = vmatpush1.msra.mxu0 %v4331_v18  ;;  %4674 = vrot.lane.b32.xlu0 %v16417_v32, %s10144_s15 }
 0xd3c   : > { %4529 = vmatprep.subr.mxu0 %v16007_v20  ;;  %5087 = vrot.lane.b32.xlu1 %v16418_v25, %s10144_s15  ;;  %v16421_v25 = vld [vmem:[#allocation39_spill] sm:$0xff] }
 0xd3d   : > { %4530 = vmatpush1.msra.mxu0 %v13379_v43  ;;  %v16420_v43 = vld [vmem:[#allocation37_spill] sm:$0xff] }
 0xd3e   : > { %4531 = vmatprep.subr.mxu0 %v16007_v20  ;;  %v4373_v41 = vpop.permute.xlu0 %4372 }
 0xd3f   : > { %4532 = vmatpush1.msra.mxu0 %v4327_v28  ;;  %4768 = vrot.lane.b32.xlu0 %v16419_v30, %s10144_s15 }
 0xd40   : > { %4533 = vmatprep.subr.mxu0 %v16007_v20  ;;  %5179 = vrot.lane.b32.xlu1 %v16345_v33, %s10144_s15  ;;  %v16426_v33 = vld [vmem:[#allocation49_spill] sm:$0xff] }
 0xd41   : > { %4534 = vmatpush1.msra.mxu0 %v13385_v6 }
 0xd42   : > { %4535 = vmatprep.subr.mxu0 %v16007_v20  ;;  %v4369_v18 = vpop.permute.xlu0 %4368 }
 0xd43   : > { %4536 = vmatpush1.msra.mxu0 %v4323_v56  ;;  %4702 = vrot.lane.b32.xlu0 %v16420_v43, %s10144_s15  ;;  %v16422_v56 = vld [vmem:[#allocation105_spill] sm:$0xff] }
 0xd44   : > { %4537 = vmatprep.subr.mxu0 %v16007_v20 }
 0xd45   : > { %4538 = vmatpush1.msra.mxu0 %v13391_v26 }
 0xd46   : > { %4539 = vmatprep.subr.mxu0 %v16007_v20  ;;  %v4365_v28 = vpop.permute.xlu0 %4364 }
 0xd47   : > { %4540 = vmatpush1.msra.mxu0 %v4319_v50  ;;  %4670 = vrot.lane.b32.xlu0 %v16421_v25, %s10144_s15  ;;  %v16423_v50 = vld [vmem:[#allocation43_spill] sm:$0xff] }
 0xd48   : > { %4541 = vmatprep.subr.mxu0 %v16007_v20 }
 0xd49   : > { %4542 = vmatpush1.msra.mxu0 %v13397_v46 }
 0xd4a   : > { %4543 = vmatprep.subr.mxu0 %v16007_v20  ;;  %v4361_v6 = vpop.permute.xlu0 %4360 }
 0xd4b   : > { %4544 = vmatpush1.msra.mxu0 %v4315_v19  ;;  %4764 = vrot.lane.b32.xlu0 %v16422_v56, %s10144_s15  ;;  %v16424_v19 = vld [vmem:[#allocation45_spill] sm:$0xff] }
 0xd4c   : > { %4547 = vmatprep.subr.mxu0 %v16007_v20 }
 0xd4d   : > { %8511 = vmatpush2.msk.msra.mxu0 %vm1868_vm3, %v13403_v59 }
 0xd4e   : > { %4549 = vmatprep.subr.mxu0 %v16007_v20  ;;  %v4357_v26 = vpop.permute.xlu0 %4356 }
 0xd4f   : > { %4550 = vmatpush2.msra.mxu0 %v4373_v41  ;;  %4698 = vrot.lane.b32.xlu0 %v16423_v50, %s10144_s15  ;;  %v16425_v41 = vld [vmem:[#allocation107_spill] sm:$0xff] }
 0xd50   : > { %4551 = vmatprep.subr.mxu0 %v16007_v20 }
 0xd51   : > { %4552 = vmatpush2.msra.mxu0 %v13409_v1 }
 0xd52   : > { %4553 = vmatprep.subr.mxu0 %v16007_v20  ;;  %v4353_v46 = vpop.permute.xlu0 %4352 }
 0xd53   : > { %4554 = vmatpush2.msra.mxu0 %v4369_v18  ;;  %4666 = vrot.lane.b32.xlu0 %v16424_v19, %s10144_s15  ;;  %v13591_v18 = vpop.permute.xlu1 %4692 }
 0xd54   : > { %4555 = vmatprep.subr.mxu0 %v16007_v20 }
 0xd55   : > { %4556 = vmatpush2.msra.mxu0 %v13415_v23 }
 0xd56   : > { %4557 = vmatprep.subr.mxu0 %v16007_v20  ;;  %v4349_v59 = vpop.permute.xlu0 %4348 }
 0xd57   : > { %4558 = vmatpush2.msra.mxu0 %v4365_v28  ;;  %4760 = vrot.lane.b32.xlu0 %v16425_v41, %s10144_s15  ;;  %v16427_v28 = vld [vmem:[#allocation52_spill] sm:$0xff] }
 0xd58   : > { %4559 = vmatprep.subr.mxu0 %v16007_v20 }
 0xd59   : > { %4560 = vmatpush2.msra.mxu0 %v13421_v49  ;;  %v13601_v49 = vpop.permute.xlu1 %4786 }
 0xd5a   : > { %4561 = vmatprep.subr.mxu0 %v16007_v20  ;;  %v4757_v1 = vpop.permute.xlu0 %4756 }
 0xd5b   : > { %4562 = vmatpush2.msra.mxu0 %v4361_v6  ;;  %4694 = vrot.lane.b32.xlu0 %v16426_v33, %s10144_s15 }
 0xd5c   : > { %4563 = vmatprep.subr.mxu0 %v16007_v20 }
 0xd5d   : > { %4564 = vmatpush2.msra.mxu0 %v13427_v4 }
 0xd5e   : > { %4565 = vmatprep.subr.mxu0 %v16007_v20  ;;  %v4753_v23 = vpop.permute.xlu0 %4752 }
 0xd5f   : > { %4566 = vmatpush2.msra.mxu0 %v4357_v26  ;;  %4662 = vrot.lane.b32.xlu0 %v16427_v28, %s10144_s15  ;;  %v13608_v26 = vpop.permute.xlu1 %4720  ;;  %v4248_v28 = vmul.f32 %v13510_v55, %v13307_v3 }
 0xd60   : > { %4567 = vmatprep.subr.mxu0 %v16007_v20 }
 0xd61   : > { %4568 = vmatpush2.msra.mxu0 %v13433_v62 }
 0xd62   : > { %4569 = vmatprep.subr.mxu0 %v16007_v20  ;;  %v4749_v6 = vpop.permute.xlu0 %4748 }
 0xd63   : > { %4570 = vmatpush2.msra.mxu0 %v4353_v46 }
 0xd64   : > { %4571 = vmatprep.subr.mxu0 %v16007_v20 }
 0xd65   : > { %4572 = vmatpush2.msra.mxu0 %v13439_v51  ;;  %v13618_v51 = vpop.permute.xlu1 %4688 }
 0xd66   : > { %4573 = vmatprep.subr.mxu0 %v16007_v20  ;;  %v4745_v4 = vpop.permute.xlu0 %4744 }
 0xd67   : > { %4574 = vmatpush2.msra.mxu0 %v4349_v59 }
 0xd68   : > { %4575 = vmatprep.subr.mxu0 %v16007_v20 }
 0xd69   : > { %4576 = vmatpush2.msra.mxu0 %v13445_v36  ;;  %v4783_v3 = vpop.permute.xlu1 %4782 }
 0xd6a   : > { %4578 = vmatmul.mubr.f32.vlgmr.msra.gmra.mxu0 %v4248_v28  ;;  %4987 = vmatprep.subr.mxu0 %v16007_v20  ;;  %v4741_v62 = vpop.permute.xlu0 %4740 }
 0xd6b   : > { %8548 = vmatpush1.xpose.msk.msra.mxu0 %vm1500_vm2, %v4757_v1  ;;  %5051 = vmatprep.mubr.f32.mxu0 %v16007_v20 }
 0xd6c   : > { %4989 = vmatprep.subr.mxu0 %v16007_v20 }
 0xd6d   : > { %v13628_v59 = vpop.permute.xlu1 %4716 }
 0xd6e   : > { %v4737_v46 = vpop.permute.xlu0 %4736 }
 0xd6f   : > { %8549 = vmatpush1.xpose.msk.msra.mxu0 %vm1500_vm2, %v13451_v63 }
 0xd70   : > { %4991 = vmatprep.subr.mxu0 %v16007_v20 }
 0xd71   : > { %v13634_v28 = vpop.permute.xlu1 %4684 }
 0xd72   : > { %v4733_v55 = vpop.permute.xlu0 %4732 }
 0xd73   : > { %8550 = vmatpush1.xpose.msk.msra.mxu0 %vm1500_vm2, %v4753_v23 }
 0xd74   : > { %4993 = vmatprep.subr.mxu0 %v16007_v20 }
 0xd76   : > { %v4729_v36 = vpop.permute.xlu0 %4728 }
 0xd77   : > { %8551 = vmatpush1.xpose.msk.msra.mxu0 %vm1500_vm2, %v13457_v34  ;;  %v4779_v34 = vpop.permute.xlu1 %4778 }
 0xd78   : > { %4995 = vmatprep.subr.mxu0 %v16007_v20 }
 0xd7a   : > { %v4727_v1 = vpop.permute.xlu0 %4726 }
 0xd7b   : > { %8552 = vmatpush1.xpose.msk.msra.mxu0 %vm1500_vm2, %v4749_v6  ;;  %v13648_v41 = vpop.permute.xlu1 %4712 }
 0xd7c   : > { %4997 = vmatprep.subr.mxu0 %v16007_v20 }
 0xd7e   : > { %v13632_v63 = vpop.permute.xlu0 %4722 }
 0xd7f   : > { %8553 = vmatpush1.xpose.msk.msra.mxu0 %vm1500_vm2, %v13463_v48 }
 0xd80   : > { %4999 = vmatprep.subr.mxu0 %v16007_v20 }
 0xd82   : > { %v13639_v23 = vpop.permute.xlu0 %4690 }
 0xd83   : > { %8554 = vmatpush1.xpose.msk.msra.mxu0 %vm1500_vm2, %v4745_v4  ;;  %v13657_v4 = vpop.permute.xlu1 %4680 }
 0xd84   : > { %5001 = vmatprep.subr.mxu0 %v16007_v20 }
 0xd86   : > { %v4785_v33 = vpop.permute.xlu0 %4784 }
 0xd87   : > { %8555 = vmatpush1.xpose.msk.msra.mxu0 %vm1500_vm2, %v13469_v12  ;;  %v4775_v50 = vpop.permute.xlu1 %4774 }
 0xd88   : > { %5003 = vmatprep.subr.mxu0 %v16007_v20 }
 0xd8a   : > { %v13646_v6 = vpop.permute.xlu0 %4718 }
 0xd8b   : > { %8556 = vmatpush1.xpose.msk.msra.mxu0 %vm1500_vm2, %v4741_v62 }
 0xd8c   : > { %5005 = vmatprep.subr.mxu0 %v16007_v20 }
 0xd8e   : > { %v13652_v48 = vpop.permute.xlu0 %4686 }
 0xd8f   : > { %8557 = vmatpush1.xpose.msk.msra.mxu0 %vm1500_vm2, %v13475_v0  ;;  %v13670_v0 = vpop.permute.xlu1 %4708 }
 0xd90   : > { %5007 = vmatprep.subr.mxu0 %v16007_v20 }
 0xd92   : > { %v4781_v12 = vpop.permute.xlu0 %4780 }
 0xd93   : > { %8558 = vmatpush1.xpose.msk.msra.mxu0 %vm1500_vm2, %v4737_v46  ;;  %v13677_v25 = vpop.permute.xlu1 %4676 }
 0xd94   : > { %5009 = vmatprep.subr.mxu0 %v16007_v20 }
 0xd96   : > { %v13661_v19 = vpop.permute.xlu0 %4714 }
 0xd97   : > { %8559 = vmatpush1.xpose.msk.msra.mxu0 %vm1500_vm2, %v13481_v58 }
 0xd98   : > { %5011 = vmatprep.subr.mxu0 %v16007_v20 }
 0xd9a   : > { %v13666_v62 = vpop.permute.xlu0 %4682 }
 0xd9b   : > { %8560 = vmatpush1.xpose.msk.msra.mxu0 %vm1500_vm2, %v4733_v55  ;;  %v4771_v55 = vpop.permute.xlu1 %4770 }
 0xd9c   : > { %5013 = vmatprep.subr.mxu0 %v16007_v20 }
 0xd9e   : > { %v4777_v56 = vpop.permute.xlu0 %4776 }
 0xd9f   : > { %8561 = vmatpush1.xpose.msk.msra.mxu0 %vm1500_vm2, %v13487_v5  ;;  %v13690_v43 = vpop.permute.xlu1 %4704 }
 0xda0   : > { %5015 = vmatprep.subr.mxu0 %v16007_v20 }
 0xda2   : > { %v13675_v46 = vpop.permute.xlu0 %4710 }
 0xda3   : > { %8562 = vmatpush1.xpose.msk.msra.mxu0 %vm1500_vm2, %v4729_v36 }
 0xda4   : > { %5017 = vmatprep.subr.mxu0 %v16007_v20 }
 0xda6   : > { %v13681_v58 = vpop.permute.xlu0 %4678 }
 0xda7   : > { %8563 = vmatpush1.xpose.msk.msra.mxu0 %vm1500_vm2, %v4727_v1  ;;  %v13698_v1 = vpop.permute.xlu1 %4672 }
 0xda8   : > { %5021 = vmatprep.subr.mxu0 %v16007_v20 }
 0xdaa   : > { %v4773_v52 = vpop.permute.xlu0 %4772 }
 0xdab   : > { %8564 = vmatpush2.xpose.msk.msra.mxu0 %vm1500_vm2, %v13601_v49  ;;  %v4767_v30 = vpop.permute.xlu1 %4766 }
 0xdac   : > { %5023 = vmatprep.subr.mxu0 %v16007_v20 }
 0xdae   : > { %v13688_v5 = vpop.permute.xlu0 %4706 }
 0xdaf   : > { %8565 = vmatpush2.xpose.msk.msra.mxu0 %vm1500_vm2, %v4785_v33 }
 0xdb0   : > { %5025 = vmatprep.subr.mxu0 %v16007_v20 }
 0xdb2   : > { %v13695_v36 = vpop.permute.xlu0 %4674 }
 0xdb3   : > { %8566 = vmatpush2.xpose.msk.msra.mxu0 %vm1500_vm2, %v4783_v3  ;;  %v13708_v3 = vpop.permute.xlu1 %4700 }
 0xdb4   : > { %5027 = vmatprep.subr.mxu0 %v16007_v20 }
 0xdb6   : > { %v4769_v49 = vpop.permute.xlu0 %4768 }
 0xdb7   : > { %8567 = vmatpush2.xpose.msk.msra.mxu0 %vm1500_vm2, %v4781_v12  ;;  %v4669_v16 = vpop.permute.xlu1 %4668 }
 0xdb8   : > { %5029 = vmatprep.subr.mxu0 %v16007_v20 }
 0xdba   : > { %v13705_v33 = vpop.permute.xlu0 %4702 }
 0xdbb   : > { %8568 = vmatpush2.xpose.msk.msra.mxu0 %vm1500_vm2, %v4779_v34 }
 0xdbc   : > { %5031 = vmatprep.subr.mxu0 %v16007_v20 }
 0xdbe   : > { %v4671_v12 = vpop.permute.xlu0 %4670 }
 0xdbf   : > { %8569 = vmatpush2.xpose.msk.msra.mxu0 %vm1500_vm2, %v4777_v56  ;;  %v4763_v56 = vpop.permute.xlu1 %4762 }
 0xdc0   : > { %5033 = vmatprep.subr.mxu0 %v16007_v20 }
 0xdc2   : > { %v4765_v34 = vpop.permute.xlu0 %4764 }
 0xdc3   : > { %8570 = vmatpush2.xpose.msk.msra.mxu0 %vm1500_vm2, %v4775_v50  ;;  %v4697_v50 = vpop.permute.xlu1 %4696 }
 0xdc4   : > { %5035 = vmatprep.subr.mxu0 %v16007_v20 }
 0xdc6   : > { %v4699_v32 = vpop.permute.xlu0 %4698 }
 0xdc7   : > { %8571 = vmatpush2.xpose.msk.msra.mxu0 %vm1500_vm2, %v4773_v52 }
 0xdc8   : > { %5037 = vmatprep.subr.mxu0 %v16007_v20 }
 0xdca   : > { %v4667_v52 = vpop.permute.xlu0 %4666 }
 0xdcb   : > { %8572 = vmatpush2.xpose.msk.msra.mxu0 %vm1500_vm2, %v4771_v55  ;;  %v4665_v55 = vpop.permute.xlu1 %4664 }
 0xdcc   : > { %5039 = vmatprep.subr.mxu0 %v16007_v20 }
 0xdce   : > { %v4761_v39 = vpop.permute.xlu0 %4760 }
 0xdcf   : > { %8573 = vmatpush2.xpose.msk.msra.mxu0 %vm1500_vm2, %v4769_v49  ;;  %v4759_v49 = vpop.permute.xlu1 %4758 }
 0xdd0   : > { %5041 = vmatprep.subr.mxu0 %v16007_v20 }
 0xdd3   : > { %8574 = vmatpush2.xpose.msk.msra.mxu0 %vm1500_vm2, %v4767_v30  ;;  %v4661_v30 = vpop.permute.xlu1 %4660 }
 0xdd4   : > { %5043 = vmatprep.subr.mxu0 %v16007_v20 }
 0xdd7   : > { %8575 = vmatpush2.xpose.msk.msra.mxu0 %vm1500_vm2, %v4765_v34 }
 0xdd8   : > { %5045 = vmatprep.subr.mxu0 %v16007_v20 }
 0xddb   : > { %8576 = vmatpush2.xpose.msk.msra.mxu0 %vm1500_vm2, %v4763_v56 }
 0xddc   : > { %5047 = vmatprep.subr.mxu0 %v16007_v20 }
 0xddf   : > { %8577 = vmatpush2.xpose.msk.msra.mxu0 %vm1500_vm2, %v4761_v39 }
 0xde0   : > { %5049 = vmatprep.subr.mxu0 %v16007_v20 }
 0xde3   : > { %8578 = vmatpush2.xpose.msk.msra.mxu0 %vm1500_vm2, %v4759_v49 }
 0xde4   : > { %9928 = vmatprep.subr.mxu0 %v16007_v20 }
 0xde6   : > { %8579 = vmatmul.mubr.msk.f32.vlgmr.msra.gmra.mxu0 %vm1500_vm2, %v4661_v30 }
 0xde7   : > { %9930 = vmatprep.mubr.msk.f32.mxu0 %vm10140_vm0, %v16007_v20 }
 0xdec   : > { %v9214_v34 = vpop.f32.mrf.mxu0 }
 0xdee   : > { %v9215_v56 = vpop.f32.mrf.mxu0 }
 0xdef   : > { %v9216_v7 = vadd.f32 %v9215_v56, %v9214_v34  ;;  %v16436_v56 = vld [vmem:[#allocation127_spill] sm:$0xff] }
 0xe2a   : > { %v4579_v42 = vpop.f32.mrf.mxu0 }
 0xe2b   : > { %v4580_v29 = vadd.f32 %v9216_v7, %v4579_v42  ;;  %v5150_v42 = vpop.permute.xlu1 %5149 }
 0xe2c   : > { %v4581_v53 = vpop.f32.mrf.mxu0 }
 0xe2d   : > { %9926 = vmatmul.mubr.msk.f32.vlgmr.msra.gmra.mxu1 %vm1500_vm2, %v4580_v29  ;;  %v4695_v53 = vpop.permute.xlu0 %4694 }
 0xe2e   : > { %9220 = vmatpush3.xpose.msk.msra.mxu1 %vm1500_vm2, %v13591_v18  ;;  %9251 = vmatprep.mubr.msk.f32.mxu1 %vm1500_vm2, %v4661_v30 }
 0xe2f   : > { %9221 = vmatprep.subr.msk.mxu1 %vm1500_vm2, %v13632_v63  ;;  %v5118_v39 = vpop.permute.xlu1 %5117 }
 0xe31   : > { %v4663_v7 = vpop.permute.xlu0 %4662 }
 0xe32   : > { %9222 = vmatpush3.xpose.msk.msra.mxu1 %vm1500_vm2, %v13639_v23  ;;  %v16428_v23 = vld [vmem:[#allocation59_spill] sm:$0xff] }
 0xe33   : > { %9223 = vmatprep.subr.msk.mxu1 %vm1500_vm2, %v13608_v26  ;;  %v5148_v29 = vpop.permute.xlu1 %5147 }
 0xe36   : > { %9224 = vmatpush3.xpose.msk.msra.mxu1 %vm1500_vm2, %v13618_v51 }
 0xe37   : > { %9225 = vmatprep.subr.msk.mxu1 %vm1500_vm2, %v13646_v6  ;;  %v16430_v6 = vld [vmem:[#allocation115_spill] sm:$0xff] }
 0xe3a   : > { %9226 = vmatpush3.xpose.msk.msra.mxu1 %vm1500_vm2, %v13652_v48  ;;  %v16431_v48 = vld [vmem:[#allocation117_spill] sm:$0xff] }
 0xe3b   : > { %9227 = vmatprep.subr.msk.mxu1 %vm1500_vm2, %v13628_v59 }
 0xe3e   : > { %9228 = vmatpush3.xpose.msk.msra.mxu1 %vm1500_vm2, %v13634_v28 }
 0xe3f   : > { %9229 = vmatprep.subr.msk.mxu1 %vm1500_vm2, %v13661_v19 }
 0xe42   : > { %9230 = vmatpush3.xpose.msk.msra.mxu1 %vm1500_vm2, %v13666_v62  ;;  %v16433_v62 = vld [vmem:[#allocation121_spill] sm:$0xff] }
 0xe43   : > { %9231 = vmatprep.subr.msk.mxu1 %vm1500_vm2, %v13648_v41 }
 0xe46   : > { %9232 = vmatpush3.xpose.msk.msra.mxu1 %vm1500_vm2, %v13657_v4  ;;  %v16432_v4 = vld [vmem:[#allocation119_spill] sm:$0xff] }
 0xe47   : > { %9233 = vmatprep.subr.msk.mxu1 %vm1500_vm2, %v13675_v46 }
 0xe4a   : > { %9234 = vmatpush3.xpose.msk.msra.mxu1 %vm1500_vm2, %v13681_v58 }
 0xe4b   : > { %9235 = vmatprep.subr.msk.mxu1 %vm1500_vm2, %v13670_v0 }
 0xe4e   : > { %9236 = vmatpush3.xpose.msk.msra.mxu1 %vm1500_vm2, %v13677_v25 }
 0xe4f   : > { %9237 = vmatprep.subr.msk.mxu1 %vm1500_vm2, %v13688_v5 }
 0xe52   : > { %9238 = vmatpush3.xpose.msk.msra.mxu1 %vm1500_vm2, %v13695_v36 }
 0xe53   : > { %9239 = vmatprep.subr.msk.mxu1 %vm1500_vm2, %v13690_v43 }
 0xe56   : > { %9240 = vmatpush3.xpose.msk.msra.mxu1 %vm1500_vm2, %v13698_v1 }
 0xe57   : > { %9241 = vmatprep.subr.msk.mxu1 %vm1500_vm2, %v13705_v33  ;;  %v16434_v33 = vld [vmem:[#allocation123_spill] sm:$0xff] }
 0xe5a   : > { %9242 = vmatpush3.xpose.msk.msra.mxu1 %vm1500_vm2, %v4671_v12 }
 0xe5b   : > { %9243 = vmatprep.subr.msk.mxu1 %vm1500_vm2, %v13708_v3 }
 0xe5e   : > { %9244 = vmatpush3.xpose.msk.msra.mxu1 %vm1500_vm2, %v4669_v16  ;;  %v5116_v16 = vpop.permute.xlu1 %5115 }
 0xe5f   : > { %9245 = vmatprep.subr.msk.mxu1 %vm1500_vm2, %v4699_v32 }
 0xe62   : > { %9246 = vmatpush3.xpose.msk.msra.mxu1 %vm1500_vm2, %v4667_v52  ;;  %v5144_v0 = vpop.permute.xlu1 %5143 }
 0xe63   : > { %9247 = vmatprep.subr.msk.mxu1 %vm1500_vm2, %v4697_v50 }
 0xe66   : > { %9248 = vmatpush3.xpose.msk.msra.mxu1 %vm1500_vm2, %v4665_v55  ;;  %v5108_v49 = vpop.permute.xlu1 %5107 }
 0xe67   : > { %9249 = vmatprep.subr.msk.mxu1 %vm1500_vm2, %v4695_v53  ;;  %v16437_v53 = vld [vmem:[#allocation57_spill] sm:$0xff] }
 0xe6a   : > { %9250 = vmatpush3.xpose.msk.msra.mxu1 %vm1500_vm2, %v4663_v7 }
 0xe6b   : > { %9253 = vmatprep.subr.mxu1 %v5150_v42  ;;  %v5106_v42 = vpop.permute.xlu1 %5105 }
 0xe6d   : > { %9252 = vmatmul.mubr.msk.f32.vlgmr.msra.gmra.mxu1 %vm1500_vm2, %v4661_v30  ;;  %v16435_v30 = vld [vmem:[#allocation125_spill] sm:$0xff] }
 0xe6e   : > { %9254 = vmatpush3.msra.mxu1 %v5118_v39 }
 0xe6f   : > { %9255 = vmatprep.subr.mxu1 %v5148_v29  ;;  %v5104_v7 = vpop.permute.xlu1 %5103 }
 0xe70   : > { %9256 = vmatpush3.msra.mxu1 %v5116_v16  ;;  %v16438_v16 = vld [vmem:[#allocation61_spill] sm:$0xff] }
 0xea6   : > { %v5053_v19 = vpop.f32.mrf.mxu0 }
 0xea8   : > { %v5055_v41 = vpop.f32.mrf.mxu0 }
 0xea9   : > { %v5058_v18 = vsel %vm1835_vm4, %v5055_v41, -inf }
 0xeaa   : > { %v5060_v59 = vmax.f32 %v5053_v19, %v5058_v18 }
 0xeed   : > { %v4655_v32 = vpop.f32.mrf.mxu1 }
 0xeee   : > { %v13789_v25 = vadd.f32 %v4655_v32, %v13230_v8  ;;  %v16429_v8 = vld [vmem:[#allocation35_spill] sm:$0xff] }
 0xeef   : > { %v9927_v43 = vpop.f32.mrf.mxu1 }
 0xf2d   : > { %v4982_v26 = vpop.f32.mrf.mxu1 }
 0xf2f   : > { %v4984_v51 = vpop.f32.mrf.mxu1 }
 0xf30   : > { %v5059_v63 = vmax.f32 %v4982_v26, %v4984_v51 }
 0xf32   : > { %v5061_v28 = vmax.f32 %v5059_v63, %v5060_v59  ;;  %v5102_v63 = vpop.permute.xlu1 %5101 }
 0xf34   : > { %5062 = vmax.xlane.f32.xlu0 %v5061_v28 }
 0xf4a   : > { %5145 = vrot.lane.b32.xlu0 %v16133_v38, %s10144_s15 }
 0xf4e   : > { %5113 = vrot.lane.b32.xlu0 %v16428_v23, %s10144_s15 }
 0xf52   : > { %5111 = vrot.lane.b32.xlu0 %v16135_v60, %s10144_s15 }
 0xf56   : > { %5141 = vrot.lane.b32.xlu0 %v16136_v11, %s10144_s15 }
 0xf5a   : > { %5109 = vrot.lane.b32.xlu0 %v16137_v22, %s10144_s15 }
 0xf5e   : > { %5139 = vrot.lane.b32.xlu0 %v16138_v27, %s10144_s15 }
 0xf62   : > { %5137 = vrot.lane.b32.xlu0 %v16139_v13, %s10144_s15 }
 0xf66   : > { %5135 = vrot.lane.b32.xlu0 %v16140_v17, %s10144_s15 }
 0xf6a   : > { %5133 = vrot.lane.b32.xlu0 %v16141_v44, %s10144_s15 }
 0xf6e   : > { %5131 = vrot.lane.b32.xlu0 %v16142_v40, %s10144_s15 }
 0xf72   : > { %5129 = vrot.lane.b32.xlu0 %v16143_v14, %s10144_s15 }
 0xf76   : > { %5127 = vrot.lane.b32.xlu0 %v16144_v57, %s10144_s15 }
 0xf7a   : > { %5125 = vrot.lane.b32.xlu0 %v16145_v37, %s10144_s15 }
 0xf7e   : > { %5123 = vrot.lane.b32.xlu0 %v16147_v47, %s10144_s15 }
 0xf82   : > { %5121 = vrot.lane.b32.xlu0 %v16148_v45, %s10144_s15 }
 0xf86   : > { %5119 = vrot.lane.b32.xlu0 %v16149_v24, %s10144_s15 }
 0xf8a   : > { %5181 = vrot.lane.b32.xlu0 %v11620_v9, %s10144_s15 }
 0xf8e   : > { %5177 = vrot.lane.b32.xlu0 %v11633_v15, %s10144_s15 }
 0xf92   : > { %5173 = vrot.lane.b32.xlu0 %v11647_v31, %s10144_s15 }
 0xf96   : > { %5169 = vrot.lane.b32.xlu0 %v11661_v21, %s10144_s15 }
 0xf9a   : > { %5165 = vrot.lane.b32.xlu0 %v11675_v61, %s10144_s15 }
 0xf9e   : > { %5161 = vrot.lane.b32.xlu0 %v11687_v35, %s10144_s15 }
 0xfa2   : > { %5157 = vrot.lane.b32.xlu0 %v16224_v2, %s10144_s15 }
 0xfa6   : > { %5153 = vrot.lane.b32.xlu0 %v16326_v10, %s10144_s15 }
 0xfaa   : > { %5211 = vrot.lane.b32.xlu0 %v16429_v8, %s10144_s15 }
 0xfae   : > { %5207 = vrot.lane.b32.xlu0 %v16430_v6, %s10144_s15 }
 0xfb2   : > { %5203 = vrot.lane.b32.xlu0 %v16431_v48, %s10144_s15 }
 0xfb6   : > { %5199 = vrot.lane.b32.xlu0 %v16432_v4, %s10144_s15  ;;  %v16502_v4 = vld [vmem:[#allocation24_spill] sm:$0xff] }
 0xfba   : > { %5195 = vrot.lane.b32.xlu0 %v16433_v62, %s10144_s15  ;;  %v16501_v62 = vld [vmem:[#allocation96_spill] sm:$0xff] }
 0xfbd   : > { %v5063_v46 = vpop.xlane.xlu0 %5062 }
 0xfbe   : > { %v5064_v58 = vsub.f32 %v4982_v26, %v5063_v46  ;;  %v5065_v5 = vsub.f32 %v4984_v51, %v5063_v46  ;;  %v5066_v36 = vsub.f32 %v5053_v19, %v5063_v46  ;;  %v5067_v1 = vsub.f32 %v5055_v41, %v5063_v46  ;;  %5191 = vrot.lane.b32.xlu0 %v16434_v33, %s10144_s15  ;;  %v16439_v51 = vld [vmem:[#allocation70_spill] sm:$0xff]  ;;  %v16499_v33 = vld [vmem:[#allocation21_spill] sm:$0xff] }
 0xfc0   : > { %v5068_v3 = vmul.f32 1.442695, %v5064_v58  ;;  %v5070_v12 = vmul.f32 1.442695, %v5065_v5  ;;  %v5072_v50 = vmul.f32 1.442695, %v5066_v36  ;;  %v5100_v36 = vpop.permute.xlu1 %5099 }
 0xfc1   : > { %v5074_v52 = vmul.f32 1.442695, %v5067_v1  ;;  %v5146_v55 = vpop.permute.xlu0 %5145  ;;  %v16440_v58 = vld [vmem:[#allocation78_spill] sm:$0xff]  ;;  %v16441_v1 = vld [vmem:[#allocation89_spill] sm:$0xff] }
 0xfc2   : > { %10037 = vpow2.f32 %v5068_v3  ;;  %5187 = vrot.lane.b32.xlu0 %v16435_v30, %s10144_s15  ;;  %9257 = vmatprep.subr.mxu1 %v5146_v55  ;;  %v13882_v3 = vld [vmem:[%s15683_s8 + $0x10] sm:$0xff]  ;;  %v16497_v30 = vld [vmem:[#allocation20_spill] sm:$0xff] }
 0xfc3   : > { %10039 = vpow2.f32 %v5070_v12  ;;  %9929 = vmatpush3.msk.msra.mxu0 %vm1868_vm3, %v13882_v3 }
 0xfc4   : > { %10041 = vpow2.f32 %v5072_v50  ;;  %v16442_v50 = vld [vmem:[#allocation92_spill] sm:$0xff] }
 0xfc5   : > { %10043 = vpow2.f32 %v5074_v52  ;;  %v5114_v34 = vpop.permute.xlu0 %5113  ;;  %v5098_v52 = vpop.permute.xlu1 %5097 }
 0xfc6   : > { %5183 = vrot.lane.b32.xlu0 %v16436_v56, %s10144_s15  ;;  %9258 = vmatpush3.msra.mxu1 %v5114_v34  ;;  %v16495_v56 = vld [vmem:[#allocation94_spill] sm:$0xff] }
 0xfc7   : > { %9259 = vmatprep.subr.mxu1 %v5144_v0 }
 0xfc9   : > { %v5112_v39 = vpop.permute.xlu0 %5111 }
 0xfca   : > { %5591 = vrot.lane.b32.xlu0 %v16437_v53, %s10145_s20  ;;  %9260 = vmatpush3.msra.mxu1 %v5112_v39  ;;  %v16444_v39 = vld [vmem:[#allocation14_spill] sm:$0xff]  ;;  %v16493_v53 = vld [vmem:[#allocation17_spill] sm:$0xff] }
 0xfcd   : > { %v5142_v29 = vpop.permute.xlu0 %5141 }
 0xfce   : > { %5587 = vrot.lane.b32.xlu0 %v16438_v16, %s10145_s20  ;;  %9261 = vmatprep.subr.mxu1 %v5142_v29  ;;  %v16445_v29 = vld [vmem:[#allocation110_spill] sm:$0xff]  ;;  %v16491_v16 = vld [vmem:[#allocation16_spill] sm:$0xff] }
 0xfcf   : > { %v13860_v32 = vpop.eup %10037 }
 0xfd0   : > { %v13862_v43 = vpop.eup %10039 }
 0xfd1   : > { %v13864_v19 = vpop.eup %10041  ;;  %v5110_v41 = vpop.permute.xlu0 %5109  ;;  %v5076_v18 = vadd.f32 %v13862_v43, %v13860_v32 }
 0xfd2   : > { %v13868_v26 = vpop.eup %10043  ;;  %5583 = vrot.lane.b32.xlu0 %v16439_v51, %s10145_s20  ;;  %9262 = vmatpush3.msra.mxu1 %v5110_v41  ;;  %v16489_v51 = vld [vmem:[#allocation91_spill] sm:$0xff] }
 0xfd3   : > { %v5077_v59 = vadd.f32 %v13864_v19, %v5076_v18  ;;  %v5078_v28 = vsel %vm1835_vm4, %v13868_v26, 0.0 }
 0xfd5   : > { %v5140_v0 = vpop.permute.xlu0 %5139  ;;  %v5079_v46 = vadd.f32 %v5078_v28, %v5077_v59  ;;  %v16447_v59 = vld [vmem:[#allocation111_spill] sm:$0xff] }
 0xfd6   : > { %5579 = vrot.lane.b32.xlu0 %v16440_v58, %s10145_s20  ;;  %9263 = vmatprep.subr.mxu1 %v5140_v0  ;;  %v16448_v28 = vld [vmem:[#allocation95_spill] sm:$0xff]  ;;  %v16449_v0 = vld [vmem:[#allocation112_spill] sm:$0xff]  ;;  %v16487_v58 = vld [vmem:[#allocation90_spill] sm:$0xff] }
 0xfd7   : > { %5080 = vadd.xlane.f32.xlu1 %v5079_v46  ;;  %9264 = vmatpush3.msra.mxu1 %v5108_v49  ;;  %v16443_v49 = vld [vmem:[#allocation93_spill] sm:$0xff] }
 0xfd9   : > { %v5138_v5 = vpop.permute.xlu0 %5137 }
 0xfda   : > { %5575 = vrot.lane.b32.xlu0 %v16441_v1, %s10145_s20  ;;  %9265 = vmatprep.subr.mxu1 %v5138_v5  ;;  %v16485_v1 = vld [vmem:[#allocation88_spill] sm:$0xff] }
 0xfdb   : > { %9266 = vmatpush3.msra.mxu1 %v5106_v42  ;;  %v5096_v42 = vpop.permute.xlu1 %5095 }
 0xfdd   : > { %v5136_v12 = vpop.permute.xlu0 %5135 }
 0xfde   : > { %5571 = vrot.lane.b32.xlu0 %v16442_v50, %s10145_s20  ;;  %9267 = vmatprep.subr.mxu1 %v5136_v12  ;;  %v16451_v12 = vld [vmem:[#allocation113_spill] sm:$0xff]  ;;  %v16483_v50 = vld [vmem:[#allocation86_spill] sm:$0xff] }
 0xfdf   : > { %9268 = vmatpush3.msra.mxu1 %v5104_v7  ;;  %v16446_v7 = vld [vmem:[#allocation15_spill] sm:$0xff]  ;;  %v5094_v18 = vpop.permute.xlu1 %5093 }
 0xfe1   : > { %v5134_v55 = vpop.permute.xlu0 %5133 }
 0xfe2   : > { %5567 = vrot.lane.b32.xlu0 %v16443_v49, %s10145_s20  ;;  %9269 = vmatprep.subr.mxu1 %v5134_v55  ;;  %v16452_v55 = vld [vmem:[#allocation19_spill] sm:$0xff]  ;;  %v16481_v49 = vld [vmem:[#allocation82_spill] sm:$0xff] }
 0xfe3   : > { %9270 = vmatpush3.msra.mxu1 %v5102_v63  ;;  %v5092_v5 = vpop.permute.xlu1 %5091 }
 0xfe5   : > { %v5132_v34 = vpop.permute.xlu0 %5131 }
 0xfe6   : > { %5561 = vrot.lane.b32.xlu0 %v16444_v39, %s10145_s20  ;;  %9271 = vmatprep.subr.mxu1 %v5132_v34  ;;  %v16479_v39 = vld [vmem:[#allocation74_spill] sm:$0xff] }
 0xfe7   : > { %9272 = vmatpush3.msra.mxu1 %v5100_v36  ;;  %v16450_v36 = vld [vmem:[#allocation18_spill] sm:$0xff]  ;;  %v5090_v34 = vpop.permute.xlu1 %5089 }
 0xfe8   : > { %5175 = vrot.lane.b32.xlu1 %v16445_v29, %s10144_s15  ;;  %v16471_v29 = vld [vmem:[#allocation126_spill] sm:$0xff] }
 0xfe9   : > { %v5130_v41 = vpop.permute.xlu0 %5129 }
 0xfea   : > { %5529 = vrot.lane.b32.xlu0 %v16446_v7, %s10145_s20  ;;  %9273 = vmatprep.subr.mxu1 %v5130_v41  ;;  %v16477_v7 = vld [vmem:[#allocation66_spill] sm:$0xff] }
 0xfeb   : > { %9274 = vmatpush3.msra.mxu1 %v5098_v52 }
 0xfec   : > { %5171 = vrot.lane.b32.xlu1 %v16447_v59, %s10144_s15  ;;  %v16467_v59 = vld [vmem:[#allocation122_spill] sm:$0xff] }
 0xfed   : > { %v5128_v63 = vpop.permute.xlu0 %5127 }
 0xfee   : > { %5623 = vrot.lane.b32.xlu0 %v16448_v28, %s10145_s20  ;;  %9275 = vmatprep.subr.mxu1 %v5128_v63  ;;  %v16454_v63 = vld [vmem:[#allocation97_spill] sm:$0xff]  ;;  %v16475_v28 = vld [vmem:[#allocation62_spill] sm:$0xff] }
 0xfef   : > { %9276 = vmatpush3.msra.mxu1 %v5096_v42  ;;  %v16453_v42 = vld [vmem:[#allocation50_spill] sm:$0xff] }
 0xff0   : > { %5167 = vrot.lane.b32.xlu1 %v16449_v0, %s10144_s15  ;;  %v16456_v0 = vld [vmem:[#allocation22_spill] sm:$0xff] }
 0xff1   : > { %v5126_v46 = vpop.permute.xlu0 %5125 }
 0xff2   : > { %5557 = vrot.lane.b32.xlu0 %v16450_v36, %s10145_s20  ;;  %9277 = vmatprep.subr.mxu1 %v5126_v46  ;;  %v16473_v36 = vld [vmem:[#allocation53_spill] sm:$0xff] }
 0xff3   : > { %9278 = vmatpush3.msra.mxu1 %v5094_v18  ;;  %v16455_v18 = vld [vmem:[#allocation44_spill] sm:$0xff] }
 0xff4   : > { %5163 = vrot.lane.b32.xlu1 %v16451_v12, %s10144_s15  ;;  %v5088_v12 = vpop.permute.xlu1 %5087 }
 0xff5   : > { %v5124_v52 = vpop.permute.xlu0 %5123 }
 0xff6   : > { %5525 = vrot.lane.b32.xlu0 %v16452_v55, %s10145_s20  ;;  %9279 = vmatprep.subr.mxu1 %v5124_v52  ;;  %v16469_v55 = vld [vmem:[#allocation124_spill] sm:$0xff] }
 0xff7   : > { %9280 = vmatpush3.msra.mxu1 %v5092_v5  ;;  %v16457_v5 = vld [vmem:[#allocation38_spill] sm:$0xff] }
 0xff8   : > { %5159 = vrot.lane.b32.xlu1 %v16453_v42, %s10144_s15  ;;  %v16460_v42 = vld [vmem:[#allocation99_spill] sm:$0xff] }
 0xff9   : > { %v5122_v41 = vpop.permute.xlu0 %5121 }
 0xffa   : > { %5619 = vrot.lane.b32.xlu0 %v16454_v63, %s10145_s20  ;;  %9281 = vmatprep.subr.mxu1 %v5122_v41  ;;  %v16458_v41 = vld [vmem:[#allocation23_spill] sm:$0xff]  ;;  %v16465_v63 = vld [vmem:[#allocation120_spill] sm:$0xff] }
 0xffb   : > { %9282 = vmatpush3.msra.mxu1 %v5090_v34  ;;  %v16459_v34 = vld [vmem:[#allocation114_spill] sm:$0xff] }
 0xffc   : > { %5155 = vrot.lane.b32.xlu1 %v16455_v18, %s10144_s15 }
 0xffd   : > { %v5120_v46 = vpop.permute.xlu0 %5119 }
 0xffe   : > { %5553 = vrot.lane.b32.xlu0 %v16456_v0, %s10145_s20  ;;  %9283 = vmatprep.subr.mxu1 %v5120_v46  ;;  %v16463_v0 = vld [vmem:[#allocation118_spill] sm:$0xff] }
 0xfff   : > { %9284 = vmatpush3.msra.mxu1 %v5088_v12  ;;  %v16461_v12 = vld [vmem:[#allocation116_spill] sm:$0xff] }
0x1000   : > { %5151 = vrot.lane.b32.xlu1 %v16457_v5, %s10144_s15  ;;  %5350 = vmatprep.subr.mxu1 %v16007_v20  ;;  %v16462_v5 = vld [vmem:[#allocation26_spill] sm:$0xff] }
0x1001   : > { %v13919_v52 = vpop.permute.xlu0 %5181 }
0x1002   : > { %5521 = vrot.lane.b32.xlu0 %v16458_v41, %s10145_s20 }
0x1004   : > { %5209 = vrot.lane.b32.xlu1 %v16459_v34, %s10144_s15  ;;  %v16464_v34 = vld [vmem:[#allocation27_spill] sm:$0xff] }
0x1005   : > { %v13925_v18 = vpop.permute.xlu0 %5177 }
0x1006   : > { %5615 = vrot.lane.b32.xlu0 %v16460_v42, %s10145_s20 }
0x1008   : > { %5205 = vrot.lane.b32.xlu1 %v16461_v12, %s10144_s15  ;;  %v16466_v12 = vld [vmem:[#allocation100_spill] sm:$0xff] }
0x1009   : > { %v13931_v46 = vpop.permute.xlu0 %5173 }
0x100a   : > { %5549 = vrot.lane.b32.xlu0 %v16462_v5, %s10145_s20 }
0x100c   : > { %5201 = vrot.lane.b32.xlu1 %v16463_v0, %s10144_s15  ;;  %v16468_v0 = vld [vmem:[#allocation30_spill] sm:$0xff] }
0x100d   : > { %v13937_v41 = vpop.permute.xlu0 %5169 }
0x100e   : > { %5517 = vrot.lane.b32.xlu0 %v16464_v34, %s10145_s20 }
0x1010   : > { %5197 = vrot.lane.b32.xlu1 %v16465_v63, %s10144_s15  ;;  %v16470_v63 = vld [vmem:[#allocation31_spill] sm:$0xff] }
0x1011   : > { %v13943_v42 = vpop.permute.xlu0 %5165 }
0x1012   : > { %5611 = vrot.lane.b32.xlu0 %v16466_v12, %s10145_s20 }
0x1014   : > { %5193 = vrot.lane.b32.xlu1 %v16467_v59, %s10144_s15  ;;  %v16472_v59 = vld [vmem:[#allocation102_spill] sm:$0xff] }
0x1015   : > { %v13949_v5 = vpop.permute.xlu0 %5161 }
0x1016   : > { %5545 = vrot.lane.b32.xlu0 %v16468_v0, %s10145_s20 }
0x1018   : > { %5189 = vrot.lane.b32.xlu1 %v16469_v55, %s10144_s15  ;;  %v16474_v55 = vld [vmem:[#allocation34_spill] sm:$0xff] }
0x1019   : > { %v13955_v34 = vpop.permute.xlu0 %5157 }
0x101a   : > { %5513 = vrot.lane.b32.xlu0 %v16470_v63, %s10145_s20 }
0x101c   : > { %5185 = vrot.lane.b32.xlu1 %v16471_v29, %s10144_s15  ;;  %v16476_v29 = vld [vmem:[#allocation36_spill] sm:$0xff]  ;;  %s365_s15 = scalar_lea.vmem [#allocation2], %s8106_s29  ;;  %s10083_s29 = scalar_lea.vmem %s10082_s27, 256 }
0x101d   : > { %v13961_v12 = vpop.permute.xlu0 %5153 }
0x101e   : > { %5607 = vrot.lane.b32.xlu0 %v16472_v59, %s10145_s20 }
0x1020   : > { %5593 = vrot.lane.b32.xlu1 %v16473_v36, %s10145_s20  ;;  %v16478_v36 = vld [vmem:[#allocation104_spill] sm:$0xff] }
0x1021   : > { %v13967_v0 = vpop.permute.xlu0 %5211 }
0x1022   : > { %5541 = vrot.lane.b32.xlu0 %v16474_v55, %s10145_s20 }
0x1024   : > { %5589 = vrot.lane.b32.xlu1 %v16475_v28, %s10145_s20  ;;  %v16480_v28 = vld [vmem:[#allocation40_spill] sm:$0xff] }
0x1025   : > { %v13973_v63 = vpop.permute.xlu0 %5207 }
0x1026   : > { %5509 = vrot.lane.b32.xlu0 %v16476_v29, %s10145_s20 }
0x1028   : > { %5585 = vrot.lane.b32.xlu1 %v16477_v7, %s10145_s20  ;;  %v16482_v7 = vld [vmem:[#allocation42_spill] sm:$0xff] }
0x1029   : > { %v13979_v59 = vpop.permute.xlu0 %5203 }
0x102a   : > { %5603 = vrot.lane.b32.xlu0 %v16478_v36, %s10145_s20 }
0x102c   : > { %5581 = vrot.lane.b32.xlu1 %v16479_v39, %s10145_s20  ;;  %v16484_v39 = vld [vmem:[#allocation106_spill] sm:$0xff] }
0x102d   : > { %v13985_v55 = vpop.permute.xlu0 %5199 }
0x102e   : > { %5537 = vrot.lane.b32.xlu0 %v16480_v28, %s10145_s20 }
0x1030   : > { %5577 = vrot.lane.b32.xlu1 %v16481_v49, %s10145_s20  ;;  %v16486_v49 = vld [vmem:[#allocation46_spill] sm:$0xff] }
0x1031   : > { %v13991_v29 = vpop.permute.xlu0 %5195 }
0x1032   : > { %5505 = vrot.lane.b32.xlu0 %v16482_v7, %s10145_s20 }
0x1034   : > { %5573 = vrot.lane.b32.xlu1 %v16483_v50, %s10145_s20  ;;  %v16488_v50 = vld [vmem:[#allocation48_spill] sm:$0xff] }
0x1035   : > { %v13997_v36 = vpop.permute.xlu0 %5191 }
0x1036   : > { %5599 = vrot.lane.b32.xlu0 %v16484_v39, %s10145_s20 }
0x1038   : > { %5569 = vrot.lane.b32.xlu1 %v16485_v1, %s10145_s20  ;;  %v16490_v1 = vld [vmem:[#allocation108_spill] sm:$0xff] }
0x1039   : > { %v14003_v28 = vpop.permute.xlu0 %5187 }
0x103a   : > { %5533 = vrot.lane.b32.xlu0 %v16486_v49, %s10145_s20 }
0x103c   : > { %5565 = vrot.lane.b32.xlu1 %v16487_v58, %s10145_s20  ;;  %v16492_v58 = vld [vmem:[#allocation13_spill] sm:$0xff] }
0x103d   : > { %v14009_v7 = vpop.permute.xlu0 %5183 }
0x103e   : > { %5501 = vrot.lane.b32.xlu0 %v16488_v50, %s10145_s20 }
0x1040   : > { %5563 = vrot.lane.b32.xlu1 %v16489_v51, %s10145_s20  ;;  %v16494_v51 = vld [vmem:[#allocation51_spill] sm:$0xff] }
0x1041   : > { %v14015_v39 = vpop.permute.xlu0 %5591 }
0x1042   : > { %5595 = vrot.lane.b32.xlu0 %v16490_v1, %s10145_s20 }
0x1044   : > { %5559 = vrot.lane.b32.xlu1 %v16491_v16, %s10145_s20  ;;  %v16496_v16 = vld [vmem:[#allocation54_spill] sm:$0xff] }
0x1045   : > { %v14021_v49 = vpop.permute.xlu0 %5587 }
0x1046   : > { %5497 = vrot.lane.b32.xlu0 %v16492_v58, %s10145_s20 }
0x1048   : > { %5527 = vrot.lane.b32.xlu1 %v16493_v53, %s10145_s20  ;;  %v16498_v53 = vld [vmem:[#allocation55_spill] sm:$0xff] }
0x1049   : > { %v14027_v50 = vpop.permute.xlu0 %5583 }
0x104a   : > { %5986 = vrot.lane.b32.xlu0 %v16494_v51, %s10145_s20 }
0x104c   : > { %5621 = vrot.lane.b32.xlu1 %v16495_v56, %s10145_s20  ;;  %v16500_v56 = vld [vmem:[#allocation56_spill] sm:$0xff] }
0x104d   : > { %v14033_v1 = vpop.permute.xlu0 %5579 }
0x104e   : > { %5954 = vrot.lane.b32.xlu0 %v16496_v16, %s10145_s20 }
0x1050   : > { %5555 = vrot.lane.b32.xlu1 %v16497_v30, %s10145_s20  ;;  %v5180_v30 = vpop.permute.xlu1 %5179 }
0x1051   : > { %v14039_v58 = vpop.permute.xlu0 %5575 }
0x1052   : > { %5984 = vrot.lane.b32.xlu0 %v16498_v53, %s10145_s20 }
0x1054   : > { %5523 = vrot.lane.b32.xlu1 %v16499_v33, %s10145_s20  ;;  %v16503_v33 = vld [vmem:[#allocation68_spill] sm:$0xff] }
0x1055   : > { %v14045_v51 = vpop.permute.xlu0 %5571 }
0x1056   : > { %5952 = vrot.lane.b32.xlu0 %v16500_v56, %s10145_s20  ;;  %v16504_v56 = vld [vmem:[#allocation25_spill] sm:$0xff] }
0x1058   : > { %5617 = vrot.lane.b32.xlu1 %v16501_v62, %s10145_s20  ;;  %v16505_v62 = vld [vmem:[#allocation71_spill] sm:$0xff] }
0x1059   : > { %v14051_v16 = vpop.permute.xlu0 %5567 }
0x105a   : > { %5950 = vrot.lane.b32.xlu0 %v16428_v23, %s10145_s20  ;;  %v16506_v23 = vld [vmem:[#allocation98_spill] sm:$0xff] }
0x105c   : > { %5551 = vrot.lane.b32.xlu1 %v16502_v4, %s10145_s20  ;;  %v16507_v4 = vld [vmem:[#allocation73_spill] sm:$0xff] }
0x105d   : > { %v5562_v53 = vpop.permute.xlu0 %5561 }
0x105e   : > { %5944 = vrot.lane.b32.xlu0 %v16503_v33, %s10145_s20  ;;  %9290 = vmatprep.subr.msk.mxu0 %vm1500_vm2, %v5562_v53  ;;  %v16508_v53 = vld [vmem:[#allocation76_spill] sm:$0xff] }
0x1060   : > { %5519 = vrot.lane.b32.xlu1 %v16504_v56, %s10145_s20  ;;  %v5081_v48 = vpop.xlane.xlu1 %5080  ;;  %v16509_v56 = vld [vmem:[#allocation29_spill] sm:$0xff] }
0x1061   : > { %10045 = vrcp.f32 %v5081_v48 }
0x1062   : > { %5942 = vrot.lane.b32.xlu0 %v16505_v62, %s10145_s20  ;;  %v16510_v62 = vld [vmem:[#allocation79_spill] sm:$0xff] }
0x1064   : > { %5613 = vrot.lane.b32.xlu1 %v16506_v23, %s10145_s20  ;;  %v5176_v6 = vpop.permute.xlu1 %5175 }
0x1066   : > { %5940 = vrot.lane.b32.xlu0 %v16507_v4, %s10145_s20 }
0x1068   : > { %5547 = vrot.lane.b32.xlu1 %v16409_v54, %s10145_s20  ;;  %v5172_v33 = vpop.permute.xlu1 %5171  ;;  %v16511_v54 = vld [vmem:[#allocation101_spill] sm:$0xff] }
0x106a   : > { %5938 = vrot.lane.b32.xlu0 %v16508_v53, %s10145_s20  ;;  %v16512_v53 = vld [vmem:[#allocation81_spill] sm:$0xff] }
0x106c   : > { %5515 = vrot.lane.b32.xlu1 %v16509_v56, %s10145_s20  ;;  %v5168_v48 = vpop.permute.xlu1 %5167 }
0x106e   : > { %v14074_v8 = vpop.eup %10045  ;;  %5936 = vrot.lane.b32.xlu0 %v16510_v62, %s10145_s20 }
0x106f   : > { %v5084_v23 = vmul.f32 %v14074_v8, %v13862_v43  ;;  %v5083_v4 = vmul.f32 %v14074_v8, %v13860_v32  ;;  %v5086_v56 = vmul.f32 %v14074_v8, %v13868_v26  ;;  %v16513_v32 = vld [vmem:[#allocation32_spill] sm:$0xff]  ;;  %v16516_v26 = vld [vmem:[#allocation87_spill] sm:$0xff] }
0x1070   : > { %5609 = vrot.lane.b32.xlu1 %v16511_v54, %s10145_s20  ;;  %v5164_v10 = vpop.permute.xlu1 %5163 }
0x1071   : > { %5344 = vmatprep.mubr.f32.mxu1 %v5084_v23  ;;  %v16514_v23 = vld [vmem:[#allocation84_spill] sm:$0xff] }
0x1072   : > { %5345 = vmatmul.mubr.f32.vlgmr.msra.gmra.mxu1 %v5083_v4  ;;  %5934 = vrot.lane.b32.xlu0 %v16512_v53, %s10145_s20  ;;  %v16515_v4 = vld [vmem:[#allocation33_spill] sm:$0xff] }
0x1073   : > { %5351 = vmatpush1.msra.mxu1 %v13919_v52  ;;  %8581 = vmatprep.mubr.msk.f32.mxu1 %vm1835_vm4, %v5086_v56  ;;  %v16518_v52 = vld [vmem:[#allocation9_spill] sm:$0xff] }
0x1074   : > { %5352 = vmatprep.subr.mxu1 %v16007_v20  ;;  %5543 = vrot.lane.b32.xlu1 %v16513_v32, %s10145_s20  ;;  %v5160_v43 = vpop.permute.xlu1 %5159 }
0x1075   : > { %5353 = vmatpush1.msra.mxu1 %v5180_v30  ;;  %v16517_v30 = vld [vmem:[#allocation103_spill] sm:$0xff] }
0x1076   : > { %5354 = vmatprep.subr.mxu1 %v16007_v20  ;;  %5932 = vrot.lane.b32.xlu0 %v16514_v23, %s10145_s20 }
0x1077   : > { %5355 = vmatpush1.msra.mxu1 %v13925_v18 }
0x1078   : > { %5356 = vmatprep.subr.mxu1 %v16007_v20  ;;  %5511 = vrot.lane.b32.xlu1 %v16515_v4, %s10145_s20  ;;  %v5156_v56 = vpop.permute.xlu1 %5155 }
0x1079   : > { %5357 = vmatpush1.msra.mxu1 %v5176_v6  ;;  %v16519_v6 = vld [vmem:[#allocation37_spill] sm:$0xff] }
0x107a   : > { %5358 = vmatprep.subr.mxu1 %v16007_v20  ;;  %5930 = vrot.lane.b32.xlu0 %v16516_v26, %s10145_s20 }
0x107b   : > { %5359 = vmatpush1.msra.mxu1 %v13931_v46 }
0x107c   : > { %5360 = vmatprep.subr.mxu1 %v16007_v20  ;;  %5605 = vrot.lane.b32.xlu1 %v16517_v30, %s10145_s20  ;;  %v5152_v18 = vpop.permute.xlu1 %5151  ;;  %v16520_v30 = vld [vmem:[#allocation8_spill] sm:$0xff] }
0x107d   : > { %5361 = vmatpush1.msra.mxu1 %v5172_v33  ;;  %v16521_v33 = vld [vmem:[#allocation39_spill] sm:$0xff] }
0x107e   : > { %5362 = vmatprep.subr.mxu1 %v16007_v20  ;;  %5928 = vrot.lane.b32.xlu0 %v16518_v52, %s10145_s20 }
0x107f   : > { %5363 = vmatpush1.msra.mxu1 %v13937_v41 }
0x1080   : > { %5364 = vmatprep.subr.mxu1 %v16007_v20  ;;  %5539 = vrot.lane.b32.xlu1 %v16519_v6, %s10145_s20  ;;  %v5210_v46 = vpop.permute.xlu1 %5209  ;;  %v16522_v6 = vld [vmem:[#allocation7_spill] sm:$0xff] }
0x1081   : > { %5365 = vmatpush1.msra.mxu1 %v5168_v48  ;;  %v16523_v48 = vld [vmem:[#allocation105_spill] sm:$0xff] }
0x1082   : > { %5366 = vmatprep.subr.mxu1 %v16007_v20  ;;  %5926 = vrot.lane.b32.xlu0 %v16520_v30, %s10145_s20 }
0x1083   : > { %5367 = vmatpush1.msra.mxu1 %v13943_v42 }
0x1084   : > { %5368 = vmatprep.subr.mxu1 %v16007_v20  ;;  %5507 = vrot.lane.b32.xlu1 %v16521_v33, %s10145_s20  ;;  %v5206_v41 = vpop.permute.xlu1 %5205 }
0x1085   : > { %5369 = vmatpush1.msra.mxu1 %v5164_v10  ;;  %v16524_v10 = vld [vmem:[#allocation43_spill] sm:$0xff] }
0x1086   : > { %5370 = vmatprep.subr.mxu1 %v16007_v20  ;;  %5924 = vrot.lane.b32.xlu0 %v16522_v6, %s10145_s20 }
0x1087   : > { %5371 = vmatpush1.msra.mxu1 %v13949_v5  ;;  %v16525_v5 = vld [vmem:[#allocation45_spill] sm:$0xff] }
0x1088   : > { %5372 = vmatprep.subr.mxu1 %v16007_v20  ;;  %5601 = vrot.lane.b32.xlu1 %v16523_v48, %s10145_s20  ;;  %v5202_v42 = vpop.permute.xlu1 %5201 }
0x1089   : > { %5373 = vmatpush1.msra.mxu1 %v5160_v43 }
0x108a   : > { %5374 = vmatprep.subr.mxu1 %v16007_v20 }
0x108b   : > { %5375 = vmatpush1.msra.mxu1 %v13955_v34  ;;  %v16526_v34 = vld [vmem:[#allocation107_spill] sm:$0xff] }
0x108c   : > { %5376 = vmatprep.subr.mxu1 %v16007_v20  ;;  %5535 = vrot.lane.b32.xlu1 %v16524_v10, %s10145_s20  ;;  %v5198_v33 = vpop.permute.xlu1 %5197 }
0x108d   : > { %5377 = vmatpush1.msra.mxu1 %v5156_v56 }
0x108e   : > { %5378 = vmatprep.subr.mxu1 %v16007_v20 }
0x108f   : > { %5379 = vmatpush1.msra.mxu1 %v13961_v12  ;;  %v16527_v12 = vld [vmem:[#allocation49_spill] sm:$0xff] }
0x1090   : > { %5380 = vmatprep.subr.mxu1 %v16007_v20  ;;  %5503 = vrot.lane.b32.xlu1 %v16525_v5, %s10145_s20  ;;  %v5194_v43 = vpop.permute.xlu1 %5193 }
0x1091   : > { %5381 = vmatpush1.msra.mxu1 %v5152_v18 }
0x1092   : > { %5384 = vmatprep.subr.mxu1 %v16007_v20 }
0x1093   : > { %8580 = vmatpush2.msk.msra.mxu1 %vm1868_vm3, %v13967_v0  ;;  %v16528_v0 = vld [vmem:[#allocation52_spill] sm:$0xff] }
0x1094   : > { %5386 = vmatprep.subr.mxu1 %v16007_v20  ;;  %5597 = vrot.lane.b32.xlu1 %v16526_v34, %s10145_s20  ;;  %v5190_v56 = vpop.permute.xlu1 %5189 }
0x1095   : > { %5387 = vmatpush2.msra.mxu1 %v5210_v46 }
0x1096   : > { %5388 = vmatprep.subr.mxu1 %v16007_v20 }
0x1097   : > { %5389 = vmatpush2.msra.mxu1 %v13973_v63 }
0x1098   : > { %5390 = vmatprep.subr.mxu1 %v16007_v20  ;;  %5531 = vrot.lane.b32.xlu1 %v16527_v12, %s10145_s20  ;;  %v5186_v18 = vpop.permute.xlu1 %5185  ;;  %v14157_v12 = vpop.permute.xlu0 %5529 }
0x1099   : > { %5391 = vmatpush2.msra.mxu1 %v5206_v41 }
0x109a   : > { %5392 = vmatprep.subr.mxu1 %v16007_v20 }
0x109b   : > { %5393 = vmatpush2.msra.mxu1 %v13979_v59 }
0x109c   : > { %5394 = vmatprep.subr.mxu1 %v16007_v20  ;;  %5499 = vrot.lane.b32.xlu1 %v16528_v0, %s10145_s20  ;;  %v5594_v46 = vpop.permute.xlu1 %5593  ;;  %v14163_v41 = vpop.permute.xlu0 %5623 }
0x109d   : > { %5395 = vmatpush2.msra.mxu1 %v5202_v42  ;;  %v5085_v42 = vmul.f32 %v14074_v8, %v13864_v19 }
0x109e   : > { %5396 = vmatprep.subr.mxu1 %v16007_v20 }
0x109f   : > { %5397 = vmatpush2.msra.mxu1 %v13985_v55 }
0x10a0   : > { %5398 = vmatprep.subr.mxu1 %v16007_v20  ;;  %v5590_v63 = vpop.permute.xlu1 %5589 }
0x10a1   : > { %5399 = vmatpush2.msra.mxu1 %v5198_v33  ;;  %v14170_v33 = vpop.permute.xlu0 %5557 }
0x10a2   : > { %5400 = vmatprep.subr.mxu1 %v16007_v20 }
0x10a3   : > { %5401 = vmatpush2.msra.mxu1 %v13991_v29 }
0x10a4   : > { %5402 = vmatprep.subr.mxu1 %v16007_v20  ;;  %v5586_v59 = vpop.permute.xlu1 %5585 }
0x10a5   : > { %5403 = vmatpush2.msra.mxu1 %v5194_v43 }
0x10a6   : > { %5404 = vmatprep.subr.mxu1 %v16007_v20 }
0x10a7   : > { %5405 = vmatpush2.msra.mxu1 %v13997_v36 }
0x10a8   : > { %5406 = vmatprep.subr.mxu1 %v16007_v20  ;;  %v5582_v55 = vpop.permute.xlu1 %5581 }
0x10a9   : > { %5407 = vmatpush2.msra.mxu1 %v5190_v56 }
0x10aa   : > { %5408 = vmatprep.subr.mxu1 %v16007_v20 }
0x10ab   : > { %5409 = vmatpush2.msra.mxu1 %v14003_v28  ;;  %v14180_v28 = vpop.permute.xlu0 %5525 }
0x10ac   : > { %5410 = vmatprep.subr.mxu1 %v16007_v20  ;;  %v5578_v29 = vpop.permute.xlu1 %5577 }
0x10ad   : > { %5411 = vmatpush2.msra.mxu1 %v5186_v18 }
0x10ae   : > { %5412 = vmatprep.subr.mxu1 %v16007_v20 }
0x10af   : > { %5413 = vmatpush2.msra.mxu1 %v14009_v7  ;;  %v5620_v19 = vpop.permute.xlu0 %5619 }
0x10b0   : > { %5415 = vmatmul.mubr.f32.vlgmr.msra.gmra.mxu1 %v5085_v42  ;;  %5824 = vmatprep.subr.mxu1 %v16007_v20  ;;  %v5574_v36 = vpop.permute.xlu1 %5573 }
0x10b1   : > { %8617 = vmatpush1.xpose.msk.msra.mxu1 %vm1500_vm2, %v5594_v46  ;;  %5888 = vmatprep.mubr.f32.mxu1 %v16007_v20 }
0x10b2   : > { %5826 = vmatprep.subr.mxu1 %v16007_v20 }
0x10b3   : > { %v14190_v56 = vpop.permute.xlu0 %5553 }
0x10b4   : > { %v5570_v43 = vpop.permute.xlu1 %5569 }
0x10b5   : > { %8618 = vmatpush1.xpose.msk.msra.mxu1 %vm1500_vm2, %v14015_v39 }
0x10b6   : > { %5828 = vmatprep.subr.mxu1 %v16007_v20 }
0x10b7   : > { %v14198_v46 = vpop.permute.xlu0 %5521 }
0x10b8   : > { %v5566_v8 = vpop.permute.xlu1 %5565 }
0x10b9   : > { %8619 = vmatpush1.xpose.msk.msra.mxu1 %vm1500_vm2, %v5590_v63 }
0x10ba   : > { %5830 = vmatprep.subr.mxu1 %v16007_v20 }
0x10bb   : > { %v5616_v63 = vpop.permute.xlu0 %5615 }
0x10bc   : > { %v5564_v7 = vpop.permute.xlu1 %5563 }
0x10bd   : > { %8620 = vmatpush1.xpose.msk.msra.mxu1 %vm1500_vm2, %v14021_v49 }
0x10be   : > { %5832 = vmatprep.subr.mxu1 %v16007_v20 }
0x10bf   : > { %v14212_v0 = vpop.permute.xlu0 %5549 }
0x10c0   : > { %v14192_v18 = vpop.permute.xlu1 %5559 }
0x10c1   : > { %8621 = vmatpush1.xpose.msk.msra.mxu1 %vm1500_vm2, %v5586_v59 }
0x10c2   : > { %5834 = vmatprep.subr.mxu1 %v16007_v20 }
0x10c4   : > { %v14196_v39 = vpop.permute.xlu1 %5527 }
0x10c5   : > { %8622 = vmatpush1.xpose.msk.msra.mxu1 %vm1500_vm2, %v14027_v50 }
0x10c6   : > { %5836 = vmatprep.subr.mxu1 %v16007_v20 }
0x10c8   : > { %v5622_v49 = vpop.permute.xlu1 %5621 }
0x10c9   : > { %8623 = vmatpush1.xpose.msk.msra.mxu1 %vm1500_vm2, %v5582_v55  ;;  %v14219_v55 = vpop.permute.xlu0 %5517 }
0x10ca   : > { %5838 = vmatprep.subr.mxu1 %v16007_v20 }
0x10cc   : > { %v14205_v42 = vpop.permute.xlu1 %5555 }
0x10cd   : > { %8624 = vmatpush1.xpose.msk.msra.mxu1 %vm1500_vm2, %v14033_v1  ;;  %v5612_v5 = vpop.permute.xlu0 %5611 }
0x10ce   : > { %5840 = vmatprep.subr.mxu1 %v16007_v20 }
0x10d0   : > { %v14210_v59 = vpop.permute.xlu1 %5523 }
0x10d1   : > { %8625 = vmatpush1.xpose.msk.msra.mxu1 %vm1500_vm2, %v5578_v29 }
0x10d2   : > { %5842 = vmatprep.subr.mxu1 %v16007_v20 }
0x10d4   : > { %v5618_v50 = vpop.permute.xlu1 %5617 }
0x10d5   : > { %8626 = vmatpush1.xpose.msk.msra.mxu1 %vm1500_vm2, %v14039_v58  ;;  %v14232_v58 = vpop.permute.xlu0 %5545 }
0x10d6   : > { %5844 = vmatprep.subr.mxu1 %v16007_v20 }
0x10d8   : > { %v14221_v34 = vpop.permute.xlu1 %5551 }
0x10d9   : > { %8627 = vmatpush1.xpose.msk.msra.mxu1 %vm1500_vm2, %v5574_v36  ;;  %v14241_v48 = vpop.permute.xlu0 %5513 }
0x10da   : > { %5846 = vmatprep.subr.mxu1 %v16007_v20 }
0x10dc   : > { %v14225_v1 = vpop.permute.xlu1 %5519 }
0x10dd   : > { %8628 = vmatpush1.xpose.msk.msra.mxu1 %vm1500_vm2, %v14045_v51 }
0x10de   : > { %5848 = vmatprep.subr.mxu1 %v16007_v20 }
0x10e0   : > { %v5614_v29 = vpop.permute.xlu1 %5613 }
0x10e1   : > { %8629 = vmatpush1.xpose.msk.msra.mxu1 %vm1500_vm2, %v5570_v43  ;;  %v5608_v43 = vpop.permute.xlu0 %5607 }
0x10e2   : > { %5850 = vmatprep.subr.mxu1 %v16007_v20 }
0x10e4   : > { %v14234_v10 = vpop.permute.xlu1 %5547 }
0x10e5   : > { %8630 = vmatpush1.xpose.msk.msra.mxu1 %vm1500_vm2, %v14051_v16  ;;  %v14252_v6 = vpop.permute.xlu0 %5541 }
0x10e6   : > { %5852 = vmatprep.subr.mxu1 %v16007_v20 }
0x10e8   : > { %v14239_v36 = vpop.permute.xlu1 %5515 }
0x10e9   : > { %8631 = vmatpush1.xpose.msk.msra.mxu1 %vm1500_vm2, %v5566_v8 }
0x10ea   : > { %5854 = vmatprep.subr.mxu1 %v16007_v20 }
0x10ec   : > { %v5610_v51 = vpop.permute.xlu1 %5609 }
0x10ed   : > { %8632 = vmatpush1.xpose.msk.msra.mxu1 %vm1500_vm2, %v5564_v7  ;;  %v14260_v7 = vpop.permute.xlu0 %5509 }
0x10ee   : > { %5858 = vmatprep.subr.mxu1 %v16007_v20 }
0x10f0   : > { %v14250_v16 = vpop.permute.xlu1 %5543 }
0x10f1   : > { %8633 = vmatpush2.xpose.msk.msra.mxu1 %vm1500_vm2, %v14163_v41  ;;  %v5604_v4 = vpop.permute.xlu0 %5603 }
0x10f2   : > { %5860 = vmatprep.subr.mxu1 %v16007_v20 }
0x10f4   : > { %v14257_v8 = vpop.permute.xlu1 %5511 }
0x10f5   : > { %8634 = vmatpush2.xpose.msk.msra.mxu1 %vm1500_vm2, %v5622_v49 }
0x10f6   : > { %5862 = vmatprep.subr.mxu1 %v16007_v20 }
0x10f8   : > { %v5606_v41 = vpop.permute.xlu1 %5605 }
0x10f9   : > { %8635 = vmatpush2.xpose.msk.msra.mxu1 %vm1500_vm2, %v5620_v19  ;;  %v14270_v19 = vpop.permute.xlu0 %5537 }
0x10fa   : > { %5864 = vmatprep.subr.mxu1 %v16007_v20 }
0x10fc   : > { %v14267_v49 = vpop.permute.xlu1 %5539 }
0x10fd   : > { %8636 = vmatpush2.xpose.msk.msra.mxu1 %vm1500_vm2, %v5618_v50  ;;  %v14274_v30 = vpop.permute.xlu0 %5505 }
0x10fe   : > { %5866 = vmatprep.subr.mxu1 %v16007_v20 }
0x1100   : > { %v5508_v50 = vpop.permute.xlu1 %5507 }
0x1101   : > { %8637 = vmatpush2.xpose.msk.msra.mxu1 %vm1500_vm2, %v5616_v63 }
0x1102   : > { %5868 = vmatprep.subr.mxu1 %v16007_v20 }
0x1104   : > { %v5602_v63 = vpop.permute.xlu1 %5601 }
0x1105   : > { %8638 = vmatpush2.xpose.msk.msra.mxu1 %vm1500_vm2, %v5614_v29  ;;  %v5600_v29 = vpop.permute.xlu0 %5599 }
0x1106   : > { %5870 = vmatprep.subr.mxu1 %v16007_v20 }
0x1109   : > { %8639 = vmatpush2.xpose.msk.msra.mxu1 %vm1500_vm2, %v5612_v5  ;;  %v5536_v5 = vpop.permute.xlu1 %5535  ;;  %v5534_v32 = vpop.permute.xlu0 %5533 }
0x110a   : > { %5872 = vmatprep.subr.mxu1 %v16007_v20 }
0x110d   : > { %8640 = vmatpush2.xpose.msk.msra.mxu1 %vm1500_vm2, %v5610_v51  ;;  %v5504_v51 = vpop.permute.xlu1 %5503 }
0x110e   : > { %5874 = vmatprep.subr.mxu1 %v16007_v20 }
0x1111   : > { %8641 = vmatpush2.xpose.msk.msra.mxu1 %vm1500_vm2, %v5608_v43  ;;  %v5502_v43 = vpop.permute.xlu0 %5501  ;;  %v5598_v52 = vpop.permute.xlu1 %5597 }
0x1112   : > { %5876 = vmatprep.subr.mxu1 %v16007_v20 }
0x1115   : > { %8642 = vmatpush2.xpose.msk.msra.mxu1 %vm1500_vm2, %v5606_v41  ;;  %v5596_v41 = vpop.permute.xlu0 %5595 }
0x1116   : > { %5878 = vmatprep.subr.mxu1 %v16007_v20 }
0x1119   : > { %8643 = vmatpush2.xpose.msk.msra.mxu1 %vm1500_vm2, %v5604_v4  ;;  %v6257_v4 = vrot.slane %v13882_v3, 4 }
0x111a   : > { %5880 = vmatprep.subr.mxu1 %v16007_v20 }
0x111d   : > { %8644 = vmatpush2.xpose.msk.msra.mxu1 %vm1500_vm2, %v5602_v63  ;;  %v5498_v63 = vpop.permute.xlu0 %5497 }
0x111e   : > { %5882 = vmatprep.subr.mxu1 %v16007_v20 }
0x1121   : > { %8645 = vmatpush2.xpose.msk.msra.mxu1 %vm1500_vm2, %v5600_v29 }
0x1122   : > { %5884 = vmatprep.subr.mxu1 %v16007_v20 }
0x1125   : > { %8646 = vmatpush2.xpose.msk.msra.mxu1 %vm1500_vm2, %v5598_v52 }
0x1126   : > { %5886 = vmatprep.subr.mxu1 %v16007_v20 }
0x1129   : > { %8647 = vmatpush2.xpose.msk.msra.mxu1 %vm1500_vm2, %v5596_v41 }
0x112a   : > { %9933 = vmatprep.subr.mxu1 %v16007_v20 }
0x112c   : > { %8648 = vmatmul.mubr.msk.f32.vlgmr.msra.gmra.mxu1 %vm1500_vm2, %v5498_v63 }
0x112d   : > { %9934 = vmatpush3.msk.msra.mxu1 %vm1868_vm3, %v6257_v4  ;;  %9935 = vmatprep.mubr.msk.f32.mxu1 %vm10140_vm0, %v16007_v20  ;;  %v16538_v4 = vld [vmem:[#allocation127_spill] sm:$0xff] }
0x1132   : > { %v9285_v29 = vpop.f32.mrf.mxu1 }
0x1134   : > { %v9286_v54 = vpop.f32.mrf.mxu1 }
0x1135   : > { %v9287_v26 = vadd.f32 %v9286_v54, %v9285_v29  ;;  %v5987_v54 = vpop.permute.xlu0 %5986 }
0x1139   : > { %v5955_v3 = vpop.permute.xlu0 %5954 }
0x1170   : > { %v5416_v52 = vpop.f32.mrf.mxu1 }
0x1171   : > { %v5417_v23 = vadd.f32 %v9287_v26, %v5416_v52  ;;  %v16539_v52 = vld [vmem:[#allocation57_spill] sm:$0xff] }
0x1172   : > { %v5418_v53 = vpop.f32.mrf.mxu1 }
0x1173   : > { %9931 = vmatmul.mubr.msk.f32.vlgmr.msra.gmra.mxu0 %vm1500_vm2, %v5417_v23  ;;  %v5532_v53 = vpop.permute.xlu1 %5531  ;;  %v5985_v23 = vpop.permute.xlu0 %5984 }
0x1174   : > { %9291 = vmatpush3.xpose.msk.msra.mxu0 %vm1500_vm2, %v14157_v12  ;;  %9322 = vmatprep.mubr.msk.f32.mxu0 %vm1500_vm2, %v5498_v63 }
0x1175   : > { %9292 = vmatprep.subr.msk.mxu0 %vm1500_vm2, %v14192_v18 }
0x1177   : > { %v5500_v26 = vpop.permute.xlu1 %5499 }
0x1178   : > { %9293 = vmatpush3.xpose.msk.msra.mxu0 %vm1500_vm2, %v14196_v39  ;;  %v16529_v39 = vld [vmem:[#allocation60_spill] sm:$0xff] }
0x1179   : > { %9294 = vmatprep.subr.msk.mxu0 %vm1500_vm2, %v14170_v33 }
0x117c   : > { %9295 = vmatpush3.xpose.msk.msra.mxu0 %vm1500_vm2, %v14180_v28 }
0x117d   : > { %9296 = vmatprep.subr.msk.mxu0 %vm1500_vm2, %v14205_v42  ;;  %v16532_v42 = vld [vmem:[#allocation115_spill] sm:$0xff] }
0x1180   : > { %9297 = vmatpush3.xpose.msk.msra.mxu0 %vm1500_vm2, %v14210_v59  ;;  %v16533_v59 = vld [vmem:[#allocation117_spill] sm:$0xff] }
0x1181   : > { %9298 = vmatprep.subr.msk.mxu0 %vm1500_vm2, %v14190_v56 }
0x1184   : > { %9299 = vmatpush3.xpose.msk.msra.mxu0 %vm1500_vm2, %v14198_v46  ;;  %v16531_v46 = vld [vmem:[#allocation35_spill] sm:$0xff] }
0x1185   : > { %9300 = vmatprep.subr.msk.mxu0 %vm1500_vm2, %v14221_v34 }
0x1188   : > { %9301 = vmatpush3.xpose.msk.msra.mxu0 %vm1500_vm2, %v14225_v1  ;;  %v16535_v1 = vld [vmem:[#allocation121_spill] sm:$0xff] }
0x1189   : > { %9302 = vmatprep.subr.msk.mxu0 %vm1500_vm2, %v14212_v0 }
0x118c   : > { %9303 = vmatpush3.xpose.msk.msra.mxu0 %vm1500_vm2, %v14219_v55  ;;  %v16534_v55 = vld [vmem:[#allocation119_spill] sm:$0xff] }
0x118d   : > { %9304 = vmatprep.subr.msk.mxu0 %vm1500_vm2, %v14234_v10 }
0x1190   : > { %9305 = vmatpush3.xpose.msk.msra.mxu0 %vm1500_vm2, %v14239_v36 }
0x1191   : > { %9306 = vmatprep.subr.msk.mxu0 %vm1500_vm2, %v14232_v58  ;;  %v16536_v58 = vld [vmem:[#allocation123_spill] sm:$0xff] }
0x1194   : > { %9307 = vmatpush3.xpose.msk.msra.mxu0 %vm1500_vm2, %v14241_v48 }
0x1195   : > { %9308 = vmatprep.subr.msk.mxu0 %vm1500_vm2, %v14250_v16  ;;  %v16537_v16 = vld [vmem:[#allocation125_spill] sm:$0xff] }
0x1198   : > { %9309 = vmatpush3.xpose.msk.msra.mxu0 %vm1500_vm2, %v14257_v8 }
0x1199   : > { %9310 = vmatprep.subr.msk.mxu0 %vm1500_vm2, %v14252_v6 }
0x119c   : > { %9311 = vmatpush3.xpose.msk.msra.mxu0 %vm1500_vm2, %v14260_v7 }
0x119d   : > { %9312 = vmatprep.subr.msk.mxu0 %vm1500_vm2, %v14267_v49 }
0x11a0   : > { %9313 = vmatpush3.xpose.msk.msra.mxu0 %vm1500_vm2, %v5508_v50 }
0x11a1   : > { %9314 = vmatprep.subr.msk.mxu0 %vm1500_vm2, %v14270_v19 }
0x11a4   : > { %9315 = vmatpush3.xpose.msk.msra.mxu0 %vm1500_vm2, %v14274_v30  ;;  %v5953_v30 = vpop.permute.xlu0 %5952 }
0x11a5   : > { %9316 = vmatprep.subr.msk.mxu0 %vm1500_vm2, %v5536_v5 }
0x11a8   : > { %9317 = vmatpush3.xpose.msk.msra.mxu0 %vm1500_vm2, %v5504_v51  ;;  %v5951_v36 = vpop.permute.xlu0 %5950 }
0x11a9   : > { %9318 = vmatprep.subr.msk.mxu0 %vm1500_vm2, %v5534_v32 }
0x11ac   : > { %9319 = vmatpush3.xpose.msk.msra.mxu0 %vm1500_vm2, %v5502_v43  ;;  %v5945_v29 = vpop.permute.xlu0 %5944 }
0x11ad   : > { %9320 = vmatprep.subr.msk.mxu0 %vm1500_vm2, %v5532_v53  ;;  %v16540_v53 = vld [vmem:[#allocation61_spill] sm:$0xff] }
0x11b0   : > { %9321 = vmatpush3.xpose.msk.msra.mxu0 %vm1500_vm2, %v5500_v26  ;;  %v16541_v26 = vld [vmem:[#allocation70_spill] sm:$0xff] }
0x11b1   : > { %9324 = vmatprep.subr.mxu0 %v5987_v54 }
0x11b3   : > { %9323 = vmatmul.mubr.msk.f32.vlgmr.msra.gmra.mxu0 %vm1500_vm2, %v5498_v63 }
0x11b4   : > { %9325 = vmatpush3.msra.mxu0 %v5955_v3  ;;  %v5943_v3 = vpop.permute.xlu0 %5942 }
0x11b5   : > { %9326 = vmatprep.subr.mxu0 %v5985_v23 }
0x11b6   : > { %9327 = vmatpush3.msra.mxu0 %v5953_v30 }
0x11ec   : > { %v5890_v10 = vpop.f32.mrf.mxu1 }
0x11ee   : > { %v5892_v34 = vpop.f32.mrf.mxu1 }
0x11ef   : > { %v5895_v12 = vsel %vm1835_vm4, %v5892_v34, -inf }
0x11f0   : > { %v5897_v28 = vmax.f32 %v5890_v10, %v5895_v12  ;;  %v16542_v12 = vld [vmem:[#allocation78_spill] sm:$0xff] }
0x1233   : > { %v5492_v6 = vpop.f32.mrf.mxu0 }
0x1234   : > { %v14356_v48 = vadd.f32 %v5492_v6, %v13789_v25  ;;  %v16530_v25 = vld [vmem:[#allocation41_spill] sm:$0xff]  ;;  %v5941_v6 = vpop.permute.xlu0 %5940 }
0x1235   : > { %v9932_v32 = vpop.f32.mrf.mxu0 }
0x1273   : > { %v5819_v0 = vpop.f32.mrf.mxu0 }
0x1275   : > { %v5821_v33 = vpop.f32.mrf.mxu0 }
0x1276   : > { %v5896_v56 = vmax.f32 %v5819_v0, %v5821_v33 }
0x1278   : > { %v5898_v18 = vmax.f32 %v5896_v56, %v5897_v28 }
0x127a   : > { %5899 = vmax.xlane.f32.xlu1 %v5898_v18  ;;  %v5939_v18 = vpop.permute.xlu0 %5938 }
0x128b   : > { %5982 = vrot.lane.b32.xlu1 %v16133_v38, %s10145_s20 }
0x128f   : > { %5980 = vrot.lane.b32.xlu1 %v16529_v39, %s10145_s20 }
0x1293   : > { %5948 = vrot.lane.b32.xlu1 %v16135_v60, %s10145_s20 }
0x1297   : > { %5978 = vrot.lane.b32.xlu1 %v16136_v11, %s10145_s20 }
0x129b   : > { %5946 = vrot.lane.b32.xlu1 %v16137_v22, %s10145_s20 }
0x129f   : > { %5976 = vrot.lane.b32.xlu1 %v16138_v27, %s10145_s20 }
0x12a3   : > { %5974 = vrot.lane.b32.xlu1 %v16139_v13, %s10145_s20 }
0x12a7   : > { %5972 = vrot.lane.b32.xlu1 %v16140_v17, %s10145_s20 }
0x12ab   : > { %5970 = vrot.lane.b32.xlu1 %v16141_v44, %s10145_s20 }
0x12af   : > { %5968 = vrot.lane.b32.xlu1 %v16142_v40, %s10145_s20 }
0x12b3   : > { %5966 = vrot.lane.b32.xlu1 %v16143_v14, %s10145_s20 }
0x12b7   : > { %5964 = vrot.lane.b32.xlu1 %v16144_v57, %s10145_s20 }
0x12bb   : > { %5962 = vrot.lane.b32.xlu1 %v16145_v37, %s10145_s20 }
0x12bf   : > { %5960 = vrot.lane.b32.xlu1 %v16147_v47, %s10145_s20 }
0x12c3   : > { %5958 = vrot.lane.b32.xlu1 %v16148_v45, %s10145_s20 }
0x12c7   : > { %5956 = vrot.lane.b32.xlu1 %v16149_v24, %s10145_s20 }
0x12cb   : > { %6018 = vrot.lane.b32.xlu1 %v11620_v9, %s10145_s20 }
0x12cf   : > { %6014 = vrot.lane.b32.xlu1 %v11633_v15, %s10145_s20 }
0x12d3   : > { %6010 = vrot.lane.b32.xlu1 %v11647_v31, %s10145_s20 }
0x12d7   : > { %6006 = vrot.lane.b32.xlu1 %v11661_v21, %s10145_s20 }
0x12db   : > { %6002 = vrot.lane.b32.xlu1 %v11675_v61, %s10145_s20 }
0x12df   : > { %5998 = vrot.lane.b32.xlu1 %v11687_v35, %s10145_s20 }
0x12e3   : > { %5994 = vrot.lane.b32.xlu1 %v16224_v2, %s10145_s20 }
0x12e7   : > { %5990 = vrot.lane.b32.xlu1 %v16530_v25, %s10145_s20 }
0x12eb   : > { %6048 = vrot.lane.b32.xlu1 %v16531_v46, %s10145_s20 }
0x12ef   : > { %6044 = vrot.lane.b32.xlu1 %v16532_v42, %s10145_s20 }
0x12f3   : > { %6040 = vrot.lane.b32.xlu1 %v16533_v59, %s10145_s20  ;;  %v16608_v59 = vld [vmem:[#allocation24_spill] sm:$0xff] }
0x12f7   : > { %6036 = vrot.lane.b32.xlu1 %v16534_v55, %s10145_s20  ;;  %v16606_v55 = vld [vmem:[#allocation96_spill] sm:$0xff] }
0x12fb   : > { %6032 = vrot.lane.b32.xlu1 %v16535_v1, %s10145_s20  ;;  %v16605_v1 = vld [vmem:[#allocation71_spill] sm:$0xff] }
0x12ff   : > { %6028 = vrot.lane.b32.xlu1 %v16536_v58, %s10145_s20  ;;  %v16603_v58 = vld [vmem:[#allocation68_spill] sm:$0xff] }
0x1303   : > { %6024 = vrot.lane.b32.xlu1 %v16537_v16, %s10145_s20  ;;  %v5900_v8 = vpop.xlane.xlu1 %5899  ;;  %v16600_v16 = vld [vmem:[#allocation56_spill] sm:$0xff] }
0x1304   : > { %v5901_v7 = vsub.f32 %v5819_v0, %v5900_v8  ;;  %v5902_v49 = vsub.f32 %v5821_v33, %v5900_v8  ;;  %v5903_v19 = vsub.f32 %v5890_v10, %v5900_v8  ;;  %v5904_v50 = vsub.f32 %v5892_v34, %v5900_v8  ;;  %v16543_v8 = vld [vmem:[#allocation89_spill] sm:$0xff] }
0x1306   : > { %v5905_v5 = vmul.f32 1.442695, %v5901_v7  ;;  %v5907_v51 = vmul.f32 1.442695, %v5902_v49  ;;  %v5909_v43 = vmul.f32 1.442695, %v5903_v19 }
0x1307   : > { %v5911_v41 = vmul.f32 1.442695, %v5904_v50  ;;  %6020 = vrot.lane.b32.xlu1 %v16538_v4, %s10145_s20  ;;  %v5983_v63 = vpop.permute.xlu1 %5982  ;;  %v16544_v19 = vld [vmem:[#allocation92_spill] sm:$0xff]  ;;  %v16598_v4 = vld [vmem:[#allocation55_spill] sm:$0xff] }
0x1308   : > { %10047 = vpow2.f32 %v5905_v5  ;;  %9328 = vmatprep.subr.mxu0 %v5983_v63  ;;  %v5937_v5 = vpop.permute.xlu0 %5936  ;;  %v16546_v63 = vld [vmem:[#allocation14_spill] sm:$0xff] }
0x1309   : > { %10049 = vpow2.f32 %v5907_v51  ;;  %9329 = vmatpush3.msra.mxu0 %v5951_v36  ;;  %v16545_v51 = vld [vmem:[#allocation93_spill] sm:$0xff] }
0x130a   : > { %10051 = vpow2.f32 %v5909_v43 }
0x130b   : > { %10053 = vpow2.f32 %v5911_v41  ;;  %6428 = vrot.lane.b32.xlu1 %v16539_v52, %s10146_s26  ;;  %v5981_v54 = vpop.permute.xlu1 %5980  ;;  %v16596_v52 = vld [vmem:[#allocation54_spill] sm:$0xff] }
0x130c   : > { %9330 = vmatprep.subr.mxu0 %v5981_v54  ;;  %v5935_v41 = vpop.permute.xlu0 %5934 }
0x130f   : > { %6424 = vrot.lane.b32.xlu1 %v16540_v53, %s10146_s26  ;;  %v5949_v23 = vpop.permute.xlu1 %5948  ;;  %v16594_v53 = vld [vmem:[#allocation51_spill] sm:$0xff] }
0x1310   : > { %9331 = vmatpush3.msra.mxu0 %v5949_v23 }
0x1313   : > { %6420 = vrot.lane.b32.xlu1 %v16541_v26, %s10146_s26  ;;  %v5979_v30 = vpop.permute.xlu1 %5978  ;;  %v16592_v26 = vld [vmem:[#allocation13_spill] sm:$0xff] }
0x1314   : > { %9332 = vmatprep.subr.mxu0 %v5979_v30  ;;  %v5933_v30 = vpop.permute.xlu0 %5932 }
0x1315   : > { %v14429_v32 = vpop.eup %10047 }
0x1316   : > { %v14431_v10 = vpop.eup %10049 }
0x1317   : > { %v14433_v34 = vpop.eup %10051  ;;  %6416 = vrot.lane.b32.xlu1 %v16542_v12, %s10146_s26  ;;  %v5947_v0 = vpop.permute.xlu1 %5946  ;;  %v5913_v33 = vadd.f32 %v14431_v10, %v14429_v32  ;;  %v16590_v12 = vld [vmem:[#allocation108_spill] sm:$0xff] }
0x1318   : > { %v14439_v28 = vpop.eup %10053  ;;  %9333 = vmatpush3.msra.mxu0 %v5947_v0 }
0x1319   : > { %v5914_v56 = vadd.f32 %v14433_v34, %v5913_v33  ;;  %v5915_v36 = vsel %vm1835_vm4, %v14439_v28, 0.0  ;;  %v16549_v33 = vld [vmem:[#allocation109_spill] sm:$0xff] }
0x131b   : > { %6412 = vrot.lane.b32.xlu1 %v16543_v8, %s10146_s26  ;;  %v5977_v7 = vpop.permute.xlu1 %5976  ;;  %v5916_v49 = vadd.f32 %v5915_v36, %v5914_v56  ;;  %v16550_v56 = vld [vmem:[#allocation18_spill] sm:$0xff]  ;;  %v16588_v8 = vld [vmem:[#allocation48_spill] sm:$0xff] }
0x131c   : > { %9334 = vmatprep.subr.mxu0 %v5977_v7  ;;  %v16551_v36 = vld [vmem:[#allocation110_spill] sm:$0xff]  ;;  %v16552_v7 = vld [vmem:[#allocation19_spill] sm:$0xff] }
0x131d   : > { %5917 = vadd.xlane.f32.xlu0 %v5916_v49  ;;  %9335 = vmatpush3.msra.mxu0 %v5945_v29  ;;  %v16547_v29 = vld [vmem:[#allocation15_spill] sm:$0xff] }
0x131f   : > { %6408 = vrot.lane.b32.xlu1 %v16544_v19, %s10146_s26  ;;  %v5975_v50 = vpop.permute.xlu1 %5974  ;;  %v16586_v19 = vld [vmem:[#allocation46_spill] sm:$0xff] }
0x1320   : > { %9336 = vmatprep.subr.mxu0 %v5975_v50 }
0x1321   : > { %9337 = vmatpush3.msra.mxu0 %v5943_v3  ;;  %v16548_v3 = vld [vmem:[#allocation95_spill] sm:$0xff] }
0x1323   : > { %6404 = vrot.lane.b32.xlu1 %v16545_v51, %s10146_s26  ;;  %v5973_v43 = vpop.permute.xlu1 %5972  ;;  %v16584_v51 = vld [vmem:[#allocation106_spill] sm:$0xff] }
0x1324   : > { %9338 = vmatprep.subr.mxu0 %v5973_v43  ;;  %v16554_v43 = vld [vmem:[#allocation97_spill] sm:$0xff] }
0x1325   : > { %9339 = vmatpush3.msra.mxu0 %v5941_v6  ;;  %v5931_v6 = vpop.permute.xlu0 %5930 }
0x1327   : > { %6398 = vrot.lane.b32.xlu1 %v16546_v63, %s10146_s26  ;;  %v5971_v54 = vpop.permute.xlu1 %5970  ;;  %v16582_v63 = vld [vmem:[#allocation42_spill] sm:$0xff] }
0x1328   : > { %9340 = vmatprep.subr.mxu0 %v5971_v54 }
0x1329   : > { %9341 = vmatpush3.msra.mxu0 %v5939_v18  ;;  %v5929_v50 = vpop.permute.xlu0 %5928 }
0x132b   : > { %6366 = vrot.lane.b32.xlu1 %v16547_v29, %s10146_s26  ;;  %v5969_v23 = vpop.permute.xlu1 %5968  ;;  %v16578_v29 = vld [vmem:[#allocation104_spill] sm:$0xff] }
0x132c   : > { %9342 = vmatprep.subr.mxu0 %v5969_v23  ;;  %v16555_v23 = vld [vmem:[#allocation112_spill] sm:$0xff] }
0x132d   : > { %9343 = vmatpush3.msra.mxu0 %v5937_v5  ;;  %v16553_v5 = vld [vmem:[#allocation111_spill] sm:$0xff]  ;;  %v5927_v54 = vpop.permute.xlu0 %5926 }
0x132f   : > { %6460 = vrot.lane.b32.xlu1 %v16548_v3, %s10146_s26  ;;  %v5967_v0 = vpop.permute.xlu1 %5966  ;;  %v16574_v3 = vld [vmem:[#allocation34_spill] sm:$0xff] }
0x1330   : > { %9344 = vmatprep.subr.mxu0 %v5967_v0 }
0x1331   : > { %9345 = vmatpush3.msra.mxu0 %v5935_v41 }
0x1333   : > { %6016 = vrot.lane.b32.xlu0 %v16549_v33, %s10145_s20  ;;  %6394 = vrot.lane.b32.xlu1 %v16550_v56, %s10146_s26  ;;  %v5965_v18 = vpop.permute.xlu1 %5964  ;;  %v16570_v56 = vld [vmem:[#allocation31_spill] sm:$0xff] }
0x1334   : > { %9346 = vmatprep.subr.mxu0 %v5965_v18  ;;  %v16558_v18 = vld [vmem:[#allocation23_spill] sm:$0xff] }
0x1335   : > { %9347 = vmatpush3.msra.mxu0 %v5933_v30  ;;  %v16556_v30 = vld [vmem:[#allocation22_spill] sm:$0xff] }
0x1337   : > { %6012 = vrot.lane.b32.xlu0 %v16551_v36, %s10145_s20  ;;  %6362 = vrot.lane.b32.xlu1 %v16552_v7, %s10146_s26  ;;  %v5963_v49 = vpop.permute.xlu1 %5962  ;;  %v16566_v7 = vld [vmem:[#allocation100_spill] sm:$0xff] }
0x1338   : > { %9348 = vmatprep.subr.mxu0 %v5963_v49  ;;  %v16580_v36 = vld [vmem:[#allocation40_spill] sm:$0xff] }
0x1339   : > { %9349 = vmatpush3.msra.mxu0 %v5931_v6  ;;  %v16557_v6 = vld [vmem:[#allocation113_spill] sm:$0xff] }
0x133b   : > { %6008 = vrot.lane.b32.xlu0 %v16553_v5, %s10145_s20  ;;  %6456 = vrot.lane.b32.xlu1 %v16554_v43, %s10146_s26  ;;  %v5961_v41 = vpop.permute.xlu1 %5960  ;;  %v5925_v43 = vpop.permute.xlu0 %5924  ;;  %v16576_v5 = vld [vmem:[#allocation36_spill] sm:$0xff] }
0x133c   : > { %9350 = vmatprep.subr.mxu0 %v5961_v41  ;;  %v16560_v41 = vld [vmem:[#allocation99_spill] sm:$0xff] }
0x133d   : > { %9351 = vmatpush3.msra.mxu0 %v5929_v50  ;;  %v16559_v50 = vld [vmem:[#allocation50_spill] sm:$0xff] }
0x133f   : > { %6004 = vrot.lane.b32.xlu0 %v16555_v23, %s10145_s20  ;;  %6390 = vrot.lane.b32.xlu1 %v16556_v30, %s10146_s26  ;;  %v5959_v0 = vpop.permute.xlu1 %5958  ;;  %v16562_v30 = vld [vmem:[#allocation26_spill] sm:$0xff] }
0x1340   : > { %9352 = vmatprep.subr.mxu0 %v5959_v0  ;;  %v16572_v23 = vld [vmem:[#allocation102_spill] sm:$0xff] }
0x1341   : > { %9353 = vmatpush3.msra.mxu0 %v5927_v54  ;;  %v16561_v54 = vld [vmem:[#allocation44_spill] sm:$0xff] }
0x1343   : > { %6000 = vrot.lane.b32.xlu0 %v16557_v6, %s10145_s20  ;;  %6358 = vrot.lane.b32.xlu1 %v16558_v18, %s10146_s26  ;;  %v5957_v49 = vpop.permute.xlu1 %5956  ;;  %v16568_v6 = vld [vmem:[#allocation30_spill] sm:$0xff] }
0x1344   : > { %9354 = vmatprep.subr.mxu0 %v5957_v49  ;;  %v16564_v49 = vld [vmem:[#allocation27_spill] sm:$0xff] }
0x1345   : > { %9355 = vmatpush3.msra.mxu0 %v5925_v43  ;;  %v16563_v43 = vld [vmem:[#allocation38_spill] sm:$0xff] }
0x1346   : > { %6187 = vmatprep.subr.mxu0 %v16007_v20 }
0x1347   : > { %5996 = vrot.lane.b32.xlu0 %v16559_v50, %s10145_s20  ;;  %6452 = vrot.lane.b32.xlu1 %v16560_v41, %s10146_s26  ;;  %v14481_v0 = vpop.permute.xlu1 %6018  ;;  %v16565_v41 = vld [vmem:[#allocation114_spill] sm:$0xff] }
0x134b   : > { %5992 = vrot.lane.b32.xlu0 %v16561_v54, %s10145_s20  ;;  %6386 = vrot.lane.b32.xlu1 %v16562_v30, %s10146_s26  ;;  %v14487_v18 = vpop.permute.xlu1 %6014  ;;  %v16567_v30 = vld [vmem:[#allocation116_spill] sm:$0xff] }
0x134f   : > { %5988 = vrot.lane.b32.xlu0 %v16563_v43, %s10145_s20  ;;  %6354 = vrot.lane.b32.xlu1 %v16564_v49, %s10146_s26  ;;  %v14493_v50 = vpop.permute.xlu1 %6010  ;;  %v16569_v49 = vld [vmem:[#allocation118_spill] sm:$0xff] }
0x1353   : > { %6046 = vrot.lane.b32.xlu0 %v16565_v41, %s10145_s20  ;;  %6448 = vrot.lane.b32.xlu1 %v16566_v7, %s10146_s26  ;;  %v14499_v54 = vpop.permute.xlu1 %6006  ;;  %v16571_v7 = vld [vmem:[#allocation120_spill] sm:$0xff] }
0x1357   : > { %6042 = vrot.lane.b32.xlu0 %v16567_v30, %s10145_s20  ;;  %6382 = vrot.lane.b32.xlu1 %v16568_v6, %s10146_s26  ;;  %v14505_v43 = vpop.permute.xlu1 %6002  ;;  %v16573_v6 = vld [vmem:[#allocation122_spill] sm:$0xff] }
0x135b   : > { %6038 = vrot.lane.b32.xlu0 %v16569_v49, %s10145_s20  ;;  %6350 = vrot.lane.b32.xlu1 %v16570_v56, %s10146_s26  ;;  %v14511_v41 = vpop.permute.xlu1 %5998  ;;  %v16575_v56 = vld [vmem:[#allocation124_spill] sm:$0xff] }
0x135f   : > { %6034 = vrot.lane.b32.xlu0 %v16571_v7, %s10145_s20  ;;  %6444 = vrot.lane.b32.xlu1 %v16572_v23, %s10146_s26  ;;  %v14517_v30 = vpop.permute.xlu1 %5994  ;;  %v16577_v23 = vld [vmem:[#allocation126_spill] sm:$0xff] }
0x1363   : > { %6030 = vrot.lane.b32.xlu0 %v16573_v6, %s10145_s20  ;;  %6378 = vrot.lane.b32.xlu1 %v16574_v3, %s10146_s26  ;;  %v14523_v49 = vpop.permute.xlu1 %5990  ;;  %v16579_v3 = vld [vmem:[#allocation53_spill] sm:$0xff] }
0x1367   : > { %6026 = vrot.lane.b32.xlu0 %v16575_v56, %s10145_s20  ;;  %6346 = vrot.lane.b32.xlu1 %v16576_v5, %s10146_s26  ;;  %v14529_v7 = vpop.permute.xlu1 %6048  ;;  %v16581_v5 = vld [vmem:[#allocation62_spill] sm:$0xff] }
0x136b   : > { %6022 = vrot.lane.b32.xlu0 %v16577_v23, %s10145_s20  ;;  %6440 = vrot.lane.b32.xlu1 %v16578_v29, %s10146_s26  ;;  %v14535_v6 = vpop.permute.xlu1 %6044  ;;  %v16583_v29 = vld [vmem:[#allocation66_spill] sm:$0xff]  ;;  %s8031_s20 = sshll.u32 %s365_s15, 4  ;;  %s8032_s20 = int_to_ptr.vmem [resolvable:$true] %s8031_s20 }
0x136c   : > { %s10077_s25 = scalar_lea.vmem %s8032_s20, 128  ;;  %p10084_p0 = scmp.lt.s32.totalorder %s8032_s20, %s10082_s27 }
0x136d   : > { %p10078_p11 = scmp.ne.s32.totalorder %s8032_s20, %s10077_s25  ;;  %p10085_p1 = scmp.lt.s32.totalorder %s10083_s29, %s10077_s25 }
0x136f   : > { %6430 = vrot.lane.b32.xlu0 %v16579_v3, %s10146_s26  ;;  %6374 = vrot.lane.b32.xlu1 %v16580_v36, %s10146_s26  ;;  %v14541_v56 = vpop.permute.xlu1 %6040  ;;  %v16585_v36 = vld [vmem:[#allocation74_spill] sm:$0xff]  ;;  %p10079_p12 = pnand %p10078_p11, %p10242_p5  ;;  %p10086_p2 = por %p10085_p1, %p10084_p0 }
0x1371   : > { %p10080_p13 = pneg %p10079_p12 }
0x1373   : > { %6426 = vrot.lane.b32.xlu0 %v16581_v5, %s10146_s26  ;;  %6342 = vrot.lane.b32.xlu1 %v16582_v63, %s10146_s26  ;;  %v14547_v23 = vpop.permute.xlu1 %6036  ;;  %v16587_v63 = vld [vmem:[#allocation82_spill] sm:$0xff]  ;;  %p10087_p3 = pnand %p10086_p2, %p10080_p13 }
0x1377   : > { %6422 = vrot.lane.b32.xlu0 %v16583_v29, %s10146_s26  ;;  %6436 = vrot.lane.b32.xlu1 %v16584_v51, %s10146_s26  ;;  %v14553_v3 = vpop.permute.xlu1 %6032  ;;  %v16589_v51 = vld [vmem:[#allocation86_spill] sm:$0xff] }
0x137b   : > { %6418 = vrot.lane.b32.xlu0 %v16585_v36, %s10146_s26  ;;  %6370 = vrot.lane.b32.xlu1 %v16586_v19, %s10146_s26  ;;  %v14559_v5 = vpop.permute.xlu1 %6028  ;;  %v16591_v19 = vld [vmem:[#allocation88_spill] sm:$0xff] }
0x137f   : > { %6414 = vrot.lane.b32.xlu0 %v16587_v63, %s10146_s26  ;;  %6338 = vrot.lane.b32.xlu1 %v16588_v8, %s10146_s26  ;;  %v14565_v29 = vpop.permute.xlu1 %6024  ;;  %v16593_v8 = vld [vmem:[#allocation90_spill] sm:$0xff] }
0x1383   : > { %6410 = vrot.lane.b32.xlu0 %v16589_v51, %s10146_s26  ;;  %6432 = vrot.lane.b32.xlu1 %v16590_v12, %s10146_s26  ;;  %v14571_v36 = vpop.permute.xlu1 %6020  ;;  %v16595_v12 = vld [vmem:[#allocation91_spill] sm:$0xff] }
0x1387   : > { %6406 = vrot.lane.b32.xlu0 %v16591_v19, %s10146_s26  ;;  %6334 = vrot.lane.b32.xlu1 %v16592_v26, %s10146_s26  ;;  %v14577_v63 = vpop.permute.xlu1 %6428  ;;  %v16597_v26 = vld [vmem:[#allocation16_spill] sm:$0xff] }
0x138b   : > { %6402 = vrot.lane.b32.xlu0 %v16593_v8, %s10146_s26  ;;  %6823 = vrot.lane.b32.xlu1 %v16594_v53, %s10146_s26  ;;  %v14583_v51 = vpop.permute.xlu1 %6424  ;;  %v16599_v53 = vld [vmem:[#allocation17_spill] sm:$0xff] }
0x138f   : > { %6400 = vrot.lane.b32.xlu0 %v16595_v12, %s10146_s26  ;;  %6791 = vrot.lane.b32.xlu1 %v16596_v52, %s10146_s26  ;;  %v14589_v19 = vpop.permute.xlu1 %6420  ;;  %v16601_v52 = vld [vmem:[#allocation94_spill] sm:$0xff] }
0x1393   : > { %6396 = vrot.lane.b32.xlu0 %v16597_v26, %s10146_s26  ;;  %6821 = vrot.lane.b32.xlu1 %v16598_v4, %s10146_s26  ;;  %v14595_v8 = vpop.permute.xlu1 %6416  ;;  %v16602_v4 = vld [vmem:[#allocation20_spill] sm:$0xff] }
0x1397   : > { %6364 = vrot.lane.b32.xlu0 %v16599_v53, %s10146_s26  ;;  %6789 = vrot.lane.b32.xlu1 %v16600_v16, %s10146_s26  ;;  %v14601_v12 = vpop.permute.xlu1 %6412  ;;  %v16604_v16 = vld [vmem:[#allocation21_spill] sm:$0xff] }
0x139b   : > { %6458 = vrot.lane.b32.xlu0 %v16601_v52, %s10146_s26  ;;  %6817 = vrot.lane.b32.xlu1 %v16529_v39, %s10146_s26  ;;  %v14607_v26 = vpop.permute.xlu1 %6408 }
0x139f   : > { %6392 = vrot.lane.b32.xlu0 %v16602_v4, %s10146_s26  ;;  %6781 = vrot.lane.b32.xlu1 %v16603_v58, %s10146_s26  ;;  %v14613_v53 = vpop.permute.xlu1 %6404  ;;  %v16607_v4 = vld [vmem:[#allocation73_spill] sm:$0xff] }
0x13a3   : > { %6360 = vrot.lane.b32.xlu0 %v16604_v16, %s10146_s26  ;;  %6779 = vrot.lane.b32.xlu1 %v16605_v1, %s10146_s26  ;;  %v6399_v52 = vpop.permute.xlu1 %6398  ;;  %v16609_v16 = vld [vmem:[#allocation76_spill] sm:$0xff]  ;;  %v16610_v1 = vld [vmem:[#allocation25_spill] sm:$0xff] }
0x13a4   : > { %9361 = vmatprep.subr.msk.mxu1 %vm1500_vm2, %v6399_v52  ;;  %v16611_v52 = vld [vmem:[#allocation98_spill] sm:$0xff] }
0x13a6   : > { %v5918_v39 = vpop.xlane.xlu0 %5917 }
0x13a7   : > { %10055 = vrcp.f32 %v5918_v39  ;;  %6454 = vrot.lane.b32.xlu0 %v16606_v55, %s10146_s26  ;;  %6777 = vrot.lane.b32.xlu1 %v16607_v4, %s10146_s26  ;;  %v16612_v4 = vld [vmem:[#allocation81_spill] sm:$0xff] }
0x13aa   : > { %v6017_v58 = vpop.permute.xlu0 %6016 }
0x13ab   : > { %6388 = vrot.lane.b32.xlu0 %v16608_v59, %s10146_s26  ;;  %6775 = vrot.lane.b32.xlu1 %v16609_v16, %s10146_s26 }
0x13ae   : > { %v6013_v42 = vpop.permute.xlu0 %6012 }
0x13af   : > { %6356 = vrot.lane.b32.xlu0 %v16610_v1, %s10146_s26  ;;  %6773 = vrot.lane.b32.xlu1 %v16510_v62, %s10146_s26  ;;  %v16613_v1 = vld [vmem:[#allocation28_spill] sm:$0xff] }
0x13b2   : > { %v6009_v39 = vpop.permute.xlu0 %6008 }
0x13b3   : > { %6450 = vrot.lane.b32.xlu0 %v16611_v52, %s10146_s26  ;;  %6771 = vrot.lane.b32.xlu1 %v16612_v4, %s10146_s26  ;;  %v16614_v52 = vld [vmem:[#allocation84_spill] sm:$0xff] }
0x13b4   : > { %v14636_v55 = vpop.eup %10055 }
0x13b5   : > { %v5921_v59 = vmul.f32 %v14636_v55, %v14431_v10  ;;  %v5920_v16 = vmul.f32 %v14636_v55, %v14429_v32  ;;  %v5923_v62 = vmul.f32 %v14636_v55, %v14439_v28  ;;  %v16615_v32 = vld [vmem:[#allocation29_spill] sm:$0xff] }
0x13b6   : > { %v6005_v46 = vpop.permute.xlu0 %6004 }
0x13b7   : > { %6384 = vrot.lane.b32.xlu0 %v16613_v1, %s10146_s26  ;;  %6181 = vmatprep.mubr.f32.mxu0 %v5921_v59  ;;  %v16616_v59 = vld [vmem:[#allocation87_spill] sm:$0xff] }
0x13b8   : > { %6769 = vrot.lane.b32.xlu1 %v16614_v52, %s10146_s26  ;;  %6182 = vmatmul.mubr.f32.vlgmr.msra.gmra.mxu0 %v5920_v16 }
0x13b9   : > { %6188 = vmatpush1.msra.mxu0 %v14481_v0  ;;  %8650 = vmatprep.mubr.msk.f32.mxu0 %vm1835_vm4, %v5923_v62  ;;  %v16617_v62 = vld [vmem:[#allocation101_spill] sm:$0xff] }
0x13ba   : > { %6189 = vmatprep.subr.mxu0 %v16007_v20  ;;  %v6001_v10 = vpop.permute.xlu0 %6000 }
0x13bb   : > { %6190 = vmatpush1.msra.mxu0 %v6017_v58  ;;  %6352 = vrot.lane.b32.xlu0 %v16615_v32, %s10146_s26  ;;  %v16618_v58 = vld [vmem:[#allocation9_spill] sm:$0xff] }
0x13bc   : > { %6191 = vmatprep.subr.mxu0 %v16007_v20  ;;  %6767 = vrot.lane.b32.xlu1 %v16616_v59, %s10146_s26 }
0x13bd   : > { %6192 = vmatpush1.msra.mxu0 %v14487_v18  ;;  %v16619_v18 = vld [vmem:[#allocation32_spill] sm:$0xff] }
0x13be   : > { %6193 = vmatprep.subr.mxu0 %v16007_v20  ;;  %v5997_v16 = vpop.permute.xlu0 %5996 }
0x13bf   : > { %6194 = vmatpush1.msra.mxu0 %v6013_v42  ;;  %6446 = vrot.lane.b32.xlu0 %v16617_v62, %s10146_s26  ;;  %v16620_v42 = vld [vmem:[#allocation8_spill] sm:$0xff] }
0x13c0   : > { %6195 = vmatprep.subr.mxu0 %v16007_v20  ;;  %6765 = vrot.lane.b32.xlu1 %v16618_v58, %s10146_s26 }
0x13c1   : > { %6196 = vmatpush1.msra.mxu0 %v14493_v50  ;;  %v16621_v50 = vld [vmem:[#allocation33_spill] sm:$0xff] }
0x13c2   : > { %6197 = vmatprep.subr.mxu0 %v16007_v20  ;;  %v5993_v28 = vpop.permute.xlu0 %5992 }
0x13c3   : > { %6198 = vmatpush1.msra.mxu0 %v6009_v39  ;;  %6380 = vrot.lane.b32.xlu0 %v16619_v18, %s10146_s26  ;;  %v16622_v39 = vld [vmem:[#allocation7_spill] sm:$0xff] }
0x13c4   : > { %6199 = vmatprep.subr.mxu0 %v16007_v20  ;;  %6763 = vrot.lane.b32.xlu1 %v16620_v42, %s10146_s26 }
0x13c5   : > { %6200 = vmatpush1.msra.mxu0 %v14499_v54  ;;  %v16623_v54 = vld [vmem:[#allocation103_spill] sm:$0xff] }
0x13c6   : > { %6201 = vmatprep.subr.mxu0 %v16007_v20  ;;  %v5989_v0 = vpop.permute.xlu0 %5988 }
0x13c7   : > { %6202 = vmatpush1.msra.mxu0 %v6005_v46  ;;  %6348 = vrot.lane.b32.xlu0 %v16621_v50, %s10146_s26 }
0x13c8   : > { %6203 = vmatprep.subr.mxu0 %v16007_v20  ;;  %6761 = vrot.lane.b32.xlu1 %v16622_v39, %s10146_s26  ;;  %v16625_v39 = vld [vmem:[#allocation39_spill] sm:$0xff] }
0x13c9   : > { %6204 = vmatpush1.msra.mxu0 %v14505_v43  ;;  %v16624_v43 = vld [vmem:[#allocation37_spill] sm:$0xff] }
0x13ca   : > { %6205 = vmatprep.subr.mxu0 %v16007_v20  ;;  %v6047_v58 = vpop.permute.xlu0 %6046 }
0x13cb   : > { %6206 = vmatpush1.msra.mxu0 %v6001_v10  ;;  %6442 = vrot.lane.b32.xlu0 %v16623_v54, %s10146_s26 }
0x13cc   : > { %6207 = vmatprep.subr.mxu0 %v16007_v20  ;;  %6853 = vrot.lane.b32.xlu1 %v16549_v33, %s10146_s26  ;;  %v16630_v33 = vld [vmem:[#allocation49_spill] sm:$0xff] }
0x13cd   : > { %6208 = vmatpush1.msra.mxu0 %v14511_v41 }
0x13ce   : > { %6209 = vmatprep.subr.mxu0 %v16007_v20  ;;  %v6043_v46 = vpop.permute.xlu0 %6042 }
0x13cf   : > { %6210 = vmatpush1.msra.mxu0 %v5997_v16  ;;  %6376 = vrot.lane.b32.xlu0 %v16624_v43, %s10146_s26  ;;  %v16626_v16 = vld [vmem:[#allocation105_spill] sm:$0xff] }
0x13d0   : > { %6211 = vmatprep.subr.mxu0 %v16007_v20 }
0x13d1   : > { %6212 = vmatpush1.msra.mxu0 %v14517_v30 }
0x13d2   : > { %6213 = vmatprep.subr.mxu0 %v16007_v20  ;;  %v6039_v10 = vpop.permute.xlu0 %6038 }
0x13d3   : > { %6214 = vmatpush1.msra.mxu0 %v5993_v28  ;;  %6344 = vrot.lane.b32.xlu0 %v16625_v39, %s10146_s26  ;;  %v16627_v28 = vld [vmem:[#allocation43_spill] sm:$0xff] }
0x13d4   : > { %6215 = vmatprep.subr.mxu0 %v16007_v20 }
0x13d5   : > { %6216 = vmatpush1.msra.mxu0 %v14523_v49 }
0x13d6   : > { %6217 = vmatprep.subr.mxu0 %v16007_v20  ;;  %v6035_v41 = vpop.permute.xlu0 %6034 }
0x13d7   : > { %6218 = vmatpush1.msra.mxu0 %v5989_v0  ;;  %6438 = vrot.lane.b32.xlu0 %v16626_v16, %s10146_s26  ;;  %v16628_v0 = vld [vmem:[#allocation45_spill] sm:$0xff] }
0x13d8   : > { %6221 = vmatprep.subr.mxu0 %v16007_v20 }
0x13d9   : > { %8649 = vmatpush2.msk.msra.mxu0 %vm1868_vm3, %v14529_v7 }
0x13da   : > { %6223 = vmatprep.subr.mxu0 %v16007_v20  ;;  %v6031_v30 = vpop.permute.xlu0 %6030 }
0x13db   : > { %6224 = vmatpush2.msra.mxu0 %v6047_v58  ;;  %6372 = vrot.lane.b32.xlu0 %v16627_v28, %s10146_s26  ;;  %v16629_v58 = vld [vmem:[#allocation107_spill] sm:$0xff] }
0x13dc   : > { %6225 = vmatprep.subr.mxu0 %v16007_v20 }
0x13dd   : > { %6226 = vmatpush2.msra.mxu0 %v14535_v6 }
0x13de   : > { %6227 = vmatprep.subr.mxu0 %v16007_v20  ;;  %v6027_v49 = vpop.permute.xlu0 %6026 }
0x13df   : > { %6228 = vmatpush2.msra.mxu0 %v6043_v46  ;;  %6340 = vrot.lane.b32.xlu0 %v16628_v0, %s10146_s26  ;;  %v14717_v46 = vpop.permute.xlu1 %6366 }
0x13e0   : > { %6229 = vmatprep.subr.mxu0 %v16007_v20 }
0x13e1   : > { %6230 = vmatpush2.msra.mxu0 %v14541_v56 }
0x13e2   : > { %6231 = vmatprep.subr.mxu0 %v16007_v20  ;;  %v6023_v7 = vpop.permute.xlu0 %6022 }
0x13e3   : > { %6232 = vmatpush2.msra.mxu0 %v6039_v10  ;;  %6434 = vrot.lane.b32.xlu0 %v16629_v58, %s10146_s26  ;;  %v16631_v10 = vld [vmem:[#allocation52_spill] sm:$0xff] }
0x13e4   : > { %6233 = vmatprep.subr.mxu0 %v16007_v20 }
0x13e5   : > { %6234 = vmatpush2.msra.mxu0 %v14547_v23  ;;  %v14727_v23 = vpop.permute.xlu1 %6460 }
0x13e6   : > { %6235 = vmatprep.subr.mxu0 %v16007_v20  ;;  %v6431_v6 = vpop.permute.xlu0 %6430 }
0x13e7   : > { %6236 = vmatpush2.msra.mxu0 %v6035_v41  ;;  %6368 = vrot.lane.b32.xlu0 %v16630_v33, %s10146_s26 }
0x13e8   : > { %6237 = vmatprep.subr.mxu0 %v16007_v20 }
0x13e9   : > { %6238 = vmatpush2.msra.mxu0 %v14553_v3 }
0x13ea   : > { %6239 = vmatprep.subr.mxu0 %v16007_v20  ;;  %v6427_v56 = vpop.permute.xlu0 %6426 }
0x13eb   : > { %6240 = vmatpush2.msra.mxu0 %v6031_v30  ;;  %6336 = vrot.lane.b32.xlu0 %v16631_v10, %s10146_s26  ;;  %v14734_v30 = vpop.permute.xlu1 %6394  ;;  %v5922_v10 = vmul.f32 %v14636_v55, %v14433_v34 }
0x13ec   : > { %6241 = vmatprep.subr.mxu0 %v16007_v20 }
0x13ed   : > { %6242 = vmatpush2.msra.mxu0 %v14559_v5 }
0x13ee   : > { %6243 = vmatprep.subr.mxu0 %v16007_v20  ;;  %v6423_v41 = vpop.permute.xlu0 %6422 }
0x13ef   : > { %6244 = vmatpush2.msra.mxu0 %v6027_v49 }
0x13f0   : > { %6245 = vmatprep.subr.mxu0 %v16007_v20 }
0x13f1   : > { %6246 = vmatpush2.msra.mxu0 %v14565_v29  ;;  %v14744_v29 = vpop.permute.xlu1 %6362 }
0x13f2   : > { %6247 = vmatprep.subr.mxu0 %v16007_v20  ;;  %v6419_v3 = vpop.permute.xlu0 %6418 }
0x13f3   : > { %6248 = vmatpush2.msra.mxu0 %v6023_v7 }
0x13f4   : > { %6249 = vmatprep.subr.mxu0 %v16007_v20 }
0x13f5   : > { %6250 = vmatpush2.msra.mxu0 %v14571_v36  ;;  %v6457_v34 = vpop.permute.xlu1 %6456 }
0x13f6   : > { %6252 = vmatmul.mubr.f32.vlgmr.msra.gmra.mxu0 %v5922_v10  ;;  %6661 = vmatprep.subr.mxu0 %v16007_v20  ;;  %v6415_v5 = vpop.permute.xlu0 %6414 }
0x13f7   : > { %8686 = vmatpush1.xpose.msk.msra.mxu0 %vm1500_vm2, %v6431_v6  ;;  %6725 = vmatprep.mubr.f32.mxu0 %v16007_v20 }
0x13f8   : > { %6663 = vmatprep.subr.mxu0 %v16007_v20 }
0x13f9   : > { %v14754_v7 = vpop.permute.xlu1 %6390 }
0x13fa   : > { %v6411_v49 = vpop.permute.xlu0 %6410 }
0x13fb   : > { %8687 = vmatpush1.xpose.msk.msra.mxu0 %vm1500_vm2, %v14577_v63 }
0x13fc   : > { %6665 = vmatprep.subr.mxu0 %v16007_v20 }
0x13fd   : > { %v14760_v10 = vpop.permute.xlu1 %6358 }
0x13fe   : > { %v6407_v55 = vpop.permute.xlu0 %6406 }
0x13ff   : > { %8688 = vmatpush1.xpose.msk.msra.mxu0 %vm1500_vm2, %v6427_v56 }
0x1400   : > { %6667 = vmatprep.subr.mxu0 %v16007_v20 }
0x1402   : > { %v6403_v36 = vpop.permute.xlu0 %6402 }
0x1403   : > { %8689 = vmatpush1.xpose.msk.msra.mxu0 %vm1500_vm2, %v14583_v51  ;;  %v6453_v51 = vpop.permute.xlu1 %6452 }
0x1404   : > { %6669 = vmatprep.subr.mxu0 %v16007_v20 }
0x1406   : > { %v6401_v6 = vpop.permute.xlu0 %6400 }
0x1407   : > { %8690 = vmatpush1.xpose.msk.msra.mxu0 %vm1500_vm2, %v6423_v41  ;;  %v14774_v58 = vpop.permute.xlu1 %6386 }
0x1408   : > { %6671 = vmatprep.subr.mxu0 %v16007_v20 }
0x140a   : > { %v14758_v63 = vpop.permute.xlu0 %6396 }
0x140b   : > { %8691 = vmatpush1.xpose.msk.msra.mxu0 %vm1500_vm2, %v14589_v19 }
0x140c   : > { %6673 = vmatprep.subr.mxu0 %v16007_v20 }
0x140e   : > { %v14765_v56 = vpop.permute.xlu0 %6364 }
0x140f   : > { %8692 = vmatpush1.xpose.msk.msra.mxu0 %vm1500_vm2, %v6419_v3  ;;  %v14783_v3 = vpop.permute.xlu1 %6354 }
0x1410   : > { %6675 = vmatprep.subr.mxu0 %v16007_v20 }
0x1412   : > { %v6459_v33 = vpop.permute.xlu0 %6458 }
0x1413   : > { %8693 = vmatpush1.xpose.msk.msra.mxu0 %vm1500_vm2, %v14595_v8  ;;  %v6449_v28 = vpop.permute.xlu1 %6448 }
0x1414   : > { %6677 = vmatprep.subr.mxu0 %v16007_v20 }
0x1416   : > { %v14772_v41 = vpop.permute.xlu0 %6392 }
0x1417   : > { %8694 = vmatpush1.xpose.msk.msra.mxu0 %vm1500_vm2, %v6415_v5 }
0x1418   : > { %6679 = vmatprep.subr.mxu0 %v16007_v20 }
0x141a   : > { %v14778_v19 = vpop.permute.xlu0 %6360 }
0x141b   : > { %8695 = vmatpush1.xpose.msk.msra.mxu0 %vm1500_vm2, %v14601_v12  ;;  %v14796_v12 = vpop.permute.xlu1 %6382 }
0x141c   : > { %6681 = vmatprep.subr.mxu0 %v16007_v20 }
0x141e   : > { %v6455_v8 = vpop.permute.xlu0 %6454 }
0x141f   : > { %8696 = vmatpush1.xpose.msk.msra.mxu0 %vm1500_vm2, %v6411_v49  ;;  %v14803_v39 = vpop.permute.xlu1 %6350 }
0x1420   : > { %6683 = vmatprep.subr.mxu0 %v16007_v20 }
0x1422   : > { %v14787_v0 = vpop.permute.xlu0 %6388 }
0x1423   : > { %8697 = vmatpush1.xpose.msk.msra.mxu0 %vm1500_vm2, %v14607_v26 }
0x1424   : > { %6685 = vmatprep.subr.mxu0 %v16007_v20 }
0x1426   : > { %v14792_v5 = vpop.permute.xlu0 %6356 }
0x1427   : > { %8698 = vmatpush1.xpose.msk.msra.mxu0 %vm1500_vm2, %v6407_v55  ;;  %v6445_v55 = vpop.permute.xlu1 %6444 }
0x1428   : > { %6687 = vmatprep.subr.mxu0 %v16007_v20 }
0x142a   : > { %v6451_v16 = vpop.permute.xlu0 %6450 }
0x142b   : > { %8699 = vmatpush1.xpose.msk.msra.mxu0 %vm1500_vm2, %v14613_v53  ;;  %v14816_v43 = vpop.permute.xlu1 %6378 }
0x142c   : > { %6689 = vmatprep.subr.mxu0 %v16007_v20 }
0x142e   : > { %v14801_v49 = vpop.permute.xlu0 %6384 }
0x142f   : > { %8700 = vmatpush1.xpose.msk.msra.mxu0 %vm1500_vm2, %v6403_v36 }
0x1430   : > { %6691 = vmatprep.subr.mxu0 %v16007_v20 }
0x1432   : > { %v14807_v26 = vpop.permute.xlu0 %6352 }
0x1433   : > { %8701 = vmatpush1.xpose.msk.msra.mxu0 %vm1500_vm2, %v6401_v6  ;;  %v14824_v6 = vpop.permute.xlu1 %6346 }
0x1434   : > { %6695 = vmatprep.subr.mxu0 %v16007_v20 }
0x1436   : > { %v6447_v42 = vpop.permute.xlu0 %6446 }
0x1437   : > { %8702 = vmatpush2.xpose.msk.msra.mxu0 %vm1500_vm2, %v14727_v23  ;;  %v6441_v54 = vpop.permute.xlu1 %6440 }
0x1438   : > { %6697 = vmatprep.subr.mxu0 %v16007_v20 }
0x143a   : > { %v14814_v53 = vpop.permute.xlu0 %6380 }
0x143b   : > { %8703 = vmatpush2.xpose.msk.msra.mxu0 %vm1500_vm2, %v6459_v33 }
0x143c   : > { %6699 = vmatprep.subr.mxu0 %v16007_v20 }
0x143e   : > { %v14821_v36 = vpop.permute.xlu0 %6348 }
0x143f   : > { %8704 = vmatpush2.xpose.msk.msra.mxu0 %vm1500_vm2, %v6457_v34  ;;  %v14834_v34 = vpop.permute.xlu1 %6374 }
0x1440   : > { %6701 = vmatprep.subr.mxu0 %v16007_v20 }
0x1442   : > { %v6443_v23 = vpop.permute.xlu0 %6442 }
0x1443   : > { %8705 = vmatpush2.xpose.msk.msra.mxu0 %vm1500_vm2, %v6455_v8  ;;  %v6343_v59 = vpop.permute.xlu1 %6342 }
0x1444   : > { %6703 = vmatprep.subr.mxu0 %v16007_v20 }
0x1446   : > { %v14831_v33 = vpop.permute.xlu0 %6376 }
0x1447   : > { %8706 = vmatpush2.xpose.msk.msra.mxu0 %vm1500_vm2, %v6453_v51 }
0x1448   : > { %6705 = vmatprep.subr.mxu0 %v16007_v20 }
0x144a   : > { %v6345_v8 = vpop.permute.xlu0 %6344 }
0x144b   : > { %8707 = vmatpush2.xpose.msk.msra.mxu0 %vm1500_vm2, %v6451_v16  ;;  %v6437_v16 = vpop.permute.xlu1 %6436 }
0x144c   : > { %6707 = vmatprep.subr.mxu0 %v16007_v20 }
0x144e   : > { %v6439_v51 = vpop.permute.xlu0 %6438 }
0x144f   : > { %8708 = vmatpush2.xpose.msk.msra.mxu0 %vm1500_vm2, %v6449_v28  ;;  %v6371_v28 = vpop.permute.xlu1 %6370 }
0x1450   : > { %6709 = vmatprep.subr.mxu0 %v16007_v20 }
0x1452   : > { %v6373_v50 = vpop.permute.xlu0 %6372 }
0x1453   : > { %8709 = vmatpush2.xpose.msk.msra.mxu0 %vm1500_vm2, %v6447_v42 }
0x1454   : > { %6711 = vmatprep.subr.mxu0 %v16007_v20 }
0x1456   : > { %v6341_v42 = vpop.permute.xlu0 %6340 }
0x1457   : > { %8710 = vmatpush2.xpose.msk.msra.mxu0 %vm1500_vm2, %v6445_v55  ;;  %v6339_v55 = vpop.permute.xlu1 %6338 }
0x1458   : > { %6713 = vmatprep.subr.mxu0 %v16007_v20 }
0x145a   : > { %v6435_v52 = vpop.permute.xlu0 %6434 }
0x145b   : > { %8711 = vmatpush2.xpose.msk.msra.mxu0 %vm1500_vm2, %v6443_v23  ;;  %v6433_v23 = vpop.permute.xlu1 %6432 }
0x145c   : > { %6715 = vmatprep.subr.mxu0 %v16007_v20 }
0x145f   : > { %8712 = vmatpush2.xpose.msk.msra.mxu0 %vm1500_vm2, %v6441_v54  ;;  %v6335_v54 = vpop.permute.xlu1 %6334 }
0x1460   : > { %6717 = vmatprep.subr.mxu0 %v16007_v20 }
0x1463   : > { %8713 = vmatpush2.xpose.msk.msra.mxu0 %vm1500_vm2, %v6439_v51 }
0x1464   : > { %6719 = vmatprep.subr.mxu0 %v16007_v20 }
0x1467   : > { %8714 = vmatpush2.xpose.msk.msra.mxu0 %vm1500_vm2, %v6437_v16 }
0x1468   : > { %6721 = vmatprep.subr.mxu0 %v16007_v20 }
0x146b   : > { %8715 = vmatpush2.xpose.msk.msra.mxu0 %vm1500_vm2, %v6435_v52 }
0x146c   : > { %6723 = vmatprep.subr.mxu0 %v16007_v20 }
0x146f   : > { %8716 = vmatpush2.xpose.msk.msra.mxu0 %vm1500_vm2, %v6433_v23 }
0x1470   : > { %9938 = vmatprep.subr.mxu0 %v16007_v20 }
0x1472   : > { %8717 = vmatmul.mubr.msk.f32.vlgmr.msra.gmra.mxu0 %vm1500_vm2, %v6335_v54 }
0x1473   : > { %9940 = vmatprep.mubr.msk.f32.mxu0 %vm10140_vm0, %v16007_v20 }
0x1478   : > { %v9356_v51 = vpop.f32.mrf.mxu0 }
0x147a   : > { %v9357_v16 = vpop.f32.mrf.mxu0 }
0x147b   : > { %v9358_v18 = vadd.f32 %v9357_v16, %v9356_v51  ;;  %v16640_v16 = vld [vmem:[#allocation127_spill] sm:$0xff] }
0x14b6   : > { %v6253_v4 = vpop.f32.mrf.mxu0 }
0x14b7   : > { %v6254_v62 = vadd.f32 %v9358_v18, %v6253_v4  ;;  %v6824_v4 = vpop.permute.xlu1 %6823 }
0x14b8   : > { %v6255_v32 = vpop.f32.mrf.mxu0 }
0x14b9   : > { %9936 = vmatmul.mubr.msk.f32.vlgmr.msra.gmra.mxu1 %vm1500_vm2, %v6254_v62  ;;  %v6369_v32 = vpop.permute.xlu0 %6368 }
0x14ba   : > { %9362 = vmatpush3.xpose.msk.msra.mxu1 %vm1500_vm2, %v14717_v46  ;;  %9393 = vmatprep.mubr.msk.f32.mxu1 %vm1500_vm2, %v6335_v54 }
0x14bb   : > { %9363 = vmatprep.subr.msk.mxu1 %vm1500_vm2, %v14758_v63  ;;  %v6792_v52 = vpop.permute.xlu1 %6791 }
0x14bd   : > { %v6337_v18 = vpop.permute.xlu0 %6336 }
0x14be   : > { %9364 = vmatpush3.xpose.msk.msra.mxu1 %vm1500_vm2, %v14765_v56  ;;  %v16632_v56 = vld [vmem:[#allocation59_spill] sm:$0xff] }
0x14bf   : > { %9365 = vmatprep.subr.msk.mxu1 %vm1500_vm2, %v14734_v30  ;;  %v6822_v62 = vpop.permute.xlu1 %6821 }
0x14c2   : > { %9366 = vmatpush3.xpose.msk.msra.mxu1 %vm1500_vm2, %v14744_v29 }
0x14c3   : > { %9367 = vmatprep.subr.msk.mxu1 %vm1500_vm2, %v14772_v41  ;;  %v16634_v41 = vld [vmem:[#allocation115_spill] sm:$0xff] }
0x14c6   : > { %9368 = vmatpush3.xpose.msk.msra.mxu1 %vm1500_vm2, %v14778_v19  ;;  %v16635_v19 = vld [vmem:[#allocation117_spill] sm:$0xff] }
0x14c7   : > { %9369 = vmatprep.subr.msk.mxu1 %vm1500_vm2, %v14754_v7 }
0x14ca   : > { %9370 = vmatpush3.xpose.msk.msra.mxu1 %vm1500_vm2, %v14760_v10 }
0x14cb   : > { %9371 = vmatprep.subr.msk.mxu1 %vm1500_vm2, %v14787_v0 }
0x14ce   : > { %9372 = vmatpush3.xpose.msk.msra.mxu1 %vm1500_vm2, %v14792_v5  ;;  %v16637_v5 = vld [vmem:[#allocation121_spill] sm:$0xff] }
0x14cf   : > { %9373 = vmatprep.subr.msk.mxu1 %vm1500_vm2, %v14774_v58 }
0x14d2   : > { %9374 = vmatpush3.xpose.msk.msra.mxu1 %vm1500_vm2, %v14783_v3  ;;  %v16636_v3 = vld [vmem:[#allocation119_spill] sm:$0xff] }
0x14d3   : > { %9375 = vmatprep.subr.msk.mxu1 %vm1500_vm2, %v14801_v49 }
0x14d6   : > { %9376 = vmatpush3.xpose.msk.msra.mxu1 %vm1500_vm2, %v14807_v26 }
0x14d7   : > { %9377 = vmatprep.subr.msk.mxu1 %vm1500_vm2, %v14796_v12 }
0x14da   : > { %9378 = vmatpush3.xpose.msk.msra.mxu1 %vm1500_vm2, %v14803_v39 }
0x14db   : > { %9379 = vmatprep.subr.msk.mxu1 %vm1500_vm2, %v14814_v53 }
0x14de   : > { %9380 = vmatpush3.xpose.msk.msra.mxu1 %vm1500_vm2, %v14821_v36 }
0x14df   : > { %9381 = vmatprep.subr.msk.mxu1 %vm1500_vm2, %v14816_v43 }
0x14e2   : > { %9382 = vmatpush3.xpose.msk.msra.mxu1 %vm1500_vm2, %v14824_v6 }
0x14e3   : > { %9383 = vmatprep.subr.msk.mxu1 %vm1500_vm2, %v14831_v33  ;;  %v16638_v33 = vld [vmem:[#allocation123_spill] sm:$0xff] }
0x14e6   : > { %9384 = vmatpush3.xpose.msk.msra.mxu1 %vm1500_vm2, %v6345_v8 }
0x14e7   : > { %9385 = vmatprep.subr.msk.mxu1 %vm1500_vm2, %v14834_v34 }
0x14ea   : > { %9386 = vmatpush3.xpose.msk.msra.mxu1 %vm1500_vm2, %v6343_v59  ;;  %v6790_v59 = vpop.permute.xlu1 %6789 }
0x14eb   : > { %9387 = vmatprep.subr.msk.mxu1 %vm1500_vm2, %v6373_v50 }
0x14ee   : > { %9388 = vmatpush3.xpose.msk.msra.mxu1 %vm1500_vm2, %v6341_v42  ;;  %v6818_v12 = vpop.permute.xlu1 %6817 }
0x14ef   : > { %9389 = vmatprep.subr.msk.mxu1 %vm1500_vm2, %v6371_v28 }
0x14f2   : > { %9390 = vmatpush3.xpose.msk.msra.mxu1 %vm1500_vm2, %v6339_v55  ;;  %v6782_v23 = vpop.permute.xlu1 %6781 }
0x14f3   : > { %9391 = vmatprep.subr.msk.mxu1 %vm1500_vm2, %v6369_v32  ;;  %v16641_v32 = vld [vmem:[#allocation57_spill] sm:$0xff] }
0x14f6   : > { %9392 = vmatpush3.xpose.msk.msra.mxu1 %vm1500_vm2, %v6337_v18 }
0x14f7   : > { %9395 = vmatprep.subr.mxu1 %v6824_v4  ;;  %v6780_v4 = vpop.permute.xlu1 %6779 }
0x14f9   : > { %9394 = vmatmul.mubr.msk.f32.vlgmr.msra.gmra.mxu1 %vm1500_vm2, %v6335_v54  ;;  %v16639_v54 = vld [vmem:[#allocation125_spill] sm:$0xff] }
0x14fa   : > { %9396 = vmatpush3.msra.mxu1 %v6792_v52 }
0x14fb   : > { %9397 = vmatprep.subr.mxu1 %v6822_v62  ;;  %v6778_v18 = vpop.permute.xlu1 %6777 }
0x14fc   : > { %9398 = vmatpush3.msra.mxu1 %v6790_v59  ;;  %v16642_v59 = vld [vmem:[#allocation61_spill] sm:$0xff] }
0x1532   : > { %v6727_v0 = vpop.f32.mrf.mxu0 }
0x1534   : > { %v6729_v58 = vpop.f32.mrf.mxu0 }
0x1535   : > { %v6732_v46 = vsel %vm1835_vm4, %v6729_v58, -inf }
0x1536   : > { %v6734_v7 = vmax.f32 %v6727_v0, %v6732_v46 }
0x1579   : > { %v6329_v50 = vpop.f32.mrf.mxu1 }
0x157a   : > { %v14915_v39 = vadd.f32 %v6329_v50, %v14356_v48  ;;  %v16633_v48 = vld [vmem:[#allocation35_spill] sm:$0xff] }
0x157b   : > { %v9937_v43 = vpop.f32.mrf.mxu1 }
0x15b9   : > { %v6656_v30 = vpop.f32.mrf.mxu1 }
0x15bb   : > { %v6658_v29 = vpop.f32.mrf.mxu1 }
0x15bc   : > { %v6733_v63 = vmax.f32 %v6656_v30, %v6658_v29 }
0x15be   : > { %v6735_v10 = vmax.f32 %v6733_v63, %v6734_v7  ;;  %v6776_v63 = vpop.permute.xlu1 %6775 }
0x15c0   : > { %6736 = vmax.xlane.f32.xlu0 %v6735_v10 }
0x15d6   : > { %6819 = vrot.lane.b32.xlu0 %v16133_v38, %s10146_s26 }
0x15da   : > { %6787 = vrot.lane.b32.xlu0 %v16632_v56, %s10146_s26 }
0x15de   : > { %6785 = vrot.lane.b32.xlu0 %v16135_v60, %s10146_s26 }
0x15e2   : > { %6815 = vrot.lane.b32.xlu0 %v16136_v11, %s10146_s26 }
0x15e6   : > { %6783 = vrot.lane.b32.xlu0 %v16137_v22, %s10146_s26 }
0x15ea   : > { %6813 = vrot.lane.b32.xlu0 %v16138_v27, %s10146_s26 }
0x15ee   : > { %6811 = vrot.lane.b32.xlu0 %v16139_v13, %s10146_s26 }
0x15f2   : > { %6809 = vrot.lane.b32.xlu0 %v16140_v17, %s10146_s26 }
0x15f6   : > { %6807 = vrot.lane.b32.xlu0 %v16141_v44, %s10146_s26 }
0x15fa   : > { %6805 = vrot.lane.b32.xlu0 %v16142_v40, %s10146_s26 }
0x15fe   : > { %6803 = vrot.lane.b32.xlu0 %v16143_v14, %s10146_s26 }
0x1602   : > { %6801 = vrot.lane.b32.xlu0 %v16144_v57, %s10146_s26 }
0x1606   : > { %6799 = vrot.lane.b32.xlu0 %v16145_v37, %s10146_s26 }
0x160a   : > { %6797 = vrot.lane.b32.xlu0 %v16147_v47, %s10146_s26 }
0x160e   : > { %6795 = vrot.lane.b32.xlu0 %v16148_v45, %s10146_s26 }
0x1612   : > { %6793 = vrot.lane.b32.xlu0 %v16149_v24, %s10146_s26 }
0x1616   : > { %6855 = vrot.lane.b32.xlu0 %v11620_v9, %s10146_s26 }
0x161a   : > { %6851 = vrot.lane.b32.xlu0 %v11633_v15, %s10146_s26 }
0x161e   : > { %6847 = vrot.lane.b32.xlu0 %v11647_v31, %s10146_s26 }
0x1622   : > { %6843 = vrot.lane.b32.xlu0 %v11661_v21, %s10146_s26 }
0x1626   : > { %6839 = vrot.lane.b32.xlu0 %v11675_v61, %s10146_s26 }
0x162a   : > { %6835 = vrot.lane.b32.xlu0 %v11687_v35, %s10146_s26 }
0x162e   : > { %6831 = vrot.lane.b32.xlu0 %v16224_v2, %s10146_s26 }
0x1632   : > { %6827 = vrot.lane.b32.xlu0 %v16530_v25, %s10146_s26 }
0x1636   : > { %6885 = vrot.lane.b32.xlu0 %v16633_v48, %s10146_s26 }
0x163a   : > { %6881 = vrot.lane.b32.xlu0 %v16634_v41, %s10146_s26 }
0x163e   : > { %6877 = vrot.lane.b32.xlu0 %v16635_v19, %s10146_s26 }
0x1642   : > { %6873 = vrot.lane.b32.xlu0 %v16636_v3, %s10146_s26  ;;  %v16706_v3 = vld [vmem:[#allocation24_spill] sm:$0xff] }
0x1646   : > { %6869 = vrot.lane.b32.xlu0 %v16637_v5, %s10146_s26  ;;  %v16705_v5 = vld [vmem:[#allocation96_spill] sm:$0xff] }
0x1649   : > { %v6737_v49 = vpop.xlane.xlu0 %6736 }
0x164a   : > { %v6738_v26 = vsub.f32 %v6656_v30, %v6737_v49  ;;  %v6739_v53 = vsub.f32 %v6658_v29, %v6737_v49  ;;  %v6740_v36 = vsub.f32 %v6727_v0, %v6737_v49  ;;  %v6741_v6 = vsub.f32 %v6729_v58, %v6737_v49  ;;  %6865 = vrot.lane.b32.xlu0 %v16638_v33, %s10146_s26  ;;  %v16643_v29 = vld [vmem:[#allocation70_spill] sm:$0xff]  ;;  %v16703_v33 = vld [vmem:[#allocation21_spill] sm:$0xff] }
0x164c   : > { %v6742_v34 = vmul.f32 1.442695, %v6738_v26  ;;  %v6744_v8 = vmul.f32 1.442695, %v6739_v53  ;;  %v6746_v28 = vmul.f32 1.442695, %v6740_v36  ;;  %v6774_v36 = vpop.permute.xlu1 %6773 }
0x164d   : > { %v6748_v42 = vmul.f32 1.442695, %v6741_v6  ;;  %v6820_v55 = vpop.permute.xlu0 %6819  ;;  %v16644_v26 = vld [vmem:[#allocation78_spill] sm:$0xff]  ;;  %v16645_v6 = vld [vmem:[#allocation89_spill] sm:$0xff] }
0x164e   : > { %10057 = vpow2.f32 %v6742_v34  ;;  %6861 = vrot.lane.b32.xlu0 %v16639_v54, %s10146_s26  ;;  %9399 = vmatprep.subr.mxu1 %v6820_v55  ;;  %v15008_v34 = vld [vmem:[%s15683_s8 + $0x18] sm:$0xff] }
0x164f   : > { %10059 = vpow2.f32 %v6744_v8  ;;  %9939 = vmatpush3.msk.msra.mxu0 %vm1868_vm3, %v15008_v34  ;;  %v16701_v54 = vld [vmem:[#allocation20_spill] sm:$0xff] }
0x1650   : > { %10061 = vpow2.f32 %v6746_v28  ;;  %v16646_v28 = vld [vmem:[#allocation92_spill] sm:$0xff] }
0x1651   : > { %10063 = vpow2.f32 %v6748_v42  ;;  %v6788_v51 = vpop.permute.xlu0 %6787  ;;  %v6772_v42 = vpop.permute.xlu1 %6771 }
0x1652   : > { %6857 = vrot.lane.b32.xlu0 %v16640_v16, %s10146_s26  ;;  %9400 = vmatpush3.msra.mxu1 %v6788_v51  ;;  %v16699_v16 = vld [vmem:[#allocation94_spill] sm:$0xff] }
0x1653   : > { %9401 = vmatprep.subr.mxu1 %v6818_v12 }
0x1655   : > { %v6786_v52 = vpop.permute.xlu0 %6785 }
0x1656   : > { %7265 = vrot.lane.b32.xlu0 %v16641_v32, %s10147_s22  ;;  %9402 = vmatpush3.msra.mxu1 %v6786_v52  ;;  %v16648_v52 = vld [vmem:[#allocation14_spill] sm:$0xff] }
0x1657   : > { %v16649_v32 = vld [vmem:[#allocation110_spill] sm:$0xff] }
0x1659   : > { %v6816_v62 = vpop.permute.xlu0 %6815 }
0x165a   : > { %7261 = vrot.lane.b32.xlu0 %v16642_v59, %s10147_s22  ;;  %9403 = vmatprep.subr.mxu1 %v6816_v62 }
0x165b   : > { %v14986_v50 = vpop.eup %10057 }
0x165c   : > { %v14988_v43 = vpop.eup %10059 }
0x165d   : > { %v14990_v0 = vpop.eup %10061  ;;  %v6784_v58 = vpop.permute.xlu0 %6783  ;;  %v6750_v46 = vadd.f32 %v14988_v43, %v14986_v50 }
0x165e   : > { %v14994_v30 = vpop.eup %10063  ;;  %7257 = vrot.lane.b32.xlu0 %v16643_v29, %s10147_s22  ;;  %9404 = vmatpush3.msra.mxu1 %v6784_v58  ;;  %v16651_v58 = vld [vmem:[#allocation111_spill] sm:$0xff] }
0x165f   : > { %v6751_v7 = vadd.f32 %v14990_v0, %v6750_v46  ;;  %v6752_v10 = vsel %vm1835_vm4, %v14994_v30, 0.0  ;;  %v16652_v29 = vld [vmem:[#allocation95_spill] sm:$0xff] }
0x1661   : > { %v6814_v12 = vpop.permute.xlu0 %6813  ;;  %v6753_v49 = vadd.f32 %v6752_v10, %v6751_v7  ;;  %v16653_v7 = vld [vmem:[#allocation112_spill] sm:$0xff] }
0x1662   : > { %7253 = vrot.lane.b32.xlu0 %v16644_v26, %s10147_s22  ;;  %9405 = vmatprep.subr.mxu1 %v6814_v12  ;;  %v16654_v12 = vld [vmem:[#allocation18_spill] sm:$0xff] }
0x1663   : > { %6754 = vadd.xlane.f32.xlu1 %v6753_v49  ;;  %9406 = vmatpush3.msra.mxu1 %v6782_v23  ;;  %v16647_v23 = vld [vmem:[#allocation93_spill] sm:$0xff] }
0x1664   : > { %v16655_v49 = vld [vmem:[#allocation113_spill] sm:$0xff] }
0x1665   : > { %v6812_v53 = vpop.permute.xlu0 %6811 }
0x1666   : > { %7249 = vrot.lane.b32.xlu0 %v16645_v6, %s10147_s22  ;;  %9407 = vmatprep.subr.mxu1 %v6812_v53  ;;  %v16656_v53 = vld [vmem:[#allocation19_spill] sm:$0xff]  ;;  %v16657_v6 = vld [vmem:[#allocation50_spill] sm:$0xff] }
0x1667   : > { %9408 = vmatpush3.msra.mxu1 %v6780_v4  ;;  %v6770_v4 = vpop.permute.xlu1 %6769 }
0x1669   : > { %v6810_v8 = vpop.permute.xlu0 %6809 }
0x166a   : > { %7245 = vrot.lane.b32.xlu0 %v16646_v28, %s10147_s22  ;;  %9409 = vmatprep.subr.mxu1 %v6810_v8  ;;  %v16658_v28 = vld [vmem:[#allocation97_spill] sm:$0xff] }
0x166b   : > { %9410 = vmatpush3.msra.mxu1 %v6778_v18  ;;  %v16650_v18 = vld [vmem:[#allocation15_spill] sm:$0xff]  ;;  %v6768_v59 = vpop.permute.xlu1 %6767 }
0x166d   : > { %v6808_v55 = vpop.permute.xlu0 %6807 }
0x166e   : > { %7241 = vrot.lane.b32.xlu0 %v16647_v23, %s10147_s22  ;;  %9411 = vmatprep.subr.mxu1 %v6808_v55 }
0x166f   : > { %9412 = vmatpush3.msra.mxu1 %v6776_v63  ;;  %v6766_v10 = vpop.permute.xlu1 %6765 }
0x1671   : > { %v6806_v51 = vpop.permute.xlu0 %6805 }
0x1672   : > { %7235 = vrot.lane.b32.xlu0 %v16648_v52, %s10147_s22  ;;  %9413 = vmatprep.subr.mxu1 %v6806_v51  ;;  %v16660_v51 = vld [vmem:[#allocation22_spill] sm:$0xff] }
0x1673   : > { %9414 = vmatpush3.msra.mxu1 %v6774_v36  ;;  %v6764_v36 = vpop.permute.xlu1 %6763 }
0x1674   : > { %6849 = vrot.lane.b32.xlu1 %v16649_v32, %s10146_s26  ;;  %v16697_v32 = vld [vmem:[#allocation17_spill] sm:$0xff] }
0x1675   : > { %v6804_v62 = vpop.permute.xlu0 %6803 }
0x1676   : > { %7203 = vrot.lane.b32.xlu0 %v16650_v18, %s10147_s22  ;;  %9415 = vmatprep.subr.mxu1 %v6804_v62  ;;  %v16662_v62 = vld [vmem:[#allocation23_spill] sm:$0xff]  ;;  %v16663_v18 = vld [vmem:[#allocation114_spill] sm:$0xff] }
0x1677   : > { %9416 = vmatpush3.msra.mxu1 %v6772_v42  ;;  %v16659_v42 = vld [vmem:[#allocation44_spill] sm:$0xff]  ;;  %v6762_v23 = vpop.permute.xlu1 %6761 }
0x1678   : > { %6845 = vrot.lane.b32.xlu1 %v16651_v58, %s10146_s26  ;;  %v16695_v58 = vld [vmem:[#allocation16_spill] sm:$0xff] }
0x1679   : > { %v6802_v46 = vpop.permute.xlu0 %6801 }
0x167a   : > { %7297 = vrot.lane.b32.xlu0 %v16652_v29, %s10147_s22  ;;  %9417 = vmatprep.subr.mxu1 %v6802_v46  ;;  %v16664_v46 = vld [vmem:[#allocation99_spill] sm:$0xff]  ;;  %v16665_v29 = vld [vmem:[#allocation116_spill] sm:$0xff] }
0x167b   : > { %9418 = vmatpush3.msra.mxu1 %v6770_v4  ;;  %v16661_v4 = vld [vmem:[#allocation38_spill] sm:$0xff] }
0x167c   : > { %6841 = vrot.lane.b32.xlu1 %v16653_v7, %s10146_s26  ;;  %v16693_v7 = vld [vmem:[#allocation91_spill] sm:$0xff] }
0x167d   : > { %v6800_v63 = vpop.permute.xlu0 %6799 }
0x167e   : > { %7231 = vrot.lane.b32.xlu0 %v16654_v12, %s10147_s22  ;;  %9419 = vmatprep.subr.mxu1 %v6800_v63  ;;  %v16667_v12 = vld [vmem:[#allocation118_spill] sm:$0xff] }
0x167f   : > { %9420 = vmatpush3.msra.mxu1 %v6768_v59 }
0x1680   : > { %6837 = vrot.lane.b32.xlu1 %v16655_v49, %s10146_s26  ;;  %v16691_v49 = vld [vmem:[#allocation90_spill] sm:$0xff] }
0x1681   : > { %v6798_v26 = vpop.permute.xlu0 %6797 }
0x1682   : > { %7199 = vrot.lane.b32.xlu0 %v16656_v53, %s10147_s22  ;;  %9421 = vmatprep.subr.mxu1 %v6798_v26  ;;  %v16668_v53 = vld [vmem:[#allocation27_spill] sm:$0xff] }
0x1683   : > { %9422 = vmatpush3.msra.mxu1 %v6766_v10  ;;  %v16666_v10 = vld [vmem:[#allocation26_spill] sm:$0xff] }
0x1684   : > { %6833 = vrot.lane.b32.xlu1 %v16657_v6, %s10146_s26  ;;  %v16689_v6 = vld [vmem:[#allocation88_spill] sm:$0xff] }
0x1685   : > { %v6796_v8 = vpop.permute.xlu0 %6795 }
0x1686   : > { %7293 = vrot.lane.b32.xlu0 %v16658_v28, %s10147_s22  ;;  %9423 = vmatprep.subr.mxu1 %v6796_v8  ;;  %v16670_v28 = vld [vmem:[#allocation100_spill] sm:$0xff] }
0x1687   : > { %9424 = vmatpush3.msra.mxu1 %v6764_v36  ;;  %v16669_v36 = vld [vmem:[#allocation120_spill] sm:$0xff] }
0x1688   : > { %6829 = vrot.lane.b32.xlu1 %v16659_v42, %s10146_s26  ;;  %v16687_v42 = vld [vmem:[#allocation86_spill] sm:$0xff] }
0x1689   : > { %v6794_v55 = vpop.permute.xlu0 %6793 }
0x168a   : > { %7227 = vrot.lane.b32.xlu0 %v16660_v51, %s10147_s22  ;;  %9425 = vmatprep.subr.mxu1 %v6794_v55  ;;  %v16671_v55 = vld [vmem:[#allocation122_spill] sm:$0xff] }
0x168b   : > { %9426 = vmatpush3.msra.mxu1 %v6762_v23  ;;  %v16672_v51 = vld [vmem:[#allocation30_spill] sm:$0xff] }
0x168c   : > { %6825 = vrot.lane.b32.xlu1 %v16661_v4, %s10146_s26  ;;  %7024 = vmatprep.subr.mxu1 %v16007_v20  ;;  %v16685_v4 = vld [vmem:[#allocation82_spill] sm:$0xff] }
0x168d   : > { %v15045_v52 = vpop.permute.xlu0 %6855 }
0x168e   : > { %7195 = vrot.lane.b32.xlu0 %v16662_v62, %s10147_s22  ;;  %v16673_v62 = vld [vmem:[#allocation124_spill] sm:$0xff] }
0x1690   : > { %6883 = vrot.lane.b32.xlu1 %v16663_v18, %s10146_s26  ;;  %v16683_v18 = vld [vmem:[#allocation74_spill] sm:$0xff] }
0x1691   : > { %v15051_v59 = vpop.permute.xlu0 %6851 }
0x1692   : > { %7289 = vrot.lane.b32.xlu0 %v16664_v46, %s10147_s22 }
0x1694   : > { %6879 = vrot.lane.b32.xlu1 %v16665_v29, %s10146_s26  ;;  %v16681_v29 = vld [vmem:[#allocation66_spill] sm:$0xff] }
0x1695   : > { %v15057_v63 = vpop.permute.xlu0 %6847 }
0x1696   : > { %7223 = vrot.lane.b32.xlu0 %v16666_v10, %s10147_s22  ;;  %v16674_v10 = vld [vmem:[#allocation31_spill] sm:$0xff] }
0x1698   : > { %6875 = vrot.lane.b32.xlu1 %v16667_v12, %s10146_s26  ;;  %v16679_v12 = vld [vmem:[#allocation62_spill] sm:$0xff] }
0x1699   : > { %v15063_v26 = vpop.permute.xlu0 %6843 }
0x169a   : > { %7191 = vrot.lane.b32.xlu0 %v16668_v53, %s10147_s22  ;;  %v16675_v53 = vld [vmem:[#allocation126_spill] sm:$0xff] }
0x169c   : > { %6871 = vrot.lane.b32.xlu1 %v16669_v36, %s10146_s26  ;;  %v16677_v36 = vld [vmem:[#allocation53_spill] sm:$0xff] }
0x169d   : > { %v15069_v8 = vpop.permute.xlu0 %6839 }
0x169e   : > { %7285 = vrot.lane.b32.xlu0 %v16670_v28, %s10147_s22 }
0x16a0   : > { %6867 = vrot.lane.b32.xlu1 %v16671_v55, %s10146_s26  ;;  %v16676_v55 = vld [vmem:[#allocation102_spill] sm:$0xff] }
0x16a1   : > { %v15075_v23 = vpop.permute.xlu0 %6835 }
0x16a2   : > { %7219 = vrot.lane.b32.xlu0 %v16672_v51, %s10147_s22 }
0x16a4   : > { %6863 = vrot.lane.b32.xlu1 %v16673_v62, %s10146_s26  ;;  %v16678_v62 = vld [vmem:[#allocation34_spill] sm:$0xff] }
0x16a5   : > { %v15081_v46 = vpop.permute.xlu0 %6831 }
0x16a6   : > { %7187 = vrot.lane.b32.xlu0 %v16674_v10, %s10147_s22 }
0x16a8   : > { %6859 = vrot.lane.b32.xlu1 %v16675_v53, %s10146_s26  ;;  %v16680_v53 = vld [vmem:[#allocation36_spill] sm:$0xff]  ;;  %s8029_s26 = scalar_lea.hbm %s15685_s10, %s8793_s18 }
0x16a9   : > { %v15087_v28 = vpop.permute.xlu0 %6827 }
0x16aa   : > { %7281 = vrot.lane.b32.xlu0 %v16676_v55, %s10147_s22 }
0x16ac   : > { %7267 = vrot.lane.b32.xlu1 %v16677_v36, %s10147_s22  ;;  %v16682_v36 = vld [vmem:[#allocation104_spill] sm:$0xff] }
0x16ad   : > { %v15093_v51 = vpop.permute.xlu0 %6885 }
0x16ae   : > { %7215 = vrot.lane.b32.xlu0 %v16678_v62, %s10147_s22 }
0x16b0   : > { %7263 = vrot.lane.b32.xlu1 %v16679_v12, %s10147_s22  ;;  %v16684_v12 = vld [vmem:[#allocation40_spill] sm:$0xff] }
0x16b1   : > { %v15099_v10 = vpop.permute.xlu0 %6881 }
0x16b2   : > { %7183 = vrot.lane.b32.xlu0 %v16680_v53, %s10147_s22 }
0x16b4   : > { %7259 = vrot.lane.b32.xlu1 %v16681_v29, %s10147_s22  ;;  %v16686_v29 = vld [vmem:[#allocation42_spill] sm:$0xff] }
0x16b5   : > { %v15105_v55 = vpop.permute.xlu0 %6877 }
0x16b6   : > { %7277 = vrot.lane.b32.xlu0 %v16682_v36, %s10147_s22 }
0x16b8   : > { %7255 = vrot.lane.b32.xlu1 %v16683_v18, %s10147_s22  ;;  %v16688_v18 = vld [vmem:[#allocation106_spill] sm:$0xff] }
0x16b9   : > { %v15111_v62 = vpop.permute.xlu0 %6873 }
0x16ba   : > { %7211 = vrot.lane.b32.xlu0 %v16684_v12, %s10147_s22 }
0x16bc   : > { %7251 = vrot.lane.b32.xlu1 %v16685_v4, %s10147_s22  ;;  %v16690_v4 = vld [vmem:[#allocation46_spill] sm:$0xff] }
0x16bd   : > { %v15117_v53 = vpop.permute.xlu0 %6869 }
0x16be   : > { %7179 = vrot.lane.b32.xlu0 %v16686_v29, %s10147_s22 }
0x16c0   : > { %7247 = vrot.lane.b32.xlu1 %v16687_v42, %s10147_s22  ;;  %v16692_v42 = vld [vmem:[#allocation48_spill] sm:$0xff] }
0x16c1   : > { %v15123_v36 = vpop.permute.xlu0 %6865 }
0x16c2   : > { %7273 = vrot.lane.b32.xlu0 %v16688_v18, %s10147_s22 }
0x16c4   : > { %7243 = vrot.lane.b32.xlu1 %v16689_v6, %s10147_s22  ;;  %v16694_v6 = vld [vmem:[#allocation108_spill] sm:$0xff] }
0x16c5   : > { %v15129_v12 = vpop.permute.xlu0 %6861 }
0x16c6   : > { %7207 = vrot.lane.b32.xlu0 %v16690_v4, %s10147_s22 }
0x16c8   : > { %7239 = vrot.lane.b32.xlu1 %v16691_v49, %s10147_s22  ;;  %v16696_v49 = vld [vmem:[#allocation13_spill] sm:$0xff] }
0x16c9   : > { %v15135_v29 = vpop.permute.xlu0 %6857 }
0x16ca   : > { %7175 = vrot.lane.b32.xlu0 %v16692_v42, %s10147_s22 }
0x16cc   : > { %7237 = vrot.lane.b32.xlu1 %v16693_v7, %s10147_s22  ;;  %v16698_v7 = vld [vmem:[#allocation51_spill] sm:$0xff] }
0x16cd   : > { %v15141_v18 = vpop.permute.xlu0 %7265 }
0x16ce   : > { %7269 = vrot.lane.b32.xlu0 %v16694_v6, %s10147_s22 }
0x16d0   : > { %7233 = vrot.lane.b32.xlu1 %v16695_v58, %s10147_s22  ;;  %v16700_v58 = vld [vmem:[#allocation54_spill] sm:$0xff] }
0x16d1   : > { %v15147_v4 = vpop.permute.xlu0 %7261 }
0x16d2   : > { %7171 = vrot.lane.b32.xlu0 %v16696_v49, %s10147_s22 }
0x16d4   : > { %7201 = vrot.lane.b32.xlu1 %v16697_v32, %s10147_s22  ;;  %v16702_v32 = vld [vmem:[#allocation55_spill] sm:$0xff] }
0x16d5   : > { %v15153_v42 = vpop.permute.xlu0 %7257 }
0x16d6   : > { %7660 = vrot.lane.b32.xlu0 %v16698_v7, %s10147_s22 }
0x16d8   : > { %7295 = vrot.lane.b32.xlu1 %v16699_v16, %s10147_s22  ;;  %v16704_v16 = vld [vmem:[#allocation56_spill] sm:$0xff] }
0x16d9   : > { %v15159_v6 = vpop.permute.xlu0 %7253 }
0x16da   : > { %7628 = vrot.lane.b32.xlu0 %v16700_v58, %s10147_s22 }
0x16dc   : > { %7229 = vrot.lane.b32.xlu1 %v16701_v54, %s10147_s22  ;;  %v6854_v54 = vpop.permute.xlu1 %6853 }
0x16dd   : > { %v15165_v49 = vpop.permute.xlu0 %7249 }
0x16de   : > { %7658 = vrot.lane.b32.xlu0 %v16702_v32, %s10147_s22 }
0x16e0   : > { %7197 = vrot.lane.b32.xlu1 %v16703_v33, %s10147_s22  ;;  %v16707_v33 = vld [vmem:[#allocation68_spill] sm:$0xff] }
0x16e1   : > { %v15171_v7 = vpop.permute.xlu0 %7245 }
0x16e2   : > { %7626 = vrot.lane.b32.xlu0 %v16704_v16, %s10147_s22  ;;  %v16708_v16 = vld [vmem:[#allocation25_spill] sm:$0xff] }
0x16e4   : > { %7291 = vrot.lane.b32.xlu1 %v16705_v5, %s10147_s22  ;;  %v16709_v5 = vld [vmem:[#allocation71_spill] sm:$0xff] }
0x16e5   : > { %v15177_v58 = vpop.permute.xlu0 %7241 }
0x16e6   : > { %7624 = vrot.lane.b32.xlu0 %v16632_v56, %s10147_s22  ;;  %v16710_v56 = vld [vmem:[#allocation98_spill] sm:$0xff] }
0x16e8   : > { %7225 = vrot.lane.b32.xlu1 %v16706_v3, %s10147_s22  ;;  %v16711_v3 = vld [vmem:[#allocation73_spill] sm:$0xff] }
0x16e9   : > { %v7236_v32 = vpop.permute.xlu0 %7235 }
0x16ea   : > { %7618 = vrot.lane.b32.xlu0 %v16707_v33, %s10147_s22  ;;  %9432 = vmatprep.subr.msk.mxu0 %vm1500_vm2, %v7236_v32  ;;  %v16712_v32 = vld [vmem:[#allocation76_spill] sm:$0xff] }
0x16ec   : > { %7193 = vrot.lane.b32.xlu1 %v16708_v16, %s10147_s22  ;;  %v6755_v19 = vpop.xlane.xlu1 %6754  ;;  %v16713_v16 = vld [vmem:[#allocation29_spill] sm:$0xff] }
0x16ed   : > { %10065 = vrcp.f32 %v6755_v19 }
0x16ee   : > { %7616 = vrot.lane.b32.xlu0 %v16709_v5, %s10147_s22  ;;  %v16714_v5 = vld [vmem:[#allocation79_spill] sm:$0xff] }
0x16f0   : > { %7287 = vrot.lane.b32.xlu1 %v16710_v56, %s10147_s22  ;;  %v6850_v41 = vpop.permute.xlu1 %6849 }
0x16f2   : > { %7614 = vrot.lane.b32.xlu0 %v16711_v3, %s10147_s22 }
0x16f4   : > { %7221 = vrot.lane.b32.xlu1 %v16613_v1, %s10147_s22  ;;  %v6846_v33 = vpop.permute.xlu1 %6845  ;;  %v16715_v1 = vld [vmem:[#allocation101_spill] sm:$0xff] }
0x16f6   : > { %7612 = vrot.lane.b32.xlu0 %v16712_v32, %s10147_s22 }
0x16f8   : > { %7189 = vrot.lane.b32.xlu1 %v16713_v16, %s10147_s22  ;;  %v6842_v19 = vpop.permute.xlu1 %6841  ;;  %v16716_v16 = vld [vmem:[#allocation81_spill] sm:$0xff] }
0x16fa   : > { %v15200_v48 = vpop.eup %10065  ;;  %7610 = vrot.lane.b32.xlu0 %v16714_v5, %s10147_s22  ;;  %v16718_v5 = vld [vmem:[#allocation84_spill] sm:$0xff] }
0x16fb   : > { %v6758_v56 = vmul.f32 %v15200_v48, %v14988_v43  ;;  %v6757_v3 = vmul.f32 %v15200_v48, %v14986_v50  ;;  %v6760_v32 = vmul.f32 %v15200_v48, %v14994_v30  ;;  %v16717_v50 = vld [vmem:[#allocation32_spill] sm:$0xff]  ;;  %v16719_v30 = vld [vmem:[#allocation33_spill] sm:$0xff] }
0x16fc   : > { %7283 = vrot.lane.b32.xlu1 %v16715_v1, %s10147_s22  ;;  %v6838_v25 = vpop.permute.xlu1 %6837  ;;  %v16724_v1 = vld [vmem:[#allocation8_spill] sm:$0xff] }
0x16fd   : > { %7018 = vmatprep.mubr.f32.mxu1 %v6758_v56  ;;  %v16720_v56 = vld [vmem:[#allocation87_spill] sm:$0xff] }
0x16fe   : > { %7019 = vmatmul.mubr.f32.vlgmr.msra.gmra.mxu1 %v6757_v3  ;;  %7608 = vrot.lane.b32.xlu0 %v16716_v16, %s10147_s22  ;;  %v16722_v3 = vld [vmem:[#allocation9_spill] sm:$0xff] }
0x16ff   : > { %7025 = vmatpush1.msra.mxu1 %v15045_v52  ;;  %8719 = vmatprep.mubr.msk.f32.mxu1 %vm1835_vm4, %v6760_v32  ;;  %v16726_v32 = vld [vmem:[#allocation7_spill] sm:$0xff] }
0x1700   : > { %7026 = vmatprep.subr.mxu1 %v16007_v20  ;;  %7217 = vrot.lane.b32.xlu1 %v16717_v50, %s10147_s22  ;;  %v6834_v43 = vpop.permute.xlu1 %6833 }
0x1701   : > { %7027 = vmatpush1.msra.mxu1 %v6854_v54  ;;  %v16721_v54 = vld [vmem:[#allocation103_spill] sm:$0xff] }
0x1702   : > { %7028 = vmatprep.subr.mxu1 %v16007_v20  ;;  %7606 = vrot.lane.b32.xlu0 %v16718_v5, %s10147_s22 }
0x1703   : > { %7029 = vmatpush1.msra.mxu1 %v15051_v59 }
0x1704   : > { %7030 = vmatprep.subr.mxu1 %v16007_v20  ;;  %7185 = vrot.lane.b32.xlu1 %v16719_v30, %s10147_s22  ;;  %v6830_v52 = vpop.permute.xlu1 %6829 }
0x1705   : > { %7031 = vmatpush1.msra.mxu1 %v6850_v41  ;;  %v16723_v41 = vld [vmem:[#allocation37_spill] sm:$0xff] }
0x1706   : > { %7032 = vmatprep.subr.mxu1 %v16007_v20  ;;  %7604 = vrot.lane.b32.xlu0 %v16720_v56, %s10147_s22 }
0x1707   : > { %7033 = vmatpush1.msra.mxu1 %v15057_v63 }
0x1708   : > { %7034 = vmatprep.subr.mxu1 %v16007_v20  ;;  %7279 = vrot.lane.b32.xlu1 %v16721_v54, %s10147_s22  ;;  %v6826_v59 = vpop.permute.xlu1 %6825 }
0x1709   : > { %7035 = vmatpush1.msra.mxu1 %v6846_v33  ;;  %v16725_v33 = vld [vmem:[#allocation39_spill] sm:$0xff] }
0x170a   : > { %7036 = vmatprep.subr.mxu1 %v16007_v20  ;;  %7602 = vrot.lane.b32.xlu0 %v16722_v3, %s10147_s22 }
0x170b   : > { %7037 = vmatpush1.msra.mxu1 %v15063_v26 }
0x170c   : > { %7038 = vmatprep.subr.mxu1 %v16007_v20  ;;  %7213 = vrot.lane.b32.xlu1 %v16723_v41, %s10147_s22  ;;  %v6884_v63 = vpop.permute.xlu1 %6883 }
0x170d   : > { %7039 = vmatpush1.msra.mxu1 %v6842_v19  ;;  %v16727_v19 = vld [vmem:[#allocation105_spill] sm:$0xff] }
0x170e   : > { %7040 = vmatprep.subr.mxu1 %v16007_v20  ;;  %7600 = vrot.lane.b32.xlu0 %v16724_v1, %s10147_s22 }
0x170f   : > { %7041 = vmatpush1.msra.mxu1 %v15069_v8 }
0x1710   : > { %7042 = vmatprep.subr.mxu1 %v16007_v20  ;;  %7181 = vrot.lane.b32.xlu1 %v16725_v33, %s10147_s22  ;;  %v6880_v26 = vpop.permute.xlu1 %6879 }
0x1711   : > { %7043 = vmatpush1.msra.mxu1 %v6838_v25  ;;  %v16728_v25 = vld [vmem:[#allocation43_spill] sm:$0xff] }
0x1712   : > { %7044 = vmatprep.subr.mxu1 %v16007_v20  ;;  %7598 = vrot.lane.b32.xlu0 %v16726_v32, %s10147_s22 }
0x1713   : > { %7045 = vmatpush1.msra.mxu1 %v15075_v23  ;;  %v16729_v23 = vld [vmem:[#allocation45_spill] sm:$0xff] }
0x1714   : > { %7046 = vmatprep.subr.mxu1 %v16007_v20  ;;  %7275 = vrot.lane.b32.xlu1 %v16727_v19, %s10147_s22  ;;  %v6876_v8 = vpop.permute.xlu1 %6875 }
0x1715   : > { %7047 = vmatpush1.msra.mxu1 %v6834_v43 }
0x1716   : > { %7048 = vmatprep.subr.mxu1 %v16007_v20 }
0x1717   : > { %7049 = vmatpush1.msra.mxu1 %v15081_v46  ;;  %v16730_v46 = vld [vmem:[#allocation107_spill] sm:$0xff] }
0x1718   : > { %7050 = vmatprep.subr.mxu1 %v16007_v20  ;;  %7209 = vrot.lane.b32.xlu1 %v16728_v25, %s10147_s22  ;;  %v6872_v16 = vpop.permute.xlu1 %6871 }
0x1719   : > { %7051 = vmatpush1.msra.mxu1 %v6830_v52  ;;  %v15283_v52 = vpop.permute.xlu0 %7203 }
0x171a   : > { %7052 = vmatprep.subr.mxu1 %v16007_v20 }
0x171b   : > { %7053 = vmatpush1.msra.mxu1 %v15087_v28  ;;  %v16731_v28 = vld [vmem:[#allocation49_spill] sm:$0xff] }
0x171c   : > { %7054 = vmatprep.subr.mxu1 %v16007_v20  ;;  %7177 = vrot.lane.b32.xlu1 %v16729_v23, %s10147_s22  ;;  %v6868_v50 = vpop.permute.xlu1 %6867 }
0x171d   : > { %7055 = vmatpush1.msra.mxu1 %v6826_v59  ;;  %v15289_v56 = vpop.permute.xlu0 %7297  ;;  %v6759_v59 = vmul.f32 %v15200_v48, %v14990_v0 }
0x171e   : > { %7058 = vmatprep.subr.mxu1 %v16007_v20 }
0x171f   : > { %8718 = vmatpush2.msk.msra.mxu1 %vm1868_vm3, %v15093_v51  ;;  %v16732_v51 = vld [vmem:[#allocation52_spill] sm:$0xff] }
0x1720   : > { %7060 = vmatprep.subr.mxu1 %v16007_v20  ;;  %7271 = vrot.lane.b32.xlu1 %v16730_v46, %s10147_s22  ;;  %v6864_v43 = vpop.permute.xlu1 %6863 }
0x1721   : > { %7061 = vmatpush2.msra.mxu1 %v6884_v63  ;;  %v15296_v54 = vpop.permute.xlu0 %7231 }
0x1722   : > { %7062 = vmatprep.subr.mxu1 %v16007_v20 }
0x1723   : > { %7063 = vmatpush2.msra.mxu1 %v15099_v10 }
0x1724   : > { %7064 = vmatprep.subr.mxu1 %v16007_v20  ;;  %7205 = vrot.lane.b32.xlu1 %v16731_v28, %s10147_s22  ;;  %v6860_v5 = vpop.permute.xlu1 %6859 }
0x1725   : > { %7065 = vmatpush2.msra.mxu1 %v6880_v26 }
0x1726   : > { %7066 = vmatprep.subr.mxu1 %v16007_v20 }
0x1727   : > { %7067 = vmatpush2.msra.mxu1 %v15105_v55 }
0x1728   : > { %7068 = vmatprep.subr.mxu1 %v16007_v20  ;;  %7173 = vrot.lane.b32.xlu1 %v16732_v51, %s10147_s22  ;;  %v7268_v30 = vpop.permute.xlu1 %7267 }
0x1729   : > { %7069 = vmatpush2.msra.mxu1 %v6876_v8 }
0x172a   : > { %7070 = vmatprep.subr.mxu1 %v16007_v20 }
0x172b   : > { %7071 = vmatpush2.msra.mxu1 %v15111_v62 }
0x172c   : > { %7072 = vmatprep.subr.mxu1 %v16007_v20  ;;  %v7264_v10 = vpop.permute.xlu1 %7263 }
0x172d   : > { %7073 = vmatpush2.msra.mxu1 %v6872_v16 }
0x172e   : > { %7074 = vmatprep.subr.mxu1 %v16007_v20 }
0x172f   : > { %7075 = vmatpush2.msra.mxu1 %v15117_v53 }
0x1730   : > { %7076 = vmatprep.subr.mxu1 %v16007_v20  ;;  %v7260_v55 = vpop.permute.xlu1 %7259 }
0x1731   : > { %7077 = vmatpush2.msra.mxu1 %v6868_v50 }
0x1732   : > { %7078 = vmatprep.subr.mxu1 %v16007_v20 }
0x1733   : > { %7079 = vmatpush2.msra.mxu1 %v15123_v36 }
0x1734   : > { %7080 = vmatprep.subr.mxu1 %v16007_v20  ;;  %v7256_v62 = vpop.permute.xlu1 %7255 }
0x1735   : > { %7081 = vmatpush2.msra.mxu1 %v6864_v43 }
0x1736   : > { %7082 = vmatprep.subr.mxu1 %v16007_v20 }
0x1737   : > { %7083 = vmatpush2.msra.mxu1 %v15129_v12  ;;  %v15306_v12 = vpop.permute.xlu0 %7199 }
0x1738   : > { %7084 = vmatprep.subr.mxu1 %v16007_v20  ;;  %v7252_v53 = vpop.permute.xlu1 %7251 }
0x1739   : > { %7085 = vmatpush2.msra.mxu1 %v6860_v5 }
0x173a   : > { %7086 = vmatprep.subr.mxu1 %v16007_v20 }
0x173b   : > { %7087 = vmatpush2.msra.mxu1 %v15135_v29  ;;  %v7294_v0 = vpop.permute.xlu0 %7293 }
0x173c   : > { %7089 = vmatmul.mubr.f32.vlgmr.msra.gmra.mxu1 %v6759_v59  ;;  %7498 = vmatprep.subr.mxu1 %v16007_v20  ;;  %v7248_v36 = vpop.permute.xlu1 %7247 }
0x173d   : > { %8755 = vmatpush1.xpose.msk.msra.mxu1 %vm1500_vm2, %v7268_v30  ;;  %7562 = vmatprep.mubr.f32.mxu1 %v16007_v20 }
0x173e   : > { %7500 = vmatprep.subr.mxu1 %v16007_v20 }
0x173f   : > { %v15316_v41 = vpop.permute.xlu0 %7227 }
0x1740   : > { %v7244_v3 = vpop.permute.xlu1 %7243 }
0x1741   : > { %8756 = vmatpush1.xpose.msk.msra.mxu1 %vm1500_vm2, %v15141_v18 }
0x1742   : > { %7502 = vmatprep.subr.mxu1 %v16007_v20 }
0x1743   : > { %v15324_v1 = vpop.permute.xlu0 %7195 }
0x1744   : > { %v7240_v48 = vpop.permute.xlu1 %7239 }
0x1745   : > { %8757 = vmatpush1.xpose.msk.msra.mxu1 %vm1500_vm2, %v7264_v10 }
0x1746   : > { %7504 = vmatprep.subr.mxu1 %v16007_v20 }
0x1747   : > { %v7290_v33 = vpop.permute.xlu0 %7289 }
0x1748   : > { %v7238_v29 = vpop.permute.xlu1 %7237 }
0x1749   : > { %8758 = vmatpush1.xpose.msk.msra.mxu1 %vm1500_vm2, %v15147_v4 }
0x174a   : > { %7506 = vmatprep.subr.mxu1 %v16007_v20 }
0x174b   : > { %v15338_v19 = vpop.permute.xlu0 %7223 }
0x174c   : > { %v15318_v63 = vpop.permute.xlu1 %7233 }
0x174d   : > { %8759 = vmatpush1.xpose.msk.msra.mxu1 %vm1500_vm2, %v7260_v55 }
0x174e   : > { %7508 = vmatprep.subr.mxu1 %v16007_v20 }
0x174f   : > { %v15345_v8 = vpop.permute.xlu0 %7191 }
0x1750   : > { %v15322_v18 = vpop.permute.xlu1 %7201 }
0x1751   : > { %8760 = vmatpush1.xpose.msk.msra.mxu1 %vm1500_vm2, %v15153_v42 }
0x1752   : > { %7510 = vmatprep.subr.mxu1 %v16007_v20 }
0x1753   : > { %v7286_v16 = vpop.permute.xlu0 %7285 }
0x1754   : > { %v7296_v4 = vpop.permute.xlu1 %7295 }
0x1755   : > { %8761 = vmatpush1.xpose.msk.msra.mxu1 %vm1500_vm2, %v7256_v62 }
0x1756   : > { %7512 = vmatprep.subr.mxu1 %v16007_v20 }
0x1758   : > { %v15331_v26 = vpop.permute.xlu1 %7229 }
0x1759   : > { %8762 = vmatpush1.xpose.msk.msra.mxu1 %vm1500_vm2, %v15159_v6 }
0x175a   : > { %7514 = vmatprep.subr.mxu1 %v16007_v20 }
0x175c   : > { %v15336_v32 = vpop.permute.xlu1 %7197 }
0x175d   : > { %8763 = vmatpush1.xpose.msk.msra.mxu1 %vm1500_vm2, %v7252_v53 }
0x175e   : > { %7516 = vmatprep.subr.mxu1 %v16007_v20 }
0x1760   : > { %v7292_v42 = vpop.permute.xlu1 %7291 }
0x1761   : > { %8764 = vmatpush1.xpose.msk.msra.mxu1 %vm1500_vm2, %v15165_v49  ;;  %v15358_v49 = vpop.permute.xlu0 %7219 }
0x1762   : > { %7518 = vmatprep.subr.mxu1 %v16007_v20 }
0x1764   : > { %v15347_v25 = vpop.permute.xlu1 %7225 }
0x1765   : > { %8765 = vmatpush1.xpose.msk.msra.mxu1 %vm1500_vm2, %v7248_v36  ;;  %v15367_v43 = vpop.permute.xlu0 %7187 }
0x1766   : > { %7520 = vmatprep.subr.mxu1 %v16007_v20 }
0x1768   : > { %v15351_v6 = vpop.permute.xlu1 %7193 }
0x1769   : > { %8766 = vmatpush1.xpose.msk.msra.mxu1 %vm1500_vm2, %v15171_v7  ;;  %v7282_v28 = vpop.permute.xlu0 %7281 }
0x176a   : > { %7522 = vmatprep.subr.mxu1 %v16007_v20 }
0x176c   : > { %v7288_v23 = vpop.permute.xlu1 %7287 }
0x176d   : > { %8767 = vmatpush1.xpose.msk.msra.mxu1 %vm1500_vm2, %v7244_v3  ;;  %v15378_v5 = vpop.permute.xlu0 %7215 }
0x176e   : > { %7524 = vmatprep.subr.mxu1 %v16007_v20 }
0x1770   : > { %v15360_v50 = vpop.permute.xlu1 %7221 }
0x1771   : > { %8768 = vmatpush1.xpose.msk.msra.mxu1 %vm1500_vm2, %v15177_v58  ;;  %v15386_v30 = vpop.permute.xlu0 %7183 }
0x1772   : > { %7526 = vmatprep.subr.mxu1 %v16007_v20 }
0x1774   : > { %v15365_v46 = vpop.permute.xlu1 %7189 }
0x1775   : > { %8769 = vmatpush1.xpose.msk.msra.mxu1 %vm1500_vm2, %v7240_v48  ;;  %v7278_v55 = vpop.permute.xlu0 %7277 }
0x1776   : > { %7528 = vmatprep.subr.mxu1 %v16007_v20 }
0x1778   : > { %v7284_v7 = vpop.permute.xlu1 %7283 }
0x1779   : > { %8770 = vmatpush1.xpose.msk.msra.mxu1 %vm1500_vm2, %v7238_v29  ;;  %v15396_v62 = vpop.permute.xlu0 %7211 }
0x177a   : > { %7532 = vmatprep.subr.mxu1 %v16007_v20 }
0x177c   : > { %v15376_v58 = vpop.permute.xlu1 %7217 }
0x177d   : > { %8771 = vmatpush2.xpose.msk.msra.mxu1 %vm1500_vm2, %v15289_v56  ;;  %v15400_v59 = vpop.permute.xlu0 %7179 }
0x177e   : > { %7534 = vmatprep.subr.mxu1 %v16007_v20 }
0x1780   : > { %v15383_v51 = vpop.permute.xlu1 %7185 }
0x1781   : > { %8772 = vmatpush2.xpose.msk.msra.mxu1 %vm1500_vm2, %v7296_v4  ;;  %v7274_v3 = vpop.permute.xlu0 %7273 }
0x1782   : > { %7536 = vmatprep.subr.mxu1 %v16007_v20 }
0x1784   : > { %v7280_v10 = vpop.permute.xlu1 %7279 }
0x1785   : > { %8773 = vmatpush2.xpose.msk.msra.mxu1 %vm1500_vm2, %v7294_v0  ;;  %v7208_v0 = vpop.permute.xlu0 %7207 }
0x1786   : > { %7538 = vmatprep.subr.mxu1 %v16007_v20 }
0x1788   : > { %v15393_v56 = vpop.permute.xlu1 %7213 }
0x1789   : > { %8774 = vmatpush2.xpose.msk.msra.mxu1 %vm1500_vm2, %v7292_v42  ;;  %v7176_v4 = vpop.permute.xlu0 %7175 }
0x178a   : > { %7540 = vmatprep.subr.mxu1 %v16007_v20 }
0x178c   : > { %v7182_v53 = vpop.permute.xlu1 %7181 }
0x178d   : > { %8775 = vmatpush2.xpose.msk.msra.mxu1 %vm1500_vm2, %v7290_v33  ;;  %v7270_v42 = vpop.permute.xlu0 %7269 }
0x178e   : > { %7542 = vmatprep.subr.mxu1 %v16007_v20 }
0x1790   : > { %v7276_v36 = vpop.permute.xlu1 %7275 }
0x1791   : > { %8776 = vmatpush2.xpose.msk.msra.mxu1 %vm1500_vm2, %v7288_v23  ;;  %v7172_v23 = vpop.permute.xlu0 %7171 }
0x1792   : > { %7544 = vmatprep.subr.mxu1 %v16007_v20 }
0x1794   : > { %v7210_v48 = vpop.permute.xlu1 %7209 }
0x1795   : > { %8777 = vmatpush2.xpose.msk.msra.mxu1 %vm1500_vm2, %v7286_v16  ;;  %v7931_v16 = vrot.slane %v15008_v34, 4  ;;  %v7661_v34 = vpop.permute.xlu0 %7660 }
0x1796   : > { %7546 = vmatprep.subr.mxu1 %v16007_v20 }
0x1798   : > { %v7178_v29 = vpop.permute.xlu1 %7177 }
0x1799   : > { %8778 = vmatpush2.xpose.msk.msra.mxu1 %vm1500_vm2, %v7284_v7 }
0x179a   : > { %7548 = vmatprep.subr.mxu1 %v16007_v20 }
0x179c   : > { %v7272_v33 = vpop.permute.xlu1 %7271 }
0x179d   : > { %8779 = vmatpush2.xpose.msk.msra.mxu1 %vm1500_vm2, %v7282_v28 }
0x179e   : > { %7550 = vmatprep.subr.mxu1 %v16007_v20 }
0x17a1   : > { %8780 = vmatpush2.xpose.msk.msra.mxu1 %vm1500_vm2, %v7280_v10 }
0x17a2   : > { %7552 = vmatprep.subr.mxu1 %v16007_v20 }
0x17a5   : > { %8781 = vmatpush2.xpose.msk.msra.mxu1 %vm1500_vm2, %v7278_v55 }
0x17a6   : > { %7554 = vmatprep.subr.mxu1 %v16007_v20 }
0x17a9   : > { %8782 = vmatpush2.xpose.msk.msra.mxu1 %vm1500_vm2, %v7276_v36 }
0x17aa   : > { %7556 = vmatprep.subr.mxu1 %v16007_v20 }
0x17ad   : > { %8783 = vmatpush2.xpose.msk.msra.mxu1 %vm1500_vm2, %v7274_v3 }
0x17ae   : > { %7558 = vmatprep.subr.mxu1 %v16007_v20 }
0x17b1   : > { %8784 = vmatpush2.xpose.msk.msra.mxu1 %vm1500_vm2, %v7272_v33 }
0x17b2   : > { %7560 = vmatprep.subr.mxu1 %v16007_v20 }
0x17b5   : > { %8785 = vmatpush2.xpose.msk.msra.mxu1 %vm1500_vm2, %v7270_v42 }
0x17b6   : > { %9943 = vmatprep.subr.mxu1 %v16007_v20 }
0x17b8   : > { %8786 = vmatmul.mubr.msk.f32.vlgmr.msra.gmra.mxu1 %vm1500_vm2, %v7172_v23 }
0x17b9   : > { %9944 = vmatpush3.msk.msra.mxu1 %vm1868_vm3, %v7931_v16  ;;  %9945 = vmatprep.mubr.msk.f32.mxu1 %vm10140_vm0, %v16007_v20 }
0x17be   : > { %v9427_v7 = vpop.f32.mrf.mxu1 }
0x17c0   : > { %v9428_v28 = vpop.f32.mrf.mxu1 }
0x17c1   : > { %v9429_v10 = vadd.f32 %v9428_v28, %v9427_v7 }
0x17fc   : > { %v7090_v55 = vpop.f32.mrf.mxu1 }
0x17fd   : > { %v7091_v36 = vadd.f32 %v9429_v10, %v7090_v55 }
0x17fe   : > { %v7092_v3 = vpop.f32.mrf.mxu1 }
0x17ff   : > { %9941 = vmatmul.mubr.msk.f32.vlgmr.msra.gmra.mxu0 %vm1500_vm2, %v7091_v36 }
0x1800   : > { %9433 = vmatpush3.xpose.msk.msra.mxu0 %vm1500_vm2, %v15283_v52  ;;  %9464 = vmatprep.mubr.msk.f32.mxu0 %vm1500_vm2, %v7172_v23  ;;  %v7629_v52 = vpop.permute.xlu0 %7628 }
0x1801   : > { %9434 = vmatprep.subr.msk.mxu0 %vm1500_vm2, %v15318_v63 }
0x1804   : > { %9435 = vmatpush3.xpose.msk.msra.mxu0 %vm1500_vm2, %v15322_v18 }
0x1805   : > { %9436 = vmatprep.subr.msk.mxu0 %vm1500_vm2, %v15296_v54  ;;  %v7206_v54 = vpop.permute.xlu1 %7205 }
0x1808   : > { %9437 = vmatpush3.xpose.msk.msra.mxu0 %vm1500_vm2, %v15306_v12  ;;  %v7659_v12 = vpop.permute.xlu0 %7658 }
0x1809   : > { %9438 = vmatprep.subr.msk.mxu0 %vm1500_vm2, %v15331_v26 }
0x180c   : > { %9439 = vmatpush3.xpose.msk.msra.mxu0 %vm1500_vm2, %v15336_v32  ;;  %v7627_v63 = vpop.permute.xlu0 %7626 }
0x180d   : > { %9440 = vmatprep.subr.msk.mxu0 %vm1500_vm2, %v15316_v41  ;;  %v7174_v41 = vpop.permute.xlu1 %7173 }
0x1810   : > { %9441 = vmatpush3.xpose.msk.msra.mxu0 %vm1500_vm2, %v15324_v1 }
0x1811   : > { %9442 = vmatprep.subr.msk.mxu0 %vm1500_vm2, %v15347_v25 }
0x1814   : > { %9443 = vmatpush3.xpose.msk.msra.mxu0 %vm1500_vm2, %v15351_v6 }
0x1815   : > { %9444 = vmatprep.subr.msk.mxu0 %vm1500_vm2, %v15338_v19 }
0x1818   : > { %9445 = vmatpush3.xpose.msk.msra.mxu0 %vm1500_vm2, %v15345_v8 }
0x1819   : > { %9446 = vmatprep.subr.msk.mxu0 %vm1500_vm2, %v15360_v50 }
0x181c   : > { %9447 = vmatpush3.xpose.msk.msra.mxu0 %vm1500_vm2, %v15365_v46 }
0x181d   : > { %9448 = vmatprep.subr.msk.mxu0 %vm1500_vm2, %v15358_v49 }
0x1820   : > { %9449 = vmatpush3.xpose.msk.msra.mxu0 %vm1500_vm2, %v15367_v43  ;;  %v16733_v43 = vld [vmem:[#allocation60_spill] sm:$0xff] }
0x1821   : > { %9450 = vmatprep.subr.msk.mxu0 %vm1500_vm2, %v15376_v58 }
0x1824   : > { %9451 = vmatpush3.xpose.msk.msra.mxu0 %vm1500_vm2, %v15383_v51 }
0x1825   : > { %9452 = vmatprep.subr.msk.mxu0 %vm1500_vm2, %v15378_v5 }
0x1828   : > { %9453 = vmatpush3.xpose.msk.msra.mxu0 %vm1500_vm2, %v15386_v30 }
0x1829   : > { %9454 = vmatprep.subr.msk.mxu0 %vm1500_vm2, %v15393_v56 }
0x182c   : > { %9455 = vmatpush3.xpose.msk.msra.mxu0 %vm1500_vm2, %v7182_v53 }
0x182d   : > { %9456 = vmatprep.subr.msk.mxu0 %vm1500_vm2, %v15396_v62 }
0x1830   : > { %9457 = vmatpush3.xpose.msk.msra.mxu0 %vm1500_vm2, %v15400_v59 }
0x1831   : > { %9458 = vmatprep.subr.msk.mxu0 %vm1500_vm2, %v7210_v48 }
0x1834   : > { %9459 = vmatpush3.xpose.msk.msra.mxu0 %vm1500_vm2, %v7178_v29 }
0x1835   : > { %9460 = vmatprep.subr.msk.mxu0 %vm1500_vm2, %v7208_v0 }
0x1838   : > { %9461 = vmatpush3.xpose.msk.msra.mxu0 %vm1500_vm2, %v7176_v4 }
0x1839   : > { %9462 = vmatprep.subr.msk.mxu0 %vm1500_vm2, %v7206_v54 }
0x183c   : > { %9463 = vmatpush3.xpose.msk.msra.mxu0 %vm1500_vm2, %v7174_v41 }
0x183d   : > { %9466 = vmatprep.subr.mxu0 %v7661_v34 }
0x183f   : > { %9465 = vmatmul.mubr.msk.f32.vlgmr.msra.gmra.mxu0 %vm1500_vm2, %v7172_v23 }
0x1840   : > { %9467 = vmatpush3.msra.mxu0 %v7629_v52  ;;  %v16743_v52 = vld [vmem:[#allocation109_spill] sm:$0xff] }
0x1841   : > { %9468 = vmatprep.subr.mxu0 %v7659_v12  ;;  %v16744_v12 = vld [vmem:[#allocation110_spill] sm:$0xff] }
0x1842   : > { %9469 = vmatpush3.msra.mxu0 %v7627_v63 }
0x1878   : > { %v7564_v32 = vpop.f32.mrf.mxu1 }
0x187a   : > { %v7566_v19 = vpop.f32.mrf.mxu1 }
0x187b   : > { %v7569_v8 = vsel %vm1835_vm4, %v7566_v19, -inf }
0x187c   : > { %v7571_v49 = vmax.f32 %v7564_v32, %v7569_v8 }
0x18bf   : > { %v7166_v18 = vpop.f32.mrf.mxu0 }
0x18c0   : > { %v15482_v1 = vadd.f32 %v7166_v18, %v14915_v39  ;;  %v16745_v18 = vld [vmem:[#allocation111_spill] sm:$0xff] }
0x18c1   : > { %v9942_v26 = vpop.f32.mrf.mxu0 }
0x18ff   : > { %v7493_v25 = vpop.f32.mrf.mxu0 }
0x1901   : > { %v7495_v6 = vpop.f32.mrf.mxu0 }
0x1902   : > { %v7570_v50 = vmax.f32 %v7493_v25, %v7495_v6 }
0x1904   : > { %v7572_v46 = vmax.f32 %v7570_v50, %v7571_v49  ;;  %v16748_v50 = vld [vmem:[#allocation50_spill] sm:$0xff] }
0x1906   : > { %7573 = vmax.xlane.f32.xlu1 %v7572_v46  ;;  %v16749_v46 = vld [vmem:[#allocation44_spill] sm:$0xff] }
0x1917   : > { %7656 = vrot.lane.b32.xlu1 %v16133_v38, %s10147_s22  ;;  %v16740_v38 = vld [vmem:[#allocation123_spill] sm:$0xff] }
0x191b   : > { %7654 = vrot.lane.b32.xlu1 %v16733_v43, %s10147_s22  ;;  %v16750_v43 = vld [vmem:[#allocation38_spill] sm:$0xff] }
0x191f   : > { %7622 = vrot.lane.b32.xlu1 %v16135_v60, %s10147_s22  ;;  %v7625_v60 = vpop.permute.xlu0 %7624 }
0x1923   : > { %7652 = vrot.lane.b32.xlu1 %v16136_v11, %s10147_s22  ;;  %v16741_v11 = vld [vmem:[#allocation125_spill] sm:$0xff] }
0x1927   : > { %7620 = vrot.lane.b32.xlu1 %v16137_v22, %s10147_s22 }
0x192b   : > { %7650 = vrot.lane.b32.xlu1 %v16138_v27, %s10147_s22 }
0x192f   : > { %7648 = vrot.lane.b32.xlu1 %v16139_v13, %s10147_s22 }
0x1933   : > { %7646 = vrot.lane.b32.xlu1 %v16140_v17, %s10147_s22 }
0x1937   : > { %7644 = vrot.lane.b32.xlu1 %v16141_v44, %s10147_s22 }
0x193b   : > { %7642 = vrot.lane.b32.xlu1 %v16142_v40, %s10147_s22 }
0x193f   : > { %7640 = vrot.lane.b32.xlu1 %v16143_v14, %s10147_s22 }
0x1943   : > { %7638 = vrot.lane.b32.xlu1 %v16144_v57, %s10147_s22 }
0x1947   : > { %7636 = vrot.lane.b32.xlu1 %v16145_v37, %s10147_s22 }
0x194b   : > { %7634 = vrot.lane.b32.xlu1 %v16147_v47, %s10147_s22  ;;  %v16742_v47 = vld [vmem:[#allocation127_spill] sm:$0xff] }
0x194f   : > { %7632 = vrot.lane.b32.xlu1 %v16148_v45, %s10147_s22 }
0x1953   : > { %7630 = vrot.lane.b32.xlu1 %v16149_v24, %s10147_s22  ;;  %v7619_v24 = vpop.permute.xlu0 %7618 }
0x1957   : > { %7692 = vrot.lane.b32.xlu1 %v11620_v9, %s10147_s22  ;;  %v16734_v9 = vld [vmem:[#allocation41_spill] sm:$0xff]  ;;  %v7617_v39 = vpop.permute.xlu0 %7616 }
0x195b   : > { %7688 = vrot.lane.b32.xlu1 %v11633_v15, %s10147_s22  ;;  %v16735_v15 = vld [vmem:[#allocation35_spill] sm:$0xff]  ;;  %v7615_v51 = vpop.permute.xlu0 %7614 }
0x195f   : > { %7684 = vrot.lane.b32.xlu1 %v11647_v31, %s10147_s22  ;;  %v16736_v31 = vld [vmem:[#allocation115_spill] sm:$0xff]  ;;  %v7613_v29 = vpop.permute.xlu0 %7612 }
0x1963   : > { %7680 = vrot.lane.b32.xlu1 %v11661_v21, %s10147_s22  ;;  %v16737_v21 = vld [vmem:[#allocation117_spill] sm:$0xff]  ;;  %v7611_v23 = vpop.permute.xlu0 %7610 }
0x1967   : > { %7676 = vrot.lane.b32.xlu1 %v11675_v61, %s10147_s22  ;;  %v16738_v61 = vld [vmem:[#allocation119_spill] sm:$0xff]  ;;  %v7609_v28 = vpop.permute.xlu0 %7608 }
0x196b   : > { %7672 = vrot.lane.b32.xlu1 %v11687_v35, %s10147_s22  ;;  %v16739_v35 = vld [vmem:[#allocation121_spill] sm:$0xff]  ;;  %v7607_v36 = vpop.permute.xlu0 %7606 }
0x196f   : > { %7668 = vrot.lane.b32.xlu1 %v16224_v2, %s10147_s22  ;;  %v7605_v34 = vpop.permute.xlu0 %7604 }
0x1973   : > { %7664 = vrot.lane.b32.xlu1 %v16734_v9, %s10147_s22  ;;  %v7603_v63 = vpop.permute.xlu0 %7602  ;;  %v16751_v9 = vld [vmem:[#allocation114_spill] sm:$0xff] }
0x1977   : > { %7722 = vrot.lane.b32.xlu1 %v16735_v15, %s10147_s22  ;;  %v16752_v15 = vld [vmem:[#allocation116_spill] sm:$0xff] }
0x197b   : > { %7718 = vrot.lane.b32.xlu1 %v16736_v31, %s10147_s22  ;;  %v16753_v31 = vld [vmem:[#allocation118_spill] sm:$0xff] }
0x197f   : > { %7714 = vrot.lane.b32.xlu1 %v16737_v21, %s10147_s22  ;;  %v16754_v21 = vld [vmem:[#allocation120_spill] sm:$0xff] }
0x1983   : > { %7710 = vrot.lane.b32.xlu1 %v16738_v61, %s10147_s22  ;;  %v16755_v61 = vld [vmem:[#allocation122_spill] sm:$0xff] }
0x1987   : > { %7706 = vrot.lane.b32.xlu1 %v16739_v35, %s10147_s22  ;;  %v16756_v35 = vld [vmem:[#allocation124_spill] sm:$0xff] }
0x198b   : > { %7702 = vrot.lane.b32.xlu1 %v16740_v38, %s10147_s22  ;;  %v16757_v38 = vld [vmem:[#allocation126_spill] sm:$0xff] }
0x198f   : > { %7698 = vrot.lane.b32.xlu1 %v16741_v11, %s10147_s22  ;;  %v7574_v22 = vpop.xlane.xlu1 %7573 }
0x1990   : > { %v7575_v27 = vsub.f32 %v7493_v25, %v7574_v22  ;;  %v7576_v13 = vsub.f32 %v7495_v6, %v7574_v22  ;;  %v7577_v17 = vsub.f32 %v7564_v32, %v7574_v22  ;;  %v7578_v44 = vsub.f32 %v7566_v19, %v7574_v22  ;;  %v7601_v32 = vpop.permute.xlu0 %7600  ;;  %v16746_v19 = vld [vmem:[#allocation112_spill] sm:$0xff]  ;;  %v16747_v25 = vld [vmem:[#allocation113_spill] sm:$0xff] }
0x1992   : > { %v7579_v40 = vmul.f32 1.442695, %v7575_v27  ;;  %v7581_v14 = vmul.f32 1.442695, %v7576_v13  ;;  %v7583_v57 = vmul.f32 1.442695, %v7577_v17 }
0x1993   : > { %v7585_v37 = vmul.f32 1.442695, %v7578_v44  ;;  %7694 = vrot.lane.b32.xlu1 %v16742_v47, %s10147_s22  ;;  %v7657_v45 = vpop.permute.xlu1 %7656 }
0x1994   : > { %10067 = vpow2.f32 %v7579_v40  ;;  %9470 = vmatprep.subr.mxu0 %v7657_v45  ;;  %v7599_v49 = vpop.permute.xlu0 %7598 }
0x1995   : > { %10069 = vpow2.f32 %v7581_v14  ;;  %9471 = vmatpush3.msra.mxu0 %v7625_v60 }
0x1996   : > { %10071 = vpow2.f32 %v7583_v57 }
0x1997   : > { %10073 = vpow2.f32 %v7585_v37  ;;  %v7655_v2 = vpop.permute.xlu1 %7654 }
0x1998   : > { %9472 = vmatprep.subr.mxu0 %v7655_v2 }
0x199b   : > { %v7623_v58 = vpop.permute.xlu1 %7622 }
0x199c   : > { %9473 = vmatpush3.msra.mxu0 %v7623_v58 }
0x199f   : > { %v7653_v5 = vpop.permute.xlu1 %7652 }
0x19a0   : > { %9474 = vmatprep.subr.mxu0 %v7653_v5 }
0x19a1   : > { %v15549_v30 = vpop.eup %10067 }
0x19a2   : > { %v15551_v56 = vpop.eup %10069 }
0x19a3   : > { %v15553_v62 = vpop.eup %10071  ;;  %v7621_v53 = vpop.permute.xlu1 %7620  ;;  %v7587_v59 = vadd.f32 %v15551_v56, %v15549_v30 }
0x19a4   : > { %v15557_v48 = vpop.eup %10073  ;;  %9475 = vmatpush3.msra.mxu0 %v7621_v53 }
0x19a5   : > { %v7588_v0 = vadd.f32 %v15553_v62, %v7587_v59  ;;  %v7589_v4 = vsel %vm1835_vm4, %v15557_v48, 0.0 }
0x19a7   : > { %v7651_v33 = vpop.permute.xlu1 %7650  ;;  %v7590_v42 = vadd.f32 %v7589_v4, %v7588_v0 }
0x19a8   : > { %9476 = vmatprep.subr.mxu0 %v7651_v33 }
0x19a9   : > { %7591 = vadd.xlane.f32.xlu0 %v7590_v42  ;;  %9477 = vmatpush3.msra.mxu0 %v7619_v24 }
0x19ab   : > { %v7649_v16 = vpop.permute.xlu1 %7648 }
0x19ac   : > { %9478 = vmatprep.subr.mxu0 %v7649_v16 }
0x19ad   : > { %9479 = vmatpush3.msra.mxu0 %v7617_v39 }
0x19af   : > { %v7647_v7 = vpop.permute.xlu1 %7646 }
0x19b0   : > { %9480 = vmatprep.subr.mxu0 %v7647_v7 }
0x19b1   : > { %9481 = vmatpush3.msra.mxu0 %v7615_v51 }
0x19b3   : > { %v7645_v10 = vpop.permute.xlu1 %7644 }
0x19b4   : > { %9482 = vmatprep.subr.mxu0 %v7645_v10 }
0x19b5   : > { %9483 = vmatpush3.msra.mxu0 %v7613_v29 }
0x19b7   : > { %v7643_v55 = vpop.permute.xlu1 %7642 }
0x19b8   : > { %9484 = vmatprep.subr.mxu0 %v7643_v55 }
0x19b9   : > { %9485 = vmatpush3.msra.mxu0 %v7611_v23 }
0x19bb   : > { %v7641_v3 = vpop.permute.xlu1 %7640 }
0x19bc   : > { %9486 = vmatprep.subr.mxu0 %v7641_v3 }
0x19bd   : > { %9487 = vmatpush3.msra.mxu0 %v7609_v28 }
0x19bf   : > { %7690 = vrot.lane.b32.xlu0 %v16743_v52, %s10147_s22  ;;  %v7639_v54 = vpop.permute.xlu1 %7638 }
0x19c0   : > { %9488 = vmatprep.subr.mxu0 %v7639_v54 }
0x19c1   : > { %9489 = vmatpush3.msra.mxu0 %v7607_v36 }
0x19c3   : > { %7686 = vrot.lane.b32.xlu0 %v16744_v12, %s10147_s22  ;;  %v7637_v41 = vpop.permute.xlu1 %7636 }
0x19c4   : > { %9490 = vmatprep.subr.mxu0 %v7637_v41 }
0x19c5   : > { %9491 = vmatpush3.msra.mxu0 %v7605_v34 }
0x19c7   : > { %7682 = vrot.lane.b32.xlu0 %v16745_v18, %s10147_s22  ;;  %v7635_v26 = vpop.permute.xlu1 %7634 }
0x19c8   : > { %9492 = vmatprep.subr.mxu0 %v7635_v26 }
0x19c9   : > { %9493 = vmatpush3.msra.mxu0 %v7603_v63 }
0x19cb   : > { %7678 = vrot.lane.b32.xlu0 %v16746_v19, %s10147_s22  ;;  %v7633_v8 = vpop.permute.xlu1 %7632 }
0x19cc   : > { %9494 = vmatprep.subr.mxu0 %v7633_v8 }
0x19cd   : > { %9495 = vmatpush3.msra.mxu0 %v7601_v32 }
0x19cf   : > { %7674 = vrot.lane.b32.xlu0 %v16747_v25, %s10147_s22  ;;  %v7631_v6 = vpop.permute.xlu1 %7630 }
0x19d0   : > { %9496 = vmatprep.subr.mxu0 %v7631_v6 }
0x19d1   : > { %9497 = vmatpush3.msra.mxu0 %v7599_v49 }
0x19d2   : > { %7861 = vmatprep.subr.mxu0 %v16007_v20 }
0x19d3   : > { %7670 = vrot.lane.b32.xlu0 %v16748_v50, %s10147_s22  ;;  %v7693_v60 = vpop.permute.xlu1 %7692 }
0x19d7   : > { %7666 = vrot.lane.b32.xlu0 %v16749_v46, %s10147_s22  ;;  %v7689_v11 = vpop.permute.xlu1 %7688 }
0x19db   : > { %7662 = vrot.lane.b32.xlu0 %v16750_v43, %s10147_s22  ;;  %v7685_v22 = vpop.permute.xlu1 %7684 }
0x19df   : > { %7720 = vrot.lane.b32.xlu0 %v16751_v9, %s10147_s22  ;;  %v7681_v17 = vpop.permute.xlu1 %7680 }
0x19e3   : > { %7716 = vrot.lane.b32.xlu0 %v16752_v15, %s10147_s22  ;;  %v7677_v40 = vpop.permute.xlu1 %7676 }
0x19e7   : > { %7712 = vrot.lane.b32.xlu0 %v16753_v31, %s10147_s22  ;;  %v7673_v2 = vpop.permute.xlu1 %7672 }
0x19eb   : > { %7708 = vrot.lane.b32.xlu0 %v16754_v21, %s10147_s22  ;;  %v7669_v58 = vpop.permute.xlu1 %7668 }
0x19ef   : > { %7704 = vrot.lane.b32.xlu0 %v16755_v61, %s10147_s22 }
0x19f3   : > { %7700 = vrot.lane.b32.xlu0 %v16756_v35, %s10147_s22 }
0x19f7   : > { %7696 = vrot.lane.b32.xlu0 %v16757_v38, %s10147_s22  ;;  %s8018_s22 = scalar_lea.sflag [#allocation3], %s363_s28 }
0x1a32   : > { %v7592_v27 = vpop.xlane.xlu0 %7591 }
0x1a33   : > { %10075 = vrcp.f32 %v7592_v27 }
0x1a36   : > { %v7691_v13 = vpop.permute.xlu0 %7690 }
0x1a3a   : > { %v7687_v44 = vpop.permute.xlu0 %7686 }
0x1a3e   : > { %v7683_v14 = vpop.permute.xlu0 %7682 }
0x1a40   : > { %v15593_v57 = vpop.eup %10075 }
0x1a41   : > { %v7595_v37 = vmul.f32 %v15593_v57, %v15551_v56  ;;  %v7594_v47 = vmul.f32 %v15593_v57, %v15549_v30  ;;  %v7597_v24 = vmul.f32 %v15593_v57, %v15557_v48  ;;  %v7665_v30 = vpop.permute.xlu1 %7664  ;;  %v7596_v3 = vmul.f32 %v15593_v57, %v15553_v62 }
0x1a42   : > { %v7679_v45 = vpop.permute.xlu0 %7678 }
0x1a43   : > { %7855 = vmatprep.mubr.f32.mxu0 %v7595_v37 }
0x1a44   : > { %7856 = vmatmul.mubr.f32.vlgmr.msra.gmra.mxu0 %v7594_v47 }
0x1a45   : > { %7862 = vmatpush1.msra.mxu0 %v7693_v60  ;;  %8788 = vmatprep.mubr.msk.f32.mxu0 %vm1835_vm4, %v7597_v24  ;;  %v7723_v53 = vpop.permute.xlu1 %7722 }
0x1a46   : > { %7863 = vmatprep.subr.mxu0 %v16007_v20  ;;  %v7675_v39 = vpop.permute.xlu0 %7674 }
0x1a47   : > { %7864 = vmatpush1.msra.mxu0 %v7691_v13 }
0x1a48   : > { %7865 = vmatprep.subr.mxu0 %v16007_v20 }
0x1a49   : > { %7866 = vmatpush1.msra.mxu0 %v7689_v11  ;;  %v7719_v48 = vpop.permute.xlu1 %7718 }
0x1a4a   : > { %7867 = vmatprep.subr.mxu0 %v16007_v20  ;;  %v7671_v5 = vpop.permute.xlu0 %7670 }
0x1a4b   : > { %7868 = vmatpush1.msra.mxu0 %v7687_v44 }
0x1a4c   : > { %7869 = vmatprep.subr.mxu0 %v16007_v20 }
0x1a4d   : > { %7870 = vmatpush1.msra.mxu0 %v7685_v22  ;;  %v7715_v29 = vpop.permute.xlu1 %7714 }
0x1a4e   : > { %7871 = vmatprep.subr.mxu0 %v16007_v20  ;;  %v7667_v51 = vpop.permute.xlu0 %7666 }
0x1a4f   : > { %7872 = vmatpush1.msra.mxu0 %v7683_v14 }
0x1a50   : > { %7873 = vmatprep.subr.mxu0 %v16007_v20 }
0x1a51   : > { %7874 = vmatpush1.msra.mxu0 %v7681_v17  ;;  %v7711_v33 = vpop.permute.xlu1 %7710 }
0x1a52   : > { %7875 = vmatprep.subr.mxu0 %v16007_v20  ;;  %v7663_v56 = vpop.permute.xlu0 %7662 }
0x1a53   : > { %7876 = vmatpush1.msra.mxu0 %v7679_v45 }
0x1a54   : > { %7877 = vmatprep.subr.mxu0 %v16007_v20 }
0x1a55   : > { %7878 = vmatpush1.msra.mxu0 %v7677_v40  ;;  %v7707_v16 = vpop.permute.xlu1 %7706 }
0x1a56   : > { %7879 = vmatprep.subr.mxu0 %v16007_v20  ;;  %v7721_v59 = vpop.permute.xlu0 %7720 }
0x1a57   : > { %7880 = vmatpush1.msra.mxu0 %v7675_v39 }
0x1a58   : > { %7881 = vmatprep.subr.mxu0 %v16007_v20 }
0x1a59   : > { %7882 = vmatpush1.msra.mxu0 %v7673_v2  ;;  %v7703_v7 = vpop.permute.xlu1 %7702 }
0x1a5a   : > { %7883 = vmatprep.subr.mxu0 %v16007_v20  ;;  %v7717_v0 = vpop.permute.xlu0 %7716 }
0x1a5b   : > { %7884 = vmatpush1.msra.mxu0 %v7671_v5 }
0x1a5c   : > { %7885 = vmatprep.subr.mxu0 %v16007_v20 }
0x1a5d   : > { %7886 = vmatpush1.msra.mxu0 %v7669_v58  ;;  %v7699_v10 = vpop.permute.xlu1 %7698 }
0x1a5e   : > { %7887 = vmatprep.subr.mxu0 %v16007_v20  ;;  %v7713_v4 = vpop.permute.xlu0 %7712 }
0x1a5f   : > { %7888 = vmatpush1.msra.mxu0 %v7667_v51 }
0x1a60   : > { %7889 = vmatprep.subr.mxu0 %v16007_v20 }
0x1a61   : > { %7890 = vmatpush1.msra.mxu0 %v7665_v30  ;;  %v7695_v36 = vpop.permute.xlu1 %7694 }
0x1a62   : > { %7891 = vmatprep.subr.mxu0 %v16007_v20  ;;  %v7709_v42 = vpop.permute.xlu0 %7708 }
0x1a63   : > { %7892 = vmatpush1.msra.mxu0 %v7663_v56 }
0x1a64   : > { %7895 = vmatprep.subr.mxu0 %v16007_v20 }
0x1a65   : > { %8787 = vmatpush2.msk.msra.mxu0 %vm1868_vm3, %v7723_v53 }
0x1a66   : > { %7897 = vmatprep.subr.mxu0 %v16007_v20  ;;  %v7705_v23 = vpop.permute.xlu0 %7704 }
0x1a67   : > { %7898 = vmatpush2.msra.mxu0 %v7721_v59 }
0x1a68   : > { %7899 = vmatprep.subr.mxu0 %v16007_v20 }
0x1a69   : > { %7900 = vmatpush2.msra.mxu0 %v7719_v48 }
0x1a6a   : > { %7901 = vmatprep.subr.mxu0 %v16007_v20  ;;  %v7701_v28 = vpop.permute.xlu0 %7700 }
0x1a6b   : > { %7902 = vmatpush2.msra.mxu0 %v7717_v0 }
0x1a6c   : > { %7903 = vmatprep.subr.mxu0 %v16007_v20 }
0x1a6d   : > { %7904 = vmatpush2.msra.mxu0 %v7715_v29 }
0x1a6e   : > { %7905 = vmatprep.subr.mxu0 %v16007_v20  ;;  %v7697_v55 = vpop.permute.xlu0 %7696 }
0x1a6f   : > { %7906 = vmatpush2.msra.mxu0 %v7713_v4 }
0x1a70   : > { %7907 = vmatprep.subr.mxu0 %v16007_v20 }
0x1a71   : > { %7908 = vmatpush2.msra.mxu0 %v7711_v33 }
0x1a72   : > { %7909 = vmatprep.subr.mxu0 %v16007_v20 }
0x1a73   : > { %7910 = vmatpush2.msra.mxu0 %v7709_v42 }
0x1a74   : > { %7911 = vmatprep.subr.mxu0 %v16007_v20 }
0x1a75   : > { %7912 = vmatpush2.msra.mxu0 %v7707_v16 }
0x1a76   : > { %7913 = vmatprep.subr.mxu0 %v16007_v20 }
0x1a77   : > { %7914 = vmatpush2.msra.mxu0 %v7705_v23 }
0x1a78   : > { %7915 = vmatprep.subr.mxu0 %v16007_v20 }
0x1a79   : > { %7916 = vmatpush2.msra.mxu0 %v7703_v7 }
0x1a7a   : > { %7917 = vmatprep.subr.mxu0 %v16007_v20 }
0x1a7b   : > { %7918 = vmatpush2.msra.mxu0 %v7701_v28 }
0x1a7c   : > { %7919 = vmatprep.subr.mxu0 %v16007_v20 }
0x1a7d   : > { %7920 = vmatpush2.msra.mxu0 %v7699_v10 }
0x1a7e   : > { %7921 = vmatprep.subr.mxu0 %v16007_v20 }
0x1a7f   : > { %7922 = vmatpush2.msra.mxu0 %v7697_v55 }
0x1a80   : > { %7923 = vmatprep.subr.mxu0 %v16007_v20  ;;  %v8791_v20 = vld [vmem:[%s15684_s9] ss:$0 sm:$0xff] }
0x1a81   : > { %7924 = vmatpush2.msra.mxu0 %v7695_v36 }
0x1a82   : > { %7926 = vmatmul.mubr.f32.vlgmr.msra.gmra.mxu0 %v7596_v3 }
0x1b04   : > { %v9498_v34 = vpop.f32.mrf.mxu0 }
0x1b06   : > { %v9499_v52 = vpop.f32.mrf.mxu0 }
0x1b07   : > { %v9500_v54 = vadd.f32 %v9499_v52, %v9498_v34 }
0x1b42   : > { %v7927_v12 = vpop.f32.mrf.mxu0 }
0x1b43   : > { %v7928_v41 = vadd.f32 %v9500_v54, %v7927_v12 }
0x1b44   : > { %v7929_v63 = vpop.f32.mrf.mxu0 }
0x1b45   : > { %9946 = vmatmul.mubr.msk.f32.vlgmr.msra.gmra.mxu1 %vm1500_vm2, %v7928_v41 }
0x1c05   : > { %v8003_v18 = vpop.f32.mrf.mxu1 }
0x1c06   : > { %v8007_v62 = vadd.f32 %v8003_v18, %v15482_v1 }
0x1c07   : > { %v9947_v26 = vpop.f32.mrf.mxu1 }
0x1c08   : > { %v8015_v32 = vadd.f32 %v8791_v20, %v8007_v62 }
0x1c0a   : > { %8016 = vst.msk [vmem:[%s365_s15] sm:$0xff] %vm450_vm1, %v8015_v32 }
0x1c0b   : > { %10090 = shalt.err (!%p10087_p3)
}
0x1c0c   : > { %s10091_s30 = scalar_lea.hbm %s8029_s26, 128  ;;  %s10095_s18 = scalar_lea.hbm %s15685_s10, 256 }
0x1c0d   : > { %p10092_p4 = scmp.ne.s32.totalorder %s8029_s26, %s10091_s30  ;;  %p10096_p9 = scmp.lt.s32.totalorder %s8029_s26, %s15685_s10 }
0x1c0e   : > { %p10097_p10 = scmp.lt.s32.totalorder %s10095_s18, %s10091_s30 }
0x1c0f   : > { %p10093_p7 = pnand %p10092_p4, %p10242_p5 }
0x1c10   : > { %p10098_p11 = por %p10097_p10, %p10096_p9 }
0x1c11   : > { %p10094_p8 = pneg %p10093_p7 }
0x1c13   : > { %p10099_p12 = pnand %p10098_p11, %p10094_p8 }
0x1c15   : > { %10102 = shalt.err (!%p10099_p12)
}
0x1c16   : > { %9949 = dma.vmem_to_hbm [thread:$0]  (%p10242_p5), %s8032_s20, 128, %s8029_s26, %s8018_s22  }
0x1c17 PF: > { %p9955_p13 = scmp.ge.s32.totalorder %s10137_s16, 2  ;;  %s8043_s11 = sand.u32 1, %s10125_s13  }
0x1c18   : > { %s8044_s25 = scalar_lea.sflag [#allocation3], %s8043_s11 }
0x1c19   : > { %p9952_p0 = pnand %p9955_p13, %p10246_p6 }
0x1c1b   : > { %p9953_p1 = pneg %p9952_p0 }
0x1c1d   : > { %10120 = dma.done.wait (%p9953_p1), %s8044_s25, 128  }
0x1c1e   : > { %10122 = vsyncadd (%p9953_p1), %s8044_s25, 4294967168  ;;  %s16758_s17 = sld [smem:[#allocation5_spill]]  ;;  %p20_p2 = scmp.ge.s32.totalorder %s10229_s19, 4  }
0x1c1f   : > { %s16759_s15 = sld [smem:[#allocation6_spill]]  ;;  %s16760_s13 = smov %s10129_s14 }
0x1c20   : > { %s16762_s16 = smov %s10229_s19  ;;  %22 = sbr.rel (!%p20_p2) target bundleno = 3 (0x3), region = 98 }
0x1c24   : > { %s16761_s14 = smov %s16758_s17 }
0x1c25   :  { %8049 = vsyncpa [#allocation3], 1 }
0x1c26   :  { %8051 = vsyncpa [#allocation3 + $0x1], 1 }

</bundles_post_ra>
